<compile_context>
chip_gen: v7x
topology: tpu7x:2x2x1
jax: 0.10.0
libtpu: 0.0.40
codegen_flags: <defaults>
</compile_context>

<pallas_src>
import functools
import math

import jax
import jax.numpy as jnp
from jax.experimental import pallas as pl
from jax.experimental.pallas import tpu as pltpu


# ----------------------------------------------------------------------------
# Config (small shapes consistent with the module)
# ----------------------------------------------------------------------------
class Config:
    image_size = 64
    patch_size = 16
    channels = 3
    dim = 64
    depth = 2
    heads = 4
    mlp_dim = 128
    decoder_input_channels = 16
    reconstruction = True


# ----------------------------------------------------------------------------
# Fused transformer-encoder kernel (one grid step == one batch element)
# ----------------------------------------------------------------------------
def _encoder_kernel(patch_ref, w_pe_ref, b_pe_ref, pos_ref,
                    ln1_g_ref, ln1_b_ref,
                    w_q_ref, b_q_ref, w_k_ref, b_k_ref, w_v_ref, b_v_ref,
                    w_o_ref, b_o_ref, ln2_g_ref, ln2_b_ref,
                    w_m1_ref, b_m1_ref, w_m2_ref, b_m2_ref,
                    lnf_g_ref, lnf_b_ref, o_ref,
                    *, depth, heads, scale, eps):
    def ln(x, g, b):
        mu = jnp.mean(x, axis=-1, keepdims=True)
        xc = x - mu
        var = jnp.mean(xc * xc, axis=-1, keepdims=True)
        return xc * jax.lax.rsqrt(var + eps) * g + b

    def mm(a, w):  # bf16 MXU inputs, f32 accumulation
        return jnp.dot(a.astype(jnp.bfloat16), w.astype(jnp.bfloat16),
                       preferred_element_type=jnp.float32)

    # patch embedding + positional embedding
    tok = mm(patch_ref[0], w_pe_ref[...]) + b_pe_ref[...] + pos_ref[...]

    for l in range(depth):
        # ---- multi-head self attention (pre-norm) ----
        h = ln(tok, ln1_g_ref[l], ln1_b_ref[l])
        attn = jnp.zeros_like(tok)
        for hh in range(heads):
            q = mm(h, w_q_ref[l, hh]) + b_q_ref[l, hh]        # (N, hd)
            k = mm(h, w_k_ref[l, hh]) + b_k_ref[l, hh]
            v = mm(h, w_v_ref[l, hh]) + b_v_ref[l, hh]
            s = mm(q, k.T) * scale                            # (N, N)
            s = s - jnp.max(s, axis=-1, keepdims=True)
            p = jnp.exp(s)
            p = p * pl.reciprocal(jnp.sum(p, axis=-1, keepdims=True), approx=True)
            o = mm(p, v)                                      # (N, hd)
            attn = attn + mm(o, w_o_ref[l, hh])               # (N, dim)
        tok = tok + attn + b_o_ref[l]

        # ---- MLP (pre-norm) ----
        h = ln(tok, ln2_g_ref[l], ln2_b_ref[l])
        h = jax.nn.gelu(mm(h, w_m1_ref[l]) + b_m1_ref[l])
        tok = tok + mm(h, w_m2_ref[l]) + b_m2_ref[l]

    o_ref[0] = ln(tok, lnf_g_ref[...], lnf_b_ref[...]).astype(o_ref.dtype)


def _const_index_map(ndim):
    def imap(b):
        return (0,) * ndim
    return imap


def vit_forward(enc, cfg, x):
    """x: (B, C, H, W) f32 -> encoded tokens (B, N, dim) f32."""
    B, C, H, W = x.shape
    P = cfg.patch_size
    nh, nw = H // P, W // P
    N = nh * nw
    PD = P * P * C
    # patchify (tiny XLA op); bf16 to halve DMA bytes into the kernel
    patches = (x.reshape(B, C, nh, P, nw, P)
                 .transpose(0, 2, 4, 3, 5, 1)
                 .reshape(B, N, PD)
                 .astype(jnp.bfloat16))

    weights = [
        enc["w_pe"], enc["b_pe"], enc["pos"],
        enc["ln1_g"], enc["ln1_b"],
        enc["w_q"], enc["b_q"], enc["w_k"], enc["b_k"], enc["w_v"], enc["b_v"],
        enc["w_o"], enc["b_o"], enc["ln2_g"], enc["ln2_b"],
        enc["w_m1"], enc["b_m1"], enc["w_m2"], enc["b_m2"],
        enc["lnf_g"], enc["lnf_b"],
    ]
    in_specs = [pl.BlockSpec((1, N, PD), lambda b: (b, 0, 0))]
    in_specs += [pl.BlockSpec(w.shape, _const_index_map(w.ndim)) for w in weights]

    hd = cfg.dim // cfg.heads
    kernel = functools.partial(_encoder_kernel, depth=cfg.depth, heads=cfg.heads,
                               scale=1.0 / math.sqrt(hd), eps=1e-5)
    return pl.pallas_call(
        kernel,
        out_shape=jax.ShapeDtypeStruct((B, N, cfg.dim), jnp.float32),
        grid=(B,),
        in_specs=in_specs,
        out_specs=pl.BlockSpec((1, N, cfg.dim), lambda b: (b, 0, 0)),
        compiler_params=pltpu.CompilerParams(dimension_semantics=("parallel",)),
    )(patches, *weights)


# ----------------------------------------------------------------------------
# Decoder: lane-dense conv3x3 matmul kernel (channel-major activations)
# ----------------------------------------------------------------------------
def _conv_matmul_kernel(w_ref, c_ref, b_ref, o_ref, *, act):
    """o = act(W @ cols + b).  W:(Cout,K) cols:(K,TN) b:(Cout,1) o:(Cout,TN)."""
    acc = jnp.dot(w_ref[...], c_ref[...], preferred_element_type=jnp.float32)
    acc = acc + b_ref[...]
    if act == "relu":
        acc = jnp.maximum(acc, 0.0)
    elif act == "tanh":
        acc = jnp.tanh(acc)
    o_ref[...] = acc.astype(o_ref.dtype)


def conv3x3_cm(x_cm, wmat, bvec, act="none"):
    """Channel-major conv3x3 (padding=1).

    x_cm : (Cin, B, H, W) f32   activations, channel-major
    wmat : (Cout, Cin*9)  bf16  pre-packed weights
    bvec : (Cout, 1)      f32   bias
    ->     (Cout, B, H, W) f32
    """
    Cin, B, H, W = x_cm.shape
    Cout = wmat.shape[0]
    K = Cin * 9
    M = B * H * W

    # im2col in XLA.  Channel-major layout means a plain stack+reshape gives
    # the (K, M) column matrix with NO transpose, and the kernel output
    # (Cout, M) reshapes straight to (Cout, B, H, W) with NO transpose.
    xp = jnp.pad(x_cm, ((0, 0), (0, 0), (1, 1), (1, 1)))
    shifts = [xp[:, :, dh:dh + H, dw:dw + W] for dh in range(3) for dw in range(3)]
    cols = jnp.stack(shifts, axis=1).reshape(K, M).astype(jnp.bfloat16)

    # 2-way parallel grid over the big spatial axis (feeds both v7x TCs).
    TN = M // 2 if (M % 256 == 0 and M >= 256) else M

    out = pl.pallas_call(
        functools.partial(_conv_matmul_kernel, act=act),
        out_shape=jax.ShapeDtypeStruct((Cout, M), jnp.float32),
        grid=(M // TN,),
        in_specs=[
            pl.BlockSpec((Cout, K), lambda j: (0, 0)),
            pl.BlockSpec((K, TN), lambda j: (0, j)),
            pl.BlockSpec((Cout, 1), lambda j: (0, 0)),
        ],
        out_specs=pl.BlockSpec((Cout, TN), lambda j: (0, j)),
        compiler_params=pltpu.CompilerParams(dimension_semantics=("parallel",)),
    )(wmat, cols, bvec)
    return out.reshape(Cout, B, H, W)


def upsample2x_cm(x_cm):
    # TODO(synk): nearest-2x still materialized by XLA; could be folded into the
    # conv's column construction.
    return jnp.repeat(jnp.repeat(x_cm, 2, axis=2), 2, axis=3)


def decoder_forward(dec_packed, cfg, encoded):
    B, N, D = encoded.shape
    cd = cfg.decoder_input_channels
    hw = int(math.isqrt(N * D // cd))
    # tokens -> (C, B, h, w) channel-major; the only decoder transposes are
    # this tiny one (8 KB) and the final one back to NCHW.
    x = encoded.reshape(B, cd, hw, hw).transpose(1, 0, 2, 3)   # (16, B, 8, 8)
    for wmat, bvec in dec_packed[:-1]:
        x = upsample2x_cm(x)
        x = conv3x3_cm(x, wmat, bvec, act="relu")
    wmat, bvec = dec_packed[-1]
    x = conv3x3_cm(x, wmat, bvec, act="tanh")
    return x.transpose(1, 0, 2, 3)                              # (B, 3, H, W)


# ----------------------------------------------------------------------------
# Parameter construction / packing
# ----------------------------------------------------------------------------
def init_params(key, cfg):
    def nrm(k, shape, std=0.02):
        return (std * jax.random.normal(k, shape)).astype(jnp.float32)

    N = (cfg.image_size // cfg.patch_size) ** 2
    patch_dim = cfg.channels * cfg.patch_size * cfg.patch_size
    keys = iter(jax.random.split(key, 64))
    p = {}
    p["w_pe"] = nrm(next(keys), (patch_dim, cfg.dim))
    p["b_pe"] = jnp.zeros((cfg.dim,), jnp.float32)
    p["pos"] = nrm(next(keys), (N, cfg.dim))
    layers = []
    for _ in range(cfg.depth):
        layers.append({
            "ln1_g": jnp.ones((cfg.dim,), jnp.float32),
            "ln1_b": jnp.zeros((cfg.dim,), jnp.float32),
            "w_qkv": nrm(next(keys), (cfg.dim, 3 * cfg.dim)),
            "b_qkv": jnp.zeros((3 * cfg.dim,), jnp.float32),
            "w_o": nrm(next(keys), (cfg.dim, cfg.dim)),
            "b_o": jnp.zeros((cfg.dim,), jnp.float32),
            "ln2_g": jnp.ones((cfg.dim,), jnp.float32),
            "ln2_b": jnp.zeros((cfg.dim,), jnp.float32),
            "w_m1": nrm(next(keys), (cfg.dim, cfg.mlp_dim)),
            "b_m1": jnp.zeros((cfg.mlp_dim,), jnp.float32),
            "w_m2": nrm(next(keys), (cfg.mlp_dim, cfg.dim)),
            "b_m2": jnp.zeros((cfg.dim,), jnp.float32),
        })
    p["layers"] = layers
    p["lnf_g"] = jnp.ones((cfg.dim,), jnp.float32)
    p["lnf_b"] = jnp.zeros((cfg.dim,), jnp.float32)

    # Decoder: 3x (nearest upsample x2 + conv3x3 + relu), final conv3x3 + tanh.
    cd = cfg.decoder_input_channels
    chans = [(cd, cd), (cd, cd // 2), (cd // 2, cd // 2), (cd // 2, cfg.channels)]
    convs = []
    for cin, cout in chans:
        convs.append((nrm(next(keys), (cout, cin, 3, 3)),
                      jnp.zeros((cout,), jnp.float32)))
    p["dec_convs"] = convs
    return p


def pack_encoder_params(p, cfg):
    """Stack per-layer weights, split q/k/v/out-proj per head, bf16 matmul weights."""
    dim, heads, depth, mlp = cfg.dim, cfg.heads, cfg.depth, cfg.mlp_dim
    hd = dim // heads
    bf = jnp.bfloat16

    def stack(key):
        return jnp.stack([l[key] for l in p["layers"]], axis=0)

    w_qkv = stack("w_qkv")                                   # (depth, dim, 3*dim)
    b_qkv = stack("b_qkv")                                   # (depth, 3*dim)

    def split_w(w):                                          # (depth,dim,dim)->(depth,heads,dim,hd)
        return w.reshape(depth, dim, heads, hd).transpose(0, 2, 1, 3).astype(bf)

    def split_b(b):                                          # (depth,dim)->(depth,heads,1,hd)
        return b.reshape(depth, heads, 1, hd)

    return {
        "w_pe": p["w_pe"].astype(bf),
        "b_pe": p["b_pe"].reshape(1, dim),
        "pos": p["pos"],
        "ln1_g": stack("ln1_g").reshape(depth, 1, dim),
        "ln1_b": stack("ln1_b").reshape(depth, 1, dim),
        "w_q": split_w(w_qkv[:, :, :dim]),
        "b_q": split_b(b_qkv[:, :dim]),
        "w_k": split_w(w_qkv[:, :, dim:2 * dim]),
        "b_k": split_b(b_qkv[:, dim:2 * dim]),
        "w_v": split_w(w_qkv[:, :, 2 * dim:]),
        "b_v": split_b(b_qkv[:, 2 * dim:]),
        "w_o": stack("w_o").reshape(depth, heads, hd, dim).astype(bf),
        "b_o": stack("b_o").reshape(depth, 1, dim),
        "ln2_g": stack("ln2_g").reshape(depth, 1, dim),
        "ln2_b": stack("ln2_b").reshape(depth, 1, dim),
        "w_m1": stack("w_m1").astype(bf),
        "b_m1": stack("b_m1").reshape(depth, 1, mlp),
        "w_m2": stack("w_m2").astype(bf),
        "b_m2": stack("b_m2").reshape(depth, 1, dim),
        "lnf_g": p["lnf_g"].reshape(1, dim),
        "lnf_b": p["lnf_b"].reshape(1, dim),
    }


def pack_decoder_params(p):
    """Pre-reshape conv weights to (Cout, Cin*9) bf16 and biases to (Cout, 1)."""
    packed = []
    for w, b in p["dec_convs"]:
        cout, cin, _, _ = w.shape
        packed.append((w.reshape(cout, cin * 9).astype(jnp.bfloat16),
                       b.reshape(cout, 1).astype(jnp.float32)))
    return packed


# ----------------------------------------------------------------------------
# Full model forward
# ----------------------------------------------------------------------------
def model_forward(enc, dec_packed, cfg, x):
    encoded = vit_forward(enc, cfg, x)
    if not cfg.reconstruction:
        return encoded
    recons = decoder_forward(dec_packed, cfg, encoded)
    return encoded, recons


# ----------------------------------------------------------------------------
if __name__ == "__main__":
    cfg = Config()
    key = jax.random.PRNGKey(0)
    kp, kx = jax.random.split(key)
    params = init_params(kp, cfg)
    enc_packed = pack_encoder_params(params, cfg)
    dec_packed = pack_decoder_params(params)

    x = jax.random.normal(
        kx, (2, cfg.channels, cfg.image_size, cfg.image_size), jnp.float32)

    fwd = jax.jit(lambda e, d, xx: model_forward(e, d, cfg, xx))
    encoded, recons = fwd(enc_packed, dec_packed, x)
    encoded = jax.block_until_ready(encoded)
    recons = jax.block_until_ready(recons)

    N = (cfg.image_size // cfg.patch_size) ** 2
    assert encoded.shape == (2, N, cfg.dim), encoded.shape
    assert recons.shape == (2, cfg.channels, cfg.image_size, cfg.image_size), recons.shape
    assert bool(jnp.all(jnp.isfinite(encoded))) and bool(jnp.all(jnp.isfinite(recons)))
    print("KERNEL_OK")
</pallas_src>

<mosaic_0001>
module attributes {stable_mosaic.version = 11 : i64} {
  func.func @_encoder_kernel(%arg0: i32, %arg1: memref<1x16x768xbf16, #tpu.memory_space<vmem>>, %arg2: memref<768x64xbf16, #tpu.memory_space<vmem>>, %arg3: memref<1x64xf32, #tpu.memory_space<vmem>>, %arg4: memref<16x64xf32, #tpu.memory_space<vmem>>, %arg5: memref<2x1x64xf32, #tpu.memory_space<vmem>>, %arg6: memref<2x1x64xf32, #tpu.memory_space<vmem>>, %arg7: memref<2x4x64x16xbf16, #tpu.memory_space<vmem>>, %arg8: memref<2x4x1x16xf32, #tpu.memory_space<vmem>>, %arg9: memref<2x4x64x16xbf16, #tpu.memory_space<vmem>>, %arg10: memref<2x4x1x16xf32, #tpu.memory_space<vmem>>, %arg11: memref<2x4x64x16xbf16, #tpu.memory_space<vmem>>, %arg12: memref<2x4x1x16xf32, #tpu.memory_space<vmem>>, %arg13: memref<2x4x16x64xbf16, #tpu.memory_space<vmem>>, %arg14: memref<2x1x64xf32, #tpu.memory_space<vmem>>, %arg15: memref<2x1x64xf32, #tpu.memory_space<vmem>>, %arg16: memref<2x1x64xf32, #tpu.memory_space<vmem>>, %arg17: memref<2x64x128xbf16, #tpu.memory_space<vmem>>, %arg18: memref<2x1x128xf32, #tpu.memory_space<vmem>>, %arg19: memref<2x128x64xbf16, #tpu.memory_space<vmem>>, %arg20: memref<2x1x64xf32, #tpu.memory_space<vmem>>, %arg21: memref<1x64xf32, #tpu.memory_space<vmem>>, %arg22: memref<1x64xf32, #tpu.memory_space<vmem>>, %arg23: memref<1x16x64xf32, #tpu.memory_space<vmem>>) attributes {dimension_semantics = [#tpu.dimension_semantics<parallel>], iteration_bounds = array<i64: 2>, scalar_prefetch = 0 : i64, scratch_operands = 0 : i64, tpu.core_type = #tpu.core_type<tc>, window_params = [{transform_indices = @transform_0, window_bounds = array<i64: 1, 16, 768>}, {pipeline_mode = #tpu.pipeline_mode<synchronous>, transform_indices = @transform_1, window_bounds = array<i64: 768, 64>}, {pipeline_mode = #tpu.pipeline_mode<synchronous>, transform_indices = @transform_2, window_bounds = array<i64: 1, 64>}, {pipeline_mode = #tpu.pipeline_mode<synchronous>, transform_indices = @transform_3, window_bounds = array<i64: 16, 64>}, {pipeline_mode = #tpu.pipeline_mode<synchronous>, transform_indices = @transform_4, window_bounds = array<i64: 2, 1, 64>}, {pipeline_mode = #tpu.pipeline_mode<synchronous>, transform_indices = @transform_5, window_bounds = array<i64: 2, 1, 64>}, {pipeline_mode = #tpu.pipeline_mode<synchronous>, transform_indices = @transform_6, window_bounds = array<i64: 2, 4, 64, 16>}, {pipeline_mode = #tpu.pipeline_mode<synchronous>, transform_indices = @transform_7, window_bounds = array<i64: 2, 4, 1, 16>}, {pipeline_mode = #tpu.pipeline_mode<synchronous>, transform_indices = @transform_8, window_bounds = array<i64: 2, 4, 64, 16>}, {pipeline_mode = #tpu.pipeline_mode<synchronous>, transform_indices = @transform_9, window_bounds = array<i64: 2, 4, 1, 16>}, {pipeline_mode = #tpu.pipeline_mode<synchronous>, transform_indices = @transform_10, window_bounds = array<i64: 2, 4, 64, 16>}, {pipeline_mode = #tpu.pipeline_mode<synchronous>, transform_indices = @transform_11, window_bounds = array<i64: 2, 4, 1, 16>}, {pipeline_mode = #tpu.pipeline_mode<synchronous>, transform_indices = @transform_12, window_bounds = array<i64: 2, 4, 16, 64>}, {pipeline_mode = #tpu.pipeline_mode<synchronous>, transform_indices = @transform_13, window_bounds = array<i64: 2, 1, 64>}, {pipeline_mode = #tpu.pipeline_mode<synchronous>, transform_indices = @transform_14, window_bounds = array<i64: 2, 1, 64>}, {pipeline_mode = #tpu.pipeline_mode<synchronous>, transform_indices = @transform_15, window_bounds = array<i64: 2, 1, 64>}, {pipeline_mode = #tpu.pipeline_mode<synchronous>, transform_indices = @transform_16, window_bounds = array<i64: 2, 64, 128>}, {pipeline_mode = #tpu.pipeline_mode<synchronous>, transform_indices = @transform_17, window_bounds = array<i64: 2, 1, 128>}, {pipeline_mode = #tpu.pipeline_mode<synchronous>, transform_indices = @transform_18, window_bounds = array<i64: 2, 128, 64>}, {pipeline_mode = #tpu.pipeline_mode<synchronous>, transform_indices = @transform_19, window_bounds = array<i64: 2, 1, 64>}, {pipeline_mode = #tpu.pipeline_mode<synchronous>, transform_indices = @transform_20, window_bounds = array<i64: 1, 64>}, {pipeline_mode = #tpu.pipeline_mode<synchronous>, transform_indices = @transform_21, window_bounds = array<i64: 1, 64>}, {transform_indices = @transform_22, window_bounds = array<i64: 1, 16, 64>}]} {
    %c0 = arith.constant 0 : index
    %c0_0 = arith.constant 0 : index
    %c0_1 = arith.constant 0 : index
    %0 = vector.load %arg1[%c0, %c0_0, %c0_1] : memref<1x16x768xbf16, #tpu.memory_space<vmem>>, vector<1x16x768xbf16>
    %1 = vector.shape_cast %0 : vector<1x16x768xbf16> to vector<16x768xbf16>
    %c0_2 = arith.constant 0 : index
    %c0_3 = arith.constant 0 : index
    %2 = vector.load %arg2[%c0_2, %c0_3] : memref<768x64xbf16, #tpu.memory_space<vmem>>, vector<768x64xbf16>
    %cst = arith.constant dense<0.000000e+00> : vector<16x64xf32>
    %3 = tpu.matmul %1, %2, %cst {dimension_numbers = #tpu.dot_dimension_numbers<[1], [0], [0], [1], [0, 0, 1, 1], [], []>} : vector<16x768xbf16>, vector<768x64xbf16>, vector<16x64xf32> -> vector<16x64xf32>
    %c0_4 = arith.constant 0 : index
    %c0_5 = arith.constant 0 : index
    %4 = vector.load %arg3[%c0_4, %c0_5] : memref<1x64xf32, #tpu.memory_space<vmem>>, vector<1x64xf32>
    %5 = vector.broadcast %4 : vector<1x64xf32> to vector<16x64xf32>
    %6 = arith.addf %3, %5 : vector<16x64xf32>
    %c0_6 = arith.constant 0 : index
    %c0_7 = arith.constant 0 : index
    %7 = vector.load %arg4[%c0_6, %c0_7] : memref<16x64xf32, #tpu.memory_space<vmem>>, vector<16x64xf32>
    %8 = arith.addf %6, %7 : vector<16x64xf32>
    %c0_8 = arith.constant 0 : index
    %c0_9 = arith.constant 0 : index
    %c0_10 = arith.constant 0 : index
    %9 = vector.load %arg5[%c0_8, %c0_9, %c0_10] : memref<2x1x64xf32, #tpu.memory_space<vmem>>, vector<1x1x64xf32>
    %10 = vector.shape_cast %9 : vector<1x1x64xf32> to vector<1x64xf32>
    %c0_11 = arith.constant 0 : index
    %c0_12 = arith.constant 0 : index
    %c0_13 = arith.constant 0 : index
    %11 = vector.load %arg6[%c0_11, %c0_12, %c0_13] : memref<2x1x64xf32, #tpu.memory_space<vmem>>, vector<1x1x64xf32>
    %12 = vector.shape_cast %11 : vector<1x1x64xf32> to vector<1x64xf32>
    %cst_14 = arith.constant dense<0.000000e+00> : vector<16xf32>
    %13 = vector.multi_reduction <add>, %8, %cst_14 [1] : vector<16x64xf32> to vector<16xf32>
    %14 = vector.shape_cast %13 : vector<16xf32> to vector<16x1xf32>
    %cst_15 = arith.constant 6.400000e+01 : f32
    %15 = vector.broadcast %cst_15 : f32 to vector<16x1xf32>
    %16 = arith.divf %14, %15 : vector<16x1xf32>
    %17 = vector.broadcast %16 : vector<16x1xf32> to vector<16x64xf32>
    %18 = arith.subf %8, %17 : vector<16x64xf32>
    %19 = arith.mulf %18, %18 : vector<16x64xf32>
    %cst_16 = arith.constant dense<0.000000e+00> : vector<16xf32>
    %20 = vector.multi_reduction <add>, %19, %cst_16 [1] : vector<16x64xf32> to vector<16xf32>
    %21 = vector.shape_cast %20 : vector<16xf32> to vector<16x1xf32>
    %cst_17 = arith.constant 6.400000e+01 : f32
    %22 = vector.broadcast %cst_17 : f32 to vector<16x1xf32>
    %23 = arith.divf %21, %22 : vector<16x1xf32>
    %cst_18 = arith.constant 9.99999974E-6 : f32
    %24 = vector.broadcast %cst_18 : f32 to vector<16x1xf32>
    %25 = arith.addf %23, %24 : vector<16x1xf32>
    %26 = math.rsqrt %25 : vector<16x1xf32>
    %27 = vector.broadcast %26 : vector<16x1xf32> to vector<16x64xf32>
    %28 = arith.mulf %18, %27 : vector<16x64xf32>
    %29 = vector.broadcast %10 : vector<1x64xf32> to vector<16x64xf32>
    %30 = arith.mulf %28, %29 : vector<16x64xf32>
    %31 = vector.broadcast %12 : vector<1x64xf32> to vector<16x64xf32>
    %32 = arith.addf %30, %31 : vector<16x64xf32>
    %cst_19 = arith.constant 0.000000e+00 : f32
    %33 = vector.broadcast %cst_19 : f32 to vector<16x64xf32>
    %c0_20 = arith.constant 0 : index
    %c0_21 = arith.constant 0 : index
    %c0_22 = arith.constant 0 : index
    %c0_23 = arith.constant 0 : index
    %34 = vector.load %arg7[%c0_20, %c0_21, %c0_22, %c0_23] : memref<2x4x64x16xbf16, #tpu.memory_space<vmem>>, vector<1x1x64x16xbf16>
    %35 = vector.shape_cast %34 : vector<1x1x64x16xbf16> to vector<64x16xbf16>
    %36 = arith.truncf %32 : vector<16x64xf32> to vector<16x64xbf16>
    %cst_24 = arith.constant dense<0.000000e+00> : vector<16x16xf32>
    %37 = tpu.matmul %36, %35, %cst_24 {dimension_numbers = #tpu.dot_dimension_numbers<[1], [0], [0], [1], [0, 0, 1, 1], [], []>} : vector<16x64xbf16>, vector<64x16xbf16>, vector<16x16xf32> -> vector<16x16xf32>
    %c0_25 = arith.constant 0 : index
    %c0_26 = arith.constant 0 : index
    %c0_27 = arith.constant 0 : index
    %c0_28 = arith.constant 0 : index
    %38 = vector.load %arg8[%c0_25, %c0_26, %c0_27, %c0_28] : memref<2x4x1x16xf32, #tpu.memory_space<vmem>>, vector<1x1x1x16xf32>
    %39 = vector.shape_cast %38 : vector<1x1x1x16xf32> to vector<1x16xf32>
    %40 = vector.broadcast %39 : vector<1x16xf32> to vector<16x16xf32>
    %41 = arith.addf %37, %40 : vector<16x16xf32>
    %c0_29 = arith.constant 0 : index
    %c0_30 = arith.constant 0 : index
    %c0_31 = arith.constant 0 : index
    %c0_32 = arith.constant 0 : index
    %42 = vector.load %arg9[%c0_29, %c0_30, %c0_31, %c0_32] : memref<2x4x64x16xbf16, #tpu.memory_space<vmem>>, vector<1x1x64x16xbf16>
    %43 = vector.shape_cast %42 : vector<1x1x64x16xbf16> to vector<64x16xbf16>
    %44 = arith.truncf %32 : vector<16x64xf32> to vector<16x64xbf16>
    %cst_33 = arith.constant dense<0.000000e+00> : vector<16x16xf32>
    %45 = tpu.matmul %44, %43, %cst_33 {dimension_numbers = #tpu.dot_dimension_numbers<[1], [0], [0], [1], [0, 0, 1, 1], [], []>} : vector<16x64xbf16>, vector<64x16xbf16>, vector<16x16xf32> -> vector<16x16xf32>
    %c0_34 = arith.constant 0 : index
    %c0_35 = arith.constant 0 : index
    %c0_36 = arith.constant 0 : index
    %c0_37 = arith.constant 0 : index
    %46 = vector.load %arg10[%c0_34, %c0_35, %c0_36, %c0_37] : memref<2x4x1x16xf32, #tpu.memory_space<vmem>>, vector<1x1x1x16xf32>
    %47 = vector.shape_cast %46 : vector<1x1x1x16xf32> to vector<1x16xf32>
    %48 = vector.broadcast %47 : vector<1x16xf32> to vector<16x16xf32>
    %49 = arith.addf %45, %48 : vector<16x16xf32>
    %c0_38 = arith.constant 0 : index
    %c0_39 = arith.constant 0 : index
    %c0_40 = arith.constant 0 : index
    %c0_41 = arith.constant 0 : index
    %50 = vector.load %arg11[%c0_38, %c0_39, %c0_40, %c0_41] : memref<2x4x64x16xbf16, #tpu.memory_space<vmem>>, vector<1x1x64x16xbf16>
    %51 = vector.shape_cast %50 : vector<1x1x64x16xbf16> to vector<64x16xbf16>
    %52 = arith.truncf %32 : vector<16x64xf32> to vector<16x64xbf16>
    %cst_42 = arith.constant dense<0.000000e+00> : vector<16x16xf32>
    %53 = tpu.matmul %52, %51, %cst_42 {dimension_numbers = #tpu.dot_dimension_numbers<[1], [0], [0], [1], [0, 0, 1, 1], [], []>} : vector<16x64xbf16>, vector<64x16xbf16>, vector<16x16xf32> -> vector<16x16xf32>
    %c0_43 = arith.constant 0 : index
    %c0_44 = arith.constant 0 : index
    %c0_45 = arith.constant 0 : index
    %c0_46 = arith.constant 0 : index
    %54 = vector.load %arg12[%c0_43, %c0_44, %c0_45, %c0_46] : memref<2x4x1x16xf32, #tpu.memory_space<vmem>>, vector<1x1x1x16xf32>
    %55 = vector.shape_cast %54 : vector<1x1x1x16xf32> to vector<1x16xf32>
    %56 = vector.broadcast %55 : vector<1x16xf32> to vector<16x16xf32>
    %57 = arith.addf %53, %56 : vector<16x16xf32>
    %58 = tpu.transpose %49, [1, 0] : vector<16x16xf32> -> vector<16x16xf32>
    %59 = arith.truncf %41 : vector<16x16xf32> to vector<16x16xbf16>
    %60 = arith.truncf %58 : vector<16x16xf32> to vector<16x16xbf16>
    %cst_47 = arith.constant dense<0.000000e+00> : vector<16x16xf32>
    %61 = tpu.matmul %59, %60, %cst_47 {dimension_numbers = #tpu.dot_dimension_numbers<[1], [0], [0], [1], [0, 0, 1, 1], [], []>} : vector<16x16xbf16>, vector<16x16xbf16>, vector<16x16xf32> -> vector<16x16xf32>
    %cst_48 = arith.constant 2.500000e-01 : f32
    %62 = vector.broadcast %cst_48 : f32 to vector<16x16xf32>
    %63 = arith.mulf %61, %62 : vector<16x16xf32>
    %cst_49 = arith.constant dense<0xFF800000> : vector<16xf32>
    %64 = vector.multi_reduction <maximumf>, %63, %cst_49 [1] : vector<16x16xf32> to vector<16xf32>
    %65 = vector.shape_cast %64 : vector<16xf32> to vector<16x1xf32>
    %66 = vector.broadcast %65 : vector<16x1xf32> to vector<16x16xf32>
    %67 = arith.subf %63, %66 : vector<16x16xf32>
    %68 = math.exp %67 : vector<16x16xf32>
    %cst_50 = arith.constant dense<0.000000e+00> : vector<16xf32>
    %69 = vector.multi_reduction <add>, %68, %cst_50 [1] : vector<16x16xf32> to vector<16xf32>
    %70 = vector.shape_cast %69 : vector<16xf32> to vector<16x1xf32>
    %71 = tpu.reciprocal %70 {approx = true} : vector<16x1xf32> -> vector<16x1xf32>
    %72 = vector.broadcast %71 : vector<16x1xf32> to vector<16x16xf32>
    %73 = arith.mulf %68, %72 : vector<16x16xf32>
    %74 = arith.truncf %73 : vector<16x16xf32> to vector<16x16xbf16>
    %75 = arith.truncf %57 : vector<16x16xf32> to vector<16x16xbf16>
    %cst_51 = arith.constant dense<0.000000e+00> : vector<16x16xf32>
    %76 = tpu.matmul %74, %75, %cst_51 {dimension_numbers = #tpu.dot_dimension_numbers<[1], [0], [0], [1], [0, 0, 1, 1], [], []>} : vector<16x16xbf16>, vector<16x16xbf16>, vector<16x16xf32> -> vector<16x16xf32>
    %c0_52 = arith.constant 0 : index
    %c0_53 = arith.constant 0 : index
    %c0_54 = arith.constant 0 : index
    %c0_55 = arith.constant 0 : index
    %77 = vector.load %arg13[%c0_52, %c0_53, %c0_54, %c0_55] : memref<2x4x16x64xbf16, #tpu.memory_space<vmem>>, vector<1x1x16x64xbf16>
    %78 = vector.shape_cast %77 : vector<1x1x16x64xbf16> to vector<16x64xbf16>
    %79 = arith.truncf %76 : vector<16x16xf32> to vector<16x16xbf16>
    %cst_56 = arith.constant dense<0.000000e+00> : vector<16x64xf32>
    %80 = tpu.matmul %79, %78, %cst_56 {dimension_numbers = #tpu.dot_dimension_numbers<[1], [0], [0], [1], [0, 0, 1, 1], [], []>} : vector<16x16xbf16>, vector<16x64xbf16>, vector<16x64xf32> -> vector<16x64xf32>
    %81 = arith.addf %33, %80 : vector<16x64xf32>
    %c0_57 = arith.constant 0 : index
    %c1 = arith.constant 1 : index
    %c0_58 = arith.constant 0 : index
    %c0_59 = arith.constant 0 : index
    %82 = vector.load %arg7[%c0_57, %c1, %c0_58, %c0_59] : memref<2x4x64x16xbf16, #tpu.memory_space<vmem>>, vector<1x1x64x16xbf16>
    %83 = vector.shape_cast %82 : vector<1x1x64x16xbf16> to vector<64x16xbf16>
    %84 = arith.truncf %32 : vector<16x64xf32> to vector<16x64xbf16>
    %cst_60 = arith.constant dense<0.000000e+00> : vector<16x16xf32>
    %85 = tpu.matmul %84, %83, %cst_60 {dimension_numbers = #tpu.dot_dimension_numbers<[1], [0], [0], [1], [0, 0, 1, 1], [], []>} : vector<16x64xbf16>, vector<64x16xbf16>, vector<16x16xf32> -> vector<16x16xf32>
    %c0_61 = arith.constant 0 : index
    %c1_62 = arith.constant 1 : index
    %c0_63 = arith.constant 0 : index
    %c0_64 = arith.constant 0 : index
    %86 = vector.load %arg8[%c0_61, %c1_62, %c0_63, %c0_64] : memref<2x4x1x16xf32, #tpu.memory_space<vmem>>, vector<1x1x1x16xf32>
    %87 = vector.shape_cast %86 : vector<1x1x1x16xf32> to vector<1x16xf32>
    %88 = vector.broadcast %87 : vector<1x16xf32> to vector<16x16xf32>
    %89 = arith.addf %85, %88 : vector<16x16xf32>
    %c0_65 = arith.constant 0 : index
    %c1_66 = arith.constant 1 : index
    %c0_67 = arith.constant 0 : index
    %c0_68 = arith.constant 0 : index
    %90 = vector.load %arg9[%c0_65, %c1_66, %c0_67, %c0_68] : memref<2x4x64x16xbf16, #tpu.memory_space<vmem>>, vector<1x1x64x16xbf16>
    %91 = vector.shape_cast %90 : vector<1x1x64x16xbf16> to vector<64x16xbf16>
    %92 = arith.truncf %32 : vector<16x64xf32> to vector<16x64xbf16>
    %cst_69 = arith.constant dense<0.000000e+00> : vector<16x16xf32>
    %93 = tpu.matmul %92, %91, %cst_69 {dimension_numbers = #tpu.dot_dimension_numbers<[1], [0], [0], [1], [0, 0, 1, 1], [], []>} : vector<16x64xbf16>, vector<64x16xbf16>, vector<16x16xf32> -> vector<16x16xf32>
    %c0_70 = arith.constant 0 : index
    %c1_71 = arith.constant 1 : index
    %c0_72 = arith.constant 0 : index
    %c0_73 = arith.constant 0 : index
    %94 = vector.load %arg10[%c0_70, %c1_71, %c0_72, %c0_73] : memref<2x4x1x16xf32, #tpu.memory_space<vmem>>, vector<1x1x1x16xf32>
    %95 = vector.shape_cast %94 : vector<1x1x1x16xf32> to vector<1x16xf32>
    %96 = vector.broadcast %95 : vector<1x16xf32> to vector<16x16xf32>
    %97 = arith.addf %93, %96 : vector<16x16xf32>
    %c0_74 = arith.constant 0 : index
    %c1_75 = arith.constant 1 : index
    %c0_76 = arith.constant 0 : index
    %c0_77 = arith.constant 0 : index
    %98 = vector.load %arg11[%c0_74, %c1_75, %c0_76, %c0_77] : memref<2x4x64x16xbf16, #tpu.memory_space<vmem>>, vector<1x1x64x16xbf16>
    %99 = vector.shape_cast %98 : vector<1x1x64x16xbf16> to vector<64x16xbf16>
    %100 = arith.truncf %32 : vector<16x64xf32> to vector<16x64xbf16>
    %cst_78 = arith.constant dense<0.000000e+00> : vector<16x16xf32>
    %101 = tpu.matmul %100, %99, %cst_78 {dimension_numbers = #tpu.dot_dimension_numbers<[1], [0], [0], [1], [0, 0, 1, 1], [], []>} : vector<16x64xbf16>, vector<64x16xbf16>, vector<16x16xf32> -> vector<16x16xf32>
    %c0_79 = arith.constant 0 : index
    %c1_80 = arith.constant 1 : index
    %c0_81 = arith.constant 0 : index
    %c0_82 = arith.constant 0 : index
    %102 = vector.load %arg12[%c0_79, %c1_80, %c0_81, %c0_82] : memref<2x4x1x16xf32, #tpu.memory_space<vmem>>, vector<1x1x1x16xf32>
    %103 = vector.shape_cast %102 : vector<1x1x1x16xf32> to vector<1x16xf32>
    %104 = vector.broadcast %103 : vector<1x16xf32> to vector<16x16xf32>
    %105 = arith.addf %101, %104 : vector<16x16xf32>
    %106 = tpu.transpose %97, [1, 0] : vector<16x16xf32> -> vector<16x16xf32>
    %107 = arith.truncf %89 : vector<16x16xf32> to vector<16x16xbf16>
    %108 = arith.truncf %106 : vector<16x16xf32> to vector<16x16xbf16>
    %cst_83 = arith.constant dense<0.000000e+00> : vector<16x16xf32>
    %109 = tpu.matmul %107, %108, %cst_83 {dimension_numbers = #tpu.dot_dimension_numbers<[1], [0], [0], [1], [0, 0, 1, 1], [], []>} : vector<16x16xbf16>, vector<16x16xbf16>, vector<16x16xf32> -> vector<16x16xf32>
    %cst_84 = arith.constant 2.500000e-01 : f32
    %110 = vector.broadcast %cst_84 : f32 to vector<16x16xf32>
    %111 = arith.mulf %109, %110 : vector<16x16xf32>
    %cst_85 = arith.constant dense<0xFF800000> : vector<16xf32>
    %112 = vector.multi_reduction <maximumf>, %111, %cst_85 [1] : vector<16x16xf32> to vector<16xf32>
    %113 = vector.shape_cast %112 : vector<16xf32> to vector<16x1xf32>
    %114 = vector.broadcast %113 : vector<16x1xf32> to vector<16x16xf32>
    %115 = arith.subf %111, %114 : vector<16x16xf32>
    %116 = math.exp %115 : vector<16x16xf32>
    %cst_86 = arith.constant dense<0.000000e+00> : vector<16xf32>
    %117 = vector.multi_reduction <add>, %116, %cst_86 [1] : vector<16x16xf32> to vector<16xf32>
    %118 = vector.shape_cast %117 : vector<16xf32> to vector<16x1xf32>
    %119 = tpu.reciprocal %118 {approx = true} : vector<16x1xf32> -> vector<16x1xf32>
    %120 = vector.broadcast %119 : vector<16x1xf32> to vector<16x16xf32>
    %121 = arith.mulf %116, %120 : vector<16x16xf32>
    %122 = arith.truncf %121 : vector<16x16xf32> to vector<16x16xbf16>
    %123 = arith.truncf %105 : vector<16x16xf32> to vector<16x16xbf16>
    %cst_87 = arith.constant dense<0.000000e+00> : vector<16x16xf32>
    %124 = tpu.matmul %122, %123, %cst_87 {dimension_numbers = #tpu.dot_dimension_numbers<[1], [0], [0], [1], [0, 0, 1, 1], [], []>} : vector<16x16xbf16>, vector<16x16xbf16>, vector<16x16xf32> -> vector<16x16xf32>
    %c0_88 = arith.constant 0 : index
    %c1_89 = arith.constant 1 : index
    %c0_90 = arith.constant 0 : index
    %c0_91 = arith.constant 0 : index
    %125 = vector.load %arg13[%c0_88, %c1_89, %c0_90, %c0_91] : memref<2x4x16x64xbf16, #tpu.memory_space<vmem>>, vector<1x1x16x64xbf16>
    %126 = vector.shape_cast %125 : vector<1x1x16x64xbf16> to vector<16x64xbf16>
    %127 = arith.truncf %124 : vector<16x16xf32> to vector<16x16xbf16>
    %cst_92 = arith.constant dense<0.000000e+00> : vector<16x64xf32>
    %128 = tpu.matmul %127, %126, %cst_92 {dimension_numbers = #tpu.dot_dimension_numbers<[1], [0], [0], [1], [0, 0, 1, 1], [], []>} : vector<16x16xbf16>, vector<16x64xbf16>, vector<16x64xf32> -> vector<16x64xf32>
    %129 = arith.addf %81, %128 : vector<16x64xf32>
    %c0_93 = arith.constant 0 : index
    %c2 = arith.constant 2 : index
    %c0_94 = arith.constant 0 : index
    %c0_95 = arith.constant 0 : index
    %130 = vector.load %arg7[%c0_93, %c2, %c0_94, %c0_95] : memref<2x4x64x16xbf16, #tpu.memory_space<vmem>>, vector<1x1x64x16xbf16>
    %131 = vector.shape_cast %130 : vector<1x1x64x16xbf16> to vector<64x16xbf16>
    %132 = arith.truncf %32 : vector<16x64xf32> to vector<16x64xbf16>
    %cst_96 = arith.constant dense<0.000000e+00> : vector<16x16xf32>
    %133 = tpu.matmul %132, %131, %cst_96 {dimension_numbers = #tpu.dot_dimension_numbers<[1], [0], [0], [1], [0, 0, 1, 1], [], []>} : vector<16x64xbf16>, vector<64x16xbf16>, vector<16x16xf32> -> vector<16x16xf32>
    %c0_97 = arith.constant 0 : index
    %c2_98 = arith.constant 2 : index
    %c0_99 = arith.constant 0 : index
    %c0_100 = arith.constant 0 : index
    %134 = vector.load %arg8[%c0_97, %c2_98, %c0_99, %c0_100] : memref<2x4x1x16xf32, #tpu.memory_space<vmem>>, vector<1x1x1x16xf32>
    %135 = vector.shape_cast %134 : vector<1x1x1x16xf32> to vector<1x16xf32>
    %136 = vector.broadcast %135 : vector<1x16xf32> to vector<16x16xf32>
    %137 = arith.addf %133, %136 : vector<16x16xf32>
    %c0_101 = arith.constant 0 : index
    %c2_102 = arith.constant 2 : index
    %c0_103 = arith.constant 0 : index
    %c0_104 = arith.constant 0 : index
    %138 = vector.load %arg9[%c0_101, %c2_102, %c0_103, %c0_104] : memref<2x4x64x16xbf16, #tpu.memory_space<vmem>>, vector<1x1x64x16xbf16>
    %139 = vector.shape_cast %138 : vector<1x1x64x16xbf16> to vector<64x16xbf16>
    %140 = arith.truncf %32 : vector<16x64xf32> to vector<16x64xbf16>
    %cst_105 = arith.constant dense<0.000000e+00> : vector<16x16xf32>
    %141 = tpu.matmul %140, %139, %cst_105 {dimension_numbers = #tpu.dot_dimension_numbers<[1], [0], [0], [1], [0, 0, 1, 1], [], []>} : vector<16x64xbf16>, vector<64x16xbf16>, vector<16x16xf32> -> vector<16x16xf32>
    %c0_106 = arith.constant 0 : index
    %c2_107 = arith.constant 2 : index
    %c0_108 = arith.constant 0 : index
    %c0_109 = arith.constant 0 : index
    %142 = vector.load %arg10[%c0_106, %c2_107, %c0_108, %c0_109] : memref<2x4x1x16xf32, #tpu.memory_space<vmem>>, vector<1x1x1x16xf32>
    %143 = vector.shape_cast %142 : vector<1x1x1x16xf32> to vector<1x16xf32>
    %144 = vector.broadcast %143 : vector<1x16xf32> to vector<16x16xf32>
    %145 = arith.addf %141, %144 : vector<16x16xf32>
    %c0_110 = arith.constant 0 : index
    %c2_111 = arith.constant 2 : index
    %c0_112 = arith.constant 0 : index
    %c0_113 = arith.constant 0 : index
    %146 = vector.load %arg11[%c0_110, %c2_111, %c0_112, %c0_113] : memref<2x4x64x16xbf16, #tpu.memory_space<vmem>>, vector<1x1x64x16xbf16>
    %147 = vector.shape_cast %146 : vector<1x1x64x16xbf16> to vector<64x16xbf16>
    %148 = arith.truncf %32 : vector<16x64xf32> to vector<16x64xbf16>
    %cst_114 = arith.constant dense<0.000000e+00> : vector<16x16xf32>
    %149 = tpu.matmul %148, %147, %cst_114 {dimension_numbers = #tpu.dot_dimension_numbers<[1], [0], [0], [1], [0, 0, 1, 1], [], []>} : vector<16x64xbf16>, vector<64x16xbf16>, vector<16x16xf32> -> vector<16x16xf32>
    %c0_115 = arith.constant 0 : index
    %c2_116 = arith.constant 2 : index
    %c0_117 = arith.constant 0 : index
    %c0_118 = arith.constant 0 : index
    %150 = vector.load %arg12[%c0_115, %c2_116, %c0_117, %c0_118] : memref<2x4x1x16xf32, #tpu.memory_space<vmem>>, vector<1x1x1x16xf32>
    %151 = vector.shape_cast %150 : vector<1x1x1x16xf32> to vector<1x16xf32>
    %152 = vector.broadcast %151 : vector<1x16xf32> to vector<16x16xf32>
    %153 = arith.addf %149, %152 : vector<16x16xf32>
    %154 = tpu.transpose %145, [1, 0] : vector<16x16xf32> -> vector<16x16xf32>
    %155 = arith.truncf %137 : vector<16x16xf32> to vector<16x16xbf16>
    %156 = arith.truncf %154 : vector<16x16xf32> to vector<16x16xbf16>
    %cst_119 = arith.constant dense<0.000000e+00> : vector<16x16xf32>
    %157 = tpu.matmul %155, %156, %cst_119 {dimension_numbers = #tpu.dot_dimension_numbers<[1], [0], [0], [1], [0, 0, 1, 1], [], []>} : vector<16x16xbf16>, vector<16x16xbf16>, vector<16x16xf32> -> vector<16x16xf32>
    %cst_120 = arith.constant 2.500000e-01 : f32
    %158 = vector.broadcast %cst_120 : f32 to vector<16x16xf32>
    %159 = arith.mulf %157, %158 : vector<16x16xf32>
    %cst_121 = arith.constant dense<0xFF800000> : vector<16xf32>
    %160 = vector.multi_reduction <maximumf>, %159, %cst_121 [1] : vector<16x16xf32> to vector<16xf32>
    %161 = vector.shape_cast %160 : vector<16xf32> to vector<16x1xf32>
    %162 = vector.broadcast %161 : vector<16x1xf32> to vector<16x16xf32>
    %163 = arith.subf %159, %162 : vector<16x16xf32>
    %164 = math.exp %163 : vector<16x16xf32>
    %cst_122 = arith.constant dense<0.000000e+00> : vector<16xf32>
    %165 = vector.multi_reduction <add>, %164, %cst_122 [1] : vector<16x16xf32> to vector<16xf32>
    %166 = vector.shape_cast %165 : vector<16xf32> to vector<16x1xf32>
    %167 = tpu.reciprocal %166 {approx = true} : vector<16x1xf32> -> vector<16x1xf32>
    %168 = vector.broadcast %167 : vector<16x1xf32> to vector<16x16xf32>
    %169 = arith.mulf %164, %168 : vector<16x16xf32>
    %170 = arith.truncf %169 : vector<16x16xf32> to vector<16x16xbf16>
    %171 = arith.truncf %153 : vector<16x16xf32> to vector<16x16xbf16>
    %cst_123 = arith.constant dense<0.000000e+00> : vector<16x16xf32>
    %172 = tpu.matmul %170, %171, %cst_123 {dimension_numbers = #tpu.dot_dimension_numbers<[1], [0], [0], [1], [0, 0, 1, 1], [], []>} : vector<16x16xbf16>, vector<16x16xbf16>, vector<16x16xf32> -> vector<16x16xf32>
    %c0_124 = arith.constant 0 : index
    %c2_125 = arith.constant 2 : index
    %c0_126 = arith.constant 0 : index
    %c0_127 = arith.constant 0 : index
    %173 = vector.load %arg13[%c0_124, %c2_125, %c0_126, %c0_127] : memref<2x4x16x64xbf16, #tpu.memory_space<vmem>>, vector<1x1x16x64xbf16>
    %174 = vector.shape_cast %173 : vector<1x1x16x64xbf16> to vector<16x64xbf16>
    %175 = arith.truncf %172 : vector<16x16xf32> to vector<16x16xbf16>
    %cst_128 = arith.constant dense<0.000000e+00> : vector<16x64xf32>
    %176 = tpu.matmul %175, %174, %cst_128 {dimension_numbers = #tpu.dot_dimension_numbers<[1], [0], [0], [1], [0, 0, 1, 1], [], []>} : vector<16x16xbf16>, vector<16x64xbf16>, vector<16x64xf32> -> vector<16x64xf32>
    %177 = arith.addf %129, %176 : vector<16x64xf32>
    %c0_129 = arith.constant 0 : index
    %c3 = arith.constant 3 : index
    %c0_130 = arith.constant 0 : index
    %c0_131 = arith.constant 0 : index
    %178 = vector.load %arg7[%c0_129, %c3, %c0_130, %c0_131] : memref<2x4x64x16xbf16, #tpu.memory_space<vmem>>, vector<1x1x64x16xbf16>
    %179 = vector.shape_cast %178 : vector<1x1x64x16xbf16> to vector<64x16xbf16>
    %180 = arith.truncf %32 : vector<16x64xf32> to vector<16x64xbf16>
    %cst_132 = arith.constant dense<0.000000e+00> : vector<16x16xf32>
    %181 = tpu.matmul %180, %179, %cst_132 {dimension_numbers = #tpu.dot_dimension_numbers<[1], [0], [0], [1], [0, 0, 1, 1], [], []>} : vector<16x64xbf16>, vector<64x16xbf16>, vector<16x16xf32> -> vector<16x16xf32>
    %c0_133 = arith.constant 0 : index
    %c3_134 = arith.constant 3 : index
    %c0_135 = arith.constant 0 : index
    %c0_136 = arith.constant 0 : index
    %182 = vector.load %arg8[%c0_133, %c3_134, %c0_135, %c0_136] : memref<2x4x1x16xf32, #tpu.memory_space<vmem>>, vector<1x1x1x16xf32>
    %183 = vector.shape_cast %182 : vector<1x1x1x16xf32> to vector<1x16xf32>
    %184 = vector.broadcast %183 : vector<1x16xf32> to vector<16x16xf32>
    %185 = arith.addf %181, %184 : vector<16x16xf32>
    %c0_137 = arith.constant 0 : index
    %c3_138 = arith.constant 3 : index
    %c0_139 = arith.constant 0 : index
    %c0_140 = arith.constant 0 : index
    %186 = vector.load %arg9[%c0_137, %c3_138, %c0_139, %c0_140] : memref<2x4x64x16xbf16, #tpu.memory_space<vmem>>, vector<1x1x64x16xbf16>
    %187 = vector.shape_cast %186 : vector<1x1x64x16xbf16> to vector<64x16xbf16>
    %188 = arith.truncf %32 : vector<16x64xf32> to vector<16x64xbf16>
    %cst_141 = arith.constant dense<0.000000e+00> : vector<16x16xf32>
    %189 = tpu.matmul %188, %187, %cst_141 {dimension_numbers = #tpu.dot_dimension_numbers<[1], [0], [0], [1], [0, 0, 1, 1], [], []>} : vector<16x64xbf16>, vector<64x16xbf16>, vector<16x16xf32> -> vector<16x16xf32>
    %c0_142 = arith.constant 0 : index
    %c3_143 = arith.constant 3 : index
    %c0_144 = arith.constant 0 : index
    %c0_145 = arith.constant 0 : index
    %190 = vector.load %arg10[%c0_142, %c3_143, %c0_144, %c0_145] : memref<2x4x1x16xf32, #tpu.memory_space<vmem>>, vector<1x1x1x16xf32>
    %191 = vector.shape_cast %190 : vector<1x1x1x16xf32> to vector<1x16xf32>
    %192 = vector.broadcast %191 : vector<1x16xf32> to vector<16x16xf32>
    %193 = arith.addf %189, %192 : vector<16x16xf32>
    %c0_146 = arith.constant 0 : index
    %c3_147 = arith.constant 3 : index
    %c0_148 = arith.constant 0 : index
    %c0_149 = arith.constant 0 : index
    %194 = vector.load %arg11[%c0_146, %c3_147, %c0_148, %c0_149] : memref<2x4x64x16xbf16, #tpu.memory_space<vmem>>, vector<1x1x64x16xbf16>
    %195 = vector.shape_cast %194 : vector<1x1x64x16xbf16> to vector<64x16xbf16>
    %196 = arith.truncf %32 : vector<16x64xf32> to vector<16x64xbf16>
    %cst_150 = arith.constant dense<0.000000e+00> : vector<16x16xf32>
    %197 = tpu.matmul %196, %195, %cst_150 {dimension_numbers = #tpu.dot_dimension_numbers<[1], [0], [0], [1], [0, 0, 1, 1], [], []>} : vector<16x64xbf16>, vector<64x16xbf16>, vector<16x16xf32> -> vector<16x16xf32>
    %c0_151 = arith.constant 0 : index
    %c3_152 = arith.constant 3 : index
    %c0_153 = arith.constant 0 : index
    %c0_154 = arith.constant 0 : index
    %198 = vector.load %arg12[%c0_151, %c3_152, %c0_153, %c0_154] : memref<2x4x1x16xf32, #tpu.memory_space<vmem>>, vector<1x1x1x16xf32>
    %199 = vector.shape_cast %198 : vector<1x1x1x16xf32> to vector<1x16xf32>
    %200 = vector.broadcast %199 : vector<1x16xf32> to vector<16x16xf32>
    %201 = arith.addf %197, %200 : vector<16x16xf32>
    %202 = tpu.transpose %193, [1, 0] : vector<16x16xf32> -> vector<16x16xf32>
    %203 = arith.truncf %185 : vector<16x16xf32> to vector<16x16xbf16>
    %204 = arith.truncf %202 : vector<16x16xf32> to vector<16x16xbf16>
    %cst_155 = arith.constant dense<0.000000e+00> : vector<16x16xf32>
    %205 = tpu.matmul %203, %204, %cst_155 {dimension_numbers = #tpu.dot_dimension_numbers<[1], [0], [0], [1], [0, 0, 1, 1], [], []>} : vector<16x16xbf16>, vector<16x16xbf16>, vector<16x16xf32> -> vector<16x16xf32>
    %cst_156 = arith.constant 2.500000e-01 : f32
    %206 = vector.broadcast %cst_156 : f32 to vector<16x16xf32>
    %207 = arith.mulf %205, %206 : vector<16x16xf32>
    %cst_157 = arith.constant dense<0xFF800000> : vector<16xf32>
    %208 = vector.multi_reduction <maximumf>, %207, %cst_157 [1] : vector<16x16xf32> to vector<16xf32>
    %209 = vector.shape_cast %208 : vector<16xf32> to vector<16x1xf32>
    %210 = vector.broadcast %209 : vector<16x1xf32> to vector<16x16xf32>
    %211 = arith.subf %207, %210 : vector<16x16xf32>
    %212 = math.exp %211 : vector<16x16xf32>
    %cst_158 = arith.constant dense<0.000000e+00> : vector<16xf32>
    %213 = vector.multi_reduction <add>, %212, %cst_158 [1] : vector<16x16xf32> to vector<16xf32>
    %214 = vector.shape_cast %213 : vector<16xf32> to vector<16x1xf32>
    %215 = tpu.reciprocal %214 {approx = true} : vector<16x1xf32> -> vector<16x1xf32>
    %216 = vector.broadcast %215 : vector<16x1xf32> to vector<16x16xf32>
    %217 = arith.mulf %212, %216 : vector<16x16xf32>
    %218 = arith.truncf %217 : vector<16x16xf32> to vector<16x16xbf16>
    %219 = arith.truncf %201 : vector<16x16xf32> to vector<16x16xbf16>
    %cst_159 = arith.constant dense<0.000000e+00> : vector<16x16xf32>
    %220 = tpu.matmul %218, %219, %cst_159 {dimension_numbers = #tpu.dot_dimension_numbers<[1], [0], [0], [1], [0, 0, 1, 1], [], []>} : vector<16x16xbf16>, vector<16x16xbf16>, vector<16x16xf32> -> vector<16x16xf32>
    %c0_160 = arith.constant 0 : index
    %c3_161 = arith.constant 3 : index
    %c0_162 = arith.constant 0 : index
    %c0_163 = arith.constant 0 : index
    %221 = vector.load %arg13[%c0_160, %c3_161, %c0_162, %c0_163] : memref<2x4x16x64xbf16, #tpu.memory_space<vmem>>, vector<1x1x16x64xbf16>
    %222 = vector.shape_cast %221 : vector<1x1x16x64xbf16> to vector<16x64xbf16>
    %223 = arith.truncf %220 : vector<16x16xf32> to vector<16x16xbf16>
    %cst_164 = arith.constant dense<0.000000e+00> : vector<16x64xf32>
    %224 = tpu.matmul %223, %222, %cst_164 {dimension_numbers = #tpu.dot_dimension_numbers<[1], [0], [0], [1], [0, 0, 1, 1], [], []>} : vector<16x16xbf16>, vector<16x64xbf16>, vector<16x64xf32> -> vector<16x64xf32>
    %225 = arith.addf %177, %224 : vector<16x64xf32>
    %226 = arith.addf %8, %225 : vector<16x64xf32>
    %c0_165 = arith.constant 0 : index
    %c0_166 = arith.constant 0 : index
    %c0_167 = arith.constant 0 : index
    %227 = vector.load %arg14[%c0_165, %c0_166, %c0_167] : memref<2x1x64xf32, #tpu.memory_space<vmem>>, vector<1x1x64xf32>
    %228 = vector.shape_cast %227 : vector<1x1x64xf32> to vector<1x64xf32>
    %229 = vector.broadcast %228 : vector<1x64xf32> to vector<16x64xf32>
    %230 = arith.addf %226, %229 : vector<16x64xf32>
    %c0_168 = arith.constant 0 : index
    %c0_169 = arith.constant 0 : index
    %c0_170 = arith.constant 0 : index
    %231 = vector.load %arg15[%c0_168, %c0_169, %c0_170] : memref<2x1x64xf32, #tpu.memory_space<vmem>>, vector<1x1x64xf32>
    %232 = vector.shape_cast %231 : vector<1x1x64xf32> to vector<1x64xf32>
    %c0_171 = arith.constant 0 : index
    %c0_172 = arith.constant 0 : index
    %c0_173 = arith.constant 0 : index
    %233 = vector.load %arg16[%c0_171, %c0_172, %c0_173] : memref<2x1x64xf32, #tpu.memory_space<vmem>>, vector<1x1x64xf32>
    %234 = vector.shape_cast %233 : vector<1x1x64xf32> to vector<1x64xf32>
    %cst_174 = arith.constant dense<0.000000e+00> : vector<16xf32>
    %235 = vector.multi_reduction <add>, %230, %cst_174 [1] : vector<16x64xf32> to vector<16xf32>
    %236 = vector.shape_cast %235 : vector<16xf32> to vector<16x1xf32>
    %cst_175 = arith.constant 6.400000e+01 : f32
    %237 = vector.broadcast %cst_175 : f32 to vector<16x1xf32>
    %238 = arith.divf %236, %237 : vector<16x1xf32>
    %239 = vector.broadcast %238 : vector<16x1xf32> to vector<16x64xf32>
    %240 = arith.subf %230, %239 : vector<16x64xf32>
    %241 = arith.mulf %240, %240 : vector<16x64xf32>
    %cst_176 = arith.constant dense<0.000000e+00> : vector<16xf32>
    %242 = vector.multi_reduction <add>, %241, %cst_176 [1] : vector<16x64xf32> to vector<16xf32>
    %243 = vector.shape_cast %242 : vector<16xf32> to vector<16x1xf32>
    %cst_177 = arith.constant 6.400000e+01 : f32
    %244 = vector.broadcast %cst_177 : f32 to vector<16x1xf32>
    %245 = arith.divf %243, %244 : vector<16x1xf32>
    %cst_178 = arith.constant 9.99999974E-6 : f32
    %246 = vector.broadcast %cst_178 : f32 to vector<16x1xf32>
    %247 = arith.addf %245, %246 : vector<16x1xf32>
    %248 = math.rsqrt %247 : vector<16x1xf32>
    %249 = vector.broadcast %248 : vector<16x1xf32> to vector<16x64xf32>
    %250 = arith.mulf %240, %249 : vector<16x64xf32>
    %251 = vector.broadcast %232 : vector<1x64xf32> to vector<16x64xf32>
    %252 = arith.mulf %250, %251 : vector<16x64xf32>
    %253 = vector.broadcast %234 : vector<1x64xf32> to vector<16x64xf32>
    %254 = arith.addf %252, %253 : vector<16x64xf32>
    %c0_179 = arith.constant 0 : index
    %c0_180 = arith.constant 0 : index
    %c0_181 = arith.constant 0 : index
    %255 = vector.load %arg17[%c0_179, %c0_180, %c0_181] : memref<2x64x128xbf16, #tpu.memory_space<vmem>>, vector<1x64x128xbf16>
    %256 = vector.shape_cast %255 : vector<1x64x128xbf16> to vector<64x128xbf16>
    %257 = arith.truncf %254 : vector<16x64xf32> to vector<16x64xbf16>
    %cst_182 = arith.constant dense<0.000000e+00> : vector<16x128xf32>
    %258 = tpu.matmul %257, %256, %cst_182 {dimension_numbers = #tpu.dot_dimension_numbers<[1], [0], [0], [1], [0, 0, 1, 1], [], []>} : vector<16x64xbf16>, vector<64x128xbf16>, vector<16x128xf32> -> vector<16x128xf32>
    %c0_183 = arith.constant 0 : index
    %c0_184 = arith.constant 0 : index
    %c0_185 = arith.constant 0 : index
    %259 = vector.load %arg18[%c0_183, %c0_184, %c0_185] : memref<2x1x128xf32, #tpu.memory_space<vmem>>, vector<1x1x128xf32>
    %260 = vector.shape_cast %259 : vector<1x1x128xf32> to vector<1x128xf32>
    %261 = vector.broadcast %260 : vector<1x128xf32> to vector<16x128xf32>
    %262 = arith.addf %258, %261 : vector<16x128xf32>
    %263 = arith.mulf %262, %262 : vector<16x128xf32>
    %264 = arith.mulf %262, %263 : vector<16x128xf32>
    %cst_186 = arith.constant 4.471500e-02 : f32
    %265 = vector.broadcast %cst_186 : f32 to vector<16x128xf32>
    %266 = arith.mulf %265, %264 : vector<16x128xf32>
    %267 = arith.addf %262, %266 : vector<16x128xf32>
    %cst_187 = arith.constant 0.797884583 : f32
    %268 = vector.broadcast %cst_187 : f32 to vector<16x128xf32>
    %269 = arith.mulf %268, %267 : vector<16x128xf32>
    %270 = math.tanh %269 : vector<16x128xf32>
    %cst_188 = arith.constant 1.000000e+00 : f32
    %271 = vector.broadcast %cst_188 : f32 to vector<16x128xf32>
    %272 = arith.addf %271, %270 : vector<16x128xf32>
    %cst_189 = arith.constant 5.000000e-01 : f32
    %273 = vector.broadcast %cst_189 : f32 to vector<16x128xf32>
    %274 = arith.mulf %273, %272 : vector<16x128xf32>
    %275 = arith.mulf %262, %274 : vector<16x128xf32>
    %c0_190 = arith.constant 0 : index
    %c0_191 = arith.constant 0 : index
    %c0_192 = arith.constant 0 : index
    %276 = vector.load %arg19[%c0_190, %c0_191, %c0_192] : memref<2x128x64xbf16, #tpu.memory_space<vmem>>, vector<1x128x64xbf16>
    %277 = vector.shape_cast %276 : vector<1x128x64xbf16> to vector<128x64xbf16>
    %278 = arith.truncf %275 : vector<16x128xf32> to vector<16x128xbf16>
    %cst_193 = arith.constant dense<0.000000e+00> : vector<16x64xf32>
    %279 = tpu.matmul %278, %277, %cst_193 {dimension_numbers = #tpu.dot_dimension_numbers<[1], [0], [0], [1], [0, 0, 1, 1], [], []>} : vector<16x128xbf16>, vector<128x64xbf16>, vector<16x64xf32> -> vector<16x64xf32>
    %280 = arith.addf %230, %279 : vector<16x64xf32>
    %c0_194 = arith.constant 0 : index
    %c0_195 = arith.constant 0 : index
    %c0_196 = arith.constant 0 : index
    %281 = vector.load %arg20[%c0_194, %c0_195, %c0_196] : memref<2x1x64xf32, #tpu.memory_space<vmem>>, vector<1x1x64xf32>
    %282 = vector.shape_cast %281 : vector<1x1x64xf32> to vector<1x64xf32>
    %283 = vector.broadcast %282 : vector<1x64xf32> to vector<16x64xf32>
    %284 = arith.addf %280, %283 : vector<16x64xf32>
    %c1_197 = arith.constant 1 : index
    %c0_198 = arith.constant 0 : index
    %c0_199 = arith.constant 0 : index
    %285 = vector.load %arg5[%c1_197, %c0_198, %c0_199] : memref<2x1x64xf32, #tpu.memory_space<vmem>>, vector<1x1x64xf32>
    %286 = vector.shape_cast %285 : vector<1x1x64xf32> to vector<1x64xf32>
    %c1_200 = arith.constant 1 : index
    %c0_201 = arith.constant 0 : index
    %c0_202 = arith.constant 0 : index
    %287 = vector.load %arg6[%c1_200, %c0_201, %c0_202] : memref<2x1x64xf32, #tpu.memory_space<vmem>>, vector<1x1x64xf32>
    %288 = vector.shape_cast %287 : vector<1x1x64xf32> to vector<1x64xf32>
    %cst_203 = arith.constant dense<0.000000e+00> : vector<16xf32>
    %289 = vector.multi_reduction <add>, %284, %cst_203 [1] : vector<16x64xf32> to vector<16xf32>
    %290 = vector.shape_cast %289 : vector<16xf32> to vector<16x1xf32>
    %cst_204 = arith.constant 6.400000e+01 : f32
    %291 = vector.broadcast %cst_204 : f32 to vector<16x1xf32>
    %292 = arith.divf %290, %291 : vector<16x1xf32>
    %293 = vector.broadcast %292 : vector<16x1xf32> to vector<16x64xf32>
    %294 = arith.subf %284, %293 : vector<16x64xf32>
    %295 = arith.mulf %294, %294 : vector<16x64xf32>
    %cst_205 = arith.constant dense<0.000000e+00> : vector<16xf32>
    %296 = vector.multi_reduction <add>, %295, %cst_205 [1] : vector<16x64xf32> to vector<16xf32>
    %297 = vector.shape_cast %296 : vector<16xf32> to vector<16x1xf32>
    %cst_206 = arith.constant 6.400000e+01 : f32
    %298 = vector.broadcast %cst_206 : f32 to vector<16x1xf32>
    %299 = arith.divf %297, %298 : vector<16x1xf32>
    %cst_207 = arith.constant 9.99999974E-6 : f32
    %300 = vector.broadcast %cst_207 : f32 to vector<16x1xf32>
    %301 = arith.addf %299, %300 : vector<16x1xf32>
    %302 = math.rsqrt %301 : vector<16x1xf32>
    %303 = vector.broadcast %302 : vector<16x1xf32> to vector<16x64xf32>
    %304 = arith.mulf %294, %303 : vector<16x64xf32>
    %305 = vector.broadcast %286 : vector<1x64xf32> to vector<16x64xf32>
    %306 = arith.mulf %304, %305 : vector<16x64xf32>
    %307 = vector.broadcast %288 : vector<1x64xf32> to vector<16x64xf32>
    %308 = arith.addf %306, %307 : vector<16x64xf32>
    %cst_208 = arith.constant 0.000000e+00 : f32
    %309 = vector.broadcast %cst_208 : f32 to vector<16x64xf32>
    %c1_209 = arith.constant 1 : index
    %c0_210 = arith.constant 0 : index
    %c0_211 = arith.constant 0 : index
    %c0_212 = arith.constant 0 : index
    %310 = vector.load %arg7[%c1_209, %c0_210, %c0_211, %c0_212] : memref<2x4x64x16xbf16, #tpu.memory_space<vmem>>, vector<1x1x64x16xbf16>
    %311 = vector.shape_cast %310 : vector<1x1x64x16xbf16> to vector<64x16xbf16>
    %312 = arith.truncf %308 : vector<16x64xf32> to vector<16x64xbf16>
    %cst_213 = arith.constant dense<0.000000e+00> : vector<16x16xf32>
    %313 = tpu.matmul %312, %311, %cst_213 {dimension_numbers = #tpu.dot_dimension_numbers<[1], [0], [0], [1], [0, 0, 1, 1], [], []>} : vector<16x64xbf16>, vector<64x16xbf16>, vector<16x16xf32> -> vector<16x16xf32>
    %c1_214 = arith.constant 1 : index
    %c0_215 = arith.constant 0 : index
    %c0_216 = arith.constant 0 : index
    %c0_217 = arith.constant 0 : index
    %314 = vector.load %arg8[%c1_214, %c0_215, %c0_216, %c0_217] : memref<2x4x1x16xf32, #tpu.memory_space<vmem>>, vector<1x1x1x16xf32>
    %315 = vector.shape_cast %314 : vector<1x1x1x16xf32> to vector<1x16xf32>
    %316 = vector.broadcast %315 : vector<1x16xf32> to vector<16x16xf32>
    %317 = arith.addf %313, %316 : vector<16x16xf32>
    %c1_218 = arith.constant 1 : index
    %c0_219 = arith.constant 0 : index
    %c0_220 = arith.constant 0 : index
    %c0_221 = arith.constant 0 : index
    %318 = vector.load %arg9[%c1_218, %c0_219, %c0_220, %c0_221] : memref<2x4x64x16xbf16, #tpu.memory_space<vmem>>, vector<1x1x64x16xbf16>
    %319 = vector.shape_cast %318 : vector<1x1x64x16xbf16> to vector<64x16xbf16>
    %320 = arith.truncf %308 : vector<16x64xf32> to vector<16x64xbf16>
    %cst_222 = arith.constant dense<0.000000e+00> : vector<16x16xf32>
    %321 = tpu.matmul %320, %319, %cst_222 {dimension_numbers = #tpu.dot_dimension_numbers<[1], [0], [0], [1], [0, 0, 1, 1], [], []>} : vector<16x64xbf16>, vector<64x16xbf16>, vector<16x16xf32> -> vector<16x16xf32>
    %c1_223 = arith.constant 1 : index
    %c0_224 = arith.constant 0 : index
    %c0_225 = arith.constant 0 : index
    %c0_226 = arith.constant 0 : index
    %322 = vector.load %arg10[%c1_223, %c0_224, %c0_225, %c0_226] : memref<2x4x1x16xf32, #tpu.memory_space<vmem>>, vector<1x1x1x16xf32>
    %323 = vector.shape_cast %322 : vector<1x1x1x16xf32> to vector<1x16xf32>
    %324 = vector.broadcast %323 : vector<1x16xf32> to vector<16x16xf32>
    %325 = arith.addf %321, %324 : vector<16x16xf32>
    %c1_227 = arith.constant 1 : index
    %c0_228 = arith.constant 0 : index
    %c0_229 = arith.constant 0 : index
    %c0_230 = arith.constant 0 : index
    %326 = vector.load %arg11[%c1_227, %c0_228, %c0_229, %c0_230] : memref<2x4x64x16xbf16, #tpu.memory_space<vmem>>, vector<1x1x64x16xbf16>
    %327 = vector.shape_cast %326 : vector<1x1x64x16xbf16> to vector<64x16xbf16>
    %328 = arith.truncf %308 : vector<16x64xf32> to vector<16x64xbf16>
    %cst_231 = arith.constant dense<0.000000e+00> : vector<16x16xf32>
    %329 = tpu.matmul %328, %327, %cst_231 {dimension_numbers = #tpu.dot_dimension_numbers<[1], [0], [0], [1], [0, 0, 1, 1], [], []>} : vector<16x64xbf16>, vector<64x16xbf16>, vector<16x16xf32> -> vector<16x16xf32>
    %c1_232 = arith.constant 1 : index
    %c0_233 = arith.constant 0 : index
    %c0_234 = arith.constant 0 : index
    %c0_235 = arith.constant 0 : index
    %330 = vector.load %arg12[%c1_232, %c0_233, %c0_234, %c0_235] : memref<2x4x1x16xf32, #tpu.memory_space<vmem>>, vector<1x1x1x16xf32>
    %331 = vector.shape_cast %330 : vector<1x1x1x16xf32> to vector<1x16xf32>
    %332 = vector.broadcast %331 : vector<1x16xf32> to vector<16x16xf32>
    %333 = arith.addf %329, %332 : vector<16x16xf32>
    %334 = tpu.transpose %325, [1, 0] : vector<16x16xf32> -> vector<16x16xf32>
    %335 = arith.truncf %317 : vector<16x16xf32> to vector<16x16xbf16>
    %336 = arith.truncf %334 : vector<16x16xf32> to vector<16x16xbf16>
    %cst_236 = arith.constant dense<0.000000e+00> : vector<16x16xf32>
    %337 = tpu.matmul %335, %336, %cst_236 {dimension_numbers = #tpu.dot_dimension_numbers<[1], [0], [0], [1], [0, 0, 1, 1], [], []>} : vector<16x16xbf16>, vector<16x16xbf16>, vector<16x16xf32> -> vector<16x16xf32>
    %cst_237 = arith.constant 2.500000e-01 : f32
    %338 = vector.broadcast %cst_237 : f32 to vector<16x16xf32>
    %339 = arith.mulf %337, %338 : vector<16x16xf32>
    %cst_238 = arith.constant dense<0xFF800000> : vector<16xf32>
    %340 = vector.multi_reduction <maximumf>, %339, %cst_238 [1] : vector<16x16xf32> to vector<16xf32>
    %341 = vector.shape_cast %340 : vector<16xf32> to vector<16x1xf32>
    %342 = vector.broadcast %341 : vector<16x1xf32> to vector<16x16xf32>
    %343 = arith.subf %339, %342 : vector<16x16xf32>
    %344 = math.exp %343 : vector<16x16xf32>
    %cst_239 = arith.constant dense<0.000000e+00> : vector<16xf32>
    %345 = vector.multi_reduction <add>, %344, %cst_239 [1] : vector<16x16xf32> to vector<16xf32>
    %346 = vector.shape_cast %345 : vector<16xf32> to vector<16x1xf32>
    %347 = tpu.reciprocal %346 {approx = true} : vector<16x1xf32> -> vector<16x1xf32>
    %348 = vector.broadcast %347 : vector<16x1xf32> to vector<16x16xf32>
    %349 = arith.mulf %344, %348 : vector<16x16xf32>
    %350 = arith.truncf %349 : vector<16x16xf32> to vector<16x16xbf16>
    %351 = arith.truncf %333 : vector<16x16xf32> to vector<16x16xbf16>
    %cst_240 = arith.constant dense<0.000000e+00> : vector<16x16xf32>
    %352 = tpu.matmul %350, %351, %cst_240 {dimension_numbers = #tpu.dot_dimension_numbers<[1], [0], [0], [1], [0, 0, 1, 1], [], []>} : vector<16x16xbf16>, vector<16x16xbf16>, vector<16x16xf32> -> vector<16x16xf32>
    %c1_241 = arith.constant 1 : index
    %c0_242 = arith.constant 0 : index
    %c0_243 = arith.constant 0 : index
    %c0_244 = arith.constant 0 : index
    %353 = vector.load %arg13[%c1_241, %c0_242, %c0_243, %c0_244] : memref<2x4x16x64xbf16, #tpu.memory_space<vmem>>, vector<1x1x16x64xbf16>
    %354 = vector.shape_cast %353 : vector<1x1x16x64xbf16> to vector<16x64xbf16>
    %355 = arith.truncf %352 : vector<16x16xf32> to vector<16x16xbf16>
    %cst_245 = arith.constant dense<0.000000e+00> : vector<16x64xf32>
    %356 = tpu.matmul %355, %354, %cst_245 {dimension_numbers = #tpu.dot_dimension_numbers<[1], [0], [0], [1], [0, 0, 1, 1], [], []>} : vector<16x16xbf16>, vector<16x64xbf16>, vector<16x64xf32> -> vector<16x64xf32>
    %357 = arith.addf %309, %356 : vector<16x64xf32>
    %c1_246 = arith.constant 1 : index
    %c1_247 = arith.constant 1 : index
    %c0_248 = arith.constant 0 : index
    %c0_249 = arith.constant 0 : index
    %358 = vector.load %arg7[%c1_246, %c1_247, %c0_248, %c0_249] : memref<2x4x64x16xbf16, #tpu.memory_space<vmem>>, vector<1x1x64x16xbf16>
    %359 = vector.shape_cast %358 : vector<1x1x64x16xbf16> to vector<64x16xbf16>
    %360 = arith.truncf %308 : vector<16x64xf32> to vector<16x64xbf16>
    %cst_250 = arith.constant dense<0.000000e+00> : vector<16x16xf32>
    %361 = tpu.matmul %360, %359, %cst_250 {dimension_numbers = #tpu.dot_dimension_numbers<[1], [0], [0], [1], [0, 0, 1, 1], [], []>} : vector<16x64xbf16>, vector<64x16xbf16>, vector<16x16xf32> -> vector<16x16xf32>
    %c1_251 = arith.constant 1 : index
    %c1_252 = arith.constant 1 : index
    %c0_253 = arith.constant 0 : index
    %c0_254 = arith.constant 0 : index
    %362 = vector.load %arg8[%c1_251, %c1_252, %c0_253, %c0_254] : memref<2x4x1x16xf32, #tpu.memory_space<vmem>>, vector<1x1x1x16xf32>
    %363 = vector.shape_cast %362 : vector<1x1x1x16xf32> to vector<1x16xf32>
    %364 = vector.broadcast %363 : vector<1x16xf32> to vector<16x16xf32>
    %365 = arith.addf %361, %364 : vector<16x16xf32>
    %c1_255 = arith.constant 1 : index
    %c1_256 = arith.constant 1 : index
    %c0_257 = arith.constant 0 : index
    %c0_258 = arith.constant 0 : index
    %366 = vector.load %arg9[%c1_255, %c1_256, %c0_257, %c0_258] : memref<2x4x64x16xbf16, #tpu.memory_space<vmem>>, vector<1x1x64x16xbf16>
    %367 = vector.shape_cast %366 : vector<1x1x64x16xbf16> to vector<64x16xbf16>
    %368 = arith.truncf %308 : vector<16x64xf32> to vector<16x64xbf16>
    %cst_259 = arith.constant dense<0.000000e+00> : vector<16x16xf32>
    %369 = tpu.matmul %368, %367, %cst_259 {dimension_numbers = #tpu.dot_dimension_numbers<[1], [0], [0], [1], [0, 0, 1, 1], [], []>} : vector<16x64xbf16>, vector<64x16xbf16>, vector<16x16xf32> -> vector<16x16xf32>
    %c1_260 = arith.constant 1 : index
    %c1_261 = arith.constant 1 : index
    %c0_262 = arith.constant 0 : index
    %c0_263 = arith.constant 0 : index
    %370 = vector.load %arg10[%c1_260, %c1_261, %c0_262, %c0_263] : memref<2x4x1x16xf32, #tpu.memory_space<vmem>>, vector<1x1x1x16xf32>
    %371 = vector.shape_cast %370 : vector<1x1x1x16xf32> to vector<1x16xf32>
    %372 = vector.broadcast %371 : vector<1x16xf32> to vector<16x16xf32>
    %373 = arith.addf %369, %372 : vector<16x16xf32>
    %c1_264 = arith.constant 1 : index
    %c1_265 = arith.constant 1 : index
    %c0_266 = arith.constant 0 : index
    %c0_267 = arith.constant 0 : index
    %374 = vector.load %arg11[%c1_264, %c1_265, %c0_266, %c0_267] : memref<2x4x64x16xbf16, #tpu.memory_space<vmem>>, vector<1x1x64x16xbf16>
    %375 = vector.shape_cast %374 : vector<1x1x64x16xbf16> to vector<64x16xbf16>
    %376 = arith.truncf %308 : vector<16x64xf32> to vector<16x64xbf16>
    %cst_268 = arith.constant dense<0.000000e+00> : vector<16x16xf32>
    %377 = tpu.matmul %376, %375, %cst_268 {dimension_numbers = #tpu.dot_dimension_numbers<[1], [0], [0], [1], [0, 0, 1, 1], [], []>} : vector<16x64xbf16>, vector<64x16xbf16>, vector<16x16xf32> -> vector<16x16xf32>
    %c1_269 = arith.constant 1 : index
    %c1_270 = arith.constant 1 : index
    %c0_271 = arith.constant 0 : index
    %c0_272 = arith.constant 0 : index
    %378 = vector.load %arg12[%c1_269, %c1_270, %c0_271, %c0_272] : memref<2x4x1x16xf32, #tpu.memory_space<vmem>>, vector<1x1x1x16xf32>
    %379 = vector.shape_cast %378 : vector<1x1x1x16xf32> to vector<1x16xf32>
    %380 = vector.broadcast %379 : vector<1x16xf32> to vector<16x16xf32>
    %381 = arith.addf %377, %380 : vector<16x16xf32>
    %382 = tpu.transpose %373, [1, 0] : vector<16x16xf32> -> vector<16x16xf32>
    %383 = arith.truncf %365 : vector<16x16xf32> to vector<16x16xbf16>
    %384 = arith.truncf %382 : vector<16x16xf32> to vector<16x16xbf16>
    %cst_273 = arith.constant dense<0.000000e+00> : vector<16x16xf32>
    %385 = tpu.matmul %383, %384, %cst_273 {dimension_numbers = #tpu.dot_dimension_numbers<[1], [0], [0], [1], [0, 0, 1, 1], [], []>} : vector<16x16xbf16>, vector<16x16xbf16>, vector<16x16xf32> -> vector<16x16xf32>
    %cst_274 = arith.constant 2.500000e-01 : f32
    %386 = vector.broadcast %cst_274 : f32 to vector<16x16xf32>
    %387 = arith.mulf %385, %386 : vector<16x16xf32>
    %cst_275 = arith.constant dense<0xFF800000> : vector<16xf32>
    %388 = vector.multi_reduction <maximumf>, %387, %cst_275 [1] : vector<16x16xf32> to vector<16xf32>
    %389 = vector.shape_cast %388 : vector<16xf32> to vector<16x1xf32>
    %390 = vector.broadcast %389 : vector<16x1xf32> to vector<16x16xf32>
    %391 = arith.subf %387, %390 : vector<16x16xf32>
    %392 = math.exp %391 : vector<16x16xf32>
    %cst_276 = arith.constant dense<0.000000e+00> : vector<16xf32>
    %393 = vector.multi_reduction <add>, %392, %cst_276 [1] : vector<16x16xf32> to vector<16xf32>
    %394 = vector.shape_cast %393 : vector<16xf32> to vector<16x1xf32>
    %395 = tpu.reciprocal %394 {approx = true} : vector<16x1xf32> -> vector<16x1xf32>
    %396 = vector.broadcast %395 : vector<16x1xf32> to vector<16x16xf32>
    %397 = arith.mulf %392, %396 : vector<16x16xf32>
    %398 = arith.truncf %397 : vector<16x16xf32> to vector<16x16xbf16>
    %399 = arith.truncf %381 : vector<16x16xf32> to vector<16x16xbf16>
    %cst_277 = arith.constant dense<0.000000e+00> : vector<16x16xf32>
    %400 = tpu.matmul %398, %399, %cst_277 {dimension_numbers = #tpu.dot_dimension_numbers<[1], [0], [0], [1], [0, 0, 1, 1], [], []>} : vector<16x16xbf16>, vector<16x16xbf16>, vector<16x16xf32> -> vector<16x16xf32>
    %c1_278 = arith.constant 1 : index
    %c1_279 = arith.constant 1 : index
    %c0_280 = arith.constant 0 : index
    %c0_281 = arith.constant 0 : index
    %401 = vector.load %arg13[%c1_278, %c1_279, %c0_280, %c0_281] : memref<2x4x16x64xbf16, #tpu.memory_space<vmem>>, vector<1x1x16x64xbf16>
    %402 = vector.shape_cast %401 : vector<1x1x16x64xbf16> to vector<16x64xbf16>
    %403 = arith.truncf %400 : vector<16x16xf32> to vector<16x16xbf16>
    %cst_282 = arith.constant dense<0.000000e+00> : vector<16x64xf32>
    %404 = tpu.matmul %403, %402, %cst_282 {dimension_numbers = #tpu.dot_dimension_numbers<[1], [0], [0], [1], [0, 0, 1, 1], [], []>} : vector<16x16xbf16>, vector<16x64xbf16>, vector<16x64xf32> -> vector<16x64xf32>
    %405 = arith.addf %357, %404 : vector<16x64xf32>
    %c1_283 = arith.constant 1 : index
    %c2_284 = arith.constant 2 : index
    %c0_285 = arith.constant 0 : index
    %c0_286 = arith.constant 0 : index
    %406 = vector.load %arg7[%c1_283, %c2_284, %c0_285, %c0_286] : memref<2x4x64x16xbf16, #tpu.memory_space<vmem>>, vector<1x1x64x16xbf16>
    %407 = vector.shape_cast %406 : vector<1x1x64x16xbf16> to vector<64x16xbf16>
    %408 = arith.truncf %308 : vector<16x64xf32> to vector<16x64xbf16>
    %cst_287 = arith.constant dense<0.000000e+00> : vector<16x16xf32>
    %409 = tpu.matmul %408, %407, %cst_287 {dimension_numbers = #tpu.dot_dimension_numbers<[1], [0], [0], [1], [0, 0, 1, 1], [], []>} : vector<16x64xbf16>, vector<64x16xbf16>, vector<16x16xf32> -> vector<16x16xf32>
    %c1_288 = arith.constant 1 : index
    %c2_289 = arith.constant 2 : index
    %c0_290 = arith.constant 0 : index
    %c0_291 = arith.constant 0 : index
    %410 = vector.load %arg8[%c1_288, %c2_289, %c0_290, %c0_291] : memref<2x4x1x16xf32, #tpu.memory_space<vmem>>, vector<1x1x1x16xf32>
    %411 = vector.shape_cast %410 : vector<1x1x1x16xf32> to vector<1x16xf32>
    %412 = vector.broadcast %411 : vector<1x16xf32> to vector<16x16xf32>
    %413 = arith.addf %409, %412 : vector<16x16xf32>
    %c1_292 = arith.constant 1 : index
    %c2_293 = arith.constant 2 : index
    %c0_294 = arith.constant 0 : index
    %c0_295 = arith.constant 0 : index
    %414 = vector.load %arg9[%c1_292, %c2_293, %c0_294, %c0_295] : memref<2x4x64x16xbf16, #tpu.memory_space<vmem>>, vector<1x1x64x16xbf16>
    %415 = vector.shape_cast %414 : vector<1x1x64x16xbf16> to vector<64x16xbf16>
    %416 = arith.truncf %308 : vector<16x64xf32> to vector<16x64xbf16>
    %cst_296 = arith.constant dense<0.000000e+00> : vector<16x16xf32>
    %417 = tpu.matmul %416, %415, %cst_296 {dimension_numbers = #tpu.dot_dimension_numbers<[1], [0], [0], [1], [0, 0, 1, 1], [], []>} : vector<16x64xbf16>, vector<64x16xbf16>, vector<16x16xf32> -> vector<16x16xf32>
    %c1_297 = arith.constant 1 : index
    %c2_298 = arith.constant 2 : index
    %c0_299 = arith.constant 0 : index
    %c0_300 = arith.constant 0 : index
    %418 = vector.load %arg10[%c1_297, %c2_298, %c0_299, %c0_300] : memref<2x4x1x16xf32, #tpu.memory_space<vmem>>, vector<1x1x1x16xf32>
    %419 = vector.shape_cast %418 : vector<1x1x1x16xf32> to vector<1x16xf32>
    %420 = vector.broadcast %419 : vector<1x16xf32> to vector<16x16xf32>
    %421 = arith.addf %417, %420 : vector<16x16xf32>
    %c1_301 = arith.constant 1 : index
    %c2_302 = arith.constant 2 : index
    %c0_303 = arith.constant 0 : index
    %c0_304 = arith.constant 0 : index
    %422 = vector.load %arg11[%c1_301, %c2_302, %c0_303, %c0_304] : memref<2x4x64x16xbf16, #tpu.memory_space<vmem>>, vector<1x1x64x16xbf16>
    %423 = vector.shape_cast %422 : vector<1x1x64x16xbf16> to vector<64x16xbf16>
    %424 = arith.truncf %308 : vector<16x64xf32> to vector<16x64xbf16>
    %cst_305 = arith.constant dense<0.000000e+00> : vector<16x16xf32>
    %425 = tpu.matmul %424, %423, %cst_305 {dimension_numbers = #tpu.dot_dimension_numbers<[1], [0], [0], [1], [0, 0, 1, 1], [], []>} : vector<16x64xbf16>, vector<64x16xbf16>, vector<16x16xf32> -> vector<16x16xf32>
    %c1_306 = arith.constant 1 : index
    %c2_307 = arith.constant 2 : index
    %c0_308 = arith.constant 0 : index
    %c0_309 = arith.constant 0 : index
    %426 = vector.load %arg12[%c1_306, %c2_307, %c0_308, %c0_309] : memref<2x4x1x16xf32, #tpu.memory_space<vmem>>, vector<1x1x1x16xf32>
    %427 = vector.shape_cast %426 : vector<1x1x1x16xf32> to vector<1x16xf32>
    %428 = vector.broadcast %427 : vector<1x16xf32> to vector<16x16xf32>
    %429 = arith.addf %425, %428 : vector<16x16xf32>
    %430 = tpu.transpose %421, [1, 0] : vector<16x16xf32> -> vector<16x16xf32>
    %431 = arith.truncf %413 : vector<16x16xf32> to vector<16x16xbf16>
    %432 = arith.truncf %430 : vector<16x16xf32> to vector<16x16xbf16>
    %cst_310 = arith.constant dense<0.000000e+00> : vector<16x16xf32>
    %433 = tpu.matmul %431, %432, %cst_310 {dimension_numbers = #tpu.dot_dimension_numbers<[1], [0], [0], [1], [0, 0, 1, 1], [], []>} : vector<16x16xbf16>, vector<16x16xbf16>, vector<16x16xf32> -> vector<16x16xf32>
    %cst_311 = arith.constant 2.500000e-01 : f32
    %434 = vector.broadcast %cst_311 : f32 to vector<16x16xf32>
    %435 = arith.mulf %433, %434 : vector<16x16xf32>
    %cst_312 = arith.constant dense<0xFF800000> : vector<16xf32>
    %436 = vector.multi_reduction <maximumf>, %435, %cst_312 [1] : vector<16x16xf32> to vector<16xf32>
    %437 = vector.shape_cast %436 : vector<16xf32> to vector<16x1xf32>
    %438 = vector.broadcast %437 : vector<16x1xf32> to vector<16x16xf32>
    %439 = arith.subf %435, %438 : vector<16x16xf32>
    %440 = math.exp %439 : vector<16x16xf32>
    %cst_313 = arith.constant dense<0.000000e+00> : vector<16xf32>
    %441 = vector.multi_reduction <add>, %440, %cst_313 [1] : vector<16x16xf32> to vector<16xf32>
    %442 = vector.shape_cast %441 : vector<16xf32> to vector<16x1xf32>
    %443 = tpu.reciprocal %442 {approx = true} : vector<16x1xf32> -> vector<16x1xf32>
    %444 = vector.broadcast %443 : vector<16x1xf32> to vector<16x16xf32>
    %445 = arith.mulf %440, %444 : vector<16x16xf32>
    %446 = arith.truncf %445 : vector<16x16xf32> to vector<16x16xbf16>
    %447 = arith.truncf %429 : vector<16x16xf32> to vector<16x16xbf16>
    %cst_314 = arith.constant dense<0.000000e+00> : vector<16x16xf32>
    %448 = tpu.matmul %446, %447, %cst_314 {dimension_numbers = #tpu.dot_dimension_numbers<[1], [0], [0], [1], [0, 0, 1, 1], [], []>} : vector<16x16xbf16>, vector<16x16xbf16>, vector<16x16xf32> -> vector<16x16xf32>
    %c1_315 = arith.constant 1 : index
    %c2_316 = arith.constant 2 : index
    %c0_317 = arith.constant 0 : index
    %c0_318 = arith.constant 0 : index
    %449 = vector.load %arg13[%c1_315, %c2_316, %c0_317, %c0_318] : memref<2x4x16x64xbf16, #tpu.memory_space<vmem>>, vector<1x1x16x64xbf16>
    %450 = vector.shape_cast %449 : vector<1x1x16x64xbf16> to vector<16x64xbf16>
    %451 = arith.truncf %448 : vector<16x16xf32> to vector<16x16xbf16>
    %cst_319 = arith.constant dense<0.000000e+00> : vector<16x64xf32>
    %452 = tpu.matmul %451, %450, %cst_319 {dimension_numbers = #tpu.dot_dimension_numbers<[1], [0], [0], [1], [0, 0, 1, 1], [], []>} : vector<16x16xbf16>, vector<16x64xbf16>, vector<16x64xf32> -> vector<16x64xf32>
    %453 = arith.addf %405, %452 : vector<16x64xf32>
    %c1_320 = arith.constant 1 : index
    %c3_321 = arith.constant 3 : index
    %c0_322 = arith.constant 0 : index
    %c0_323 = arith.constant 0 : index
    %454 = vector.load %arg7[%c1_320, %c3_321, %c0_322, %c0_323] : memref<2x4x64x16xbf16, #tpu.memory_space<vmem>>, vector<1x1x64x16xbf16>
    %455 = vector.shape_cast %454 : vector<1x1x64x16xbf16> to vector<64x16xbf16>
    %456 = arith.truncf %308 : vector<16x64xf32> to vector<16x64xbf16>
    %cst_324 = arith.constant dense<0.000000e+00> : vector<16x16xf32>
    %457 = tpu.matmul %456, %455, %cst_324 {dimension_numbers = #tpu.dot_dimension_numbers<[1], [0], [0], [1], [0, 0, 1, 1], [], []>} : vector<16x64xbf16>, vector<64x16xbf16>, vector<16x16xf32> -> vector<16x16xf32>
    %c1_325 = arith.constant 1 : index
    %c3_326 = arith.constant 3 : index
    %c0_327 = arith.constant 0 : index
    %c0_328 = arith.constant 0 : index
    %458 = vector.load %arg8[%c1_325, %c3_326, %c0_327, %c0_328] : memref<2x4x1x16xf32, #tpu.memory_space<vmem>>, vector<1x1x1x16xf32>
    %459 = vector.shape_cast %458 : vector<1x1x1x16xf32> to vector<1x16xf32>
    %460 = vector.broadcast %459 : vector<1x16xf32> to vector<16x16xf32>
    %461 = arith.addf %457, %460 : vector<16x16xf32>
    %c1_329 = arith.constant 1 : index
    %c3_330 = arith.constant 3 : index
    %c0_331 = arith.constant 0 : index
    %c0_332 = arith.constant 0 : index
    %462 = vector.load %arg9[%c1_329, %c3_330, %c0_331, %c0_332] : memref<2x4x64x16xbf16, #tpu.memory_space<vmem>>, vector<1x1x64x16xbf16>
    %463 = vector.shape_cast %462 : vector<1x1x64x16xbf16> to vector<64x16xbf16>
    %464 = arith.truncf %308 : vector<16x64xf32> to vector<16x64xbf16>
    %cst_333 = arith.constant dense<0.000000e+00> : vector<16x16xf32>
    %465 = tpu.matmul %464, %463, %cst_333 {dimension_numbers = #tpu.dot_dimension_numbers<[1], [0], [0], [1], [0, 0, 1, 1], [], []>} : vector<16x64xbf16>, vector<64x16xbf16>, vector<16x16xf32> -> vector<16x16xf32>
    %c1_334 = arith.constant 1 : index
    %c3_335 = arith.constant 3 : index
    %c0_336 = arith.constant 0 : index
    %c0_337 = arith.constant 0 : index
    %466 = vector.load %arg10[%c1_334, %c3_335, %c0_336, %c0_337] : memref<2x4x1x16xf32, #tpu.memory_space<vmem>>, vector<1x1x1x16xf32>
    %467 = vector.shape_cast %466 : vector<1x1x1x16xf32> to vector<1x16xf32>
    %468 = vector.broadcast %467 : vector<1x16xf32> to vector<16x16xf32>
    %469 = arith.addf %465, %468 : vector<16x16xf32>
    %c1_338 = arith.constant 1 : index
    %c3_339 = arith.constant 3 : index
    %c0_340 = arith.constant 0 : index
    %c0_341 = arith.constant 0 : index
    %470 = vector.load %arg11[%c1_338, %c3_339, %c0_340, %c0_341] : memref<2x4x64x16xbf16, #tpu.memory_space<vmem>>, vector<1x1x64x16xbf16>
    %471 = vector.shape_cast %470 : vector<1x1x64x16xbf16> to vector<64x16xbf16>
    %472 = arith.truncf %308 : vector<16x64xf32> to vector<16x64xbf16>
    %cst_342 = arith.constant dense<0.000000e+00> : vector<16x16xf32>
    %473 = tpu.matmul %472, %471, %cst_342 {dimension_numbers = #tpu.dot_dimension_numbers<[1], [0], [0], [1], [0, 0, 1, 1], [], []>} : vector<16x64xbf16>, vector<64x16xbf16>, vector<16x16xf32> -> vector<16x16xf32>
    %c1_343 = arith.constant 1 : index
    %c3_344 = arith.constant 3 : index
    %c0_345 = arith.constant 0 : index
    %c0_346 = arith.constant 0 : index
    %474 = vector.load %arg12[%c1_343, %c3_344, %c0_345, %c0_346] : memref<2x4x1x16xf32, #tpu.memory_space<vmem>>, vector<1x1x1x16xf32>
    %475 = vector.shape_cast %474 : vector<1x1x1x16xf32> to vector<1x16xf32>
    %476 = vector.broadcast %475 : vector<1x16xf32> to vector<16x16xf32>
    %477 = arith.addf %473, %476 : vector<16x16xf32>
    %478 = tpu.transpose %469, [1, 0] : vector<16x16xf32> -> vector<16x16xf32>
    %479 = arith.truncf %461 : vector<16x16xf32> to vector<16x16xbf16>
    %480 = arith.truncf %478 : vector<16x16xf32> to vector<16x16xbf16>
    %cst_347 = arith.constant dense<0.000000e+00> : vector<16x16xf32>
    %481 = tpu.matmul %479, %480, %cst_347 {dimension_numbers = #tpu.dot_dimension_numbers<[1], [0], [0], [1], [0, 0, 1, 1], [], []>} : vector<16x16xbf16>, vector<16x16xbf16>, vector<16x16xf32> -> vector<16x16xf32>
    %cst_348 = arith.constant 2.500000e-01 : f32
    %482 = vector.broadcast %cst_348 : f32 to vector<16x16xf32>
    %483 = arith.mulf %481, %482 : vector<16x16xf32>
    %cst_349 = arith.constant dense<0xFF800000> : vector<16xf32>
    %484 = vector.multi_reduction <maximumf>, %483, %cst_349 [1] : vector<16x16xf32> to vector<16xf32>
    %485 = vector.shape_cast %484 : vector<16xf32> to vector<16x1xf32>
    %486 = vector.broadcast %485 : vector<16x1xf32> to vector<16x16xf32>
    %487 = arith.subf %483, %486 : vector<16x16xf32>
    %488 = math.exp %487 : vector<16x16xf32>
    %cst_350 = arith.constant dense<0.000000e+00> : vector<16xf32>
    %489 = vector.multi_reduction <add>, %488, %cst_350 [1] : vector<16x16xf32> to vector<16xf32>
    %490 = vector.shape_cast %489 : vector<16xf32> to vector<16x1xf32>
    %491 = tpu.reciprocal %490 {approx = true} : vector<16x1xf32> -> vector<16x1xf32>
    %492 = vector.broadcast %491 : vector<16x1xf32> to vector<16x16xf32>
    %493 = arith.mulf %488, %492 : vector<16x16xf32>
    %494 = arith.truncf %493 : vector<16x16xf32> to vector<16x16xbf16>
    %495 = arith.truncf %477 : vector<16x16xf32> to vector<16x16xbf16>
    %cst_351 = arith.constant dense<0.000000e+00> : vector<16x16xf32>
    %496 = tpu.matmul %494, %495, %cst_351 {dimension_numbers = #tpu.dot_dimension_numbers<[1], [0], [0], [1], [0, 0, 1, 1], [], []>} : vector<16x16xbf16>, vector<16x16xbf16>, vector<16x16xf32> -> vector<16x16xf32>
    %c1_352 = arith.constant 1 : index
    %c3_353 = arith.constant 3 : index
    %c0_354 = arith.constant 0 : index
    %c0_355 = arith.constant 0 : index
    %497 = vector.load %arg13[%c1_352, %c3_353, %c0_354, %c0_355] : memref<2x4x16x64xbf16, #tpu.memory_space<vmem>>, vector<1x1x16x64xbf16>
    %498 = vector.shape_cast %497 : vector<1x1x16x64xbf16> to vector<16x64xbf16>
    %499 = arith.truncf %496 : vector<16x16xf32> to vector<16x16xbf16>
    %cst_356 = arith.constant dense<0.000000e+00> : vector<16x64xf32>
    %500 = tpu.matmul %499, %498, %cst_356 {dimension_numbers = #tpu.dot_dimension_numbers<[1], [0], [0], [1], [0, 0, 1, 1], [], []>} : vector<16x16xbf16>, vector<16x64xbf16>, vector<16x64xf32> -> vector<16x64xf32>
    %501 = arith.addf %453, %500 : vector<16x64xf32>
    %502 = arith.addf %284, %501 : vector<16x64xf32>
    %c1_357 = arith.constant 1 : index
    %c0_358 = arith.constant 0 : index
    %c0_359 = arith.constant 0 : index
    %503 = vector.load %arg14[%c1_357, %c0_358, %c0_359] : memref<2x1x64xf32, #tpu.memory_space<vmem>>, vector<1x1x64xf32>
    %504 = vector.shape_cast %503 : vector<1x1x64xf32> to vector<1x64xf32>
    %505 = vector.broadcast %504 : vector<1x64xf32> to vector<16x64xf32>
    %506 = arith.addf %502, %505 : vector<16x64xf32>
    %c1_360 = arith.constant 1 : index
    %c0_361 = arith.constant 0 : index
    %c0_362 = arith.constant 0 : index
    %507 = vector.load %arg15[%c1_360, %c0_361, %c0_362] : memref<2x1x64xf32, #tpu.memory_space<vmem>>, vector<1x1x64xf32>
    %508 = vector.shape_cast %507 : vector<1x1x64xf32> to vector<1x64xf32>
    %c1_363 = arith.constant 1 : index
    %c0_364 = arith.constant 0 : index
    %c0_365 = arith.constant 0 : index
    %509 = vector.load %arg16[%c1_363, %c0_364, %c0_365] : memref<2x1x64xf32, #tpu.memory_space<vmem>>, vector<1x1x64xf32>
    %510 = vector.shape_cast %509 : vector<1x1x64xf32> to vector<1x64xf32>
    %cst_366 = arith.constant dense<0.000000e+00> : vector<16xf32>
    %511 = vector.multi_reduction <add>, %506, %cst_366 [1] : vector<16x64xf32> to vector<16xf32>
    %512 = vector.shape_cast %511 : vector<16xf32> to vector<16x1xf32>
    %cst_367 = arith.constant 6.400000e+01 : f32
    %513 = vector.broadcast %cst_367 : f32 to vector<16x1xf32>
    %514 = arith.divf %512, %513 : vector<16x1xf32>
    %515 = vector.broadcast %514 : vector<16x1xf32> to vector<16x64xf32>
    %516 = arith.subf %506, %515 : vector<16x64xf32>
    %517 = arith.mulf %516, %516 : vector<16x64xf32>
    %cst_368 = arith.constant dense<0.000000e+00> : vector<16xf32>
    %518 = vector.multi_reduction <add>, %517, %cst_368 [1] : vector<16x64xf32> to vector<16xf32>
    %519 = vector.shape_cast %518 : vector<16xf32> to vector<16x1xf32>
    %cst_369 = arith.constant 6.400000e+01 : f32
    %520 = vector.broadcast %cst_369 : f32 to vector<16x1xf32>
    %521 = arith.divf %519, %520 : vector<16x1xf32>
    %cst_370 = arith.constant 9.99999974E-6 : f32
    %522 = vector.broadcast %cst_370 : f32 to vector<16x1xf32>
    %523 = arith.addf %521, %522 : vector<16x1xf32>
    %524 = math.rsqrt %523 : vector<16x1xf32>
    %525 = vector.broadcast %524 : vector<16x1xf32> to vector<16x64xf32>
    %526 = arith.mulf %516, %525 : vector<16x64xf32>
    %527 = vector.broadcast %508 : vector<1x64xf32> to vector<16x64xf32>
    %528 = arith.mulf %526, %527 : vector<16x64xf32>
    %529 = vector.broadcast %510 : vector<1x64xf32> to vector<16x64xf32>
    %530 = arith.addf %528, %529 : vector<16x64xf32>
    %c1_371 = arith.constant 1 : index
    %c0_372 = arith.constant 0 : index
    %c0_373 = arith.constant 0 : index
    %531 = vector.load %arg17[%c1_371, %c0_372, %c0_373] : memref<2x64x128xbf16, #tpu.memory_space<vmem>>, vector<1x64x128xbf16>
    %532 = vector.shape_cast %531 : vector<1x64x128xbf16> to vector<64x128xbf16>
    %533 = arith.truncf %530 : vector<16x64xf32> to vector<16x64xbf16>
    %cst_374 = arith.constant dense<0.000000e+00> : vector<16x128xf32>
    %534 = tpu.matmul %533, %532, %cst_374 {dimension_numbers = #tpu.dot_dimension_numbers<[1], [0], [0], [1], [0, 0, 1, 1], [], []>} : vector<16x64xbf16>, vector<64x128xbf16>, vector<16x128xf32> -> vector<16x128xf32>
    %c1_375 = arith.constant 1 : index
    %c0_376 = arith.constant 0 : index
    %c0_377 = arith.constant 0 : index
    %535 = vector.load %arg18[%c1_375, %c0_376, %c0_377] : memref<2x1x128xf32, #tpu.memory_space<vmem>>, vector<1x1x128xf32>
    %536 = vector.shape_cast %535 : vector<1x1x128xf32> to vector<1x128xf32>
    %537 = vector.broadcast %536 : vector<1x128xf32> to vector<16x128xf32>
    %538 = arith.addf %534, %537 : vector<16x128xf32>
    %539 = arith.mulf %538, %538 : vector<16x128xf32>
    %540 = arith.mulf %538, %539 : vector<16x128xf32>
    %cst_378 = arith.constant 4.471500e-02 : f32
    %541 = vector.broadcast %cst_378 : f32 to vector<16x128xf32>
    %542 = arith.mulf %541, %540 : vector<16x128xf32>
    %543 = arith.addf %538, %542 : vector<16x128xf32>
    %cst_379 = arith.constant 0.797884583 : f32
    %544 = vector.broadcast %cst_379 : f32 to vector<16x128xf32>
    %545 = arith.mulf %544, %543 : vector<16x128xf32>
    %546 = math.tanh %545 : vector<16x128xf32>
    %cst_380 = arith.constant 1.000000e+00 : f32
    %547 = vector.broadcast %cst_380 : f32 to vector<16x128xf32>
    %548 = arith.addf %547, %546 : vector<16x128xf32>
    %cst_381 = arith.constant 5.000000e-01 : f32
    %549 = vector.broadcast %cst_381 : f32 to vector<16x128xf32>
    %550 = arith.mulf %549, %548 : vector<16x128xf32>
    %551 = arith.mulf %538, %550 : vector<16x128xf32>
    %c1_382 = arith.constant 1 : index
    %c0_383 = arith.constant 0 : index
    %c0_384 = arith.constant 0 : index
    %552 = vector.load %arg19[%c1_382, %c0_383, %c0_384] : memref<2x128x64xbf16, #tpu.memory_space<vmem>>, vector<1x128x64xbf16>
    %553 = vector.shape_cast %552 : vector<1x128x64xbf16> to vector<128x64xbf16>
    %554 = arith.truncf %551 : vector<16x128xf32> to vector<16x128xbf16>
    %cst_385 = arith.constant dense<0.000000e+00> : vector<16x64xf32>
    %555 = tpu.matmul %554, %553, %cst_385 {dimension_numbers = #tpu.dot_dimension_numbers<[1], [0], [0], [1], [0, 0, 1, 1], [], []>} : vector<16x128xbf16>, vector<128x64xbf16>, vector<16x64xf32> -> vector<16x64xf32>
    %556 = arith.addf %506, %555 : vector<16x64xf32>
    %c1_386 = arith.constant 1 : index
    %c0_387 = arith.constant 0 : index
    %c0_388 = arith.constant 0 : index
    %557 = vector.load %arg20[%c1_386, %c0_387, %c0_388] : memref<2x1x64xf32, #tpu.memory_space<vmem>>, vector<1x1x64xf32>
    %558 = vector.shape_cast %557 : vector<1x1x64xf32> to vector<1x64xf32>
    %559 = vector.broadcast %558 : vector<1x64xf32> to vector<16x64xf32>
    %560 = arith.addf %556, %559 : vector<16x64xf32>
    %c0_389 = arith.constant 0 : index
    %c0_390 = arith.constant 0 : index
    %561 = vector.load %arg21[%c0_389, %c0_390] : memref<1x64xf32, #tpu.memory_space<vmem>>, vector<1x64xf32>
    %c0_391 = arith.constant 0 : index
    %c0_392 = arith.constant 0 : index
    %562 = vector.load %arg22[%c0_391, %c0_392] : memref<1x64xf32, #tpu.memory_space<vmem>>, vector<1x64xf32>
    %cst_393 = arith.constant dense<0.000000e+00> : vector<16xf32>
    %563 = vector.multi_reduction <add>, %560, %cst_393 [1] : vector<16x64xf32> to vector<16xf32>
    %564 = vector.shape_cast %563 : vector<16xf32> to vector<16x1xf32>
    %cst_394 = arith.constant 6.400000e+01 : f32
    %565 = vector.broadcast %cst_394 : f32 to vector<16x1xf32>
    %566 = arith.divf %564, %565 : vector<16x1xf32>
    %567 = vector.broadcast %566 : vector<16x1xf32> to vector<16x64xf32>
    %568 = arith.subf %560, %567 : vector<16x64xf32>
    %569 = arith.mulf %568, %568 : vector<16x64xf32>
    %cst_395 = arith.constant dense<0.000000e+00> : vector<16xf32>
    %570 = vector.multi_reduction <add>, %569, %cst_395 [1] : vector<16x64xf32> to vector<16xf32>
    %571 = vector.shape_cast %570 : vector<16xf32> to vector<16x1xf32>
    %cst_396 = arith.constant 6.400000e+01 : f32
    %572 = vector.broadcast %cst_396 : f32 to vector<16x1xf32>
    %573 = arith.divf %571, %572 : vector<16x1xf32>
    %cst_397 = arith.constant 9.99999974E-6 : f32
    %574 = vector.broadcast %cst_397 : f32 to vector<16x1xf32>
    %575 = arith.addf %573, %574 : vector<16x1xf32>
    %576 = math.rsqrt %575 : vector<16x1xf32>
    %577 = vector.broadcast %576 : vector<16x1xf32> to vector<16x64xf32>
    %578 = arith.mulf %568, %577 : vector<16x64xf32>
    %579 = vector.broadcast %561 : vector<1x64xf32> to vector<16x64xf32>
    %580 = arith.mulf %578, %579 : vector<16x64xf32>
    %581 = vector.broadcast %562 : vector<1x64xf32> to vector<16x64xf32>
    %582 = arith.addf %580, %581 : vector<16x64xf32>
    %c0_398 = arith.constant 0 : index
    %c0_399 = arith.constant 0 : index
    %c0_400 = arith.constant 0 : index
    %583 = vector.load %arg23[%c0_398, %c0_399, %c0_400] : memref<1x16x64xf32, #tpu.memory_space<vmem>>, vector<1x16x64xf32>
    %584 = vector.shape_cast %583 : vector<1x16x64xf32> to vector<16x64xf32>
    %585 = vector.shape_cast %582 : vector<16x64xf32> to vector<1x16x64xf32>
    tpu.vector_store %arg23[%c0_398, %c0_399, %c0_400], %585 {strides = array<i32>} : memref<1x16x64xf32, #tpu.memory_space<vmem>>, vector<1x16x64xf32>,
    return
  }
  func.func @transform_0(%arg0: i32) -> (i32, i32, i32) {
    %c0_i32 = arith.constant 0 : i32
    %c0_i32_0 = arith.constant 0 : i32
    %c0_i32_1 = arith.constant 0 : i32
    return %arg0, %c0_i32, %c0_i32_0 : i32, i32, i32
  }
  func.func @transform_1(%arg0: i32) -> (i32, i32) {
    %c0_i32 = arith.constant 0 : i32
    %c0_i32_0 = arith.constant 0 : i32
    %c0_i32_1 = arith.constant 0 : i32
    return %c0_i32, %c0_i32_0 : i32, i32
  }
  func.func @transform_2(%arg0: i32) -> (i32, i32) {
    %c0_i32 = arith.constant 0 : i32
    %c0_i32_0 = arith.constant 0 : i32
    %c0_i32_1 = arith.constant 0 : i32
    return %c0_i32, %c0_i32_0 : i32, i32
  }
  func.func @transform_3(%arg0: i32) -> (i32, i32) {
    %c0_i32 = arith.constant 0 : i32
    %c0_i32_0 = arith.constant 0 : i32
    %c0_i32_1 = arith.constant 0 : i32
    return %c0_i32, %c0_i32_0 : i32, i32
  }
  func.func @transform_4(%arg0: i32) -> (i32, i32, i32) {
    %c0_i32 = arith.constant 0 : i32
    %c0_i32_0 = arith.constant 0 : i32
    %c0_i32_1 = arith.constant 0 : i32
    %c0_i32_2 = arith.constant 0 : i32
    return %c0_i32, %c0_i32_0, %c0_i32_1 : i32, i32, i32
  }
  func.func @transform_5(%arg0: i32) -> (i32, i32, i32) {
    %c0_i32 = arith.constant 0 : i32
    %c0_i32_0 = arith.constant 0 : i32
    %c0_i32_1 = arith.constant 0 : i32
    %c0_i32_2 = arith.constant 0 : i32
    return %c0_i32, %c0_i32_0, %c0_i32_1 : i32, i32, i32
  }
  func.func @transform_6(%arg0: i32) -> (i32, i32, i32, i32) {
    %c0_i32 = arith.constant 0 : i32
    %c0_i32_0 = arith.constant 0 : i32
    %c0_i32_1 = arith.constant 0 : i32
    %c0_i32_2 = arith.constant 0 : i32
    %c0_i32_3 = arith.constant 0 : i32
    return %c0_i32, %c0_i32_0, %c0_i32_1, %c0_i32_2 : i32, i32, i32, i32
  }
  func.func @transform_7(%arg0: i32) -> (i32, i32, i32, i32) {
    %c0_i32 = arith.constant 0 : i32
    %c0_i32_0 = arith.constant 0 : i32
    %c0_i32_1 = arith.constant 0 : i32
    %c0_i32_2 = arith.constant 0 : i32
    %c0_i32_3 = arith.constant 0 : i32
    return %c0_i32, %c0_i32_0, %c0_i32_1, %c0_i32_2 : i32, i32, i32, i32
  }
  func.func @transform_8(%arg0: i32) -> (i32, i32, i32, i32) {
    %c0_i32 = arith.constant 0 : i32
    %c0_i32_0 = arith.constant 0 : i32
    %c0_i32_1 = arith.constant 0 : i32
    %c0_i32_2 = arith.constant 0 : i32
    %c0_i32_3 = arith.constant 0 : i32
    return %c0_i32, %c0_i32_0, %c0_i32_1, %c0_i32_2 : i32, i32, i32, i32
  }
  func.func @transform_9(%arg0: i32) -> (i32, i32, i32, i32) {
    %c0_i32 = arith.constant 0 : i32
    %c0_i32_0 = arith.constant 0 : i32
    %c0_i32_1 = arith.constant 0 : i32
    %c0_i32_2 = arith.constant 0 : i32
    %c0_i32_3 = arith.constant 0 : i32
    return %c0_i32, %c0_i32_0, %c0_i32_1, %c0_i32_2 : i32, i32, i32, i32
  }
  func.func @transform_10(%arg0: i32) -> (i32, i32, i32, i32) {
    %c0_i32 = arith.constant 0 : i32
    %c0_i32_0 = arith.constant 0 : i32
    %c0_i32_1 = arith.constant 0 : i32
    %c0_i32_2 = arith.constant 0 : i32
    %c0_i32_3 = arith.constant 0 : i32
    return %c0_i32, %c0_i32_0, %c0_i32_1, %c0_i32_2 : i32, i32, i32, i32
  }
  func.func @transform_11(%arg0: i32) -> (i32, i32, i32, i32) {
    %c0_i32 = arith.constant 0 : i32
    %c0_i32_0 = arith.constant 0 : i32
    %c0_i32_1 = arith.constant 0 : i32
    %c0_i32_2 = arith.constant 0 : i32
    %c0_i32_3 = arith.constant 0 : i32
    return %c0_i32, %c0_i32_0, %c0_i32_1, %c0_i32_2 : i32, i32, i32, i32
  }
  func.func @transform_12(%arg0: i32) -> (i32, i32, i32, i32) {
    %c0_i32 = arith.constant 0 : i32
    %c0_i32_0 = arith.constant 0 : i32
    %c0_i32_1 = arith.constant 0 : i32
    %c0_i32_2 = arith.constant 0 : i32
    %c0_i32_3 = arith.constant 0 : i32
    return %c0_i32, %c0_i32_0, %c0_i32_1, %c0_i32_2 : i32, i32, i32, i32
  }
  func.func @transform_13(%arg0: i32) -> (i32, i32, i32) {
    %c0_i32 = arith.constant 0 : i32
    %c0_i32_0 = arith.constant 0 : i32
    %c0_i32_1 = arith.constant 0 : i32
    %c0_i32_2 = arith.constant 0 : i32
    return %c0_i32, %c0_i32_0, %c0_i32_1 : i32, i32, i32
  }
  func.func @transform_14(%arg0: i32) -> (i32, i32, i32) {
    %c0_i32 = arith.constant 0 : i32
    %c0_i32_0 = arith.constant 0 : i32
    %c0_i32_1 = arith.constant 0 : i32
    %c0_i32_2 = arith.constant 0 : i32
    return %c0_i32, %c0_i32_0, %c0_i32_1 : i32, i32, i32
  }
  func.func @transform_15(%arg0: i32) -> (i32, i32, i32) {
    %c0_i32 = arith.constant 0 : i32
    %c0_i32_0 = arith.constant 0 : i32
    %c0_i32_1 = arith.constant 0 : i32
    %c0_i32_2 = arith.constant 0 : i32
    return %c0_i32, %c0_i32_0, %c0_i32_1 : i32, i32, i32
  }
  func.func @transform_16(%arg0: i32) -> (i32, i32, i32) {
    %c0_i32 = arith.constant 0 : i32
    %c0_i32_0 = arith.constant 0 : i32
    %c0_i32_1 = arith.constant 0 : i32
    %c0_i32_2 = arith.constant 0 : i32
    return %c0_i32, %c0_i32_0, %c0_i32_1 : i32, i32, i32
  }
  func.func @transform_17(%arg0: i32) -> (i32, i32, i32) {
    %c0_i32 = arith.constant 0 : i32
    %c0_i32_0 = arith.constant 0 : i32
    %c0_i32_1 = arith.constant 0 : i32
    %c0_i32_2 = arith.constant 0 : i32
    return %c0_i32, %c0_i32_0, %c0_i32_1 : i32, i32, i32
  }
  func.func @transform_18(%arg0: i32) -> (i32, i32, i32) {
    %c0_i32 = arith.constant 0 : i32
    %c0_i32_0 = arith.constant 0 : i32
    %c0_i32_1 = arith.constant 0 : i32
    %c0_i32_2 = arith.constant 0 : i32
    return %c0_i32, %c0_i32_0, %c0_i32_1 : i32, i32, i32
  }
  func.func @transform_19(%arg0: i32) -> (i32, i32, i32) {
    %c0_i32 = arith.constant 0 : i32
    %c0_i32_0 = arith.constant 0 : i32
    %c0_i32_1 = arith.constant 0 : i32
    %c0_i32_2 = arith.constant 0 : i32
    return %c0_i32, %c0_i32_0, %c0_i32_1 : i32, i32, i32
  }
  func.func @transform_20(%arg0: i32) -> (i32, i32) {
    %c0_i32 = arith.constant 0 : i32
    %c0_i32_0 = arith.constant 0 : i32
    %c0_i32_1 = arith.constant 0 : i32
    return %c0_i32, %c0_i32_0 : i32, i32
  }
  func.func @transform_21(%arg0: i32) -> (i32, i32) {
    %c0_i32 = arith.constant 0 : i32
    %c0_i32_0 = arith.constant 0 : i32
    %c0_i32_1 = arith.constant 0 : i32
    return %c0_i32, %c0_i32_0 : i32, i32
  }
  func.func @transform_22(%arg0: i32) -> (i32, i32, i32) {
    %c0_i32 = arith.constant 0 : i32
    %c0_i32_0 = arith.constant 0 : i32
    %c0_i32_1 = arith.constant 0 : i32
    return %arg0, %c0_i32, %c0_i32_0 : i32, i32, i32
  }
}

module attributes {stable_mosaic.version = 11 : i64} {
  func.func @_conv_matmul_kernel(%arg0: i32, %arg1: memref<16x144xbf16, #tpu.memory_space<vmem>>, %arg2: memref<144x256xbf16, #tpu.memory_space<vmem>>, %arg3: memref<16x1xf32, #tpu.memory_space<vmem>>, %arg4: memref<16x256xf32, #tpu.memory_space<vmem>>) attributes {dimension_semantics = [#tpu.dimension_semantics<parallel>], iteration_bounds = array<i64: 2>, scalar_prefetch = 0 : i64, scratch_operands = 0 : i64, tpu.core_type = #tpu.core_type<tc>, window_params = [{pipeline_mode = #tpu.pipeline_mode<synchronous>, transform_indices = @transform_0, window_bounds = array<i64: 16, 144>}, {transform_indices = @transform_1, window_bounds = array<i64: 144, 256>}, {pipeline_mode = #tpu.pipeline_mode<synchronous>, transform_indices = @transform_2, window_bounds = array<i64: 16, 1>}, {transform_indices = @transform_3, window_bounds = array<i64: 16, 256>}]} {
    %c0 = arith.constant 0 : index
    %c0_0 = arith.constant 0 : index
    %0 = vector.load %arg1[%c0, %c0_0] : memref<16x144xbf16, #tpu.memory_space<vmem>>, vector<16x144xbf16>
    %c0_1 = arith.constant 0 : index
    %c0_2 = arith.constant 0 : index
    %1 = vector.load %arg2[%c0_1, %c0_2] : memref<144x256xbf16, #tpu.memory_space<vmem>>, vector<144x256xbf16>
    %cst = arith.constant dense<0.000000e+00> : vector<16x256xf32>
    %2 = tpu.matmul %0, %1, %cst {dimension_numbers = #tpu.dot_dimension_numbers<[1], [0], [0], [1], [0, 0, 1, 1], [], []>} : vector<16x144xbf16>, vector<144x256xbf16>, vector<16x256xf32> -> vector<16x256xf32>
    %c0_3 = arith.constant 0 : index
    %c0_4 = arith.constant 0 : index
    %3 = vector.load %arg3[%c0_3, %c0_4] : memref<16x1xf32, #tpu.memory_space<vmem>>, vector<16x1xf32>
    %4 = vector.broadcast %3 : vector<16x1xf32> to vector<16x256xf32>
    %5 = arith.addf %2, %4 : vector<16x256xf32>
    %cst_5 = arith.constant 0.000000e+00 : f32
    %6 = vector.broadcast %cst_5 : f32 to vector<16x256xf32>
    %7 = arith.maximumf %5, %6 : vector<16x256xf32>
    %c0_6 = arith.constant 0 : index
    %c0_7 = arith.constant 0 : index
    %8 = vector.load %arg4[%c0_6, %c0_7] : memref<16x256xf32, #tpu.memory_space<vmem>>, vector<16x256xf32>
    tpu.vector_store %arg4[%c0_6, %c0_7], %7 {strides = array<i32>} : memref<16x256xf32, #tpu.memory_space<vmem>>, vector<16x256xf32>,
    return
  }
  func.func @transform_0(%arg0: i32) -> (i32, i32) {
    %c0_i32 = arith.constant 0 : i32
    %c0_i32_0 = arith.constant 0 : i32
    %c0_i32_1 = arith.constant 0 : i32
    return %c0_i32, %c0_i32_0 : i32, i32
  }
  func.func @transform_1(%arg0: i32) -> (i32, i32) {
    %c0_i32 = arith.constant 0 : i32
    %c0_i32_0 = arith.constant 0 : i32
    return %c0_i32, %arg0 : i32, i32
  }
  func.func @transform_2(%arg0: i32) -> (i32, i32) {
    %c0_i32 = arith.constant 0 : i32
    %c0_i32_0 = arith.constant 0 : i32
    %c0_i32_1 = arith.constant 0 : i32
    return %c0_i32, %c0_i32_0 : i32, i32
  }
  func.func @transform_3(%arg0: i32) -> (i32, i32) {
    %c0_i32 = arith.constant 0 : i32
    %c0_i32_0 = arith.constant 0 : i32
    return %c0_i32, %arg0 : i32, i32
  }
}

module attributes {stable_mosaic.version = 11 : i64} {
  func.func @_conv_matmul_kernel(%arg0: i32, %arg1: memref<8x144xbf16, #tpu.memory_space<vmem>>, %arg2: memref<144x1024xbf16, #tpu.memory_space<vmem>>, %arg3: memref<8x1xf32, #tpu.memory_space<vmem>>, %arg4: memref<8x1024xf32, #tpu.memory_space<vmem>>) attributes {dimension_semantics = [#tpu.dimension_semantics<parallel>], iteration_bounds = array<i64: 2>, scalar_prefetch = 0 : i64, scratch_operands = 0 : i64, tpu.core_type = #tpu.core_type<tc>, window_params = [{pipeline_mode = #tpu.pipeline_mode<synchronous>, transform_indices = @transform_0, window_bounds = array<i64: 8, 144>}, {transform_indices = @transform_1, window_bounds = array<i64: 144, 1024>}, {pipeline_mode = #tpu.pipeline_mode<synchronous>, transform_indices = @transform_2, window_bounds = array<i64: 8, 1>}, {transform_indices = @transform_3, window_bounds = array<i64: 8, 1024>}]} {
    %c0 = arith.constant 0 : index
    %c0_0 = arith.constant 0 : index
    %0 = vector.load %arg1[%c0, %c0_0] : memref<8x144xbf16, #tpu.memory_space<vmem>>, vector<8x144xbf16>
    %c0_1 = arith.constant 0 : index
    %c0_2 = arith.constant 0 : index
    %1 = vector.load %arg2[%c0_1, %c0_2] : memref<144x1024xbf16, #tpu.memory_space<vmem>>, vector<144x1024xbf16>
    %cst = arith.constant dense<0.000000e+00> : vector<8x1024xf32>
    %2 = tpu.matmul %0, %1, %cst {dimension_numbers = #tpu.dot_dimension_numbers<[1], [0], [0], [1], [0, 0, 1, 1], [], []>} : vector<8x144xbf16>, vector<144x1024xbf16>, vector<8x1024xf32> -> vector<8x1024xf32>
    %c0_3 = arith.constant 0 : index
    %c0_4 = arith.constant 0 : index
    %3 = vector.load %arg3[%c0_3, %c0_4] : memref<8x1xf32, #tpu.memory_space<vmem>>, vector<8x1xf32>
    %4 = vector.broadcast %3 : vector<8x1xf32> to vector<8x1024xf32>
    %5 = arith.addf %2, %4 : vector<8x1024xf32>
    %cst_5 = arith.constant 0.000000e+00 : f32
    %6 = vector.broadcast %cst_5 : f32 to vector<8x1024xf32>
    %7 = arith.maximumf %5, %6 : vector<8x1024xf32>
    %c0_6 = arith.constant 0 : index
    %c0_7 = arith.constant 0 : index
    %8 = vector.load %arg4[%c0_6, %c0_7] : memref<8x1024xf32, #tpu.memory_space<vmem>>, vector<8x1024xf32>
    tpu.vector_store %arg4[%c0_6, %c0_7], %7 {strides = array<i32>} : memref<8x1024xf32, #tpu.memory_space<vmem>>, vector<8x1024xf32>,
    return
  }
  func.func @transform_0(%arg0: i32) -> (i32, i32) {
    %c0_i32 = arith.constant 0 : i32
    %c0_i32_0 = arith.constant 0 : i32
    %c0_i32_1 = arith.constant 0 : i32
    return %c0_i32, %c0_i32_0 : i32, i32
  }
  func.func @transform_1(%arg0: i32) -> (i32, i32) {
    %c0_i32 = arith.constant 0 : i32
    %c0_i32_0 = arith.constant 0 : i32
    return %c0_i32, %arg0 : i32, i32
  }
  func.func @transform_2(%arg0: i32) -> (i32, i32) {
    %c0_i32 = arith.constant 0 : i32
    %c0_i32_0 = arith.constant 0 : i32
    %c0_i32_1 = arith.constant 0 : i32
    return %c0_i32, %c0_i32_0 : i32, i32
  }
  func.func @transform_3(%arg0: i32) -> (i32, i32) {
    %c0_i32 = arith.constant 0 : i32
    %c0_i32_0 = arith.constant 0 : i32
    return %c0_i32, %arg0 : i32, i32
  }
}

module attributes {stable_mosaic.version = 11 : i64} {
  func.func @_conv_matmul_kernel(%arg0: i32, %arg1: memref<8x72xbf16, #tpu.memory_space<vmem>>, %arg2: memref<72x4096xbf16, #tpu.memory_space<vmem>>, %arg3: memref<8x1xf32, #tpu.memory_space<vmem>>, %arg4: memref<8x4096xf32, #tpu.memory_space<vmem>>) attributes {dimension_semantics = [#tpu.dimension_semantics<parallel>], iteration_bounds = array<i64: 2>, scalar_prefetch = 0 : i64, scratch_operands = 0 : i64, tpu.core_type = #tpu.core_type<tc>, window_params = [{pipeline_mode = #tpu.pipeline_mode<synchronous>, transform_indices = @transform_0, window_bounds = array<i64: 8, 72>}, {transform_indices = @transform_1, window_bounds = array<i64: 72, 4096>}, {pipeline_mode = #tpu.pipeline_mode<synchronous>, transform_indices = @transform_2, window_bounds = array<i64: 8, 1>}, {transform_indices = @transform_3, window_bounds = array<i64: 8, 4096>}]} {
    %c0 = arith.constant 0 : index
    %c0_0 = arith.constant 0 : index
    %0 = vector.load %arg1[%c0, %c0_0] : memref<8x72xbf16, #tpu.memory_space<vmem>>, vector<8x72xbf16>
    %c0_1 = arith.constant 0 : index
    %c0_2 = arith.constant 0 : index
    %1 = vector.load %arg2[%c0_1, %c0_2] : memref<72x4096xbf16, #tpu.memory_space<vmem>>, vector<72x4096xbf16>
    %cst = arith.constant dense<0.000000e+00> : vector<8x4096xf32>
    %2 = tpu.matmul %0, %1, %cst {dimension_numbers = #tpu.dot_dimension_numbers<[1], [0], [0], [1], [0, 0, 1, 1], [], []>} : vector<8x72xbf16>, vector<72x4096xbf16>, vector<8x4096xf32> -> vector<8x4096xf32>
    %c0_3 = arith.constant 0 : index
    %c0_4 = arith.constant 0 : index
    %3 = vector.load %arg3[%c0_3, %c0_4] : memref<8x1xf32, #tpu.memory_space<vmem>>, vector<8x1xf32>
    %4 = vector.broadcast %3 : vector<8x1xf32> to vector<8x4096xf32>
    %5 = arith.addf %2, %4 : vector<8x4096xf32>
    %cst_5 = arith.constant 0.000000e+00 : f32
    %6 = vector.broadcast %cst_5 : f32 to vector<8x4096xf32>
    %7 = arith.maximumf %5, %6 : vector<8x4096xf32>
    %c0_6 = arith.constant 0 : index
    %c0_7 = arith.constant 0 : index
    %8 = vector.load %arg4[%c0_6, %c0_7] : memref<8x4096xf32, #tpu.memory_space<vmem>>, vector<8x4096xf32>
    tpu.vector_store %arg4[%c0_6, %c0_7], %7 {strides = array<i32>} : memref<8x4096xf32, #tpu.memory_space<vmem>>, vector<8x4096xf32>,
    return
  }
  func.func @transform_0(%arg0: i32) -> (i32, i32) {
    %c0_i32 = arith.constant 0 : i32
    %c0_i32_0 = arith.constant 0 : i32
    %c0_i32_1 = arith.constant 0 : i32
    return %c0_i32, %c0_i32_0 : i32, i32
  }
  func.func @transform_1(%arg0: i32) -> (i32, i32) {
    %c0_i32 = arith.constant 0 : i32
    %c0_i32_0 = arith.constant 0 : i32
    return %c0_i32, %arg0 : i32, i32
  }
  func.func @transform_2(%arg0: i32) -> (i32, i32) {
    %c0_i32 = arith.constant 0 : i32
    %c0_i32_0 = arith.constant 0 : i32
    %c0_i32_1 = arith.constant 0 : i32
    return %c0_i32, %c0_i32_0 : i32, i32
  }
  func.func @transform_3(%arg0: i32) -> (i32, i32) {
    %c0_i32 = arith.constant 0 : i32
    %c0_i32_0 = arith.constant 0 : i32
    return %c0_i32, %arg0 : i32, i32
  }
}

module attributes {stable_mosaic.version = 11 : i64} {
  func.func @_conv_matmul_kernel(%arg0: i32, %arg1: memref<3x72xbf16, #tpu.memory_space<vmem>>, %arg2: memref<72x4096xbf16, #tpu.memory_space<vmem>>, %arg3: memref<3x1xf32, #tpu.memory_space<vmem>>, %arg4: memref<3x4096xf32, #tpu.memory_space<vmem>>) attributes {dimension_semantics = [#tpu.dimension_semantics<parallel>], iteration_bounds = array<i64: 2>, scalar_prefetch = 0 : i64, scratch_operands = 0 : i64, tpu.core_type = #tpu.core_type<tc>, window_params = [{pipeline_mode = #tpu.pipeline_mode<synchronous>, transform_indices = @transform_0, window_bounds = array<i64: 3, 72>}, {transform_indices = @transform_1, window_bounds = array<i64: 72, 4096>}, {pipeline_mode = #tpu.pipeline_mode<synchronous>, transform_indices = @transform_2, window_bounds = array<i64: 3, 1>}, {transform_indices = @transform_3, window_bounds = array<i64: 3, 4096>}]} {
    %c0 = arith.constant 0 : index
    %c0_0 = arith.constant 0 : index
    %0 = vector.load %arg1[%c0, %c0_0] : memref<3x72xbf16, #tpu.memory_space<vmem>>, vector<3x72xbf16>
    %c0_1 = arith.constant 0 : index
    %c0_2 = arith.constant 0 : index
    %1 = vector.load %arg2[%c0_1, %c0_2] : memref<72x4096xbf16, #tpu.memory_space<vmem>>, vector<72x4096xbf16>
    %cst = arith.constant dense<0.000000e+00> : vector<3x4096xf32>
    %2 = tpu.matmul %0, %1, %cst {dimension_numbers = #tpu.dot_dimension_numbers<[1], [0], [0], [1], [0, 0, 1, 1], [], []>} : vector<3x72xbf16>, vector<72x4096xbf16>, vector<3x4096xf32> -> vector<3x4096xf32>
    %c0_3 = arith.constant 0 : index
    %c0_4 = arith.constant 0 : index
    %3 = vector.load %arg3[%c0_3, %c0_4] : memref<3x1xf32, #tpu.memory_space<vmem>>, vector<3x1xf32>
    %4 = vector.broadcast %3 : vector<3x1xf32> to vector<3x4096xf32>
    %5 = arith.addf %2, %4 : vector<3x4096xf32>
    %6 = math.tanh %5 : vector<3x4096xf32>
    %c0_5 = arith.constant 0 : index
    %c0_6 = arith.constant 0 : index
    %7 = vector.load %arg4[%c0_5, %c0_6] : memref<3x4096xf32, #tpu.memory_space<vmem>>, vector<3x4096xf32>
    tpu.vector_store %arg4[%c0_5, %c0_6], %6 {strides = array<i32>} : memref<3x4096xf32, #tpu.memory_space<vmem>>, vector<3x4096xf32>,
    return
  }
  func.func @transform_0(%arg0: i32) -> (i32, i32) {
    %c0_i32 = arith.constant 0 : i32
    %c0_i32_0 = arith.constant 0 : i32
    %c0_i32_1 = arith.constant 0 : i32
    return %c0_i32, %c0_i32_0 : i32, i32
  }
  func.func @transform_1(%arg0: i32) -> (i32, i32) {
    %c0_i32 = arith.constant 0 : i32
    %c0_i32_0 = arith.constant 0 : i32
    return %c0_i32, %arg0 : i32, i32
  }
  func.func @transform_2(%arg0: i32) -> (i32, i32) {
    %c0_i32 = arith.constant 0 : i32
    %c0_i32_0 = arith.constant 0 : i32
    %c0_i32_1 = arith.constant 0 : i32
    return %c0_i32, %c0_i32_0 : i32, i32
  }
  func.func @transform_3(%arg0: i32) -> (i32, i32) {
    %c0_i32 = arith.constant 0 : i32
    %c0_i32_0 = arith.constant 0 : i32
    return %c0_i32, %arg0 : i32, i32
  }
}

</mosaic_0001>

<bundles_post_ra>
// kernel: _lambda_.5
= control target key start
LH: loop header
LB: loop body
LE: loop exit
PB: predicated region body
PF: predicated region fallthrough
CT: control target
= control target key end

     0   :  { %s8434_s0 = inlined_call_operand.vmem [shape: bf16[2,16,768], index: 0, kind: input, shape index: {}]   ;;  %s8435_s1 = inlined_call_operand.vmem [shape: bf16[768,64], index: 1, kind: input, shape index: {}]   ;;  %s8436_s2 = inlined_call_operand.vmem [shape: f32[1,64], index: 2, kind: input, shape index: {}]   ;;  %s8437_s3 = inlined_call_operand.vmem [shape: f32[16,64], index: 3, kind: input, shape index: {}]   ;;  %s8438_s4 = inlined_call_operand.vmem [shape: f32[2,1,64], index: 4, kind: input, shape index: {}]   ;;  %s8439_s5 = inlined_call_operand.vmem [shape: f32[2,1,64], index: 5, kind: input, shape index: {}]   ;;  %s8440_s6 = inlined_call_operand.vmem [shape: bf16[2,4,64,16], index: 6, kind: input, shape index: {}]   ;;  %s8441_s7 = inlined_call_operand.vmem [shape: f32[2,4,1,16], index: 7, kind: input, shape index: {}]   ;;  %s8442_s8 = inlined_call_operand.vmem [shape: bf16[2,4,64,16], index: 8, kind: input, shape index: {}]   ;;  %s8443_s9 = inlined_call_operand.vmem [shape: f32[2,4,1,16], index: 9, kind: input, shape index: {}]   ;;  %s8444_s10 = inlined_call_operand.vmem [shape: bf16[2,4,64,16], index: 10, kind: input, shape index: {}]   ;;  %s8445_s11 = inlined_call_operand.vmem [shape: f32[2,4,1,16], index: 11, kind: input, shape index: {}]   ;;  %s8446_s12 = inlined_call_operand.vmem [shape: bf16[2,4,16,64], index: 12, kind: input, shape index: {}]   ;;  %s8447_s13 = inlined_call_operand.vmem [shape: f32[2,1,64], index: 13, kind: input, shape index: {}]   ;;  %s8448_s14 = inlined_call_operand.vmem [shape: f32[2,1,64], index: 14, kind: input, shape index: {}]   ;;  %s8449_s15 = inlined_call_operand.vmem [shape: f32[2,1,64], index: 15, kind: input, shape index: {}]   ;;  %s8450_s16 = inlined_call_operand.vmem [shape: bf16[2,64,128], index: 16, kind: input, shape index: {}]   ;;  %s8451_s17 = inlined_call_operand.vmem [shape: f32[2,1,128], index: 17, kind: input, shape index: {}]   ;;  %s8452_s18 = inlined_call_operand.vmem [shape: bf16[2,128,64], index: 18, kind: input, shape index: {}]   ;;  %s8453_s19 = inlined_call_operand.vmem [shape: f32[2,1,64], index: 19, kind: input, shape index: {}]   ;;  %s8454_s20 = inlined_call_operand.vmem [shape: f32[1,64], index: 20, kind: input, shape index: {}]   ;;  %s8455_s21 = inlined_call_operand.vmem [shape: f32[1,64], index: 21, kind: input, shape index: {}]   ;;  %s8456_s22 = inlined_call_operand.vmem [shape: f32[2,16,64], index: 22, kind: output, shape index: {}]  }
   0x1   :  { %8462 = sst [smem:[#allocation2_spill]] %s8434_s0 }
   0x2   :  { %8463 = sst [smem:[#allocation3_spill]] %s8435_s1 }
   0x3   :  { %8464 = sst [smem:[#allocation4_spill]] %s8436_s2 }
   0x4   :  { %8465 = sst [smem:[#allocation5_spill]] %s8437_s3  ;;  %s7270_s3 = smov 0  }
   0x5   :  { %8466 = sst [smem:[#allocation6_spill]] %s8438_s4 }
   0x6   :  { %8467 = sst [smem:[#allocation7_spill]] %s8439_s5 }
   0x7   :  { %8468 = sst [smem:[#allocation8_spill]] %s8440_s6 }
   0x8 LB: > { %s5581_s28 = sadd.s32 4294967295, %s7151_s3   ;;  %p5585_p0 = scmp.ge.s32.totalorder %s7151_s3, 1  ;;  %s7151_s3 = sphi %s7270_s3, %s32_s3  }
   0x9   : > { %p612_p1 = scmp.lt.s32.totalorder %s7151_s3, 3 }
   0xb   : > { %p613_p2 = pnand %p5585_p0, %p612_p1 }
   0xc   : > { %s8469_s4 = sld [smem:[#allocation3_spill]] (!%p613_p2)  ;;  %p674_p3 = scmp.lt.s32.totalorder (!%p613_p2), %s5581_s28, 1  ;;  %vm1241_vm0 = vcmask (!%p613_p2), 523264   ;;  %vm7154_vm1 = vmmov (!%p613_p2), 0   ;;  %vm1563_vm2 = vcmask (!%p613_p2), 130048  }
   0xd   : > { %616 = sbr.rel (%p613_p2) target bundleno = 11494 (0x2ce6), region = 108  ;;  %s8470_s30 = sld [smem:[#allocation2_spill]] (!%p613_p2) }
   0xe   : > { %s8471_s2 = sld [smem:[#allocation4_spill]] (!%p613_p2)  ;;  %s8472_s29 = sld [smem:[#allocation5_spill]] (!%p613_p2) }
   0xf   : > { %s8473_s6 = sld [smem:[#allocation8_spill]] (!%p613_p2)  ;;  %s8475_s24 = sld [smem:[#allocation7_spill]] (!%p613_p2) }
  0x12   : > { %v6868_v0 = vld [vmem:[%s8469_s4 + $0x40] sm:$0xff] (!%p613_p2)   ;;  %v6872_v4 = vld [vmem:[%s8469_s4 + $0x48] sm:$0xff] (!%p613_p2)   ;;  %v6876_v8 = vld [vmem:[%s8469_s4 + $0x50] sm:$0xff] (!%p613_p2)  }
  0x13   : > { %v6869_v1 = vld [vmem:[%s8469_s4] sm:$0xff] (!%p613_p2)   ;;  %6099 = vmatprep.subr.bf16.mxu0 (!%p613_p2), %v6868_v0  ;;  %v6873_v5 = vld [vmem:[%s8469_s4 + $0x8] sm:$0xff] (!%p613_p2)   ;;  %v6877_v9 = vld [vmem:[%s8469_s4 + $0x10] sm:$0xff] (!%p613_p2)  }
  0x14   : > { %v6870_v2 = vld [vmem:[%s8469_s4 + $0xc0] sm:$0xff]   ;;  %6100 = vmatpush3.bf16.msra.mxu0 %v6869_v1  ;;  %v6874_v6 = vld [vmem:[%s8469_s4 + $0xc8] sm:$0xff]   ;;  %v6878_v10 = vld [vmem:[%s8469_s4 + $0xd0] sm:$0xff]   ;;  %s8477_s28 = smov (!%p674_p3, %s5581_s28), 1 }
  0x15   : > { %v6871_v3 = vld [vmem:[%s8469_s4 + $0x80] sm:$0xff]   ;;  %6121 = vmatprep.subr.bf16.mxu1 %v6870_v2  ;;  %6101 = vmatprep.subr.bf16.mxu0 %v6872_v4  ;;  %v6875_v7 = vld [vmem:[%s8469_s4 + $0x88] sm:$0xff]   ;;  %v6879_v11 = vld [vmem:[%s8469_s4 + $0x90] sm:$0xff]   ;;  %s6857_s0 = smul.u32 48, %s8477_s28  ;;  %s6098_s26 = sshll.u32 %s8477_s28, 4 }
  0x16   : > { %6122 = vmatpush3.bf16.msra.mxu1 %v6871_v3  ;;  %v6880_v12 = vld [vmem:[%s8469_s4 + $0x58] sm:$0xff]   ;;  %v6884_v16 = vld [vmem:[%s8469_s4 + $0x60] sm:$0xff]   ;;  %v6888_v20 = vld [vmem:[%s8469_s4 + $0x68] sm:$0xff]   ;;  %s683_s5 = scalar_lea.vmem %s8456_s22, %s6098_s26 }
  0x17   : > { %6123 = vmatprep.subr.bf16.mxu1 %v6874_v6  ;;  %v6881_v13 = vld [vmem:[%s8469_s4 + $0x18] sm:$0xff]   ;;  %v6885_v17 = vld [vmem:[%s8469_s4 + $0x20] sm:$0xff]   ;;  %v6889_v21 = vld [vmem:[%s8469_s4 + $0x28] sm:$0xff]   ;;  %s7375_s23 = scalar_lea.vmem %s8470_s30, %s6857_s0  ;;  %s8474_s30 = sld [smem:[#allocation6_spill]] }
  0x18   : > { %6102 = vmatpush3.bf16.msra.mxu0 %v6873_v5  ;;  %v6882_v14 = vld [vmem:[%s8469_s4 + $0xd8] sm:$0xff]   ;;  %v6886_v18 = vld [vmem:[%s8469_s4 + $0xe0] sm:$0xff]   ;;  %v6890_v22 = vld [vmem:[%s8469_s4 + $0xe8] sm:$0xff]  }
  0x19   : > { %6103 = vmatprep.subr.bf16.mxu0 %v6876_v8  ;;  %v6883_v15 = vld [vmem:[%s8469_s4 + $0x98] sm:$0xff]   ;;  %v6887_v19 = vld [vmem:[%s8469_s4 + $0xa0] sm:$0xff]   ;;  %v6891_v23 = vld [vmem:[%s8469_s4 + $0xa8] sm:$0xff]  }
  0x1a   : > { %6124 = vmatpush3.bf16.msra.mxu1 %v6875_v7  ;;  %v6892_v24 = vld [vmem:[%s8469_s4 + $0x70] sm:$0xff]   ;;  %v6896_v28 = vld [vmem:[%s8469_s4 + $0x78] sm:$0xff]   ;;  %v6903_v34 = vld [vmem:[%s8469_s4 + $0x140] sm:$0xff]  }
  0x1b   : > { %6125 = vmatprep.subr.bf16.mxu1 %v6878_v10  ;;  %v6893_v25 = vld [vmem:[%s8469_s4 + $0x30] sm:$0xff]   ;;  %v6897_v29 = vld [vmem:[%s8469_s4 + $0x38] sm:$0xff]   ;;  %v6904_v35 = vld [vmem:[%s7375_s23 + $0x8] ss:$24 sps:$4 sm:$0xff]  }
  0x1c   : > { %6104 = vmatpush3.bf16.msra.mxu0 %v6877_v9  ;;  %v6894_v26 = vld [vmem:[%s8469_s4 + $0xf0] sm:$0xff]   ;;  %v6898_v30 = vld [vmem:[%s8469_s4 + $0xf8] sm:$0xff]   ;;  %v6906_v36 = vld [vmem:[%s7375_s23 + $0xc] ss:$24 sps:$4 sm:$0xff]  }
  0x1d   : > { %6105 = vmatprep.subr.bf16.mxu0 %v6880_v12  ;;  %v6895_v27 = vld [vmem:[%s8469_s4 + $0xb0] sm:$0xff]   ;;  %v6899_v31 = vld [vmem:[%s7375_s23] ss:$24 sps:$4 sm:$0xff]   ;;  %v6901_v32 = vld [vmem:[%s7375_s23 + $0x4] ss:$24 sps:$4 sm:$0xff]   ;;  %1185 = vmatprep.mubr.bf16.mxu1 %v6906_v36 }
  0x1e   : > { %6126 = vmatpush3.bf16.msra.mxu1 %v6879_v11  ;;  %v6902_v33 = vld [vmem:[%s8469_s4 + $0xb8] sm:$0xff]   ;;  %1144 = vmatprep.mubr.bf16.mxu0 %v6901_v32  ;;  %v6907_v37 = vld [vmem:[%s8469_s4 + $0x100] sm:$0xff]   ;;  %v6908_v38 = vld [vmem:[%s8469_s4 + $0x148] sm:$0xff]   ;;  %v7153_v32 = vmov 0.0  }
  0x1f   : > { %6127 = vmatprep.subr.bf16.mxu1 %v6882_v14  ;;  %v6909_v39 = vld [vmem:[%s8469_s4 + $0x108] sm:$0xff]   ;;  %v6910_v40 = vld [vmem:[%s8469_s4 + $0x150] sm:$0xff]   ;;  %v6912_v42 = vld [vmem:[%s8469_s4 + $0x158] sm:$0xff]  }
  0x20   : > { %6106 = vmatpush3.bf16.msra.mxu0 %v6881_v13  ;;  %v6911_v41 = vld [vmem:[%s8469_s4 + $0x110] sm:$0xff]   ;;  %v6913_v43 = vld [vmem:[%s8469_s4 + $0x118] sm:$0xff]   ;;  %v6914_v44 = vld [vmem:[%s8469_s4 + $0x160] sm:$0xff]  }
  0x21   : > { %6107 = vmatprep.subr.bf16.mxu0 %v6884_v16  ;;  %v6915_v45 = vld [vmem:[%s8469_s4 + $0x120] sm:$0xff]   ;;  %v6916_v46 = vld [vmem:[%s8469_s4 + $0x168] sm:$0xff]   ;;  %v6918_v49 = vld [vmem:[%s8469_s4 + $0x170] sm:$0xff]  }
  0x22   : > { %6128 = vmatpush3.bf16.msra.mxu1 %v6883_v15  ;;  %v6924_v47 = vld [vmem:[%s7375_s23 + $0x14] ss:$24 sps:$4 sm:$0xff]   ;;  %v6920_v51 = vld [vmem:[%s8469_s4 + $0x178] sm:$0xff]   ;;  %v6922_v53 = vld [vmem:[%s7375_s23 + $0x10] ss:$24 sps:$4 sm:$0xff]  }
  0x23   : > { %6129 = vmatprep.subr.bf16.mxu1 %v6886_v18  ;;  %v6917_v48 = vld [vmem:[%s8469_s4 + $0x128] sm:$0xff]   ;;  %v6919_v50 = vld [vmem:[%s8469_s4 + $0x130] sm:$0xff]   ;;  %v6921_v52 = vld [vmem:[%s8469_s4 + $0x138] sm:$0xff]  }
  0x24   : > { %6108 = vmatpush3.bf16.msra.mxu0 %v6885_v17  ;;  %v5589_v55 = vld [vmem:[%s8471_s2] ss:$0 sm:$0xff]  ;;  %v1236_v15 = vld [vmem:[%s8472_s29 + $0x8] sm:$0xff]  ;;  %v6929_v36 = vld [vmem:[%s8473_s6 + $0x10] sm:$0xff]  }
  0x25   : > { %6109 = vmatprep.subr.bf16.mxu0 %v6888_v20  ;;  %v1235_v12 = vld [vmem:[%s8472_s29] sm:$0xff] }
  0x26   : > { %6130 = vmatpush3.bf16.msra.mxu1 %v6887_v19 }
  0x27   : > { %6131 = vmatprep.subr.bf16.mxu1 %v6890_v22 }
  0x28   : > { %6110 = vmatpush3.bf16.msra.mxu0 %v6889_v21 }
  0x29   : > { %6111 = vmatprep.subr.bf16.mxu0 %v6892_v24 }
  0x2a   : > { %6132 = vmatpush3.bf16.msra.mxu1 %v6891_v23 }
  0x2b   : > { %6133 = vmatprep.subr.bf16.mxu1 %v6894_v26 }
  0x2c   : > { %6112 = vmatpush3.bf16.msra.mxu0 %v6893_v25 }
  0x2d   : > { %6113 = vmatprep.subr.bf16.mxu0 %v6896_v28 }
  0x2e   : > { %6134 = vmatpush3.bf16.msra.mxu1 %v6895_v27 }
  0x2f   : > { %6135 = vmatprep.subr.bf16.mxu1 %v6898_v30 }
  0x30   : > { %6114 = vmatpush3.bf16.msra.mxu0 %v6897_v29 }
  0x31   : > { %6143 = vmatprep.subr.bf16.mxu0 %v6903_v34  ;;  %v6927_v34 = vld [vmem:[%s8473_s6 + $0x8] sm:$0xff]  }
  0x32   : > { %6136 = vmatpush3.bf16.msra.mxu1 %v6902_v33  ;;  %v6926_v33 = vld [vmem:[%s8444_s10] sm:$0xff]  }
  0x33   : > { %1145 = vmatmul.mubr.bf16.vlgmr.msra.gmra.mrb[0].mxu0 %v6899_v31  ;;  %v6925_v31 = vld [vmem:[%s8473_s6] sm:$0xff]   ;;  %6361 = vmatprep.subr.bf16.mxu1 %v7153_v32 }
  0x34   : > { %6144 = vmatpush3.bf16.msra.mxu0 %v6907_v37  ;;  %1226 = vmatprep.mubr.bf16.mxu0 %v6924_v47  ;;  %v6930_v37 = vld [vmem:[%s8444_s10 + $0x10] sm:$0xff]  }
  0x35   : > { %1186 = vmatmul.mubr.bf16.vlgmr.msra.gmra.mrb[0].mxu1 %v6904_v35  ;;  %6145 = vmatprep.subr.bf16.mxu0 %v6908_v38  ;;  %v6928_v35 = vld [vmem:[%s8444_s10 + $0x8] sm:$0xff]   ;;  %v6931_v38 = vld [vmem:[%s8473_s6 + $0x18] sm:$0xff]  }
  0x36   : > { %6362 = vmatpush3.bf16.msra.mxu1 %v6925_v31  ;;  %6369 = vmatprep.mubr.msk.bf16.mxu1 %vm7154_vm1, %v7153_v32  ;;  %v6943_v31 = vld [vmem:[%s8444_s10 + $0x30] sm:$0xff]  }
  0x37   : > { %6363 = vmatprep.subr.bf16.mxu1 %v7153_v32 }
  0x38   : > { %6146 = vmatpush3.bf16.msra.mxu0 %v6909_v39  ;;  %v6932_v39 = vld [vmem:[%s8444_s10 + $0x18] sm:$0xff]  }
  0x39   : > { %6147 = vmatprep.subr.bf16.mxu0 %v6910_v40 }
  0x3a   : > { %6364 = vmatpush3.bf16.msra.mxu1 %v6927_v34 }
  0x3b   : > { %6365 = vmatprep.subr.bf16.mxu1 %v7153_v32 }
  0x3c   : > { %6148 = vmatpush3.bf16.msra.mxu0 %v6911_v41 }
  0x3d   : > { %6149 = vmatprep.subr.bf16.mxu0 %v6912_v42 }
  0x3e   : > { %6366 = vmatpush3.bf16.msra.mxu1 %v6929_v36 }
  0x3f   : > { %6367 = vmatprep.subr.bf16.mxu1 %v7153_v32 }
  0x40   : > { %6150 = vmatpush3.bf16.msra.mxu0 %v6913_v43 }
  0x41   : > { %6151 = vmatprep.subr.bf16.mxu0 %v6914_v44 }
  0x42   : > { %6368 = vmatpush3.bf16.msra.mxu1 %v6931_v38 }
  0x43   : > { %6373 = vmatprep.subr.bf16.mxu1 %v7153_v32 }
  0x44   : > { %6152 = vmatpush3.bf16.msra.mxu0 %v6915_v45 }
  0x45   : > { %6153 = vmatprep.subr.bf16.mxu0 %v6916_v46 }
  0x48   : > { %6154 = vmatpush3.bf16.msra.mxu0 %v6917_v48  ;;  %v5644_v48 = vld [vmem:[%s8474_s30] ss:$0 sm:$0xff] }
  0x49   : > { %6155 = vmatprep.subr.bf16.mxu0 %v6918_v49 }
  0x4c   : > { %6156 = vmatpush3.bf16.msra.mxu0 %v6919_v50 }
  0x4d   : > { %6157 = vmatprep.subr.bf16.mxu0 %v6920_v51 }
  0x50   : > { %6158 = vmatpush3.bf16.msra.mxu0 %v6921_v52  ;;  %v5645_v52 = vld [vmem:[%s8475_s24] ss:$0 sm:$0xff] }
  0x51   : > { %6385 = vmatprep.subr.bf16.mxu0 %v7153_v32 }
  0x53   : > { %1227 = vmatmul.mubr.bf16.vlgmr.msra.gmra.mrb[4].mxu0 %v6922_v53 }
  0x54   : > { %6386 = vmatpush3.bf16.msra.mxu0 %v6926_v33  ;;  %6393 = vmatprep.mubr.msk.bf16.mxu0 %vm7154_vm1, %v7153_v32  ;;  %v6944_v33 = vld [vmem:[%s8444_s10 + $0x38] sm:$0xff]  }
  0x55   : > { %6387 = vmatprep.subr.bf16.mxu0 %v7153_v32 }
  0x58   : > { %6388 = vmatpush3.bf16.msra.mxu0 %v6928_v35 }
  0x59   : > { %6389 = vmatprep.subr.bf16.mxu0 %v7153_v32 }
  0x5c   : > { %6390 = vmatpush3.bf16.msra.mxu0 %v6930_v37 }
  0x5d   : > { %6391 = vmatprep.subr.bf16.mxu0 %v7153_v32 }
  0x60   : > { %6392 = vmatpush3.bf16.msra.mxu0 %v6932_v39 }
  0x61   : > { %6397 = vmatprep.subr.bf16.mxu0 %v7153_v32 }
 0x106   : > { %v6115_v54 = vpop.f32.mrb[0].mxu0 }
 0x107   : > { %v6116_v56 = vpop.f32.mrb[1].mxu0 }
 0x108   : > { %v6117_v57 = vadd.f32 %v6116_v56, %v6115_v54  ;;  %v6118_v58 = vpop.f32.mrb[2].mxu0  ;;  %v6137_v59 = vpop.f32.mrb[0].mxu1  ;;  %v6933_v56 = vld [vmem:[%s8442_s8] sm:$0xff]  }
 0x109   : > { %v6119_v60 = vpop.f32.mrb[3].mxu0  ;;  %v6138_v63 = vpop.f32.mrb[1].mxu1 }
 0x10a   : > { %v1147_v61 = vadd.f32 %v6117_v57, %v5589_v55  ;;  %v6120_v62 = vadd.f32 %v6119_v60, %v6118_v58  ;;  %v6139_v0 = vadd.f32 %v6138_v63, %v6137_v59  ;;  %v6140_v1 = vpop.f32.mrb[2].mxu1  ;;  %v6934_v58 = vld [vmem:[%s8442_s8 + $0x8] sm:$0xff]   ;;  %v6935_v59 = vld [vmem:[%s8442_s8 + $0x10] sm:$0xff]   ;;  %v6936_v60 = vld [vmem:[%s8442_s8 + $0x18] sm:$0xff]  }
 0x10b   : > { %v6141_v3 = vpop.f32.mrb[3].mxu1  ;;  %v5658_v63 = vld [vmem:[%s8445_s11] ss:$0 sm:$0xff] }
 0x10c   : > { %v1150_v2 = vadd.f32 %v6120_v62, %v5589_v55  ;;  %v1188_v4 = vadd.f32 %v6139_v0, %v1147_v61  ;;  %v6142_v5 = vadd.f32 %v6141_v3, %v6140_v1  ;;  %v5646_v61 = vld [vmem:[%s8441_s7] ss:$0 sm:$0xff] }
 0x10e   : > { %v1191_v6 = vadd.f32 %v6142_v5, %v1150_v2 }
 0x126   : > { %v6159_v7 = vpop.f32.mrb[4].mxu0 }
 0x127   : > { %v6160_v8 = vpop.f32.mrb[5].mxu0 }
 0x128   : > { %v6161_v9 = vadd.f32 %v6160_v8, %v6159_v7  ;;  %v6162_v10 = vpop.f32.mrb[6].mxu0 }
 0x129   : > { %v6163_v11 = vpop.f32.mrb[7].mxu0 }
 0x12a   : > { %v1229_v13 = vadd.f32 %v6161_v9, %v1188_v4  ;;  %v6164_v14 = vadd.f32 %v6163_v11, %v6162_v10 }
 0x12c   : > { %v1232_v16 = vadd.f32 %v6164_v14, %v1191_v6  ;;  %v7449_v17 = vadd.f32 %v1235_v12, %v1229_v13  ;;  %v5652_v13 = vld [vmem:[%s8443_s9] ss:$0 sm:$0xff] }
 0x12e   : > { %v7451_v18 = vadd.f32 %v1236_v15, %v1232_v16  ;;  %v1242_v19 = vsel %vm1241_vm0, %v7449_v17, 0.0 }
 0x12f   : > { %1243 = vadd.xlane.f32.xlu0 %v1242_v19 }
 0x130   : > { %v1245_v20 = vsel %vm1241_vm0, %v7451_v18, 0.0 }
 0x133   : > { %1246 = vadd.xlane.f32.xlu0 %v1245_v20 }
 0x1bc   : > { %v1244_v21 = vpop.xlane.xlu0 %1243 }
 0x1bd   : > { %v1249_v22 = vmul.f32 0.015625, %v1244_v21 }
 0x1bf   : > { %v1251_v23 = vsub.f32 %v7449_v17, %v1249_v22 }
 0x1c0   : > { %v1247_v24 = vpop.xlane.xlu0 %1246 }
 0x1c1   : > { %v1250_v25 = vmul.f32 0.015625, %v1247_v24  ;;  %v1253_v26 = vmul.f32 %v1251_v23, %v1251_v23 }
 0x1c3   : > { %v1252_v27 = vsub.f32 %v7451_v18, %v1250_v25  ;;  %v1255_v28 = vsel %vm1241_vm0, %v1253_v26, 0.0  ;;  %v6937_v25 = vld [vmem:[%s8473_s6 + $0x20] sm:$0xff]   ;;  %v6938_v26 = vld [vmem:[%s8473_s6 + $0x28] sm:$0xff]  }
 0x1c4   : > { %1256 = vadd.xlane.f32.xlu1 %v1255_v28  ;;  %v6940_v28 = vld [vmem:[%s8473_s6 + $0x38] sm:$0xff]  }
 0x1c5   : > { %v1254_v29 = vmul.f32 %v1252_v27, %v1252_v27 }
 0x1c7   : > { %v1258_v30 = vsel %vm1241_vm0, %v1254_v29, 0.0  ;;  %v6941_v29 = vld [vmem:[%s8444_s10 + $0x20] sm:$0xff]  }
 0x1c8   : > { %1259 = vadd.xlane.f32.xlu1 %v1258_v30  ;;  %v6942_v30 = vld [vmem:[%s8444_s10 + $0x28] sm:$0xff]  }
 0x251   : > { %v1257_v40 = vpop.xlane.xlu1 %1256 }
 0x252   : > { %v1261_v41 = vmul.f32 0.015625, %v1257_v40 }
 0x254   : > { %v1263_v42 = vadd.f32 1e-05, %v1261_v41 }
 0x255   : > { %v1260_v43 = vpop.xlane.xlu1 %1259 }
 0x256   : > { %7053 = vrsqrt.f32 %v1263_v42  ;;  %v1262_v44 = vmul.f32 0.015625, %v1260_v43  ;;  %v5675_v42 = vld [vmem:[%s8441_s7 + $0x1] ss:$0 sm:$0xff] }
 0x258   : > { %v1264_v45 = vadd.f32 1e-05, %v1262_v44 }
 0x25a   : > { %7055 = vrsqrt.f32 %v1264_v45 }
 0x260   : > { %v7054_v46 = vpop.eup %7053 }
 0x261   : > { %v1267_v47 = vmul.f32 %v7054_v46, %v1251_v23 }
 0x263   : > { %v1275_v50 = vmul.f32 %v5644_v48, %v1267_v47 }
 0x264   : > { %v7056_v49 = vpop.eup %7055 }
 0x265   : > { %v1268_v51 = vmul.f32 %v7056_v49, %v1252_v27  ;;  %v1283_v54 = vadd.f32 %v5645_v52, %v1275_v50  ;;  %v6939_v27 = vld [vmem:[%s8473_s6 + $0x30] sm:$0xff]   ;;  %v5705_v50 = vld [vmem:[%s8445_s11 + $0x1] ss:$0 sm:$0xff] }
 0x267   : > { %v1276_v53 = vmul.f32 %v5644_v48, %v1268_v51 }
 0x269   : > { %v1284_v55 = vadd.f32 %v5645_v52, %v1276_v53 }
 0x26b   : > { %v7508_v57 = vpack.c.bf16 %v1284_v55, %v1283_v54 }
 0x26d   : > { %6370 = vmatmul.mubr.msk.bf16.vlgmr.msra.gmra.mrb[4].mxu1 %vm1241_vm0, %v7508_v57  ;;  %6394 = vmatmul.mubr.msk.bf16.vlgmr.msra.gmra.mrb[8].mxu0 %vm1241_vm0, %v7508_v57 }
 0x26e   : > { %6374 = vmatpush3.bf16.msra.mxu1 %v6933_v56  ;;  %6381 = vmatprep.mubr.msk.bf16.mxu1 %vm7154_vm1, %v7153_v32 }
 0x26f   : > { %6375 = vmatprep.subr.bf16.mxu1 %v7153_v32  ;;  %6399 = vmatprep.mubr.msk.bf16.mxu0 %vm7154_vm1, %v7153_v32 }
 0x272   : > { %6376 = vmatpush3.bf16.msra.mxu1 %v6934_v58 }
 0x273   : > { %6377 = vmatprep.subr.bf16.mxu1 %v7153_v32 }
 0x276   : > { %6378 = vmatpush3.bf16.msra.mxu1 %v6935_v59 }
 0x277   : > { %6379 = vmatprep.subr.bf16.mxu1 %v7153_v32 }
 0x27a   : > { %6380 = vmatpush3.bf16.msra.mxu1 %v6936_v60 }
 0x27b   : > { %6403 = vmatprep.subr.bf16.mxu1 %v7153_v32 }
 0x27d   : > { %6382 = vmatmul.mubr.msk.bf16.vlgmr.msra.gmra.mrb[8].mxu1 %vm1241_vm0, %v7508_v57 }
 0x27e   : > { %6405 = vmatprep.mubr.msk.bf16.mxu1 %vm7154_vm1, %v7153_v32 }
 0x340   : > { %v1362_v62 = vpop.f32.mrb[4].mxu1  ;;  %v1522_v0 = vpop.f32.mrb[8].mxu0 }
 0x341   : > { %v6371_v1 = vpop.f32.mrb[5].mxu1  ;;  %v6395_v2 = vpop.f32.mrb[9].mxu0  ;;  %v1363_v5 = vadd.f32 %v5646_v61, %v1362_v62  ;;  %v1523_v6 = vadd.f32 %v5658_v63, %v1522_v0 }
 0x342   : > { %v1365_v3 = vpop.f32.mrb[6].mxu1  ;;  %v1525_v4 = vpop.f32.mrb[10].mxu0 }
 0x343   : > { %v1366_v7 = vadd.f32 %v5646_v61, %v1365_v3  ;;  %v1526_v8 = vadd.f32 %v5658_v63, %v1525_v4  ;;  %v6372_v9 = vpop.f32.mrb[7].mxu1  ;;  %v6396_v10 = vpop.f32.mrb[11].mxu0 }
 0x345   : > { %v1561_v11 = vpack.c.bf16 %v1366_v7, %v1363_v5  ;;  %v1633_v12 = vpack.c.bf16 %v1526_v8, %v1523_v6 }
 0x347   : > { %6404 = vmatpush3.bf16.msra.mxu1 %v1633_v12 }
 0x348   : > { %6421 = vmatprep.subr.bf16.mxu1 %v7153_v32 }
 0x350   : > { %v1442_v14 = vpop.f32.mrb[8].mxu1 }
 0x351   : > { %v1443_v15 = vadd.f32 %v5652_v13, %v1442_v14  ;;  %v6383_v16 = vpop.f32.mrb[9].mxu1  ;;  %v6947_v14 = vld [vmem:[%s8442_s8 + $0x30] sm:$0xff]  }
 0x352   : > { %v1445_v19 = vpop.f32.mrb[10].mxu1 }
 0x353   : > { %1529 = vxpose.xlu0.b32.start [1/2] (short) (narrow) %v1443_v15, 16  ;;  %v6384_v20 = vpop.f32.mrb[11].mxu1  ;;  %v1446_v21 = vadd.f32 %v5652_v13, %v1445_v19  ;;  %v6946_v13 = vld [vmem:[%s8442_s8 + $0x28] sm:$0xff]   ;;  %v6948_v15 = vld [vmem:[%s8442_s8 + $0x38] sm:$0xff]  }
 0x357   : > { %1530 = vxpose.xlu0.b32.end [2/2] (short) (narrow) %v1446_v21, 16 }
 0x3d3   : > { %v1545_v22 = vpop.trf.xlu0 }
 0x3d7   : > { %v1546_v23 = vpop.trf.xlu0 }
 0x3d8   : > { %v1562_v24 = vpack.c.bf16 %v1546_v23, %v1545_v22  ;;  %v5690_v23 = vld [vmem:[%s8443_s9 + $0x1] ss:$0 sm:$0xff] }
 0x3da   : > { %6398 = vmatpush3.bf16.msra.mxu0 %v1562_v24 }
 0x3db   : > { %6409 = vmatprep.subr.bf16.mxu0 %v7153_v32 }
 0x3dd   : > { %6400 = vmatmul.mubr.msk.bf16.vlgmr.msra.gmra.mrb[12].mxu0 %vm1563_vm2, %v1561_v11  ;;  %v6945_v11 = vld [vmem:[%s8442_s8 + $0x20] sm:$0xff]  }
 0x3de   : > { %6410 = vmatpush3.bf16.msra.mxu0 %v6937_v25  ;;  %6417 = vmatprep.mubr.msk.bf16.mxu0 %vm7154_vm1, %v7153_v32 }
 0x3df   : > { %6411 = vmatprep.subr.bf16.mxu0 %v7153_v32 }
 0x3e2   : > { %6412 = vmatpush3.bf16.msra.mxu0 %v6938_v26 }
 0x3e3   : > { %6413 = vmatprep.subr.bf16.mxu0 %v7153_v32 }
 0x3e6   : > { %6414 = vmatpush3.bf16.msra.mxu0 %v6939_v27 }
 0x3e7   : > { %6415 = vmatprep.subr.bf16.mxu0 %v7153_v32 }
 0x3ea   : > { %6416 = vmatpush3.bf16.msra.mxu0 %v6940_v28 }
 0x3eb   : > { %6433 = vmatprep.subr.bf16.mxu0 %v7153_v32 }
 0x3ed   : > { %6418 = vmatmul.mubr.msk.bf16.vlgmr.msra.gmra.mrb[16].mxu0 %vm1241_vm0, %v7508_v57 }
 0x3ee   : > { %6434 = vmatpush3.bf16.msra.mxu0 %v6941_v29  ;;  %6441 = vmatprep.mubr.msk.bf16.mxu0 %vm7154_vm1, %v7153_v32 }
 0x3ef   : > { %6435 = vmatprep.subr.bf16.mxu0 %v7153_v32 }
 0x3f2   : > { %6436 = vmatpush3.bf16.msra.mxu0 %v6942_v30 }
 0x3f3   : > { %6437 = vmatprep.subr.bf16.mxu0 %v7153_v32 }
 0x3f6   : > { %6438 = vmatpush3.bf16.msra.mxu0 %v6943_v31 }
 0x3f7   : > { %6439 = vmatprep.subr.bf16.mxu0 %v7153_v32 }
 0x3fa   : > { %6440 = vmatpush3.bf16.msra.mxu0 %v6944_v33 }
 0x3fb   : > { %6457 = vmatprep.subr.bf16.mxu0 %v7153_v32 }
 0x3fd   : > { %6442 = vmatmul.mubr.msk.bf16.vlgmr.msra.gmra.mrb[20].mxu0 %vm1241_vm0, %v7508_v57 }
 0x3fe   : > { %6459 = vmatprep.mubr.msk.bf16.mxu0 %vm7154_vm1, %v7153_v32 }
 0x4b0   : > { %v1601_v34 = vpop.f32.mrb[12].mxu0 }
 0x4b1   : > { %v1608_v35 = vmul.f32 0.25, %v1601_v34  ;;  %v6401_v36 = vpop.f32.mrb[13].mxu0 }
 0x4b2   : > { %v1604_v37 = vpop.f32.mrb[14].mxu0 }
 0x4b3   : > { %v1609_v38 = vmul.f32 0.25, %v1604_v37  ;;  %v6402_v39 = vpop.f32.mrb[15].mxu0  ;;  %v1610_v40 = vsel %vm1563_vm2, %v1608_v35, -inf }
 0x4b4   : > { %1611 = vmax.xlane.f32.xlu1 %v1610_v40 }
 0x4b5   : > { %v1613_v41 = vsel %vm1563_vm2, %v1609_v38, -inf }
 0x4b8   : > { %1614 = vmax.xlane.f32.xlu1 %v1613_v41 }
 0x4c0   : > { %v1756_v43 = vpop.f32.mrb[16].mxu0 }
 0x4c1   : > { %v6419_v44 = vpop.f32.mrb[17].mxu0  ;;  %v7594_v46 = vadd.f32 %v5675_v42, %v1756_v43 }
 0x4c2   : > { %v1759_v45 = vpop.f32.mrb[18].mxu0 }
 0x4c3   : > { %v7596_v47 = vadd.f32 %v5675_v42, %v1759_v45  ;;  %v6420_v48 = vpop.f32.mrb[19].mxu0 }
 0x4c5   : > { %v1959_v49 = vpack.c.bf16 %v7596_v47, %v7594_v46 }
 0x4d0   : > { %v1920_v51 = vpop.f32.mrb[20].mxu0 }
 0x4d1   : > { %v6443_v52 = vpop.f32.mrb[21].mxu0  ;;  %v7603_v54 = vadd.f32 %v5705_v50, %v1920_v51 }
 0x4d2   : > { %v1923_v53 = vpop.f32.mrb[22].mxu0 }
 0x4d3   : > { %v1924_v55 = vadd.f32 %v5705_v50, %v1923_v53  ;;  %v6444_v56 = vpop.f32.mrb[23].mxu0 }
 0x4d5   : > { %v2030_v58 = vpack.c.bf16 %v1924_v55, %v7603_v54 }
 0x541   : > { %v1612_v59 = vpop.xlane.xlu1 %1611 }
 0x542   : > { %v1616_v60 = vsub.f32 %v1608_v35, %v1612_v59  ;;  %v6949_v59 = vld [vmem:[%s8446_s12] sm:$0xff]  }
 0x544   : > { %v1618_v61 = vmul.f32 1.442695, %v1616_v60 }
 0x545   : > { %v1615_v62 = vpop.xlane.xlu1 %1614 }
 0x546   : > { %7057 = vpow2.f32 %v1618_v61  ;;  %v1617_v63 = vsub.f32 %v1609_v38, %v1615_v62  ;;  %v6950_v61 = vld [vmem:[%s8442_s8 + $0x40] sm:$0xff]   ;;  %v6951_v62 = vld [vmem:[%s8442_s8 + $0x48] sm:$0xff]  }
 0x548   : > { %v1620_v0 = vmul.f32 1.442695, %v1617_v63  ;;  %v6952_v63 = vld [vmem:[%s8442_s8 + $0x50] sm:$0xff]  }
 0x54a   : > { %7059 = vpow2.f32 %v1620_v0  ;;  %v6953_v0 = vld [vmem:[%s8442_s8 + $0x58] sm:$0xff]  }
 0x550   : > { %v7058_v1 = vpop.eup %7057 }
 0x551   : > { %v1622_v2 = vsel %vm1563_vm2, %v7058_v1, 0.0 }
 0x552   : > { %1623 = vadd.xlane.f32.xlu1 %v1622_v2 }
 0x554   : > { %v7060_v3 = vpop.eup %7059 }
 0x555   : > { %v1625_v4 = vsel %vm1563_vm2, %v7060_v3, 0.0 }
 0x556   : > { %1626 = vadd.xlane.f32.xlu1 %v1625_v4 }
 0x5df   : > { %v1624_v5 = vpop.xlane.xlu1 %1623 }
 0x5e0   : > { %7061 = vrcp.f32 %v1624_v5  ;;  %v6955_v5 = vld [vmem:[%s8473_s6 + $0x40] sm:$0xff]  }
 0x5e3   : > { %v1627_v6 = vpop.xlane.xlu1 %1626 }
 0x5e4   : > { %7063 = vrcp.f32 %v1627_v6 }
 0x5ea   : > { %v7062_v7 = vpop.eup %7061 }
 0x5eb   : > { %v1630_v9 = vmul.f32 %v7062_v7, %v7058_v1  ;;  %v6954_v1 = vld [vmem:[%s8446_s12 + $0x8] sm:$0xff]  }
 0x5ec   : > { %6458 = vmatpush3.bf16.msra.mxu0 %v6954_v1 }
 0x5ed   : > { %6469 = vmatprep.subr.bf16.mxu0 %v7153_v32 }
 0x5ee   : > { %v7064_v8 = vpop.eup %7063 }
 0x5ef   : > { %v1631_v10 = vmul.f32 %v7064_v8, %v7060_v3  ;;  %v6956_v8 = vld [vmem:[%s8473_s6 + $0x48] sm:$0xff]  }
 0x5f1   : > { %v1632_v12 = vpack.c.bf16 %v1631_v10, %v1630_v9 }
 0x5f3   : > { %6406 = vmatmul.mubr.msk.bf16.vlgmr.msra.gmra.mrb[12].mxu1 %vm1563_vm2, %v1632_v12  ;;  %v6957_v12 = vld [vmem:[%s8473_s6 + $0x50] sm:$0xff]  }
 0x5f4   : > { %6422 = vmatpush3.bf16.msra.mxu1 %v6945_v11  ;;  %6429 = vmatprep.mubr.msk.bf16.mxu1 %vm7154_vm1, %v7153_v32 }
 0x5f5   : > { %6423 = vmatprep.subr.bf16.mxu1 %v7153_v32 }
 0x5f8   : > { %6424 = vmatpush3.bf16.msra.mxu1 %v6946_v13 }
 0x5f9   : > { %6425 = vmatprep.subr.bf16.mxu1 %v7153_v32 }
 0x5fc   : > { %6426 = vmatpush3.bf16.msra.mxu1 %v6947_v14  ;;  %v6958_v14 = vld [vmem:[%s8473_s6 + $0x58] sm:$0xff]  }
 0x5fd   : > { %6427 = vmatprep.subr.bf16.mxu1 %v7153_v32 }
 0x600   : > { %6428 = vmatpush3.bf16.msra.mxu1 %v6948_v15  ;;  %v6959_v15 = vld [vmem:[%s8444_s10 + $0x40] sm:$0xff]  }
 0x601   : > { %6445 = vmatprep.subr.bf16.mxu1 %v7153_v32 }
 0x603   : > { %6430 = vmatmul.mubr.msk.bf16.vlgmr.msra.gmra.mrb[16].mxu1 %vm1241_vm0, %v7508_v57 }
 0x604   : > { %6447 = vmatprep.mubr.msk.bf16.mxu1 %vm7154_vm1, %v7153_v32 }
 0x6c6   : > { %v7631_v16 = vpop.f32.mrb[12].mxu1 }
 0x6c7   : > { %v6407_v19 = vpop.f32.mrb[13].mxu1 }
 0x6c8   : > { %v1674_v20 = vpop.f32.mrb[14].mxu1  ;;  %v6960_v19 = vld [vmem:[%s8444_s10 + $0x48] sm:$0xff]  }
 0x6c9   : > { %v1680_v21 = vpack.c.bf16 %v1674_v20, %v7631_v16  ;;  %v6408_v22 = vpop.f32.mrb[15].mxu1  ;;  %v5743_v16 = vld [vmem:[%s8443_s9 + $0x2] ss:$0 sm:$0xff] }
 0x6d6   : > { %v1838_v24 = vpop.f32.mrb[16].mxu1 }
 0x6d7   : > { %v1839_v25 = vadd.f32 %v5690_v23, %v1838_v24  ;;  %v6431_v26 = vpop.f32.mrb[17].mxu1  ;;  %v6961_v24 = vld [vmem:[%s8444_s10 + $0x50] sm:$0xff]  }
 0x6d8   : > { %v1841_v27 = vpop.f32.mrb[18].mxu1 }
 0x6d9   : > { %1927 = vxpose.xlu1.b32.start [1/2] (short) (narrow) %v1839_v25, 16  ;;  %v6432_v28 = vpop.f32.mrb[19].mxu1  ;;  %v1842_v29 = vadd.f32 %v5690_v23, %v1841_v27  ;;  %v6962_v27 = vld [vmem:[%s8444_s10 + $0x58] sm:$0xff]  }
 0x6dd   : > { %1928 = vxpose.xlu1.b32.end [2/2] (short) (narrow) %v1842_v29, 16 }
 0x759   : > { %v1943_v30 = vpop.trf.xlu1 }
 0x75d   : > { %v1944_v31 = vpop.trf.xlu1 }
 0x75e   : > { %v1960_v33 = vpack.c.bf16 %v1944_v31, %v1943_v30 }
 0x760   : > { %6446 = vmatpush3.bf16.msra.mxu1 %v1960_v33 }
 0x761   : > { %6451 = vmatprep.subr.bf16.mxu1 %v7153_v32 }
 0x763   : > { %6448 = vmatmul.mubr.msk.bf16.vlgmr.msra.gmra.mrb[20].mxu1 %vm1563_vm2, %v1959_v49 }
 0x764   : > { %6452 = vmatpush3.bf16.msra.mxu1 %v2030_v58  ;;  %6453 = vmatprep.mubr.msk.bf16.mxu1 %vm7154_vm1, %v7153_v32 }
 0x765   : > { %6463 = vmatprep.subr.bf16.mxu1 %v7153_v32 }
 0x836   : > { %v1998_v34 = vpop.f32.mrb[20].mxu1 }
 0x837   : > { %v2005_v35 = vmul.f32 0.25, %v1998_v34  ;;  %v6449_v36 = vpop.f32.mrb[21].mxu1 }
 0x838   : > { %v2001_v37 = vpop.f32.mrb[22].mxu1 }
 0x839   : > { %v2006_v38 = vmul.f32 0.25, %v2001_v37  ;;  %v6450_v39 = vpop.f32.mrb[23].mxu1  ;;  %v2007_v40 = vsel %vm1563_vm2, %v2005_v35, -inf }
 0x83a   : > { %2008 = vmax.xlane.f32.xlu0 %v2007_v40 }
 0x83b   : > { %v2010_v41 = vsel %vm1563_vm2, %v2006_v38, -inf }
 0x83c   : > { %2011 = vmax.xlane.f32.xlu1 %v2010_v41 }
 0x8c7   : > { %v2009_v42 = vpop.xlane.xlu0 %2008 }
 0x8c8   : > { %v2013_v43 = vsub.f32 %v2005_v35, %v2009_v42 }
 0x8c9   : > { %v2012_v44 = vpop.xlane.xlu1 %2011 }
 0x8ca   : > { %v2015_v45 = vmul.f32 1.442695, %v2013_v43  ;;  %v2014_v46 = vsub.f32 %v2006_v38, %v2012_v44  ;;  %v5728_v38 = vld [vmem:[%s8441_s7 + $0x2] ss:$0 sm:$0xff] }
 0x8cc   : > { %7065 = vpow2.f32 %v2015_v45  ;;  %v2017_v47 = vmul.f32 1.442695, %v2014_v46  ;;  %v5758_v46 = vld [vmem:[%s8445_s11 + $0x2] ss:$0 sm:$0xff] }
 0x8ce   : > { %7067 = vpow2.f32 %v2017_v47 }
 0x8d6   : > { %v7066_v48 = vpop.eup %7065 }
 0x8d7   : > { %v2019_v49 = vsel %vm1563_vm2, %v7066_v48, 0.0 }
 0x8d8   : > { %v7068_v50 = vpop.eup %7067  ;;  %2020 = vadd.xlane.f32.xlu0 %v2019_v49 }
 0x8d9   : > { %v2022_v51 = vsel %vm1563_vm2, %v7068_v50, 0.0 }
 0x8dc   : > { %2023 = vadd.xlane.f32.xlu0 %v2022_v51 }
 0x965   : > { %v2021_v52 = vpop.xlane.xlu0 %2020 }
 0x966   : > { %7069 = vrcp.f32 %v2021_v52 }
 0x969   : > { %v2024_v53 = vpop.xlane.xlu0 %2023 }
 0x96a   : > { %7071 = vrcp.f32 %v2024_v53 }
 0x970   : > { %v7070_v54 = vpop.eup %7069 }
 0x971   : > { %v2027_v56 = vmul.f32 %v7070_v54, %v7066_v48 }
 0x974   : > { %v7072_v55 = vpop.eup %7071 }
 0x975   : > { %v2028_v58 = vmul.f32 %v7072_v55, %v7068_v50 }
 0x977   : > { %v2029_v60 = vpack.c.bf16 %v2028_v58, %v2027_v56 }
 0x979   : > { %6454 = vmatmul.mubr.msk.bf16.vlgmr.msra.gmra.mrb[24].mxu1 %vm1563_vm2, %v2029_v60 }
 0x97a   : > { %6464 = vmatpush3.bf16.msra.mxu1 %v6949_v59  ;;  %6465 = vmatprep.mubr.msk.bf16.mxu1 %vm7154_vm1, %v7153_v32 }
 0x97b   : > { %6481 = vmatprep.subr.bf16.mxu1 %v7153_v32 }
 0x981   : > { %6466 = vmatmul.mubr.msk.bf16.vlgmr.msra.gmra.mrb[28].mxu1 %vm1563_vm2, %v1680_v21 }
 0x982   : > { %6482 = vmatpush3.bf16.msra.mxu1 %v6950_v61  ;;  %6489 = vmatprep.mubr.msk.bf16.mxu1 %vm7154_vm1, %v7153_v32 }
 0x983   : > { %6483 = vmatprep.subr.bf16.mxu1 %v7153_v32 }
 0x986   : > { %6484 = vmatpush3.bf16.msra.mxu1 %v6951_v62 }
 0x987   : > { %6485 = vmatprep.subr.bf16.mxu1 %v7153_v32 }
 0x98a   : > { %6486 = vmatpush3.bf16.msra.mxu1 %v6952_v63 }
 0x98b   : > { %6487 = vmatprep.subr.bf16.mxu1 %v7153_v32 }
 0x98e   : > { %6488 = vmatpush3.bf16.msra.mxu1 %v6953_v0 }
 0x98f   : > { %6505 = vmatprep.subr.bf16.mxu1 %v7153_v32 }
 0x991   : > { %6490 = vmatmul.mubr.msk.bf16.vlgmr.msra.gmra.mrb[32].mxu1 %vm1241_vm0, %v7508_v57 }
 0x992   : > { %6507 = vmatprep.mubr.msk.bf16.mxu1 %vm7154_vm1, %v7153_v32 }
 0xa4c   : > { %v2068_v2 = vpop.f32.mrb[24].mxu1 }
 0xa4d   : > { %v6455_v3 = vpop.f32.mrb[25].mxu1 }
 0xa4e   : > { %v2071_v4 = vpop.f32.mrb[26].mxu1 }
 0xa4f   : > { %v2078_v6 = vpack.c.bf16 %v2071_v4, %v2068_v2  ;;  %v6456_v7 = vpop.f32.mrb[27].mxu1 }
 0xa51   : > { %6460 = vmatmul.mubr.msk.bf16.vlgmr.msra.gmra.mrb[24].mxu0 %vm1563_vm2, %v2078_v6 }
 0xa52   : > { %6470 = vmatpush3.bf16.msra.mxu0 %v6955_v5  ;;  %6477 = vmatprep.mubr.msk.bf16.mxu0 %vm7154_vm1, %v7153_v32 }
 0xa53   : > { %6471 = vmatprep.subr.bf16.mxu0 %v7153_v32 }
 0xa54   : > { %v2172_v9 = vpop.f32.mrb[28].mxu1 }
 0xa55   : > { %v6467_v10 = vpop.f32.mrb[29].mxu1 }
 0xa56   : > { %6472 = vmatpush3.bf16.msra.mxu0 %v6956_v8  ;;  %v2175_v11 = vpop.f32.mrb[30].mxu1 }
 0xa57   : > { %v6468_v13 = vpop.f32.mrb[31].mxu1  ;;  %6473 = vmatprep.subr.bf16.mxu0 %v7153_v32 }
 0xa5a   : > { %6474 = vmatpush3.bf16.msra.mxu0 %v6957_v12 }
 0xa5b   : > { %6475 = vmatprep.subr.bf16.mxu0 %v7153_v32 }
 0xa5e   : > { %6476 = vmatpush3.bf16.msra.mxu0 %v6958_v14 }
 0xa5f   : > { %6493 = vmatprep.subr.bf16.mxu0 %v7153_v32 }
 0xa61   : > { %6478 = vmatmul.mubr.msk.bf16.vlgmr.msra.gmra.mrb[28].mxu0 %vm1241_vm0, %v7508_v57 }
 0xa62   : > { %6494 = vmatpush3.bf16.msra.mxu0 %v6959_v15  ;;  %6501 = vmatprep.mubr.msk.bf16.mxu0 %vm7154_vm1, %v7153_v32  ;;  %v6963_v15 = vld [vmem:[%s8473_s6 + $0x60] sm:$0xff]  }
 0xa63   : > { %6495 = vmatprep.subr.bf16.mxu0 %v7153_v32 }
 0xa64   : > { %v2336_v20 = vpop.f32.mrb[32].mxu1 }
 0xa65   : > { %v2337_v21 = vadd.f32 %v5743_v16, %v2336_v20  ;;  %v6491_v22 = vpop.f32.mrb[33].mxu1  ;;  %v6965_v20 = vld [vmem:[%s8473_s6 + $0x70] sm:$0xff]  }
 0xa66   : > { %v2339_v23 = vpop.f32.mrb[34].mxu1  ;;  %6496 = vmatpush3.bf16.msra.mxu0 %v6960_v19  ;;  %v6964_v19 = vld [vmem:[%s8473_s6 + $0x68] sm:$0xff]   ;;  %v6967_v22 = vld [vmem:[%s8444_s10 + $0x60] sm:$0xff]  }
 0xa67   : > { %2425 = vxpose.xlu0.b32.start [1/2] (short) (narrow) %v2337_v21, 16  ;;  %v6492_v25 = vpop.f32.mrb[35].mxu1  ;;  %6497 = vmatprep.subr.bf16.mxu0 %v7153_v32  ;;  %v2340_v26 = vadd.f32 %v5743_v16, %v2339_v23  ;;  %v6966_v21 = vld [vmem:[%s8473_s6 + $0x78] sm:$0xff]   ;;  %v6968_v23 = vld [vmem:[%s8444_s10 + $0x68] sm:$0xff]  }
 0xa68   : > { %v6970_v25 = vld [vmem:[%s8444_s10 + $0x78] sm:$0xff]  }
 0xa6a   : > { %6498 = vmatpush3.bf16.msra.mxu0 %v6961_v24  ;;  %v6969_v24 = vld [vmem:[%s8444_s10 + $0x70] sm:$0xff]  }
 0xa6b   : > { %2426 = vxpose.xlu0.b32.end [2/2] (short) (narrow) %v2340_v26, 16  ;;  %6499 = vmatprep.subr.bf16.mxu0 %v7153_v32  ;;  %v6971_v26 = vld [vmem:[%s8446_s12 + $0x10] sm:$0xff]  }
 0xa6e   : > { %6500 = vmatpush3.bf16.msra.mxu0 %v6962_v27 }
 0xa6f   : > { %6517 = vmatprep.subr.bf16.mxu0 %v7153_v32 }
 0xa71   : > { %6502 = vmatmul.mubr.msk.bf16.vlgmr.msra.gmra.mrb[32].mxu0 %vm1241_vm0, %v7508_v57 }
 0xa72   : > { %6519 = vmatprep.mubr.msk.bf16.mxu0 %vm7154_vm1, %v7153_v32  ;;  %6518 = vmatpush3.bf16.msra.mxu0 %v6971_v26 }
 0xa73   : > { %6535 = vmatprep.subr.bf16.mxu0 %v7153_v32 }
 0xae7   : > { %v2441_v28 = vpop.trf.xlu0 }
 0xaeb   : > { %v2442_v29 = vpop.trf.xlu0 }
 0xaec   : > { %v2458_v30 = vpack.c.bf16 %v2442_v29, %v2441_v28 }
 0xaee   : > { %6506 = vmatpush3.bf16.msra.mxu1 %v2458_v30  ;;  %v6972_v30 = vld [vmem:[%s8442_s8 + $0x60] sm:$0xff]  }
 0xaef   : > { %6511 = vmatprep.subr.bf16.mxu1 %v7153_v32 }
 0xb24   : > { %v2122_v31 = vpop.f32.mrb[24].mxu0 }
 0xb25   : > { %v7730_v33 = vadd.f32 %v2172_v9, %v2122_v31  ;;  %v6461_v34 = vpop.f32.mrb[25].mxu0 }
 0xb26   : > { %v2125_v35 = vpop.f32.mrb[26].mxu0 }
 0xb27   : > { %v7732_v36 = vadd.f32 %v2175_v11, %v2125_v35  ;;  %v6462_v37 = vpop.f32.mrb[27].mxu0  ;;  %v6973_v35 = vld [vmem:[%s8442_s8 + $0x68] sm:$0xff]  }
 0xb28   : > { %v6974_v37 = vld [vmem:[%s8442_s8 + $0x70] sm:$0xff]  }
 0xb34   : > { %v2254_v39 = vpop.f32.mrb[28].mxu0 }
 0xb35   : > { %v6479_v40 = vpop.f32.mrb[29].mxu0  ;;  %v2255_v42 = vadd.f32 %v5728_v38, %v2254_v39  ;;  %v5779_v39 = vld [vmem:[%s8441_s7 + $0x3] ss:$0 sm:$0xff] }
 0xb36   : > { %v2257_v41 = vpop.f32.mrb[30].mxu0 }
 0xb37   : > { %v2258_v43 = vadd.f32 %v5728_v38, %v2257_v41  ;;  %v6480_v44 = vpop.f32.mrb[31].mxu0  ;;  %v6975_v38 = vld [vmem:[%s8442_s8 + $0x78] sm:$0xff]  }
 0xb39   : > { %v2457_v45 = vpack.c.bf16 %v2258_v43, %v2255_v42 }
 0xb3b   : > { %6508 = vmatmul.mubr.msk.bf16.vlgmr.msra.gmra.mrb[36].mxu1 %vm1563_vm2, %v2457_v45 }
 0xb3c   : > { %6513 = vmatprep.mubr.msk.bf16.mxu1 %vm7154_vm1, %v7153_v32 }
 0xb44   : > { %v2418_v47 = vpop.f32.mrb[32].mxu0 }
 0xb45   : > { %v6503_v48 = vpop.f32.mrb[33].mxu0  ;;  %v2419_v50 = vadd.f32 %v5758_v46, %v2418_v47  ;;  %v5809_v47 = vld [vmem:[%s8445_s11 + $0x3] ss:$0 sm:$0xff] }
 0xb46   : > { %v2421_v49 = vpop.f32.mrb[34].mxu0 }
 0xb47   : > { %v2422_v51 = vadd.f32 %v5758_v46, %v2421_v49  ;;  %v6504_v52 = vpop.f32.mrb[35].mxu0 }
 0xb49   : > { %v2528_v53 = vpack.c.bf16 %v2422_v51, %v2419_v50 }
 0xb4b   : > { %6512 = vmatpush3.bf16.msra.mxu1 %v2528_v53 }
 0xb4c   : > { %6523 = vmatprep.subr.bf16.mxu1 %v7153_v32 }
 0xc0e   : > { %v2496_v54 = vpop.f32.mrb[36].mxu1 }
 0xc0f   : > { %v2503_v55 = vmul.f32 0.25, %v2496_v54  ;;  %v6509_v56 = vpop.f32.mrb[37].mxu1 }
 0xc10   : > { %v2499_v58 = vpop.f32.mrb[38].mxu1 }
 0xc11   : > { %v2504_v59 = vmul.f32 0.25, %v2499_v58  ;;  %v6510_v60 = vpop.f32.mrb[39].mxu1  ;;  %v2505_v61 = vsel %vm1563_vm2, %v2503_v55, -inf }
 0xc12   : > { %2506 = vmax.xlane.f32.xlu1 %v2505_v61  ;;  %v5794_v61 = vld [vmem:[%s8443_s9 + $0x3] ss:$0 sm:$0xff] }
 0xc13   : > { %v2508_v62 = vsel %vm1563_vm2, %v2504_v59, -inf }
 0xc16   : > { %2509 = vmax.xlane.f32.xlu1 %v2508_v62 }
 0xc9f   : > { %v2507_v63 = vpop.xlane.xlu1 %2506 }
 0xca0   : > { %v2511_v0 = vsub.f32 %v2503_v55, %v2507_v63 }
 0xca2   : > { %v2513_v1 = vmul.f32 1.442695, %v2511_v0 }
 0xca3   : > { %v2510_v2 = vpop.xlane.xlu1 %2509 }
 0xca4   : > { %7073 = vpow2.f32 %v2513_v1  ;;  %v2512_v3 = vsub.f32 %v2504_v59, %v2510_v2 }
 0xca6   : > { %v2515_v4 = vmul.f32 1.442695, %v2512_v3 }
 0xca8   : > { %7075 = vpow2.f32 %v2515_v4 }
 0xcae   : > { %v7074_v5 = vpop.eup %7073 }
 0xcaf   : > { %v2517_v6 = vsel %vm1563_vm2, %v7074_v5, 0.0 }
 0xcb0   : > { %2518 = vadd.xlane.f32.xlu1 %v2517_v6 }
 0xcb2   : > { %v7076_v7 = vpop.eup %7075 }
 0xcb3   : > { %v2520_v8 = vsel %vm1563_vm2, %v7076_v7, 0.0 }
 0xcb4   : > { %2521 = vadd.xlane.f32.xlu1 %v2520_v8 }
 0xd3d   : > { %v2519_v9 = vpop.xlane.xlu1 %2518 }
 0xd3e   : > { %7077 = vrcp.f32 %v2519_v9 }
 0xd41   : > { %v2522_v10 = vpop.xlane.xlu1 %2521 }
 0xd42   : > { %7079 = vrcp.f32 %v2522_v10 }
 0xd48   : > { %v7078_v11 = vpop.eup %7077 }
 0xd49   : > { %v2525_v13 = vmul.f32 %v7078_v11, %v7074_v5 }
 0xd4c   : > { %v7080_v12 = vpop.eup %7079 }
 0xd4d   : > { %v2526_v14 = vmul.f32 %v7080_v12, %v7076_v7 }
 0xd4f   : > { %v2527_v16 = vpack.c.bf16 %v2526_v14, %v2525_v13 }
 0xd51   : > { %6514 = vmatmul.mubr.msk.bf16.vlgmr.msra.gmra.mrb[40].mxu1 %vm1563_vm2, %v2527_v16 }
 0xd52   : > { %6524 = vmatpush3.bf16.msra.mxu1 %v6963_v15  ;;  %6531 = vmatprep.mubr.msk.bf16.mxu1 %vm7154_vm1, %v7153_v32 }
 0xd53   : > { %6525 = vmatprep.subr.bf16.mxu1 %v7153_v32 }
 0xd56   : > { %6526 = vmatpush3.bf16.msra.mxu1 %v6964_v19 }
 0xd57   : > { %6527 = vmatprep.subr.bf16.mxu1 %v7153_v32 }
 0xd5a   : > { %6528 = vmatpush3.bf16.msra.mxu1 %v6965_v20 }
 0xd5b   : > { %6529 = vmatprep.subr.bf16.mxu1 %v7153_v32 }
 0xd5e   : > { %6530 = vmatpush3.bf16.msra.mxu1 %v6966_v21 }
 0xd5f   : > { %6547 = vmatprep.subr.bf16.mxu1 %v7153_v32 }
 0xd61   : > { %6532 = vmatmul.mubr.msk.bf16.vlgmr.msra.gmra.mrb[44].mxu1 %vm1241_vm0, %v7508_v57 }
 0xd62   : > { %6548 = vmatpush3.bf16.msra.mxu1 %v6967_v22  ;;  %6555 = vmatprep.mubr.msk.bf16.mxu1 %vm7154_vm1, %v7153_v32 }
 0xd63   : > { %6549 = vmatprep.subr.bf16.mxu1 %v7153_v32 }
 0xd66   : > { %6550 = vmatpush3.bf16.msra.mxu1 %v6968_v23 }
 0xd67   : > { %6551 = vmatprep.subr.bf16.mxu1 %v7153_v32 }
 0xd6a   : > { %6552 = vmatpush3.bf16.msra.mxu1 %v6969_v24 }
 0xd6b   : > { %6553 = vmatprep.subr.bf16.mxu1 %v7153_v32 }
 0xd6e   : > { %6554 = vmatpush3.bf16.msra.mxu1 %v6970_v25 }
 0xd6f   : > { %6571 = vmatprep.subr.bf16.mxu1 %v7153_v32 }
 0xd71   : > { %6556 = vmatmul.mubr.msk.bf16.vlgmr.msra.gmra.mrb[48].mxu1 %vm1241_vm0, %v7508_v57 }
 0xd72   : > { %6573 = vmatprep.mubr.msk.bf16.mxu1 %vm7154_vm1, %v7153_v32 }
 0xe24   : > { %v2566_v27 = vpop.f32.mrb[40].mxu1 }
 0xe25   : > { %v6515_v28 = vpop.f32.mrb[41].mxu1 }
 0xe26   : > { %v2569_v29 = vpop.f32.mrb[42].mxu1 }
 0xe27   : > { %v2576_v31 = vpack.c.bf16 %v2569_v29, %v2566_v27  ;;  %v6516_v34 = vpop.f32.mrb[43].mxu1 }
 0xe28   : > { %v6976_v34 = vld [vmem:[%s8446_s12 + $0x18] sm:$0xff]  }
 0xe29   : > { %6520 = vmatmul.mubr.msk.bf16.vlgmr.msra.gmra.mrb[36].mxu0 %vm1563_vm2, %v2576_v31  ;;  %6572 = vmatpush3.bf16.msra.mxu1 %v6976_v34 }
 0xe2a   : > { %6536 = vmatpush3.bf16.msra.mxu0 %v6972_v30  ;;  %6543 = vmatprep.mubr.msk.bf16.mxu0 %vm7154_vm1, %v7153_v32 }
 0xe2b   : > { %6537 = vmatprep.subr.bf16.mxu0 %v7153_v32  ;;  %6589 = vmatprep.subr.bf16.mxu1 %v7153_v32 }
 0xe2e   : > { %6538 = vmatpush3.bf16.msra.mxu0 %v6973_v35 }
 0xe2f   : > { %6539 = vmatprep.subr.bf16.mxu0 %v7153_v32 }
 0xe32   : > { %6540 = vmatpush3.bf16.msra.mxu0 %v6974_v37 }
 0xe33   : > { %6541 = vmatprep.subr.bf16.mxu0 %v7153_v32 }
 0xe34   : > { %v2704_v40 = vpop.f32.mrb[44].mxu1 }
 0xe35   : > { %v6533_v41 = vpop.f32.mrb[45].mxu1  ;;  %v2705_v43 = vadd.f32 %v5779_v39, %v2704_v40 }
 0xe36   : > { %v2707_v42 = vpop.f32.mrb[46].mxu1  ;;  %6542 = vmatpush3.bf16.msra.mxu0 %v6975_v38 }
 0xe37   : > { %v2708_v44 = vadd.f32 %v5779_v39, %v2707_v42  ;;  %v6534_v45 = vpop.f32.mrb[47].mxu1  ;;  %6559 = vmatprep.subr.bf16.mxu0 %v7153_v32 }
 0xe39   : > { %v2907_v46 = vpack.c.bf16 %v2708_v44, %v2705_v43  ;;  %6544 = vmatmul.mubr.msk.bf16.vlgmr.msra.gmra.mrb[40].mxu0 %vm1241_vm0, %v7508_v57  ;;  %v5821_v44 = vld [vmem:[%s8447_s13] ss:$0 sm:$0xff] }
 0xe3a   : > { %6561 = vmatprep.mubr.msk.bf16.mxu0 %vm7154_vm1, %v7153_v32 }
 0xe44   : > { %v2868_v48 = vpop.f32.mrb[48].mxu1 }
 0xe45   : > { %v6557_v49 = vpop.f32.mrb[49].mxu1  ;;  %v2869_v51 = vadd.f32 %v5809_v47, %v2868_v48 }
 0xe46   : > { %v2871_v50 = vpop.f32.mrb[50].mxu1 }
 0xe47   : > { %v2872_v52 = vadd.f32 %v5809_v47, %v2871_v50  ;;  %v6558_v53 = vpop.f32.mrb[51].mxu1 }
 0xe49   : > { %v2978_v54 = vpack.c.bf16 %v2872_v52, %v2869_v51 }
 0xefc   : > { %v2620_v55 = vpop.f32.mrb[36].mxu0 }
 0xefd   : > { %v7825_v56 = vadd.f32 %v2620_v55, %v7730_v33  ;;  %v6521_v58 = vpop.f32.mrb[37].mxu0 }
 0xefe   : > { %v2623_v57 = vpop.f32.mrb[38].mxu0 }
 0xeff   : > { %v7828_v59 = vadd.f32 %v2623_v57, %v7732_v36  ;;  %v6522_v60 = vpop.f32.mrb[39].mxu0 }
 0xf0c   : > { %v2786_v62 = vpop.f32.mrb[40].mxu0 }
 0xf0d   : > { %v2787_v63 = vadd.f32 %v5794_v61, %v2786_v62  ;;  %v6545_v0 = vpop.f32.mrb[41].mxu0  ;;  %v6977_v62 = vld [vmem:[%s8450_s16] sm:$0xff]  }
 0xf0e   : > { %v2789_v1 = vpop.f32.mrb[42].mxu0  ;;  %v6979_v0 = vld [vmem:[%s8450_s16 + $0x10] sm:$0xff]  }
 0xf0f   : > { %2875 = vxpose.xlu1.b32.start [1/2] (short) (narrow) %v2787_v63, 16  ;;  %v6546_v2 = vpop.f32.mrb[43].mxu0  ;;  %v2790_v3 = vadd.f32 %v5794_v61, %v2789_v1  ;;  %v6978_v63 = vld [vmem:[%s8450_s16 + $0x8] sm:$0xff]   ;;  %v6980_v1 = vld [vmem:[%s8450_s16 + $0x18] sm:$0xff]  }
 0xf13   : > { %2876 = vxpose.xlu1.b32.end [2/2] (short) (narrow) %v2790_v3, 16 }
 0xf8f   : > { %v2891_v33 = vpop.trf.xlu1 }
 0xf93   : > { %v2892_v4 = vpop.trf.xlu1 }
 0xf94   : > { %v2908_v5 = vpack.c.bf16 %v2892_v4, %v2891_v33 }
 0xf96   : > { %6560 = vmatpush3.bf16.msra.mxu0 %v2908_v5 }
 0xf97   : > { %6565 = vmatprep.subr.bf16.mxu0 %v7153_v32 }
 0xf99   : > { %6562 = vmatmul.mubr.msk.bf16.vlgmr.msra.gmra.mrb[44].mxu0 %vm1563_vm2, %v2907_v46 }
 0xf9a   : > { %6566 = vmatpush3.bf16.msra.mxu0 %v2978_v54  ;;  %6567 = vmatprep.mubr.msk.bf16.mxu0 %vm7154_vm1, %v7153_v32 }
 0xf9b   : > { %6577 = vmatprep.subr.bf16.mxu0 %v7153_v32 }
0x106c   : > { %v2946_v36 = vpop.f32.mrb[44].mxu0 }
0x106d   : > { %v2953_v6 = vmul.f32 0.25, %v2946_v36  ;;  %v6563_v7 = vpop.f32.mrb[45].mxu0 }
0x106e   : > { %v2949_v8 = vpop.f32.mrb[46].mxu0 }
0x106f   : > { %v2954_v9 = vmul.f32 0.25, %v2949_v8  ;;  %v6564_v10 = vpop.f32.mrb[47].mxu0  ;;  %v2955_v11 = vsel %vm1563_vm2, %v2953_v6, -inf  ;;  %v5822_v8 = vld [vmem:[%s8448_s14] ss:$0 sm:$0xff] }
0x1070   : > { %2956 = vmax.xlane.f32.xlu0 %v2955_v11 }
0x1071   : > { %v2958_v12 = vsel %vm1563_vm2, %v2954_v9, -inf }
0x1072   : > { %2959 = vmax.xlane.f32.xlu1 %v2958_v12  ;;  %v5823_v12 = vld [vmem:[%s8449_s15] ss:$0 sm:$0xff] }
0x10fd   : > { %v2957_v13 = vpop.xlane.xlu0 %2956 }
0x10fe   : > { %v2961_v14 = vsub.f32 %v2953_v6, %v2957_v13 }
0x10ff   : > { %v2960_v15 = vpop.xlane.xlu1 %2959 }
0x1100   : > { %v2963_v16 = vmul.f32 1.442695, %v2961_v14  ;;  %v2962_v19 = vsub.f32 %v2954_v9, %v2960_v15 }
0x1102   : > { %7081 = vpow2.f32 %v2963_v16  ;;  %v2965_v20 = vmul.f32 1.442695, %v2962_v19  ;;  %v6981_v19 = vld [vmem:[%s8452_s18] sm:$0xff]  }
0x1104   : > { %7083 = vpow2.f32 %v2965_v20  ;;  %v6982_v20 = vld [vmem:[%s8452_s18 + $0x8] sm:$0xff]  }
0x110c   : > { %v7082_v21 = vpop.eup %7081 }
0x110d   : > { %v2967_v22 = vsel %vm1563_vm2, %v7082_v21, 0.0 }
0x110e   : > { %v7084_v23 = vpop.eup %7083  ;;  %2968 = vadd.xlane.f32.xlu0 %v2967_v22  ;;  %v6984_v22 = vld [vmem:[%s8452_s18 + $0x18] sm:$0xff]  }
0x110f   : > { %v2970_v24 = vsel %vm1563_vm2, %v7084_v23, 0.0 }
0x1112   : > { %2971 = vadd.xlane.f32.xlu0 %v2970_v24  ;;  %v6986_v24 = vld [vmem:[%s8452_s18 + $0x28] sm:$0xff]  }
0x119b   : > { %v2969_v25 = vpop.xlane.xlu0 %2968 }
0x119c   : > { %7085 = vrcp.f32 %v2969_v25  ;;  %v6987_v25 = vld [vmem:[%s8452_s18 + $0x30] sm:$0xff]  }
0x119f   : > { %v2972_v26 = vpop.xlane.xlu0 %2971 }
0x11a0   : > { %7087 = vrcp.f32 %v2972_v26  ;;  %v6988_v26 = vld [vmem:[%s8452_s18 + $0x38] sm:$0xff]  }
0x11a6   : > { %v7086_v27 = vpop.eup %7085 }
0x11a7   : > { %v2975_v29 = vmul.f32 %v7086_v27, %v7082_v21  ;;  %v6983_v21 = vld [vmem:[%s8452_s18 + $0x10] sm:$0xff]   ;;  %v5824_v27 = vld [vmem:[%s8451_s17] ss:$0 sm:$0xff] }
0x11aa   : > { %v7088_v28 = vpop.eup %7087 }
0x11ab   : > { %v2976_v30 = vmul.f32 %v7088_v28, %v7084_v23  ;;  %v6985_v23 = vld [vmem:[%s8452_s18 + $0x20] sm:$0xff]  }
0x11ad   : > { %v2977_v31 = vpack.c.bf16 %v2976_v30, %v2975_v29 }
0x11af   : > { %6568 = vmatmul.mubr.msk.bf16.vlgmr.msra.gmra.mrb[48].mxu0 %vm1563_vm2, %v2977_v31 }
0x11b0   : > { %6585 = vmatprep.mubr.msk.bf16.mxu0 %vm7154_vm1, %v7153_v32  ;;  %6578 = vmatpush3.bf16.msra.mxu0 %v6977_v62 }
0x11b1   : > { %6579 = vmatprep.subr.bf16.mxu0 %v7153_v32 }
0x11b4   : > { %6580 = vmatpush3.bf16.msra.mxu0 %v6978_v63 }
0x11b5   : > { %6581 = vmatprep.subr.bf16.mxu0 %v7153_v32 }
0x11b8   : > { %6582 = vmatpush3.bf16.msra.mxu0 %v6979_v0 }
0x11b9   : > { %6583 = vmatprep.subr.bf16.mxu0 %v7153_v32 }
0x11bc   : > { %6584 = vmatpush3.bf16.msra.mxu0 %v6980_v1 }
0x11bd   : > { %6609 = vmatprep.subr.bf16.mxu0 %v7153_v32 }
0x1282   : > { %v3016_v35 = vpop.f32.mrb[48].mxu0 }
0x1283   : > { %v6569_v37 = vpop.f32.mrb[49].mxu0 }
0x1284   : > { %v3019_v38 = vpop.f32.mrb[50].mxu0 }
0x1285   : > { %v3026_v39 = vpack.c.bf16 %v3019_v38, %v3016_v35  ;;  %v6570_v40 = vpop.f32.mrb[51].mxu0 }
0x1287   : > { %6574 = vmatmul.mubr.msk.bf16.vlgmr.msra.gmra.mrb[52].mxu1 %vm1563_vm2, %v3026_v39 }
0x1288   : > { %6605 = vmatprep.mubr.msk.bf16.mxu1 %vm7154_vm1, %v7153_v32  ;;  %6590 = vmatpush3.bf16.msra.mxu1 %v6981_v19 }
0x1289   : > { %6591 = vmatprep.subr.bf16.mxu1 %v7153_v32 }
0x128c   : > { %6592 = vmatpush3.bf16.msra.mxu1 %v6982_v20 }
0x128d   : > { %6593 = vmatprep.subr.bf16.mxu1 %v7153_v32 }
0x1290   : > { %6594 = vmatpush3.bf16.msra.mxu1 %v6983_v21 }
0x1291   : > { %6595 = vmatprep.subr.bf16.mxu1 %v7153_v32 }
0x1294   : > { %6596 = vmatpush3.bf16.msra.mxu1 %v6984_v22 }
0x1295   : > { %6597 = vmatprep.subr.bf16.mxu1 %v7153_v32 }
0x1298   : > { %6598 = vmatpush3.bf16.msra.mxu1 %v6985_v23 }
0x1299   : > { %6599 = vmatprep.subr.bf16.mxu1 %v7153_v32 }
0x129c   : > { %6600 = vmatpush3.bf16.msra.mxu1 %v6986_v24 }
0x129d   : > { %6601 = vmatprep.subr.bf16.mxu1 %v7153_v32 }
0x12a0   : > { %6602 = vmatpush3.bf16.msra.mxu1 %v6987_v25 }
0x12a1   : > { %6603 = vmatprep.subr.bf16.mxu1 %v7153_v32 }
0x12a4   : > { %6604 = vmatpush3.bf16.msra.mxu1 %v6988_v26  ;;  %v5841_v26 = vld [vmem:[%s8474_s30 + $0x1] ss:$0 sm:$0xff] }
0x12a5   : > { %6633 = vmatprep.subr.bf16.mxu1 %v7153_v32 }
0x135a   : > { %v3070_v41 = vpop.f32.mrb[52].mxu1 }
0x135b   : > { %v3077_v42 = vadd.f32 %v3070_v41, %v7825_v56  ;;  %v6575_v43 = vpop.f32.mrb[53].mxu1 }
0x135c   : > { %v3073_v45 = vpop.f32.mrb[54].mxu1 }
0x135d   : > { %v3079_v46 = vadd.f32 %v3077_v42, %v7449_v17  ;;  %v3078_v47 = vadd.f32 %v3073_v45, %v7828_v59  ;;  %v6576_v48 = vpop.f32.mrb[55].mxu1 }
0x135f   : > { %v7858_v49 = vadd.f32 %v5821_v44, %v3079_v46  ;;  %v3080_v50 = vadd.f32 %v3078_v47, %v7451_v18 }
0x1361   : > { %v7861_v51 = vadd.f32 %v5821_v44, %v3080_v50  ;;  %v3092_v52 = vsel %vm1241_vm0, %v7858_v49, 0.0 }
0x1362   : > { %3093 = vadd.xlane.f32.xlu0 %v3092_v52 }
0x1363   : > { %v3095_v53 = vsel %vm1241_vm0, %v7861_v51, 0.0 }
0x1366   : > { %3096 = vadd.xlane.f32.xlu0 %v3095_v53 }
0x13ef   : > { %v3094_v54 = vpop.xlane.xlu0 %3093 }
0x13f0   : > { %v3098_v55 = vmul.f32 0.015625, %v3094_v54 }
0x13f2   : > { %v3100_v17 = vsub.f32 %v7858_v49, %v3098_v55 }
0x13f3   : > { %v3097_v56 = vpop.xlane.xlu0 %3096 }
0x13f4   : > { %v3099_v58 = vmul.f32 0.015625, %v3097_v56  ;;  %v3102_v57 = vmul.f32 %v3100_v17, %v3100_v17 }
0x13f6   : > { %v3101_v59 = vsub.f32 %v7861_v51, %v3099_v58  ;;  %v3104_v18 = vsel %vm1241_vm0, %v3102_v57, 0.0  ;;  %v5838_v57 = vld [vmem:[%s8453_s19] ss:$0 sm:$0xff] }
0x13f7   : > { %3105 = vadd.xlane.f32.xlu0 %v3104_v18 }
0x13f8   : > { %v3103_v60 = vmul.f32 %v3101_v59, %v3101_v59 }
0x13fa   : > { %v3107_v61 = vsel %vm1241_vm0, %v3103_v60, 0.0 }
0x13fb   : > { %3108 = vadd.xlane.f32.xlu0 %v3107_v61 }
0x1484   : > { %v3106_v2 = vpop.xlane.xlu0 %3105 }
0x1485   : > { %v3110_v3 = vmul.f32 0.015625, %v3106_v2 }
0x1487   : > { %v3112_v33 = vadd.f32 1e-05, %v3110_v3 }
0x1488   : > { %v3109_v4 = vpop.xlane.xlu0 %3108 }
0x1489   : > { %7089 = vrsqrt.f32 %v3112_v33  ;;  %v3111_v5 = vmul.f32 0.015625, %v3109_v4 }
0x148b   : > { %v3113_v36 = vadd.f32 1e-05, %v3111_v5 }
0x148d   : > { %7091 = vrsqrt.f32 %v3113_v36 }
0x1493   : > { %v7090_v6 = vpop.eup %7089 }
0x1494   : > { %v3116_v7 = vmul.f32 %v7090_v6, %v3100_v17 }
0x1496   : > { %v3124_v10 = vmul.f32 %v5822_v8, %v3116_v7 }
0x1497   : > { %v7092_v9 = vpop.eup %7091 }
0x1498   : > { %v3117_v11 = vmul.f32 %v7092_v9, %v3101_v59  ;;  %v3132_v14 = vadd.f32 %v5823_v12, %v3124_v10  ;;  %v6989_v9 = vld [vmem:[%s8473_s6 + $0x80] sm:$0xff]  }
0x1499   : > { %v6990_v10 = vld [vmem:[%s8444_s10 + $0x80] sm:$0xff]  }
0x149a   : > { %v3125_v13 = vmul.f32 %v5822_v8, %v3117_v11  ;;  %v6991_v11 = vld [vmem:[%s8473_s6 + $0x88] sm:$0xff]  }
0x149c   : > { %v3133_v15 = vadd.f32 %v5823_v12, %v3125_v13  ;;  %v6992_v12 = vld [vmem:[%s8444_s10 + $0x88] sm:$0xff]   ;;  %v6993_v13 = vld [vmem:[%s8473_s6 + $0x90] sm:$0xff]  }
0x149e   : > { %v3142_v16 = vpack.c.bf16 %v3133_v15, %v3132_v14  ;;  %v6994_v14 = vld [vmem:[%s8444_s10 + $0x90] sm:$0xff]   ;;  %v6995_v15 = vld [vmem:[%s8473_s6 + $0x98] sm:$0xff]  }
0x14a0   : > { %6586 = vmatmul.mubr.msk.bf16.vlgmr.msra.gmra.mrb[52].mxu0 %vm1241_vm0, %v3142_v16  ;;  %v6996_v16 = vld [vmem:[%s8444_s10 + $0x98] sm:$0xff]  }
0x14a1   : > { %6617 = vmatprep.mubr.msk.bf16.mxu0 %vm7154_vm1, %v7153_v32  ;;  %6610 = vmatpush3.bf16.msra.mxu0 %v6989_v9  ;;  %v7007_v9 = vld [vmem:[%s8444_s10 + $0xb0] sm:$0xff]  }
0x14a2   : > { %6611 = vmatprep.subr.bf16.mxu0 %v7153_v32 }
0x14a5   : > { %6612 = vmatpush3.bf16.msra.mxu0 %v6991_v11 }
0x14a6   : > { %6613 = vmatprep.subr.bf16.mxu0 %v7153_v32 }
0x14a9   : > { %6614 = vmatpush3.bf16.msra.mxu0 %v6993_v13 }
0x14aa   : > { %6615 = vmatprep.subr.bf16.mxu0 %v7153_v32 }
0x14ad   : > { %6616 = vmatpush3.bf16.msra.mxu0 %v6995_v15 }
0x14ae   : > { %6621 = vmatprep.subr.bf16.mxu0 %v7153_v32 }
0x1573   : > { %v3211_v28 = vpop.f32.mrb[52].mxu0 }
0x1574   : > { %v3212_v29 = vadd.f32 %v5824_v27, %v3211_v28  ;;  %v6587_v30 = vpop.f32.mrb[53].mxu0 }
0x1575   : > { %v3214_v31 = vpop.f32.mrb[54].mxu0 }
0x1576   : > { %v3218_v34 = vmul.f32 %v3212_v29, %v3212_v29  ;;  %v3215_v35 = vadd.f32 %v5824_v27, %v3214_v31  ;;  %v6588_v37 = vpop.f32.mrb[55].mxu0  ;;  %v5842_v31 = vld [vmem:[%s8475_s24 + $0x1] ss:$0 sm:$0xff] }
0x1578   : > { %v3220_v38 = vmul.f32 %v3218_v34, %v3212_v29  ;;  %v3219_v39 = vmul.f32 %v3215_v35, %v3215_v35 }
0x157a   : > { %v3222_v40 = vmul.f32 0.044715, %v3220_v38  ;;  %v3221_v41 = vmul.f32 %v3219_v39, %v3215_v35  ;;  %v6997_v38 = vld [vmem:[%s8442_s8 + $0x80] sm:$0xff]  }
0x157c   : > { %v3224_v42 = vadd.f32 %v3222_v40, %v3212_v29  ;;  %v3223_v43 = vmul.f32 0.044715, %v3221_v41  ;;  %v6998_v40 = vld [vmem:[%s8442_s8 + $0x88] sm:$0xff]   ;;  %v6999_v41 = vld [vmem:[%s8442_s8 + $0x90] sm:$0xff]  }
0x157e   : > { %v3226_v44 = vmul.f32 0.7978846, %v3224_v42  ;;  %v3225_v45 = vadd.f32 %v3223_v43, %v3215_v35  ;;  %v7000_v42 = vld [vmem:[%s8442_s8 + $0x98] sm:$0xff]   ;;  %v5852_v43 = vld [vmem:[%s8441_s7 + $0x4] ss:$0 sm:$0xff] }
0x1580   : > { %7093 = vtanh.f32 %v3226_v44  ;;  %v3227_v46 = vmul.f32 0.7978846, %v3225_v45  ;;  %v5882_v45 = vld [vmem:[%s8445_s11 + $0x4] ss:$0 sm:$0xff] }
0x1582   : > { %7095 = vtanh.f32 %v3227_v46 }
0x158a   : > { %v7094_v47 = vpop.eup %7093 }
0x158b   : > { %v3230_v48 = vadd.f32 1.0, %v7094_v47 }
0x158c   : > { %v7096_v50 = vpop.eup %7095 }
0x158d   : > { %v3232_v52 = vmul.f32 0.5, %v3230_v48  ;;  %v3231_v53 = vadd.f32 1.0, %v7096_v50 }
0x158f   : > { %v3233_v54 = vmul.f32 0.5, %v3231_v53  ;;  %v3234_v55 = vmul.f32 %v3232_v52, %v3212_v29 }
0x1591   : > { %v3235_v17 = vmul.f32 %v3233_v54, %v3215_v35 }
0x1593   : > { %v3252_v56 = vpack.c.bf16 %v3235_v17, %v3234_v55 }
0x1595   : > { %6606 = vmatmul.mubr.bf16.vlgmr.msra.gmra.mrb[56].mxu1 %v3252_v56 }
0x1596   : > { %6641 = vmatprep.mubr.msk.bf16.mxu1 %vm7154_vm1, %v7153_v32  ;;  %6634 = vmatpush3.bf16.msra.mxu1 %v6990_v10  ;;  %v7008_v10 = vld [vmem:[%s8444_s10 + $0xb8] sm:$0xff]  }
0x1597   : > { %6635 = vmatprep.subr.bf16.mxu1 %v7153_v32 }
0x159a   : > { %6636 = vmatpush3.bf16.msra.mxu1 %v6992_v12 }
0x159b   : > { %6637 = vmatprep.subr.bf16.mxu1 %v7153_v32 }
0x159e   : > { %6638 = vmatpush3.bf16.msra.mxu1 %v6994_v14 }
0x159f   : > { %6639 = vmatprep.subr.bf16.mxu1 %v7153_v32 }
0x15a2   : > { %6640 = vmatpush3.bf16.msra.mxu1 %v6996_v16 }
0x15a3   : > { %6651 = vmatprep.subr.bf16.mxu1 %v7153_v32 }
0x1668   : > { %v3335_v58 = vpop.f32.mrb[56].mxu1 }
0x1669   : > { %v3342_v59 = vadd.f32 %v3335_v58, %v7858_v49  ;;  %v6607_v18 = vpop.f32.mrb[57].mxu1 }
0x166a   : > { %v3338_v60 = vpop.f32.mrb[58].mxu1  ;;  %v5867_v18 = vld [vmem:[%s8443_s9 + $0x4] ss:$0 sm:$0xff] }
0x166b   : > { %v7937_v61 = vadd.f32 %v5838_v57, %v3342_v59  ;;  %v3343_v62 = vadd.f32 %v3338_v60, %v7861_v51  ;;  %v6608_v63 = vpop.f32.mrb[59].mxu1 }
0x166d   : > { %v7940_v0 = vadd.f32 %v5838_v57, %v3343_v62  ;;  %v3357_v1 = vsel %vm1241_vm0, %v7937_v61, 0.0 }
0x166e   : > { %3358 = vadd.xlane.f32.xlu0 %v3357_v1 }
0x166f   : > { %v3360_v2 = vsel %vm1241_vm0, %v7940_v0, 0.0 }
0x1670   : > { %3361 = vadd.xlane.f32.xlu1 %v3360_v2 }
0x16fb   : > { %v3359_v3 = vpop.xlane.xlu0 %3358 }
0x16fc   : > { %v3363_v33 = vmul.f32 0.015625, %v3359_v3 }
0x16fd   : > { %v3362_v49 = vpop.xlane.xlu1 %3361 }
0x16fe   : > { %v3365_v4 = vsub.f32 %v7937_v61, %v3363_v33  ;;  %v3364_v5 = vmul.f32 0.015625, %v3362_v49 }
0x1700   : > { %v3366_v36 = vsub.f32 %v7940_v0, %v3364_v5  ;;  %v3367_v51 = vmul.f32 %v3365_v4, %v3365_v4  ;;  %v7001_v5 = vld [vmem:[%s8473_s6 + $0xa0] sm:$0xff]  }
0x1702   : > { %v3369_v6 = vsel %vm1241_vm0, %v3367_v51, 0.0  ;;  %v3368_v7 = vmul.f32 %v3366_v36, %v3366_v36  ;;  %v7003_v51 = vld [vmem:[%s8473_s6 + $0xb0] sm:$0xff]  }
0x1703   : > { %3370 = vadd.xlane.f32.xlu0 %v3369_v6  ;;  %v7004_v6 = vld [vmem:[%s8473_s6 + $0xb8] sm:$0xff]  }
0x1704   : > { %v3372_v8 = vsel %vm1241_vm0, %v3368_v7, 0.0  ;;  %v7005_v7 = vld [vmem:[%s8444_s10 + $0xa0] sm:$0xff]  }
0x1705   : > { %3373 = vadd.xlane.f32.xlu1 %v3372_v8  ;;  %v7006_v8 = vld [vmem:[%s8444_s10 + $0xa8] sm:$0xff]  }
0x1790   : > { %v3371_v19 = vpop.xlane.xlu0 %3370 }
0x1791   : > { %v3375_v20 = vmul.f32 0.015625, %v3371_v19 }
0x1792   : > { %v3374_v21 = vpop.xlane.xlu1 %3373 }
0x1793   : > { %v3377_v22 = vadd.f32 1e-05, %v3375_v20  ;;  %v3376_v23 = vmul.f32 0.015625, %v3374_v21  ;;  %v5901_v21 = vld [vmem:[%s8441_s7 + $0x5] ss:$0 sm:$0xff] }
0x1795   : > { %7097 = vrsqrt.f32 %v3377_v22  ;;  %v3378_v24 = vadd.f32 1e-05, %v3376_v23 }
0x1797   : > { %7099 = vrsqrt.f32 %v3378_v24 }
0x179f   : > { %v7098_v25 = vpop.eup %7097 }
0x17a0   : > { %v3381_v27 = vmul.f32 %v7098_v25, %v3365_v4 }
0x17a1   : > { %v7100_v28 = vpop.eup %7099 }
0x17a2   : > { %v3389_v29 = vmul.f32 %v5841_v26, %v3381_v27  ;;  %v3382_v30 = vmul.f32 %v7100_v28, %v3366_v36  ;;  %v7002_v36 = vld [vmem:[%s8473_s6 + $0xa8] sm:$0xff]  }
0x17a4   : > { %v3390_v34 = vmul.f32 %v5841_v26, %v3382_v30  ;;  %v3397_v35 = vadd.f32 %v5842_v31, %v3389_v29  ;;  %v5931_v29 = vld [vmem:[%s8445_s11 + $0x5] ss:$0 sm:$0xff] }
0x17a6   : > { %v3398_v37 = vadd.f32 %v5842_v31, %v3390_v34 }
0x17a8   : > { %v7991_v39 = vpack.c.bf16 %v3398_v37, %v3397_v35 }
0x17aa   : > { %6618 = vmatmul.mubr.msk.bf16.vlgmr.msra.gmra.mrb[56].mxu0 %vm1241_vm0, %v7991_v39  ;;  %6642 = vmatmul.mubr.msk.bf16.vlgmr.msra.gmra.mrb[60].mxu1 %vm1241_vm0, %v7991_v39 }
0x17ab   : > { %6622 = vmatpush3.bf16.msra.mxu0 %v6997_v38  ;;  %6629 = vmatprep.mubr.msk.bf16.mxu0 %vm7154_vm1, %v7153_v32 }
0x17ac   : > { %6623 = vmatprep.subr.bf16.mxu0 %v7153_v32  ;;  %6653 = vmatprep.mubr.msk.bf16.mxu1 %vm7154_vm1, %v7153_v32 }
0x17af   : > { %6624 = vmatpush3.bf16.msra.mxu0 %v6998_v40 }
0x17b0   : > { %6625 = vmatprep.subr.bf16.mxu0 %v7153_v32 }
0x17b3   : > { %6626 = vmatpush3.bf16.msra.mxu0 %v6999_v41 }
0x17b4   : > { %6627 = vmatprep.subr.bf16.mxu0 %v7153_v32 }
0x17b7   : > { %6628 = vmatpush3.bf16.msra.mxu0 %v7000_v42 }
0x17b8   : > { %6645 = vmatprep.subr.bf16.mxu0 %v7153_v32 }
0x17ba   : > { %6630 = vmatmul.mubr.msk.bf16.vlgmr.msra.gmra.mrb[60].mxu0 %vm1241_vm0, %v7991_v39 }
0x17bb   : > { %6647 = vmatprep.mubr.msk.bf16.mxu0 %vm7154_vm1, %v7153_v32 }
0x187d   : > { %v3478_v44 = vpop.f32.mrb[56].mxu0  ;;  %v3642_v46 = vpop.f32.mrb[60].mxu1 }
0x187e   : > { %v6619_v47 = vpop.f32.mrb[57].mxu0  ;;  %v6643_v48 = vpop.f32.mrb[61].mxu1  ;;  %v3479_v53 = vadd.f32 %v5852_v43, %v3478_v44  ;;  %v3643_v54 = vadd.f32 %v5882_v45, %v3642_v46 }
0x187f   : > { %v3481_v50 = vpop.f32.mrb[58].mxu0  ;;  %v3645_v52 = vpop.f32.mrb[62].mxu1 }
0x1880   : > { %v3482_v55 = vadd.f32 %v5852_v43, %v3481_v50  ;;  %v3646_v17 = vadd.f32 %v5882_v45, %v3645_v52  ;;  %v6620_v56 = vpop.f32.mrb[59].mxu0  ;;  %v6644_v58 = vpop.f32.mrb[63].mxu1 }
0x1882   : > { %v3681_v57 = vpack.c.bf16 %v3482_v55, %v3479_v53  ;;  %v3752_v59 = vpack.c.bf16 %v3646_v17, %v3643_v54 }
0x1884   : > { %6652 = vmatpush3.bf16.msra.mxu1 %v3752_v59 }
0x1885   : > { %6669 = vmatprep.subr.bf16.mxu1 %v7153_v32 }
0x188d   : > { %v3560_v60 = vpop.f32.mrb[60].mxu0 }
0x188e   : > { %v3561_v62 = vadd.f32 %v5867_v18, %v3560_v60  ;;  %v6631_v63 = vpop.f32.mrb[61].mxu0  ;;  %v7011_v60 = vld [vmem:[%s8442_s8 + $0xb0] sm:$0xff]  }
0x188f   : > { %v3563_v1 = vpop.f32.mrb[62].mxu0 }
0x1890   : > { %3649 = vxpose.xlu0.b32.start [1/2] (short) (narrow) %v3561_v62, 16  ;;  %v6632_v2 = vpop.f32.mrb[63].mxu0  ;;  %v3564_v3 = vadd.f32 %v5867_v18, %v3563_v1  ;;  %v7010_v18 = vld [vmem:[%s8442_s8 + $0xa8] sm:$0xff]   ;;  %v7012_v62 = vld [vmem:[%s8442_s8 + $0xb8] sm:$0xff]  }
0x1894   : > { %3650 = vxpose.xlu0.b32.end [2/2] (short) (narrow) %v3564_v3, 16 }
0x1910   : > { %v3665_v33 = vpop.trf.xlu0 }
0x1914   : > { %v3666_v49 = vpop.trf.xlu0 }
0x1915   : > { %v3682_v4 = vpack.c.bf16 %v3666_v49, %v3665_v33  ;;  %v5916_v49 = vld [vmem:[%s8443_s9 + $0x5] ss:$0 sm:$0xff] }
0x1917   : > { %6646 = vmatpush3.bf16.msra.mxu0 %v3682_v4 }
0x1918   : > { %6657 = vmatprep.subr.bf16.mxu0 %v7153_v32 }
0x191a   : > { %6648 = vmatmul.mubr.msk.bf16.vlgmr.msra.gmra.mrb[64].mxu0 %vm1563_vm2, %v3681_v57  ;;  %v7009_v57 = vld [vmem:[%s8442_s8 + $0xa0] sm:$0xff]  }
0x191b   : > { %6658 = vmatpush3.bf16.msra.mxu0 %v7001_v5  ;;  %6665 = vmatprep.mubr.msk.bf16.mxu0 %vm7154_vm1, %v7153_v32 }
0x191c   : > { %6659 = vmatprep.subr.bf16.mxu0 %v7153_v32 }
0x191f   : > { %6660 = vmatpush3.bf16.msra.mxu0 %v7002_v36 }
0x1920   : > { %6661 = vmatprep.subr.bf16.mxu0 %v7153_v32 }
0x1923   : > { %6662 = vmatpush3.bf16.msra.mxu0 %v7003_v51 }
0x1924   : > { %6663 = vmatprep.subr.bf16.mxu0 %v7153_v32 }
0x1927   : > { %6664 = vmatpush3.bf16.msra.mxu0 %v7004_v6 }
0x1928   : > { %6681 = vmatprep.subr.bf16.mxu0 %v7153_v32 }
0x192a   : > { %6666 = vmatmul.mubr.msk.bf16.vlgmr.msra.gmra.mrb[68].mxu0 %vm1241_vm0, %v7991_v39 }
0x192b   : > { %6682 = vmatpush3.bf16.msra.mxu0 %v7005_v7  ;;  %6689 = vmatprep.mubr.msk.bf16.mxu0 %vm7154_vm1, %v7153_v32 }
0x192c   : > { %6683 = vmatprep.subr.bf16.mxu0 %v7153_v32 }
0x192f   : > { %6684 = vmatpush3.bf16.msra.mxu0 %v7006_v8 }
0x1930   : > { %6685 = vmatprep.subr.bf16.mxu0 %v7153_v32 }
0x1933   : > { %6686 = vmatpush3.bf16.msra.mxu0 %v7007_v9 }
0x1934   : > { %6687 = vmatprep.subr.bf16.mxu0 %v7153_v32 }
0x1937   : > { %6688 = vmatpush3.bf16.msra.mxu0 %v7008_v10 }
0x1938   : > { %6705 = vmatprep.subr.bf16.mxu0 %v7153_v32 }
0x193a   : > { %6690 = vmatmul.mubr.msk.bf16.vlgmr.msra.gmra.mrb[72].mxu0 %vm1241_vm0, %v7991_v39 }
0x193b   : > { %6707 = vmatprep.mubr.msk.bf16.mxu0 %vm7154_vm1, %v7153_v32 }
0x19ed   : > { %v3720_v11 = vpop.f32.mrb[64].mxu0 }
0x19ee   : > { %v3727_v12 = vmul.f32 0.25, %v3720_v11  ;;  %v6649_v13 = vpop.f32.mrb[65].mxu0 }
0x19ef   : > { %v3723_v14 = vpop.f32.mrb[66].mxu0 }
0x19f0   : > { %v3728_v15 = vmul.f32 0.25, %v3723_v14  ;;  %v6650_v16 = vpop.f32.mrb[67].mxu0  ;;  %v3729_v19 = vsel %vm1563_vm2, %v3727_v12, -inf }
0x19f1   : > { %3730 = vmax.xlane.f32.xlu1 %v3729_v19 }
0x19f2   : > { %v3732_v20 = vsel %vm1563_vm2, %v3728_v15, -inf }
0x19f5   : > { %3733 = vmax.xlane.f32.xlu1 %v3732_v20 }
0x19fd   : > { %v3876_v22 = vpop.f32.mrb[68].mxu0 }
0x19fe   : > { %v6667_v23 = vpop.f32.mrb[69].mxu0  ;;  %v8077_v25 = vadd.f32 %v5901_v21, %v3876_v22 }
0x19ff   : > { %v3879_v24 = vpop.f32.mrb[70].mxu0 }
0x1a00   : > { %v8079_v26 = vadd.f32 %v5901_v21, %v3879_v24  ;;  %v6668_v27 = vpop.f32.mrb[71].mxu0 }
0x1a02   : > { %v4079_v28 = vpack.c.bf16 %v8079_v26, %v8077_v25 }
0x1a0d   : > { %v4040_v30 = vpop.f32.mrb[72].mxu0 }
0x1a0e   : > { %v6691_v31 = vpop.f32.mrb[73].mxu0  ;;  %v8086_v35 = vadd.f32 %v5931_v29, %v4040_v30 }
0x1a0f   : > { %v4043_v34 = vpop.f32.mrb[74].mxu0 }
0x1a10   : > { %v4044_v37 = vadd.f32 %v5931_v29, %v4043_v34  ;;  %v6692_v38 = vpop.f32.mrb[75].mxu0 }
0x1a12   : > { %v4150_v40 = vpack.c.bf16 %v4044_v37, %v8086_v35 }
0x1a7e   : > { %v3731_v41 = vpop.xlane.xlu1 %3730 }
0x1a7f   : > { %v3735_v42 = vsub.f32 %v3727_v12, %v3731_v41  ;;  %v7013_v41 = vld [vmem:[%s8446_s12 + $0x20] sm:$0xff]  }
0x1a81   : > { %v3737_v43 = vmul.f32 1.442695, %v3735_v42 }
0x1a82   : > { %v3734_v44 = vpop.xlane.xlu1 %3733 }
0x1a83   : > { %7101 = vpow2.f32 %v3737_v43  ;;  %v3736_v45 = vsub.f32 %v3728_v15, %v3734_v44  ;;  %v7014_v43 = vld [vmem:[%s8442_s8 + $0xc0] sm:$0xff]   ;;  %v7015_v44 = vld [vmem:[%s8442_s8 + $0xc8] sm:$0xff]  }
0x1a85   : > { %v3739_v46 = vmul.f32 1.442695, %v3736_v45  ;;  %v7016_v45 = vld [vmem:[%s8442_s8 + $0xd0] sm:$0xff]  }
0x1a87   : > { %7103 = vpow2.f32 %v3739_v46  ;;  %v7017_v46 = vld [vmem:[%s8442_s8 + $0xd8] sm:$0xff]  }
0x1a8d   : > { %v7102_v47 = vpop.eup %7101 }
0x1a8e   : > { %v3741_v48 = vsel %vm1563_vm2, %v7102_v47, 0.0 }
0x1a8f   : > { %3742 = vadd.xlane.f32.xlu1 %v3741_v48 }
0x1a91   : > { %v7104_v50 = vpop.eup %7103 }
0x1a92   : > { %v3744_v52 = vsel %vm1563_vm2, %v7104_v50, 0.0 }
0x1a93   : > { %3745 = vadd.xlane.f32.xlu1 %v3744_v52 }
0x1b1c   : > { %v3743_v53 = vpop.xlane.xlu1 %3742 }
0x1b1d   : > { %7105 = vrcp.f32 %v3743_v53  ;;  %v7019_v53 = vld [vmem:[%s8473_s6 + $0xc0] sm:$0xff]  }
0x1b20   : > { %v3746_v54 = vpop.xlane.xlu1 %3745 }
0x1b21   : > { %7107 = vrcp.f32 %v3746_v54 }
0x1b27   : > { %v7106_v55 = vpop.eup %7105 }
0x1b28   : > { %v3749_v56 = vmul.f32 %v7106_v55, %v7102_v47  ;;  %v7018_v47 = vld [vmem:[%s8446_s12 + $0x28] sm:$0xff]  }
0x1b29   : > { %6706 = vmatpush3.bf16.msra.mxu0 %v7018_v47 }
0x1b2a   : > { %6717 = vmatprep.subr.bf16.mxu0 %v7153_v32 }
0x1b2b   : > { %v7108_v17 = vpop.eup %7107 }
0x1b2c   : > { %v3750_v58 = vmul.f32 %v7108_v17, %v7104_v50  ;;  %v7020_v17 = vld [vmem:[%s8473_s6 + $0xc8] sm:$0xff]  }
0x1b2e   : > { %v3751_v59 = vpack.c.bf16 %v3750_v58, %v3749_v56 }
0x1b30   : > { %6654 = vmatmul.mubr.msk.bf16.vlgmr.msra.gmra.mrb[64].mxu1 %vm1563_vm2, %v3751_v59  ;;  %v7021_v59 = vld [vmem:[%s8473_s6 + $0xd0] sm:$0xff]  }
0x1b31   : > { %6670 = vmatpush3.bf16.msra.mxu1 %v7009_v57  ;;  %6677 = vmatprep.mubr.msk.bf16.mxu1 %vm7154_vm1, %v7153_v32 }
0x1b32   : > { %6671 = vmatprep.subr.bf16.mxu1 %v7153_v32 }
0x1b35   : > { %6672 = vmatpush3.bf16.msra.mxu1 %v7010_v18 }
0x1b36   : > { %6673 = vmatprep.subr.bf16.mxu1 %v7153_v32 }
0x1b39   : > { %6674 = vmatpush3.bf16.msra.mxu1 %v7011_v60  ;;  %v7022_v60 = vld [vmem:[%s8473_s6 + $0xd8] sm:$0xff]  }
0x1b3a   : > { %6675 = vmatprep.subr.bf16.mxu1 %v7153_v32 }
0x1b3d   : > { %6676 = vmatpush3.bf16.msra.mxu1 %v7012_v62  ;;  %v7023_v62 = vld [vmem:[%s8444_s10 + $0xc0] sm:$0xff]  }
0x1b3e   : > { %6693 = vmatprep.subr.bf16.mxu1 %v7153_v32 }
0x1b40   : > { %6678 = vmatmul.mubr.msk.bf16.vlgmr.msra.gmra.mrb[68].mxu1 %vm1241_vm0, %v7991_v39 }
0x1b41   : > { %6695 = vmatprep.mubr.msk.bf16.mxu1 %vm7154_vm1, %v7153_v32 }
0x1c03   : > { %v8114_v63 = vpop.f32.mrb[64].mxu1 }
0x1c04   : > { %v6655_v1 = vpop.f32.mrb[65].mxu1 }
0x1c05   : > { %v3793_v2 = vpop.f32.mrb[66].mxu1  ;;  %v7024_v1 = vld [vmem:[%s8444_s10 + $0xc8] sm:$0xff]  }
0x1c06   : > { %v3800_v3 = vpack.c.bf16 %v3793_v2, %v8114_v63  ;;  %v6656_v33 = vpop.f32.mrb[67].mxu1  ;;  %v5969_v63 = vld [vmem:[%s8443_s9 + $0x6] ss:$0 sm:$0xff] }
0x1c13   : > { %v3958_v4 = vpop.f32.mrb[68].mxu1 }
0x1c14   : > { %v3959_v5 = vadd.f32 %v5916_v49, %v3958_v4  ;;  %v6679_v36 = vpop.f32.mrb[69].mxu1  ;;  %v7025_v4 = vld [vmem:[%s8444_s10 + $0xd0] sm:$0xff]  }
0x1c15   : > { %v3961_v51 = vpop.f32.mrb[70].mxu1 }
0x1c16   : > { %4047 = vxpose.xlu1.b32.start [1/2] (short) (narrow) %v3959_v5, 16  ;;  %v6680_v6 = vpop.f32.mrb[71].mxu1  ;;  %v3962_v7 = vadd.f32 %v5916_v49, %v3961_v51  ;;  %v7026_v51 = vld [vmem:[%s8444_s10 + $0xd8] sm:$0xff]  }
0x1c1a   : > { %4048 = vxpose.xlu1.b32.end [2/2] (short) (narrow) %v3962_v7, 16 }
0x1c96   : > { %v4063_v8 = vpop.trf.xlu1 }
0x1c9a   : > { %v4064_v9 = vpop.trf.xlu1 }
0x1c9b   : > { %v4080_v10 = vpack.c.bf16 %v4064_v9, %v4063_v8 }
0x1c9d   : > { %6694 = vmatpush3.bf16.msra.mxu1 %v4080_v10 }
0x1c9e   : > { %6699 = vmatprep.subr.bf16.mxu1 %v7153_v32 }
0x1ca0   : > { %6696 = vmatmul.mubr.msk.bf16.vlgmr.msra.gmra.mrb[72].mxu1 %vm1563_vm2, %v4079_v28 }
0x1ca1   : > { %6700 = vmatpush3.bf16.msra.mxu1 %v4150_v40  ;;  %6701 = vmatprep.mubr.msk.bf16.mxu1 %vm7154_vm1, %v7153_v32 }
0x1ca2   : > { %6711 = vmatprep.subr.bf16.mxu1 %v7153_v32 }
0x1d73   : > { %v4118_v11 = vpop.f32.mrb[72].mxu1 }
0x1d74   : > { %v4125_v12 = vmul.f32 0.25, %v4118_v11  ;;  %v6697_v13 = vpop.f32.mrb[73].mxu1 }
0x1d75   : > { %v4121_v14 = vpop.f32.mrb[74].mxu1 }
0x1d76   : > { %v4126_v15 = vmul.f32 0.25, %v4121_v14  ;;  %v6698_v16 = vpop.f32.mrb[75].mxu1  ;;  %v4127_v19 = vsel %vm1563_vm2, %v4125_v12, -inf }
0x1d77   : > { %4128 = vmax.xlane.f32.xlu0 %v4127_v19 }
0x1d78   : > { %v4130_v20 = vsel %vm1563_vm2, %v4126_v15, -inf }
0x1d79   : > { %4131 = vmax.xlane.f32.xlu1 %v4130_v20 }
0x1e04   : > { %v4129_v21 = vpop.xlane.xlu0 %4128 }
0x1e05   : > { %v4133_v22 = vsub.f32 %v4125_v12, %v4129_v21 }
0x1e06   : > { %v4132_v23 = vpop.xlane.xlu1 %4131 }
0x1e07   : > { %v4135_v24 = vmul.f32 1.442695, %v4133_v22  ;;  %v4134_v25 = vsub.f32 %v4126_v15, %v4132_v23  ;;  %v5954_v15 = vld [vmem:[%s8441_s7 + $0x6] ss:$0 sm:$0xff] }
0x1e09   : > { %7109 = vpow2.f32 %v4135_v24  ;;  %v4137_v26 = vmul.f32 1.442695, %v4134_v25  ;;  %v5984_v25 = vld [vmem:[%s8445_s11 + $0x6] ss:$0 sm:$0xff] }
0x1e0b   : > { %7111 = vpow2.f32 %v4137_v26 }
0x1e13   : > { %v7110_v27 = vpop.eup %7109 }
0x1e14   : > { %v4139_v28 = vsel %vm1563_vm2, %v7110_v27, 0.0 }
0x1e15   : > { %v7112_v29 = vpop.eup %7111  ;;  %4140 = vadd.xlane.f32.xlu0 %v4139_v28 }
0x1e16   : > { %v4142_v30 = vsel %vm1563_vm2, %v7112_v29, 0.0 }
0x1e19   : > { %4143 = vadd.xlane.f32.xlu0 %v4142_v30 }
0x1ea2   : > { %v4141_v31 = vpop.xlane.xlu0 %4140 }
0x1ea3   : > { %7113 = vrcp.f32 %v4141_v31 }
0x1ea6   : > { %v4144_v34 = vpop.xlane.xlu0 %4143 }
0x1ea7   : > { %7115 = vrcp.f32 %v4144_v34 }
0x1ead   : > { %v7114_v35 = vpop.eup %7113 }
0x1eae   : > { %v4147_v38 = vmul.f32 %v7114_v35, %v7110_v27 }
0x1eb1   : > { %v7116_v37 = vpop.eup %7115 }
0x1eb2   : > { %v4148_v40 = vmul.f32 %v7116_v37, %v7112_v29 }
0x1eb4   : > { %v4149_v42 = vpack.c.bf16 %v4148_v40, %v4147_v38 }
0x1eb6   : > { %6702 = vmatmul.mubr.msk.bf16.vlgmr.msra.gmra.mrb[76].mxu1 %vm1563_vm2, %v4149_v42 }
0x1eb7   : > { %6712 = vmatpush3.bf16.msra.mxu1 %v7013_v41  ;;  %6713 = vmatprep.mubr.msk.bf16.mxu1 %vm7154_vm1, %v7153_v32 }
0x1eb8   : > { %6729 = vmatprep.subr.bf16.mxu1 %v7153_v32 }
0x1ebe   : > { %6714 = vmatmul.mubr.msk.bf16.vlgmr.msra.gmra.mrb[80].mxu1 %vm1563_vm2, %v3800_v3 }
0x1ebf   : > { %6730 = vmatpush3.bf16.msra.mxu1 %v7014_v43  ;;  %6737 = vmatprep.mubr.msk.bf16.mxu1 %vm7154_vm1, %v7153_v32 }
0x1ec0   : > { %6731 = vmatprep.subr.bf16.mxu1 %v7153_v32 }
0x1ec3   : > { %6732 = vmatpush3.bf16.msra.mxu1 %v7015_v44 }
0x1ec4   : > { %6733 = vmatprep.subr.bf16.mxu1 %v7153_v32 }
0x1ec7   : > { %6734 = vmatpush3.bf16.msra.mxu1 %v7016_v45 }
0x1ec8   : > { %6735 = vmatprep.subr.bf16.mxu1 %v7153_v32 }
0x1ecb   : > { %6736 = vmatpush3.bf16.msra.mxu1 %v7017_v46 }
0x1ecc   : > { %6753 = vmatprep.subr.bf16.mxu1 %v7153_v32 }
0x1ece   : > { %6738 = vmatmul.mubr.msk.bf16.vlgmr.msra.gmra.mrb[84].mxu1 %vm1241_vm0, %v7991_v39 }
0x1ecf   : > { %6755 = vmatprep.mubr.msk.bf16.mxu1 %vm7154_vm1, %v7153_v32 }
0x1f89   : > { %v4188_v48 = vpop.f32.mrb[76].mxu1 }
0x1f8a   : > { %v6703_v50 = vpop.f32.mrb[77].mxu1 }
0x1f8b   : > { %v4191_v52 = vpop.f32.mrb[78].mxu1 }
0x1f8c   : > { %v4198_v54 = vpack.c.bf16 %v4191_v52, %v4188_v48  ;;  %v6704_v55 = vpop.f32.mrb[79].mxu1 }
0x1f8e   : > { %6708 = vmatmul.mubr.msk.bf16.vlgmr.msra.gmra.mrb[76].mxu0 %vm1563_vm2, %v4198_v54 }
0x1f8f   : > { %6718 = vmatpush3.bf16.msra.mxu0 %v7019_v53  ;;  %6725 = vmatprep.mubr.msk.bf16.mxu0 %vm7154_vm1, %v7153_v32 }
0x1f90   : > { %6719 = vmatprep.subr.bf16.mxu0 %v7153_v32 }
0x1f91   : > { %v4292_v56 = vpop.f32.mrb[80].mxu1 }
0x1f92   : > { %v6715_v58 = vpop.f32.mrb[81].mxu1 }
0x1f93   : > { %6720 = vmatpush3.bf16.msra.mxu0 %v7020_v17  ;;  %v4295_v57 = vpop.f32.mrb[82].mxu1 }
0x1f94   : > { %v6716_v18 = vpop.f32.mrb[83].mxu1  ;;  %6721 = vmatprep.subr.bf16.mxu0 %v7153_v32 }
0x1f97   : > { %6722 = vmatpush3.bf16.msra.mxu0 %v7021_v59 }
0x1f98   : > { %6723 = vmatprep.subr.bf16.mxu0 %v7153_v32 }
0x1f9b   : > { %6724 = vmatpush3.bf16.msra.mxu0 %v7022_v60 }
0x1f9c   : > { %6741 = vmatprep.subr.bf16.mxu0 %v7153_v32 }
0x1f9e   : > { %6726 = vmatmul.mubr.msk.bf16.vlgmr.msra.gmra.mrb[80].mxu0 %vm1241_vm0, %v7991_v39 }
0x1f9f   : > { %6742 = vmatpush3.bf16.msra.mxu0 %v7023_v62  ;;  %6749 = vmatprep.mubr.msk.bf16.mxu0 %vm7154_vm1, %v7153_v32  ;;  %v7027_v62 = vld [vmem:[%s8473_s6 + $0xe0] sm:$0xff]  }
0x1fa0   : > { %6743 = vmatprep.subr.bf16.mxu0 %v7153_v32 }
0x1fa1   : > { %v4456_v2 = vpop.f32.mrb[84].mxu1 }
0x1fa2   : > { %v4457_v3 = vadd.f32 %v5969_v63, %v4456_v2  ;;  %v6739_v33 = vpop.f32.mrb[85].mxu1  ;;  %v7029_v2 = vld [vmem:[%s8473_s6 + $0xf0] sm:$0xff]  }
0x1fa3   : > { %v4459_v49 = vpop.f32.mrb[86].mxu1  ;;  %6744 = vmatpush3.bf16.msra.mxu0 %v7024_v1  ;;  %v7028_v1 = vld [vmem:[%s8473_s6 + $0xe8] sm:$0xff]   ;;  %v7031_v33 = vld [vmem:[%s8444_s10 + $0xe0] sm:$0xff]  }
0x1fa4   : > { %4545 = vxpose.xlu0.b32.start [1/2] (short) (narrow) %v4457_v3, 16  ;;  %v6740_v5 = vpop.f32.mrb[87].mxu1  ;;  %6745 = vmatprep.subr.bf16.mxu0 %v7153_v32  ;;  %v4460_v36 = vadd.f32 %v5969_v63, %v4459_v49  ;;  %v7030_v3 = vld [vmem:[%s8473_s6 + $0xf8] sm:$0xff]   ;;  %v7032_v49 = vld [vmem:[%s8444_s10 + $0xe8] sm:$0xff]  }
0x1fa5   : > { %v7034_v5 = vld [vmem:[%s8444_s10 + $0xf8] sm:$0xff]  }
0x1fa7   : > { %6746 = vmatpush3.bf16.msra.mxu0 %v7025_v4  ;;  %v7033_v4 = vld [vmem:[%s8444_s10 + $0xf0] sm:$0xff]  }
0x1fa8   : > { %4546 = vxpose.xlu0.b32.end [2/2] (short) (narrow) %v4460_v36, 16  ;;  %6747 = vmatprep.subr.bf16.mxu0 %v7153_v32  ;;  %v7035_v36 = vld [vmem:[%s8446_s12 + $0x30] sm:$0xff]  }
0x1fab   : > { %6748 = vmatpush3.bf16.msra.mxu0 %v7026_v51 }
0x1fac   : > { %6765 = vmatprep.subr.bf16.mxu0 %v7153_v32 }
0x1fae   : > { %6750 = vmatmul.mubr.msk.bf16.vlgmr.msra.gmra.mrb[84].mxu0 %vm1241_vm0, %v7991_v39 }
0x1faf   : > { %6767 = vmatprep.mubr.msk.bf16.mxu0 %vm7154_vm1, %v7153_v32  ;;  %6766 = vmatpush3.bf16.msra.mxu0 %v7035_v36 }
0x1fb0   : > { %6783 = vmatprep.subr.bf16.mxu0 %v7153_v32 }
0x2024   : > { %v4561_v6 = vpop.trf.xlu0 }
0x2028   : > { %v4562_v7 = vpop.trf.xlu0 }
0x2029   : > { %v4578_v8 = vpack.c.bf16 %v4562_v7, %v4561_v6 }
0x202b   : > { %6754 = vmatpush3.bf16.msra.mxu1 %v4578_v8  ;;  %v7036_v8 = vld [vmem:[%s8442_s8 + $0xe0] sm:$0xff]  }
0x202c   : > { %6759 = vmatprep.subr.bf16.mxu1 %v7153_v32 }
0x2061   : > { %v4242_v9 = vpop.f32.mrb[76].mxu0 }
0x2062   : > { %v8213_v10 = vadd.f32 %v4292_v56, %v4242_v9  ;;  %v6709_v11 = vpop.f32.mrb[77].mxu0 }
0x2063   : > { %v4245_v12 = vpop.f32.mrb[78].mxu0 }
0x2064   : > { %v8215_v13 = vadd.f32 %v4295_v57, %v4245_v12  ;;  %v6710_v14 = vpop.f32.mrb[79].mxu0  ;;  %v7037_v12 = vld [vmem:[%s8442_s8 + $0xe8] sm:$0xff]  }
0x2065   : > { %v7038_v14 = vld [vmem:[%s8442_s8 + $0xf0] sm:$0xff]  }
0x2071   : > { %v4374_v16 = vpop.f32.mrb[80].mxu0 }
0x2072   : > { %v6727_v19 = vpop.f32.mrb[81].mxu0  ;;  %v4375_v21 = vadd.f32 %v5954_v15, %v4374_v16  ;;  %v6005_v16 = vld [vmem:[%s8441_s7 + $0x7] ss:$0 sm:$0xff] }
0x2073   : > { %v4377_v20 = vpop.f32.mrb[82].mxu0 }
0x2074   : > { %v4378_v22 = vadd.f32 %v5954_v15, %v4377_v20  ;;  %v6728_v23 = vpop.f32.mrb[83].mxu0  ;;  %v7039_v15 = vld [vmem:[%s8442_s8 + $0xf8] sm:$0xff]  }
0x2076   : > { %v4577_v24 = vpack.c.bf16 %v4378_v22, %v4375_v21 }
0x2078   : > { %6756 = vmatmul.mubr.msk.bf16.vlgmr.msra.gmra.mrb[88].mxu1 %vm1563_vm2, %v4577_v24 }
0x2079   : > { %6761 = vmatprep.mubr.msk.bf16.mxu1 %vm7154_vm1, %v7153_v32 }
0x2081   : > { %v4538_v26 = vpop.f32.mrb[84].mxu0 }
0x2082   : > { %v6751_v27 = vpop.f32.mrb[85].mxu0  ;;  %v4539_v29 = vadd.f32 %v5984_v25, %v4538_v26  ;;  %v6035_v26 = vld [vmem:[%s8445_s11 + $0x7] ss:$0 sm:$0xff] }
0x2083   : > { %v4541_v28 = vpop.f32.mrb[86].mxu0 }
0x2084   : > { %v4542_v30 = vadd.f32 %v5984_v25, %v4541_v28  ;;  %v6752_v31 = vpop.f32.mrb[87].mxu0 }
0x2086   : > { %v4648_v34 = vpack.c.bf16 %v4542_v30, %v4539_v29 }
0x2088   : > { %6760 = vmatpush3.bf16.msra.mxu1 %v4648_v34 }
0x2089   : > { %6771 = vmatprep.subr.bf16.mxu1 %v7153_v32 }
0x214b   : > { %v4616_v35 = vpop.f32.mrb[88].mxu1 }
0x214c   : > { %v4623_v37 = vmul.f32 0.25, %v4616_v35  ;;  %v6757_v38 = vpop.f32.mrb[89].mxu1 }
0x214d   : > { %v4619_v40 = vpop.f32.mrb[90].mxu1 }
0x214e   : > { %v4624_v41 = vmul.f32 0.25, %v4619_v40  ;;  %v6758_v42 = vpop.f32.mrb[91].mxu1  ;;  %v4625_v43 = vsel %vm1563_vm2, %v4623_v37, -inf }
0x214f   : > { %4626 = vmax.xlane.f32.xlu1 %v4625_v43  ;;  %v6020_v43 = vld [vmem:[%s8443_s9 + $0x7] ss:$0 sm:$0xff] }
0x2150   : > { %v4628_v44 = vsel %vm1563_vm2, %v4624_v41, -inf }
0x2153   : > { %4629 = vmax.xlane.f32.xlu1 %v4628_v44 }
0x21dc   : > { %v4627_v45 = vpop.xlane.xlu1 %4626 }
0x21dd   : > { %v4631_v46 = vsub.f32 %v4623_v37, %v4627_v45 }
0x21df   : > { %v4633_v47 = vmul.f32 1.442695, %v4631_v46 }
0x21e0   : > { %v4630_v48 = vpop.xlane.xlu1 %4629 }
0x21e1   : > { %7117 = vpow2.f32 %v4633_v47  ;;  %v4632_v50 = vsub.f32 %v4624_v41, %v4630_v48 }
0x21e3   : > { %v4635_v52 = vmul.f32 1.442695, %v4632_v50 }
0x21e5   : > { %7119 = vpow2.f32 %v4635_v52 }
0x21eb   : > { %v7118_v53 = vpop.eup %7117 }
0x21ec   : > { %v4637_v54 = vsel %vm1563_vm2, %v7118_v53, 0.0 }
0x21ed   : > { %4638 = vadd.xlane.f32.xlu1 %v4637_v54 }
0x21ef   : > { %v7120_v55 = vpop.eup %7119 }
0x21f0   : > { %v4640_v17 = vsel %vm1563_vm2, %v7120_v55, 0.0 }
0x21f1   : > { %4641 = vadd.xlane.f32.xlu1 %v4640_v17 }
0x227a   : > { %v4639_v56 = vpop.xlane.xlu1 %4638 }
0x227b   : > { %7121 = vrcp.f32 %v4639_v56 }
0x227e   : > { %v4642_v58 = vpop.xlane.xlu1 %4641 }
0x227f   : > { %7123 = vrcp.f32 %v4642_v58 }
0x2285   : > { %v7122_v57 = vpop.eup %7121 }
0x2286   : > { %v4645_v18 = vmul.f32 %v7122_v57, %v7118_v53 }
0x2289   : > { %v7124_v59 = vpop.eup %7123 }
0x228a   : > { %v4646_v60 = vmul.f32 %v7124_v59, %v7120_v55 }
0x228c   : > { %v4647_v63 = vpack.c.bf16 %v4646_v60, %v4645_v18 }
0x228e   : > { %6762 = vmatmul.mubr.msk.bf16.vlgmr.msra.gmra.mrb[92].mxu1 %vm1563_vm2, %v4647_v63 }
0x228f   : > { %6772 = vmatpush3.bf16.msra.mxu1 %v7027_v62  ;;  %6779 = vmatprep.mubr.msk.bf16.mxu1 %vm7154_vm1, %v7153_v32 }
0x2290   : > { %6773 = vmatprep.subr.bf16.mxu1 %v7153_v32 }
0x2293   : > { %6774 = vmatpush3.bf16.msra.mxu1 %v7028_v1 }
0x2294   : > { %6775 = vmatprep.subr.bf16.mxu1 %v7153_v32 }
0x2297   : > { %6776 = vmatpush3.bf16.msra.mxu1 %v7029_v2 }
0x2298   : > { %6777 = vmatprep.subr.bf16.mxu1 %v7153_v32 }
0x229b   : > { %6778 = vmatpush3.bf16.msra.mxu1 %v7030_v3 }
0x229c   : > { %6795 = vmatprep.subr.bf16.mxu1 %v7153_v32 }
0x229e   : > { %6780 = vmatmul.mubr.msk.bf16.vlgmr.msra.gmra.mrb[96].mxu1 %vm1241_vm0, %v7991_v39 }
0x229f   : > { %6796 = vmatpush3.bf16.msra.mxu1 %v7031_v33  ;;  %6803 = vmatprep.mubr.msk.bf16.mxu1 %vm7154_vm1, %v7153_v32 }
0x22a0   : > { %6797 = vmatprep.subr.bf16.mxu1 %v7153_v32 }
0x22a3   : > { %6798 = vmatpush3.bf16.msra.mxu1 %v7032_v49 }
0x22a4   : > { %6799 = vmatprep.subr.bf16.mxu1 %v7153_v32 }
0x22a7   : > { %6800 = vmatpush3.bf16.msra.mxu1 %v7033_v4 }
0x22a8   : > { %6801 = vmatprep.subr.bf16.mxu1 %v7153_v32 }
0x22ab   : > { %6802 = vmatpush3.bf16.msra.mxu1 %v7034_v5 }
0x22ac   : > { %6819 = vmatprep.subr.bf16.mxu1 %v7153_v32 }
0x22ae   : > { %6804 = vmatmul.mubr.msk.bf16.vlgmr.msra.gmra.mrb[100].mxu1 %vm1241_vm0, %v7991_v39 }
0x22af   : > { %6821 = vmatprep.mubr.msk.bf16.mxu1 %vm7154_vm1, %v7153_v32 }
0x2361   : > { %v4686_v51 = vpop.f32.mrb[92].mxu1 }
0x2362   : > { %v6763_v6 = vpop.f32.mrb[93].mxu1 }
0x2363   : > { %v4689_v7 = vpop.f32.mrb[94].mxu1 }
0x2364   : > { %v4696_v9 = vpack.c.bf16 %v4689_v7, %v4686_v51  ;;  %v6764_v11 = vpop.f32.mrb[95].mxu1 }
0x2365   : > { %v7040_v11 = vld [vmem:[%s8446_s12 + $0x38] sm:$0xff]  }
0x2366   : > { %6768 = vmatmul.mubr.msk.bf16.vlgmr.msra.gmra.mrb[88].mxu0 %vm1563_vm2, %v4696_v9  ;;  %6820 = vmatpush3.bf16.msra.mxu1 %v7040_v11 }
0x2367   : > { %6784 = vmatpush3.bf16.msra.mxu0 %v7036_v8  ;;  %6791 = vmatprep.mubr.msk.bf16.mxu0 %vm7154_vm1, %v7153_v32 }
0x2368   : > { %6785 = vmatprep.subr.bf16.mxu0 %v7153_v32  ;;  %6837 = vmatprep.subr.bf16.mxu1 %v7153_v32 }
0x236b   : > { %6786 = vmatpush3.bf16.msra.mxu0 %v7037_v12 }
0x236c   : > { %6787 = vmatprep.subr.bf16.mxu0 %v7153_v32 }
0x236f   : > { %6788 = vmatpush3.bf16.msra.mxu0 %v7038_v14 }
0x2370   : > { %6789 = vmatprep.subr.bf16.mxu0 %v7153_v32 }
0x2371   : > { %v4824_v19 = vpop.f32.mrb[96].mxu1 }
0x2372   : > { %v6781_v20 = vpop.f32.mrb[97].mxu1  ;;  %v4825_v22 = vadd.f32 %v6005_v16, %v4824_v19 }
0x2373   : > { %v4827_v21 = vpop.f32.mrb[98].mxu1  ;;  %6790 = vmatpush3.bf16.msra.mxu0 %v7039_v15 }
0x2374   : > { %v4828_v23 = vadd.f32 %v6005_v16, %v4827_v21  ;;  %v6782_v24 = vpop.f32.mrb[99].mxu1  ;;  %6807 = vmatprep.subr.bf16.mxu0 %v7153_v32 }
0x2376   : > { %v5027_v25 = vpack.c.bf16 %v4828_v23, %v4825_v22  ;;  %6792 = vmatmul.mubr.msk.bf16.vlgmr.msra.gmra.mrb[92].mxu0 %vm1241_vm0, %v7991_v39  ;;  %v6048_v23 = vld [vmem:[%s8447_s13 + $0x1] ss:$0 sm:$0xff] }
0x2377   : > { %6809 = vmatprep.mubr.msk.bf16.mxu0 %vm7154_vm1, %v7153_v32 }
0x2381   : > { %v4988_v27 = vpop.f32.mrb[100].mxu1 }
0x2382   : > { %v6805_v28 = vpop.f32.mrb[101].mxu1  ;;  %v4989_v30 = vadd.f32 %v6035_v26, %v4988_v27 }
0x2383   : > { %v4991_v29 = vpop.f32.mrb[102].mxu1 }
0x2384   : > { %v4992_v31 = vadd.f32 %v6035_v26, %v4991_v29  ;;  %v6806_v34 = vpop.f32.mrb[103].mxu1 }
0x2386   : > { %v5098_v35 = vpack.c.bf16 %v4992_v31, %v4989_v30 }
0x2439   : > { %v4740_v37 = vpop.f32.mrb[88].mxu0 }
0x243a   : > { %v8308_v38 = vadd.f32 %v4740_v37, %v8213_v10  ;;  %v6769_v40 = vpop.f32.mrb[89].mxu0 }
0x243b   : > { %v4743_v39 = vpop.f32.mrb[90].mxu0 }
0x243c   : > { %v8311_v41 = vadd.f32 %v4743_v39, %v8215_v13  ;;  %v6770_v42 = vpop.f32.mrb[91].mxu0 }
0x2449   : > { %v4906_v44 = vpop.f32.mrb[92].mxu0 }
0x244a   : > { %v4907_v45 = vadd.f32 %v6020_v43, %v4906_v44  ;;  %v6793_v46 = vpop.f32.mrb[93].mxu0  ;;  %v7041_v44 = vld [vmem:[%s8450_s16 + $0x20] sm:$0xff]  }
0x244b   : > { %v4909_v47 = vpop.f32.mrb[94].mxu0  ;;  %v7043_v46 = vld [vmem:[%s8450_s16 + $0x30] sm:$0xff]  }
0x244c   : > { %4995 = vxpose.xlu1.b32.start [1/2] (short) (narrow) %v4907_v45, 16  ;;  %v6794_v48 = vpop.f32.mrb[95].mxu0  ;;  %v4910_v50 = vadd.f32 %v6020_v43, %v4909_v47  ;;  %v7042_v45 = vld [vmem:[%s8450_s16 + $0x28] sm:$0xff]   ;;  %v7044_v47 = vld [vmem:[%s8450_s16 + $0x38] sm:$0xff]  }
0x2450   : > { %4996 = vxpose.xlu1.b32.end [2/2] (short) (narrow) %v4910_v50, 16 }
0x24cc   : > { %v5011_v10 = vpop.trf.xlu1 }
0x24d0   : > { %v5012_v52 = vpop.trf.xlu1 }
0x24d1   : > { %v5028_v53 = vpack.c.bf16 %v5012_v52, %v5011_v10 }
0x24d3   : > { %6808 = vmatpush3.bf16.msra.mxu0 %v5028_v53 }
0x24d4   : > { %6813 = vmatprep.subr.bf16.mxu0 %v7153_v32 }
0x24d6   : > { %6810 = vmatmul.mubr.msk.bf16.vlgmr.msra.gmra.mrb[96].mxu0 %vm1563_vm2, %v5027_v25 }
0x24d7   : > { %6814 = vmatpush3.bf16.msra.mxu0 %v5098_v35  ;;  %6815 = vmatprep.mubr.msk.bf16.mxu0 %vm7154_vm1, %v7153_v32 }
0x24d8   : > { %6825 = vmatprep.subr.bf16.mxu0 %v7153_v32 }
0x25a9   : > { %v5066_v13 = vpop.f32.mrb[96].mxu0 }
0x25aa   : > { %v5073_v54 = vmul.f32 0.25, %v5066_v13  ;;  %v6811_v55 = vpop.f32.mrb[97].mxu0 }
0x25ab   : > { %v5069_v17 = vpop.f32.mrb[98].mxu0 }
0x25ac   : > { %v5074_v56 = vmul.f32 0.25, %v5069_v17  ;;  %v6812_v58 = vpop.f32.mrb[99].mxu0  ;;  %v5075_v57 = vsel %vm1563_vm2, %v5073_v54, -inf  ;;  %v6051_v17 = vld [vmem:[%s8448_s14 + $0x1] ss:$0 sm:$0xff] }
0x25ad   : > { %5076 = vmax.xlane.f32.xlu0 %v5075_v57 }
0x25ae   : > { %v5078_v59 = vsel %vm1563_vm2, %v5074_v56, -inf }
0x25af   : > { %5079 = vmax.xlane.f32.xlu1 %v5078_v59  ;;  %v6052_v59 = vld [vmem:[%s8449_s15 + $0x1] ss:$0 sm:$0xff] }
0x263a   : > { %v5077_v18 = vpop.xlane.xlu0 %5076 }
0x263b   : > { %v5081_v60 = vsub.f32 %v5073_v54, %v5077_v18 }
0x263c   : > { %v5080_v62 = vpop.xlane.xlu1 %5079 }
0x263d   : > { %v5083_v63 = vmul.f32 1.442695, %v5081_v60  ;;  %v5082_v1 = vsub.f32 %v5074_v56, %v5080_v62 }
0x263f   : > { %7125 = vpow2.f32 %v5083_v63  ;;  %v5085_v2 = vmul.f32 1.442695, %v5082_v1  ;;  %v7045_v1 = vld [vmem:[%s8452_s18 + $0x40] sm:$0xff]  }
0x2641   : > { %7127 = vpow2.f32 %v5085_v2  ;;  %v7046_v2 = vld [vmem:[%s8452_s18 + $0x48] sm:$0xff]  }
0x2649   : > { %v7126_v3 = vpop.eup %7125 }
0x264a   : > { %v5087_v33 = vsel %vm1563_vm2, %v7126_v3, 0.0 }
0x264b   : > { %v7128_v49 = vpop.eup %7127  ;;  %5088 = vadd.xlane.f32.xlu0 %v5087_v33  ;;  %v7048_v33 = vld [vmem:[%s8452_s18 + $0x58] sm:$0xff]  }
0x264c   : > { %v5090_v4 = vsel %vm1563_vm2, %v7128_v49, 0.0 }
0x264f   : > { %5091 = vadd.xlane.f32.xlu0 %v5090_v4  ;;  %v7050_v4 = vld [vmem:[%s8452_s18 + $0x68] sm:$0xff]  }
0x26d8   : > { %v5089_v5 = vpop.xlane.xlu0 %5088 }
0x26d9   : > { %7129 = vrcp.f32 %v5089_v5  ;;  %v7051_v5 = vld [vmem:[%s8452_s18 + $0x70] sm:$0xff]  }
0x26dc   : > { %v5092_v36 = vpop.xlane.xlu0 %5091 }
0x26dd   : > { %7131 = vrcp.f32 %v5092_v36  ;;  %v7052_v36 = vld [vmem:[%s8452_s18 + $0x78] sm:$0xff]  }
0x26e3   : > { %v7130_v51 = vpop.eup %7129 }
0x26e4   : > { %v5095_v7 = vmul.f32 %v7130_v51, %v7126_v3  ;;  %v7047_v3 = vld [vmem:[%s8452_s18 + $0x50] sm:$0xff]   ;;  %v6062_v51 = vld [vmem:[%s8451_s17 + $0x1] ss:$0 sm:$0xff] }
0x26e7   : > { %v7132_v6 = vpop.eup %7131 }
0x26e8   : > { %v5096_v8 = vmul.f32 %v7132_v6, %v7128_v49  ;;  %v7049_v49 = vld [vmem:[%s8452_s18 + $0x60] sm:$0xff]  }
0x26ea   : > { %v5097_v9 = vpack.c.bf16 %v5096_v8, %v5095_v7 }
0x26ec   : > { %6816 = vmatmul.mubr.msk.bf16.vlgmr.msra.gmra.mrb[100].mxu0 %vm1563_vm2, %v5097_v9 }
0x26ed   : > { %6833 = vmatprep.mubr.msk.bf16.mxu0 %vm7154_vm1, %v7153_v32  ;;  %6826 = vmatpush3.bf16.msra.mxu0 %v7041_v44 }
0x26ee   : > { %6827 = vmatprep.subr.bf16.mxu0 %v7153_v32 }
0x26f1   : > { %6828 = vmatpush3.bf16.msra.mxu0 %v7042_v45 }
0x26f2   : > { %6829 = vmatprep.subr.bf16.mxu0 %v7153_v32 }
0x26f5   : > { %6830 = vmatpush3.bf16.msra.mxu0 %v7043_v46 }
0x26f6   : > { %6831 = vmatprep.subr.bf16.mxu0 %v7153_v32 }
0x26f9   : > { %6832 = vmatpush3.bf16.msra.mxu0 %v7044_v47 }
0x27bf   : > { %v5136_v12 = vpop.f32.mrb[100].mxu0 }
0x27c0   : > { %v6817_v14 = vpop.f32.mrb[101].mxu0 }
0x27c1   : > { %v5139_v15 = vpop.f32.mrb[102].mxu0 }
0x27c2   : > { %v5146_v16 = vpack.c.bf16 %v5139_v15, %v5136_v12  ;;  %v6818_v19 = vpop.f32.mrb[103].mxu0 }
0x27c4   : > { %6822 = vmatmul.mubr.msk.bf16.vlgmr.msra.gmra.mrb[104].mxu1 %vm1563_vm2, %v5146_v16 }
0x27c5   : > { %6853 = vmatprep.mubr.msk.bf16.mxu1 %vm7154_vm1, %v7153_v32  ;;  %6838 = vmatpush3.bf16.msra.mxu1 %v7045_v1 }
0x27c6   : > { %6839 = vmatprep.subr.bf16.mxu1 %v7153_v32 }
0x27c9   : > { %6840 = vmatpush3.bf16.msra.mxu1 %v7046_v2  ;;  %v6095_v2 = vld [vmem:[%s8455_s21] ss:$0 sm:$0xff] }
0x27ca   : > { %6841 = vmatprep.subr.bf16.mxu1 %v7153_v32 }
0x27cd   : > { %6842 = vmatpush3.bf16.msra.mxu1 %v7047_v3 }
0x27ce   : > { %6843 = vmatprep.subr.bf16.mxu1 %v7153_v32 }
0x27d1   : > { %6844 = vmatpush3.bf16.msra.mxu1 %v7048_v33 }
0x27d2   : > { %6845 = vmatprep.subr.bf16.mxu1 %v7153_v32 }
0x27d5   : > { %6846 = vmatpush3.bf16.msra.mxu1 %v7049_v49 }
0x27d6   : > { %6847 = vmatprep.subr.bf16.mxu1 %v7153_v32 }
0x27d9   : > { %6848 = vmatpush3.bf16.msra.mxu1 %v7050_v4 }
0x27da   : > { %6849 = vmatprep.subr.bf16.mxu1 %v7153_v32 }
0x27dd   : > { %6850 = vmatpush3.bf16.msra.mxu1 %v7051_v5 }
0x27de   : > { %6851 = vmatprep.subr.bf16.mxu1 %v7153_v32 }
0x27e1   : > { %6852 = vmatpush3.bf16.msra.mxu1 %v7052_v36 }
0x2897   : > { %v5190_v20 = vpop.f32.mrb[104].mxu1 }
0x2898   : > { %v5197_v21 = vadd.f32 %v5190_v20, %v8308_v38  ;;  %v6823_v22 = vpop.f32.mrb[105].mxu1 }
0x2899   : > { %v5193_v24 = vpop.f32.mrb[106].mxu1 }
0x289a   : > { %v5199_v25 = vadd.f32 %v5197_v21, %v7937_v61  ;;  %v5198_v26 = vadd.f32 %v5193_v24, %v8311_v41  ;;  %v6824_v27 = vpop.f32.mrb[107].mxu1 }
0x289c   : > { %v8341_v28 = vadd.f32 %v6048_v23, %v5199_v25  ;;  %v5200_v29 = vadd.f32 %v5198_v26, %v7940_v0 }
0x289e   : > { %v8344_v30 = vadd.f32 %v6048_v23, %v5200_v29  ;;  %v5215_v31 = vsel %vm1241_vm0, %v8341_v28, 0.0 }
0x289f   : > { %5216 = vadd.xlane.f32.xlu0 %v5215_v31 }
0x28a0   : > { %v5218_v34 = vsel %vm1241_vm0, %v8344_v30, 0.0 }
0x28a3   : > { %5219 = vadd.xlane.f32.xlu0 %v5218_v34 }
0x292c   : > { %v5217_v35 = vpop.xlane.xlu0 %5216 }
0x292d   : > { %v5221_v37 = vmul.f32 0.015625, %v5217_v35 }
0x292f   : > { %v5223_v61 = vsub.f32 %v8341_v28, %v5221_v37 }
0x2930   : > { %v5220_v38 = vpop.xlane.xlu0 %5219 }
0x2931   : > { %v5222_v40 = vmul.f32 0.015625, %v5220_v38  ;;  %v5225_v39 = vmul.f32 %v5223_v61, %v5223_v61 }
0x2933   : > { %v5224_v41 = vsub.f32 %v8344_v30, %v5222_v40  ;;  %v5227_v0 = vsel %vm1241_vm0, %v5225_v39, 0.0  ;;  %v6093_v40 = vld [vmem:[%s8453_s19 + $0x1] ss:$0 sm:$0xff] }
0x2934   : > { %5228 = vadd.xlane.f32.xlu0 %v5227_v0 }
0x2935   : > { %v5226_v42 = vmul.f32 %v5224_v41, %v5224_v41 }
0x2937   : > { %v5230_v43 = vsel %vm1241_vm0, %v5226_v42, 0.0 }
0x2938   : > { %5231 = vadd.xlane.f32.xlu0 %v5230_v43 }
0x29c1   : > { %v5229_v48 = vpop.xlane.xlu0 %5228 }
0x29c2   : > { %v5233_v50 = vmul.f32 0.015625, %v5229_v48 }
0x29c4   : > { %v5235_v10 = vadd.f32 1e-05, %v5233_v50 }
0x29c5   : > { %v5232_v52 = vpop.xlane.xlu0 %5231 }
0x29c6   : > { %7133 = vrsqrt.f32 %v5235_v10  ;;  %v5234_v53 = vmul.f32 0.015625, %v5232_v52 }
0x29c8   : > { %v5236_v13 = vadd.f32 1e-05, %v5234_v53 }
0x29ca   : > { %7135 = vrsqrt.f32 %v5236_v13 }
0x29d0   : > { %v7134_v54 = vpop.eup %7133 }
0x29d1   : > { %v5239_v55 = vmul.f32 %v7134_v54, %v5223_v61 }
0x29d3   : > { %v5247_v58 = vmul.f32 %v6051_v17, %v5239_v55 }
0x29d4   : > { %v7136_v56 = vpop.eup %7135 }
0x29d5   : > { %v5240_v57 = vmul.f32 %v7136_v56, %v5224_v41  ;;  %v5255_v60 = vadd.f32 %v6052_v59, %v5247_v58 }
0x29d7   : > { %v5248_v18 = vmul.f32 %v6051_v17, %v5240_v57 }
0x29d9   : > { %v5256_v62 = vadd.f32 %v6052_v59, %v5248_v18 }
0x29db   : > { %v5266_v63 = vpack.c.bf16 %v5256_v62, %v5255_v60  ;;  %v6094_v62 = vld [vmem:[%s8454_s20] ss:$0 sm:$0xff] }
0x29dd   : > { %6834 = vmatmul.mubr.msk.bf16.vlgmr.msra.gmra.mrb[104].mxu0 %vm1241_vm0, %v5266_v63 }
0x2ab0   : > { %v5336_v6 = vpop.f32.mrb[104].mxu0 }
0x2ab1   : > { %v5337_v7 = vadd.f32 %v6062_v51, %v5336_v6  ;;  %v6835_v8 = vpop.f32.mrb[105].mxu0 }
0x2ab2   : > { %v5339_v9 = vpop.f32.mrb[106].mxu0 }
0x2ab3   : > { %v5343_v11 = vmul.f32 %v5337_v7, %v5337_v7  ;;  %v5340_v12 = vadd.f32 %v6062_v51, %v5339_v9  ;;  %v6836_v14 = vpop.f32.mrb[107].mxu0 }
0x2ab5   : > { %v5345_v15 = vmul.f32 %v5343_v11, %v5337_v7  ;;  %v5344_v16 = vmul.f32 %v5340_v12, %v5340_v12 }
0x2ab7   : > { %v5347_v19 = vmul.f32 0.044715, %v5345_v15  ;;  %v5346_v32 = vmul.f32 %v5344_v16, %v5340_v12 }
0x2ab9   : > { %v5349_v20 = vadd.f32 %v5347_v19, %v5337_v7  ;;  %v5348_v21 = vmul.f32 0.044715, %v5346_v32 }
0x2abb   : > { %v5351_v22 = vmul.f32 0.7978846, %v5349_v20  ;;  %v5350_v23 = vadd.f32 %v5348_v21, %v5340_v12 }
0x2abd   : > { %7137 = vtanh.f32 %v5351_v22  ;;  %v5352_v24 = vmul.f32 0.7978846, %v5350_v23 }
0x2abf   : > { %7139 = vtanh.f32 %v5352_v24 }
0x2ac7   : > { %v7138_v25 = vpop.eup %7137 }
0x2ac8   : > { %v5355_v26 = vadd.f32 1.0, %v7138_v25 }
0x2ac9   : > { %v7140_v27 = vpop.eup %7139 }
0x2aca   : > { %v5357_v29 = vmul.f32 0.5, %v5355_v26  ;;  %v5356_v31 = vadd.f32 1.0, %v7140_v27 }
0x2acc   : > { %v5358_v34 = vmul.f32 0.5, %v5356_v31  ;;  %v5359_v35 = vmul.f32 %v5357_v29, %v5337_v7 }
0x2ace   : > { %v5360_v37 = vmul.f32 %v5358_v34, %v5340_v12 }
0x2ad0   : > { %v5378_v61 = vpack.c.bf16 %v5360_v37, %v5359_v35 }
0x2ad2   : > { %6854 = vmatmul.mubr.bf16.vlgmr.msra.gmra.mrb[108].mxu1 %v5378_v61 }
0x2ba5   : > { %v5461_v38 = vpop.f32.mrb[108].mxu1 }
0x2ba6   : > { %v5468_v39 = vadd.f32 %v5461_v38, %v8341_v28  ;;  %v6855_v41 = vpop.f32.mrb[109].mxu1 }
0x2ba7   : > { %v5464_v0 = vpop.f32.mrb[110].mxu1 }
0x2ba8   : > { %v5469_v42 = vadd.f32 %v5464_v0, %v8344_v30  ;;  %v6856_v43 = vpop.f32.mrb[111].mxu1  ;;  %v5478_v44 = vadd.f32 %v6093_v40, %v5468_v39 }
0x2baa   : > { %v5482_v45 = vsel %vm1241_vm0, %v5478_v44, 0.0  ;;  %v5479_v46 = vadd.f32 %v6093_v40, %v5469_v42 }
0x2bab   : > { %5483 = vadd.xlane.f32.xlu0 %v5482_v45 }
0x2bac   : > { %v5485_v47 = vsel %vm1241_vm0, %v5479_v46, 0.0 }
0x2bad   : > { %5486 = vadd.xlane.f32.xlu1 %v5485_v47 }
0x2c38   : > { %v5484_v48 = vpop.xlane.xlu0 %5483 }
0x2c39   : > { %v5488_v50 = vmul.f32 0.015625, %v5484_v48 }
0x2c3a   : > { %v5487_v10 = vpop.xlane.xlu1 %5486 }
0x2c3b   : > { %v5490_v52 = vsub.f32 %v5478_v44, %v5488_v50  ;;  %v5489_v53 = vmul.f32 0.015625, %v5487_v10 }
0x2c3d   : > { %v5491_v13 = vsub.f32 %v5479_v46, %v5489_v53  ;;  %v5492_v28 = vmul.f32 %v5490_v52, %v5490_v52 }
0x2c3f   : > { %v5494_v54 = vsel %vm1241_vm0, %v5492_v28, 0.0  ;;  %v5493_v30 = vmul.f32 %v5491_v13, %v5491_v13 }
0x2c40   : > { %5495 = vadd.xlane.f32.xlu0 %v5494_v54 }
0x2c41   : > { %v5497_v55 = vsel %vm1241_vm0, %v5493_v30, 0.0 }
0x2c42   : > { %5498 = vadd.xlane.f32.xlu1 %v5497_v55 }
0x2ccd   : > { %v5496_v17 = vpop.xlane.xlu0 %5495 }
0x2cce   : > { %v5500_v56 = vmul.f32 0.015625, %v5496_v17 }
0x2ccf   : > { %v5499_v58 = vpop.xlane.xlu1 %5498 }
0x2cd0   : > { %v5502_v57 = vadd.f32 1e-05, %v5500_v56  ;;  %v5501_v59 = vmul.f32 0.015625, %v5499_v58 }
0x2cd2   : > { %7141 = vrsqrt.f32 %v5502_v57  ;;  %v5503_v18 = vadd.f32 1e-05, %v5501_v59 }
0x2cd4   : > { %7143 = vrsqrt.f32 %v5503_v18 }
0x2cdc   : > { %v7142_v60 = vpop.eup %7141 }
0x2cdd   : > { %v5506_v63 = vmul.f32 %v7142_v60, %v5490_v52 }
0x2cde   : > { %v7144_v1 = vpop.eup %7143 }
0x2cdf   : > { %v5514_v3 = vmul.f32 %v6094_v62, %v5506_v63  ;;  %v5507_v33 = vmul.f32 %v7144_v1, %v5491_v13 }
0x2ce1   : > { %v5522_v49 = vadd.f32 %v6095_v2, %v5514_v3  ;;  %v5515_v4 = vmul.f32 %v6094_v62, %v5507_v33 }
0x2ce3   : > { %5524 = vst.msk [vmem:[%s683_s5] sm:$0xff] %vm1241_vm0, %v5522_v49  ;;  %v5523_v5 = vadd.f32 %v6095_v2, %v5515_v4 }
0x2ce5   : > { %5525 = vst.msk [vmem:[%s683_s5 + $0x8] sm:$0xff] %vm1241_vm0, %v5523_v5 }
0x2ce6 PF: > { %s32_s3 = sadd.s32 1, %s7151_s3  }
0x2ce7   : > { %p29_p4 = scmp.ge.s32.totalorder %s32_s3, 4  }
0x2ce9   :  { %31 = sbr.rel (!%p29_p4) target bundleno = 8 (0x8), region = 196 }

// kernel: _lambda_.6
= control target key start
LH: loop header
LB: loop body
LE: loop exit
PB: predicated region body
PF: predicated region fallthrough
CT: control target
= control target key end

     0   :  { %s685_s12 = smov 0   ;;  %s687_s13 = smov 0   ;;  %s801_s0 = inlined_call_operand.vmem [shape: bf16[16,144], index: 0, kind: input, shape index: {}]   ;;  %s802_s1 = inlined_call_operand.vmem [shape: bf16[144,512], index: 1, kind: input, shape index: {}]   ;;  %s803_s2 = inlined_call_operand.vmem [shape: f32[16,1], index: 2, kind: input, shape index: {}]   ;;  %s804_s3 = inlined_call_operand.vmem [shape: f32[16,512], index: 3, kind: output, shape index: {}]  }
   0x1   :  { %s689_s14 = smov 0  }
   0x2 LB: > { %s546_s15 = sadd.s32 4294967295, %s662_s14   ;;  %s702_s16 = sadd.s32 1, %s662_s14   ;;  %s662_s14 = sphi %s689_s14, %s808_s14   ;;  %s658_s13 = sphi %s687_s13, %s807_s13   ;;  %s654_s12 = sphi %s685_s12, %s806_s12  }
   0x3   : > { %s38_s17 = ssub.s32 %s662_s14, %s702_s16  ;;  %s41_s18 = sadd.s32 1, %s658_s13 }
   0x4   : > { %p39_p0 = scmp.eq.s32.totalorder %s38_s17, 0  ;;  %p48_p1 = scmp.ne.s32.totalorder %s658_s13, %s654_s12 }
   0x5   : > { %p49_p2 = scmp.eq.s32.totalorder %s662_s14, 0  ;;  %p99_p3 = scmp.eq.s32.totalorder %s546_s15, 1 }
   0x6   : > { %s713_s19 = scalar_select %p39_p0, %s658_s13, %s41_s18  }
   0x7   : > { %p50_p4 = por %p49_p2, %p48_p1  ;;  %p715_p5 = por %p99_p3, %p48_p1 }
   0x8   : > { %p549_p6 = scmp.ge.s32.totalorder %s662_s14, 2 }
   0xa   : > { %127 = sbr.rel (%p549_p6) target bundleno = 30 (0x1e), region = 24 }
  0x11   : > { %130 = sbr.rel (!%p50_p4) target bundleno = 30 (0x1e), region = 28  ;;  %s132_s21 = sand.u32 (%p50_p4), 1, %s658_s13  }
  0x12   : > { %s580_s22 = sshll.u32 (%p50_p4), %s662_s14, 3  ;;  %s582_s23 = smul.u32 (%p50_p4), 144, %s132_s21 }
  0x13   : > { %s725_s26 = scalar_lea.vmem (%p50_p4), %s802_s1, %s580_s22 }
  0x14   : > { %v199_v0 = vld [vmem:[%s725_s26] sm:$0xff] (%p50_p4)  ;;  %v201_v1 = vld [vmem:[%s725_s26 + $0x10] sm:$0xff] (%p50_p4)  ;;  %s134_s27 = scalar_lea.vmem (%p50_p4), [#allocation2], %s582_s23 }
  0x15   : > { %v203_v2 = vld [vmem:[%s725_s26 + $0x20] sm:$0xff] (%p50_p4)  ;;  %v205_v3 = vld [vmem:[%s725_s26 + $0x30] sm:$0xff] (%p50_p4)  ;;  %200 = vst [vmem:[%s134_s27] sm:$0xff] (%p50_p4), %v199_v0  ;;  %202 = vst [vmem:[%s134_s27 + $0x8] sm:$0xff] (%p50_p4), %v201_v1 }
  0x16   : > { %v207_v4 = vld [vmem:[%s725_s26 + $0x40] sm:$0xff] (%p50_p4)  ;;  %v209_v5 = vld [vmem:[%s725_s26 + $0x50] sm:$0xff] (%p50_p4)  ;;  %204 = vst [vmem:[%s134_s27 + $0x10] sm:$0xff] (%p50_p4), %v203_v2  ;;  %206 = vst [vmem:[%s134_s27 + $0x18] sm:$0xff] (%p50_p4), %v205_v3 }
  0x17   : > { %208 = vst [vmem:[%s134_s27 + $0x20] sm:$0xff] (%p50_p4), %v207_v4  ;;  %210 = vst [vmem:[%s134_s27 + $0x28] sm:$0xff] (%p50_p4), %v209_v5  ;;  %v211_v6 = vld [vmem:[%s725_s26 + $0x60] sm:$0xff] (%p50_p4)  ;;  %v213_v7 = vld [vmem:[%s725_s26 + $0x70] sm:$0xff] (%p50_p4) }
  0x18   : > { %v215_v8 = vld [vmem:[%s725_s26 + $0x80] sm:$0xff]  ;;  %212 = vst [vmem:[%s134_s27 + $0x30] sm:$0xff] %v211_v6  ;;  %214 = vst [vmem:[%s134_s27 + $0x38] sm:$0xff] %v213_v7  ;;  %v217_v9 = vld [vmem:[%s725_s26 + $0x90] sm:$0xff] }
  0x19   : > { %216 = vst [vmem:[%s134_s27 + $0x40] sm:$0xff] %v215_v8  ;;  %v219_v10 = vld [vmem:[%s725_s26 + $0xa0] sm:$0xff]  ;;  %v221_v11 = vld [vmem:[%s725_s26 + $0xb0] sm:$0xff]  ;;  %218 = vst [vmem:[%s134_s27 + $0x48] sm:$0xff] %v217_v9 }
  0x1a   : > { %220 = vst [vmem:[%s134_s27 + $0x50] sm:$0xff] %v219_v10  ;;  %222 = vst [vmem:[%s134_s27 + $0x58] sm:$0xff] %v221_v11  ;;  %v223_v12 = vld [vmem:[%s725_s26 + $0xc0] sm:$0xff]  ;;  %v225_v13 = vld [vmem:[%s725_s26 + $0xd0] sm:$0xff] }
  0x1b   : > { %v227_v14 = vld [vmem:[%s725_s26 + $0xe0] sm:$0xff]  ;;  %224 = vst [vmem:[%s134_s27 + $0x60] sm:$0xff] %v223_v12  ;;  %226 = vst [vmem:[%s134_s27 + $0x68] sm:$0xff] %v225_v13  ;;  %v229_v15 = vld [vmem:[%s725_s26 + $0xf0] sm:$0xff] }
  0x1c   : > { %228 = vst [vmem:[%s134_s27 + $0x70] sm:$0xff] %v227_v14  ;;  %v231_v16 = vld [vmem:[%s725_s26 + $0x100] sm:$0xff]  ;;  %v233_v17 = vld [vmem:[%s725_s26 + $0x110] sm:$0xff]  ;;  %230 = vst [vmem:[%s134_s27 + $0x78] sm:$0xff] %v229_v15 }
  0x1d   : > { %232 = vst [vmem:[%s134_s27 + $0x80] sm:$0xff] %v231_v16  ;;  %234 = vst [vmem:[%s134_s27 + $0x88] sm:$0xff] %v233_v17 }
  0x1e PF: > { %p552_p7 = scmp.ge.s32.totalorder %s662_s14, 1  ;;  %p239_p8 = scmp.lt.s32.totalorder %s662_s14, 3 }
  0x20   : > { %p240_p9 = pnand %p552_p7, %p239_p8 }
  0x21   : > { %s246_s28 = sand.u32 (!%p240_p9), 1, %s654_s12   ;;  %vm402_vm0 = vcmask (!%p240_p9), 130048   ;;  %v639_v18 = vld [vmem:[%s801_s0 + $0x4] ss:$8 sps:$4 sm:$0xff] (!%p240_p9)   ;;  %v664_v20 = vmov (!%p240_p9), 0  }
  0x22   : > { %243 = sbr.rel (%p240_p9) target bundleno = 303 (0x12f), region = 66  ;;  %v291_v19 = vld [vmem:[%s803_s2] sm:$0xff] (!%p240_p9)  ;;  %609 = vset.pattern.permute.xlu0 (!%p240_p9), %v664_v20  ;;  %574 = vmatprep.mubr.msk.bf16.mxu0 (!%p240_p9), %vm402_vm0, %v639_v18  ;;  %v292_v21 = vld [vmem:[%s803_s2 + $0x8] sm:$0xff] (!%p240_p9)  ;;  %s553_s17 = sshll.u32 (!%p240_p9), %s246_s28, 5 }
  0x23   : > { %s583_s29 = smul.u32 (!%p240_p9), 144, %s246_s28  ;;  %295 = vperm.xlu0 (!%p240_p9), %609, %v291_v19   ;;  %v637_v40 = vld [vmem:[%s801_s0] ss:$8 sps:$4 sm:$0xff] (!%p240_p9)   ;;  %s267_s18 = scalar_lea.vmem (!%p240_p9), [#allocation3], %s553_s17 }
  0x25   : > { %s759_s9 = scalar_lea.vmem (!%p240_p9), [#allocation2], %s583_s29 }
  0x26   : > { %v610_v22 = vld [vmem:[%s759_s9 + $0x4] ss:$8 sps:$4 sm:$0xff] (!%p240_p9)   ;;  %v612_v23 = vld [vmem:[%s759_s9] ss:$8 sps:$4 sm:$0xff] (!%p240_p9)   ;;  %v613_v24 = vld [vmem:[%s759_s9 + $0x14] ss:$8 sps:$4 sm:$0xff] (!%p240_p9)  }
  0x27   : > { %406 = vmatprep.subr.bf16.mxu0 (!%p240_p9), %v610_v22  ;;  %v615_v25 = vld [vmem:[%s759_s9 + $0x10] ss:$8 sps:$4 sm:$0xff] (!%p240_p9)   ;;  %300 = vperm.xlu0 (!%p240_p9), %609, %v292_v21   ;;  %v616_v26 = vld [vmem:[%s759_s9 + $0x24] ss:$8 sps:$4 sm:$0xff] (!%p240_p9)   ;;  %v618_v27 = vld [vmem:[%s759_s9 + $0x20] ss:$8 sps:$4 sm:$0xff] (!%p240_p9)  }
  0x28   : > { %407 = vmatpush1.bf16.msra.mxu0 (!%p240_p9), %v612_v23  ;;  %v619_v28 = vld [vmem:[%s759_s9 + $0x34] ss:$8 sps:$4 sm:$0xff] (!%p240_p9)   ;;  %v621_v29 = vld [vmem:[%s759_s9 + $0x30] ss:$8 sps:$4 sm:$0xff] (!%p240_p9)   ;;  %v622_v30 = vld [vmem:[%s759_s9 + $0x44] ss:$8 sps:$4 sm:$0xff] (!%p240_p9)  }
  0x29   : > { %408 = vmatprep.subr.bf16.mxu0 %v613_v24  ;;  %v624_v31 = vld [vmem:[%s759_s9 + $0x40] ss:$8 sps:$4 sm:$0xff]   ;;  %v625_v32 = vld [vmem:[%s759_s9 + $0x54] ss:$8 sps:$4 sm:$0xff]   ;;  %v627_v33 = vld [vmem:[%s759_s9 + $0x50] ss:$8 sps:$4 sm:$0xff]  }
  0x2a   : > { %v628_v34 = vld [vmem:[%s759_s9 + $0x64] ss:$8 sps:$4 sm:$0xff]   ;;  %v630_v35 = vld [vmem:[%s759_s9 + $0x60] ss:$8 sps:$4 sm:$0xff]   ;;  %v631_v36 = vld [vmem:[%s759_s9 + $0x74] ss:$8 sps:$4 sm:$0xff]  }
  0x2b   : > { %v633_v37 = vld [vmem:[%s759_s9 + $0x70] ss:$8 sps:$4 sm:$0xff]   ;;  %v634_v38 = vld [vmem:[%s759_s9 + $0x84] ss:$8 sps:$4 sm:$0xff]   ;;  %v636_v39 = vld [vmem:[%s759_s9 + $0x80] ss:$8 sps:$4 sm:$0xff]  }
  0x2c   : > { %409 = vmatpush1.bf16.msra.mxu0 %v615_v25  ;;  %s581_s12 = sshll.u32 (%p715_p5), %s546_s15, 4 }
  0x2d   : > { %410 = vmatprep.subr.bf16.mxu0 %v616_v26  ;;  %s466_s23 = scalar_lea.vmem (%p715_p5), %s804_s3, %s581_s12 }
  0x30   : > { %411 = vmatpush1.bf16.msra.mxu0 %v618_v27 }
  0x31   : > { %412 = vmatprep.subr.bf16.mxu0 %v619_v28 }
  0x34   : > { %413 = vmatpush1.bf16.msra.mxu0 %v621_v29 }
  0x35   : > { %414 = vmatprep.subr.bf16.mxu0 %v622_v30 }
  0x38   : > { %415 = vmatpush1.bf16.msra.mxu0 %v624_v31 }
  0x39   : > { %416 = vmatprep.subr.bf16.mxu0 %v625_v32 }
  0x3c   : > { %417 = vmatpush1.bf16.msra.mxu0 %v627_v33 }
  0x3d   : > { %418 = vmatprep.subr.bf16.mxu0 %v628_v34 }
  0x40   : > { %419 = vmatpush1.bf16.msra.mxu0 %v630_v35 }
  0x41   : > { %420 = vmatprep.subr.bf16.mxu0 %v631_v36 }
  0x44   : > { %421 = vmatpush1.bf16.msra.mxu0 %v633_v37 }
  0x45   : > { %422 = vmatprep.subr.bf16.mxu0 %v634_v38 }
  0x48   : > { %423 = vmatpush1.bf16.msra.mxu0 %v636_v39 }
  0x4b   : > { %439 = vmatmul.mubr.bf16.vlgmr.msra.gmra.mrb[0].mxu0 %v637_v40 }
  0xa2   : > { %v296_v41 = vpop.permute.xlu0 %295 }
  0xa6   : > { %v301_v45 = vpop.permute.xlu0 %300 }
 0x11e   : > { %v440_v42 = vpop.f32.mrb[0].mxu0 }
 0x11f   : > { %v441_v43 = vadd.f32 %v440_v42, %v296_v41  ;;  %v442_v44 = vpop.f32.mrb[1].mxu0 }
 0x120   : > { %v443_v46 = vadd.f32 %v442_v44, %v296_v41  ;;  %v444_v47 = vpop.f32.mrb[2].mxu0  ;;  %463 = sbr.rel (!%p715_p5) target bundleno = 303 (0x12f), region = 74 }
 0x121   : > { %v449_v48 = vmax.f32 %v441_v43, 0.0  ;;  %v445_v49 = vadd.f32 %v444_v47, %v301_v45  ;;  %v446_v50 = vpop.f32.mrb[3].mxu0 }
 0x122   : > { %v450_v51 = vmax.f32 %v443_v46, 0.0  ;;  %v447_v52 = vadd.f32 %v446_v50, %v301_v45 }
 0x123   : > { %453 = vst [vmem:[%s267_s18] sm:$0xff] %v449_v48  ;;  %v451_v53 = vmax.f32 %v445_v49, 0.0 }
 0x124   : > { %454 = vst [vmem:[%s267_s18 + $0x8] sm:$0xff] %v450_v51  ;;  %v452_v54 = vmax.f32 %v447_v52, 0.0 }
 0x125   : > { %455 = vst [vmem:[%s267_s18 + $0x10] sm:$0xff] %v451_v53 }
 0x126   : > { %456 = vst [vmem:[%s267_s18 + $0x18] sm:$0xff] %v452_v54 }
 0x12a   : > { %v479_v55 = vld [vmem:[%s267_s18] sm:$0xff] }
 0x12b   : > { %v481_v56 = vld [vmem:[%s267_s18 + $0x8] sm:$0xff]  ;;  %480 = vst [vmem:[%s466_s23] sm:$0xff] %v479_v55 }
 0x12c   : > { %v483_v57 = vld [vmem:[%s267_s18 + $0x10] sm:$0xff]  ;;  %482 = vst [vmem:[%s466_s23 + $0x8] sm:$0xff] %v481_v56 }
 0x12d   : > { %v485_v58 = vld [vmem:[%s267_s18 + $0x18] sm:$0xff]  ;;  %484 = vst [vmem:[%s466_s23 + $0x20] sm:$0xff] %v483_v57 }
 0x12e   : > { %486 = vst [vmem:[%s466_s23 + $0x28] sm:$0xff] %v485_v58 }
 0x12f PF: > { %p10_p10 = scmp.ge.s32.totalorder %s702_s16, 4   ;;  %s806_s12 = smov %s658_s13 }
 0x130   : > { %s807_s13 = smov %s713_s19  ;;  %s808_s14 = smov %s702_s16 }
 0x131   :  { %12 = sbr.rel (!%p10_p10) target bundleno = 2 (0x2), region = 128 }

// kernel: _lambda_.7
= control target key start
LH: loop header
LB: loop body
LE: loop exit
PB: predicated region body
PF: predicated region fallthrough
CT: control target
= control target key end

     0   :  { %s1192_s12 = smov 0   ;;  %s1194_s13 = smov 0   ;;  %s1504_s0 = inlined_call_operand.vmem [shape: bf16[8,144], index: 0, kind: input, shape index: {}]   ;;  %s1505_s1 = inlined_call_operand.vmem [shape: bf16[144,2048], index: 1, kind: input, shape index: {}]   ;;  %s1506_s2 = inlined_call_operand.vmem [shape: f32[8,1], index: 2, kind: input, shape index: {}]   ;;  %s1507_s3 = inlined_call_operand.vmem [shape: f32[8,2048], index: 3, kind: output, shape index: {}]  }
   0x1   :  { %s1196_s14 = smov 0  }
   0x2 LB: > { %s1027_s15 = sadd.s32 4294967295, %s1169_s14   ;;  %s1209_s16 = sadd.s32 1, %s1169_s14   ;;  %s1169_s14 = sphi %s1196_s14, %s1510_s14   ;;  %s1165_s13 = sphi %s1194_s13, %s1509_s13   ;;  %s1161_s12 = sphi %s1192_s12, %s1508_s12  }
   0x3   : > { %s38_s17 = ssub.s32 %s1169_s14, %s1209_s16  ;;  %s41_s18 = sadd.s32 1, %s1165_s13 }
   0x4   : > { %p39_p0 = scmp.eq.s32.totalorder %s38_s17, 0  ;;  %p48_p1 = scmp.ne.s32.totalorder %s1165_s13, %s1161_s12 }
   0x5   : > { %p49_p2 = scmp.eq.s32.totalorder %s1169_s14, 0  ;;  %p1030_p4 = scmp.ge.s32.totalorder %s1169_s14, 2 }
   0x6   : > { %s1218_s19 = scalar_select %p39_p0, %s1165_s13, %s41_s18  }
   0x7   : > { %p50_p3 = por %p49_p2, %p48_p1  ;;  %127 = sbr.rel (%p1030_p4) target bundleno = 55 (0x37), region = 24 }
   0xe   : > { %130 = sbr.rel (!%p50_p3) target bundleno = 55 (0x37), region = 28  ;;  %s132_s20 = sand.u32 (%p50_p3), 1, %s1165_s13  }
   0xf   : > { %s1116_s21 = sshll.u32 (%p50_p3), %s1169_s14, 5  ;;  %s1117_s22 = smul.u32 (%p50_p3), 576, %s132_s20 }
  0x10   : > { %s1226_s25 = scalar_lea.vmem (%p50_p3), %s1505_s1, %s1116_s21 }
  0x11   : > { %v150_v0 = vld [vmem:[%s1226_s25] sm:$0xff] (%p50_p3)  ;;  %v152_v1 = vld [vmem:[%s1226_s25 + $0x8] sm:$0xff] (%p50_p3)  ;;  %v154_v2 = vld [vmem:[%s1226_s25 + $0x10] sm:$0xff] (%p50_p3)  ;;  %s1234_s26 = scalar_lea.vmem (%p50_p3), [#allocation2], %s1117_s22 }
  0x12   : > { %v156_v3 = vld [vmem:[%s1226_s25 + $0x18] sm:$0xff] (%p50_p3)  ;;  %v158_v4 = vld [vmem:[%s1226_s25 + $0x40] sm:$0xff] (%p50_p3)  ;;  %v160_v5 = vld [vmem:[%s1226_s25 + $0x48] sm:$0xff] (%p50_p3)  ;;  %151 = vst [vmem:[%s1234_s26] sm:$0xff] (%p50_p3), %v150_v0 }
  0x13   : > { %153 = vst [vmem:[%s1234_s26 + $0x8] sm:$0xff] (%p50_p3), %v152_v1  ;;  %155 = vst [vmem:[%s1234_s26 + $0x10] sm:$0xff] (%p50_p3), %v154_v2  ;;  %v162_v6 = vld [vmem:[%s1226_s25 + $0x50] sm:$0xff] (%p50_p3)  ;;  %v164_v7 = vld [vmem:[%s1226_s25 + $0x58] sm:$0xff] (%p50_p3) }
  0x14   : > { %157 = vst [vmem:[%s1234_s26 + $0x18] sm:$0xff] (%p50_p3), %v156_v3  ;;  %159 = vst [vmem:[%s1234_s26 + $0x20] sm:$0xff] (%p50_p3), %v158_v4  ;;  %v166_v8 = vld [vmem:[%s1226_s25 + $0x80] sm:$0xff] (%p50_p3)  ;;  %v168_v9 = vld [vmem:[%s1226_s25 + $0x88] sm:$0xff] (%p50_p3) }
  0x15   : > { %161 = vst [vmem:[%s1234_s26 + $0x28] sm:$0xff] %v160_v5  ;;  %163 = vst [vmem:[%s1234_s26 + $0x30] sm:$0xff] %v162_v6  ;;  %v170_v10 = vld [vmem:[%s1226_s25 + $0x90] sm:$0xff]  ;;  %v172_v11 = vld [vmem:[%s1226_s25 + $0x98] sm:$0xff] }
  0x16   : > { %165 = vst [vmem:[%s1234_s26 + $0x38] sm:$0xff] %v164_v7  ;;  %167 = vst [vmem:[%s1234_s26 + $0x40] sm:$0xff] %v166_v8  ;;  %v174_v12 = vld [vmem:[%s1226_s25 + $0xc0] sm:$0xff]  ;;  %v176_v13 = vld [vmem:[%s1226_s25 + $0xc8] sm:$0xff] }
  0x17   : > { %169 = vst [vmem:[%s1234_s26 + $0x48] sm:$0xff] %v168_v9  ;;  %171 = vst [vmem:[%s1234_s26 + $0x50] sm:$0xff] %v170_v10  ;;  %v178_v14 = vld [vmem:[%s1226_s25 + $0xd0] sm:$0xff]  ;;  %v180_v15 = vld [vmem:[%s1226_s25 + $0xd8] sm:$0xff] }
  0x18   : > { %173 = vst [vmem:[%s1234_s26 + $0x58] sm:$0xff] %v172_v11  ;;  %175 = vst [vmem:[%s1234_s26 + $0x60] sm:$0xff] %v174_v12  ;;  %v182_v16 = vld [vmem:[%s1226_s25 + $0x100] sm:$0xff]  ;;  %v184_v17 = vld [vmem:[%s1226_s25 + $0x108] sm:$0xff] }
  0x19   : > { %177 = vst [vmem:[%s1234_s26 + $0x68] sm:$0xff] %v176_v13  ;;  %179 = vst [vmem:[%s1234_s26 + $0x70] sm:$0xff] %v178_v14  ;;  %v186_v18 = vld [vmem:[%s1226_s25 + $0x110] sm:$0xff]  ;;  %v188_v19 = vld [vmem:[%s1226_s25 + $0x118] sm:$0xff] }
  0x1a   : > { %181 = vst [vmem:[%s1234_s26 + $0x78] sm:$0xff] %v180_v15  ;;  %183 = vst [vmem:[%s1234_s26 + $0x80] sm:$0xff] %v182_v16  ;;  %v190_v20 = vld [vmem:[%s1226_s25 + $0x140] sm:$0xff]  ;;  %v192_v21 = vld [vmem:[%s1226_s25 + $0x148] sm:$0xff] }
  0x1b   : > { %185 = vst [vmem:[%s1234_s26 + $0x88] sm:$0xff] %v184_v17  ;;  %187 = vst [vmem:[%s1234_s26 + $0x90] sm:$0xff] %v186_v18  ;;  %v194_v22 = vld [vmem:[%s1226_s25 + $0x150] sm:$0xff]  ;;  %v196_v23 = vld [vmem:[%s1226_s25 + $0x158] sm:$0xff] }
  0x1c   : > { %189 = vst [vmem:[%s1234_s26 + $0x98] sm:$0xff] %v188_v19  ;;  %191 = vst [vmem:[%s1234_s26 + $0xa0] sm:$0xff] %v190_v20  ;;  %v198_v24 = vld [vmem:[%s1226_s25 + $0x180] sm:$0xff]  ;;  %v200_v25 = vld [vmem:[%s1226_s25 + $0x188] sm:$0xff] }
  0x1d   : > { %193 = vst [vmem:[%s1234_s26 + $0xa8] sm:$0xff] %v192_v21  ;;  %195 = vst [vmem:[%s1234_s26 + $0xb0] sm:$0xff] %v194_v22  ;;  %v202_v26 = vld [vmem:[%s1226_s25 + $0x190] sm:$0xff]  ;;  %v204_v27 = vld [vmem:[%s1226_s25 + $0x198] sm:$0xff] }
  0x1e   : > { %197 = vst [vmem:[%s1234_s26 + $0xb8] sm:$0xff] %v196_v23  ;;  %199 = vst [vmem:[%s1234_s26 + $0xc0] sm:$0xff] %v198_v24  ;;  %v206_v28 = vld [vmem:[%s1226_s25 + $0x1c0] sm:$0xff]  ;;  %v208_v29 = vld [vmem:[%s1226_s25 + $0x1c8] sm:$0xff] }
  0x1f   : > { %201 = vst [vmem:[%s1234_s26 + $0xc8] sm:$0xff] %v200_v25  ;;  %203 = vst [vmem:[%s1234_s26 + $0xd0] sm:$0xff] %v202_v26  ;;  %v210_v30 = vld [vmem:[%s1226_s25 + $0x1d0] sm:$0xff]  ;;  %v212_v31 = vld [vmem:[%s1226_s25 + $0x1d8] sm:$0xff] }
  0x20   : > { %205 = vst [vmem:[%s1234_s26 + $0xd8] sm:$0xff] %v204_v27  ;;  %207 = vst [vmem:[%s1234_s26 + $0xe0] sm:$0xff] %v206_v28  ;;  %v214_v32 = vld [vmem:[%s1226_s25 + $0x200] sm:$0xff]  ;;  %v216_v33 = vld [vmem:[%s1226_s25 + $0x208] sm:$0xff] }
  0x21   : > { %209 = vst [vmem:[%s1234_s26 + $0xe8] sm:$0xff] %v208_v29  ;;  %211 = vst [vmem:[%s1234_s26 + $0xf0] sm:$0xff] %v210_v30  ;;  %v218_v34 = vld [vmem:[%s1226_s25 + $0x210] sm:$0xff]  ;;  %v220_v35 = vld [vmem:[%s1226_s25 + $0x218] sm:$0xff] }
  0x22   : > { %213 = vst [vmem:[%s1234_s26 + $0xf8] sm:$0xff] %v212_v31  ;;  %215 = vst [vmem:[%s1234_s26 + $0x100] sm:$0xff] %v214_v32  ;;  %v222_v36 = vld [vmem:[%s1226_s25 + $0x240] sm:$0xff]  ;;  %v224_v37 = vld [vmem:[%s1226_s25 + $0x248] sm:$0xff] }
  0x23   : > { %217 = vst [vmem:[%s1234_s26 + $0x108] sm:$0xff] %v216_v33  ;;  %219 = vst [vmem:[%s1234_s26 + $0x110] sm:$0xff] %v218_v34  ;;  %v226_v38 = vld [vmem:[%s1226_s25 + $0x250] sm:$0xff]  ;;  %v228_v39 = vld [vmem:[%s1226_s25 + $0x258] sm:$0xff] }
  0x24   : > { %221 = vst [vmem:[%s1234_s26 + $0x118] sm:$0xff] %v220_v35  ;;  %223 = vst [vmem:[%s1234_s26 + $0x120] sm:$0xff] %v222_v36  ;;  %v230_v40 = vld [vmem:[%s1226_s25 + $0x280] sm:$0xff]  ;;  %v232_v41 = vld [vmem:[%s1226_s25 + $0x288] sm:$0xff] }
  0x25   : > { %225 = vst [vmem:[%s1234_s26 + $0x128] sm:$0xff] %v224_v37  ;;  %227 = vst [vmem:[%s1234_s26 + $0x130] sm:$0xff] %v226_v38  ;;  %v234_v42 = vld [vmem:[%s1226_s25 + $0x290] sm:$0xff]  ;;  %v236_v43 = vld [vmem:[%s1226_s25 + $0x298] sm:$0xff] }
  0x26   : > { %229 = vst [vmem:[%s1234_s26 + $0x138] sm:$0xff] %v228_v39  ;;  %231 = vst [vmem:[%s1234_s26 + $0x140] sm:$0xff] %v230_v40  ;;  %v238_v44 = vld [vmem:[%s1226_s25 + $0x2c0] sm:$0xff]  ;;  %v240_v45 = vld [vmem:[%s1226_s25 + $0x2c8] sm:$0xff] }
  0x27   : > { %233 = vst [vmem:[%s1234_s26 + $0x148] sm:$0xff] %v232_v41  ;;  %235 = vst [vmem:[%s1234_s26 + $0x150] sm:$0xff] %v234_v42  ;;  %v242_v46 = vld [vmem:[%s1226_s25 + $0x2d0] sm:$0xff]  ;;  %v244_v47 = vld [vmem:[%s1226_s25 + $0x2d8] sm:$0xff] }
  0x28   : > { %237 = vst [vmem:[%s1234_s26 + $0x158] sm:$0xff] %v236_v43  ;;  %239 = vst [vmem:[%s1234_s26 + $0x160] sm:$0xff] %v238_v44  ;;  %v246_v48 = vld [vmem:[%s1226_s25 + $0x300] sm:$0xff]  ;;  %v248_v49 = vld [vmem:[%s1226_s25 + $0x308] sm:$0xff] }
  0x29   : > { %241 = vst [vmem:[%s1234_s26 + $0x168] sm:$0xff] %v240_v45  ;;  %243 = vst [vmem:[%s1234_s26 + $0x170] sm:$0xff] %v242_v46  ;;  %v250_v50 = vld [vmem:[%s1226_s25 + $0x310] sm:$0xff]  ;;  %v252_v51 = vld [vmem:[%s1226_s25 + $0x318] sm:$0xff] }
  0x2a   : > { %245 = vst [vmem:[%s1234_s26 + $0x178] sm:$0xff] %v244_v47  ;;  %247 = vst [vmem:[%s1234_s26 + $0x180] sm:$0xff] %v246_v48  ;;  %v254_v52 = vld [vmem:[%s1226_s25 + $0x340] sm:$0xff]  ;;  %v256_v53 = vld [vmem:[%s1226_s25 + $0x348] sm:$0xff] }
  0x2b   : > { %249 = vst [vmem:[%s1234_s26 + $0x188] sm:$0xff] %v248_v49  ;;  %251 = vst [vmem:[%s1234_s26 + $0x190] sm:$0xff] %v250_v50  ;;  %v258_v54 = vld [vmem:[%s1226_s25 + $0x350] sm:$0xff]  ;;  %v260_v55 = vld [vmem:[%s1226_s25 + $0x358] sm:$0xff] }
  0x2c   : > { %253 = vst [vmem:[%s1234_s26 + $0x198] sm:$0xff] %v252_v51  ;;  %255 = vst [vmem:[%s1234_s26 + $0x1a0] sm:$0xff] %v254_v52  ;;  %v262_v56 = vld [vmem:[%s1226_s25 + $0x380] sm:$0xff]  ;;  %v264_v57 = vld [vmem:[%s1226_s25 + $0x388] sm:$0xff] }
  0x2d   : > { %257 = vst [vmem:[%s1234_s26 + $0x1a8] sm:$0xff] %v256_v53  ;;  %259 = vst [vmem:[%s1234_s26 + $0x1b0] sm:$0xff] %v258_v54  ;;  %v266_v58 = vld [vmem:[%s1226_s25 + $0x390] sm:$0xff]  ;;  %v268_v59 = vld [vmem:[%s1226_s25 + $0x398] sm:$0xff] }
  0x2e   : > { %261 = vst [vmem:[%s1234_s26 + $0x1b8] sm:$0xff] %v260_v55  ;;  %263 = vst [vmem:[%s1234_s26 + $0x1c0] sm:$0xff] %v262_v56  ;;  %v270_v60 = vld [vmem:[%s1226_s25 + $0x3c0] sm:$0xff]  ;;  %v272_v61 = vld [vmem:[%s1226_s25 + $0x3c8] sm:$0xff] }
  0x2f   : > { %265 = vst [vmem:[%s1234_s26 + $0x1c8] sm:$0xff] %v264_v57  ;;  %267 = vst [vmem:[%s1234_s26 + $0x1d0] sm:$0xff] %v266_v58  ;;  %v274_v62 = vld [vmem:[%s1226_s25 + $0x3d0] sm:$0xff]  ;;  %v276_v63 = vld [vmem:[%s1226_s25 + $0x3d8] sm:$0xff] }
  0x30   : > { %269 = vst [vmem:[%s1234_s26 + $0x1d8] sm:$0xff] %v268_v59  ;;  %271 = vst [vmem:[%s1234_s26 + $0x1e0] sm:$0xff] %v270_v60  ;;  %v278_v0 = vld [vmem:[%s1226_s25 + $0x400] sm:$0xff]  ;;  %v280_v1 = vld [vmem:[%s1226_s25 + $0x408] sm:$0xff] }
  0x31   : > { %273 = vst [vmem:[%s1234_s26 + $0x1e8] sm:$0xff] %v272_v61  ;;  %275 = vst [vmem:[%s1234_s26 + $0x1f0] sm:$0xff] %v274_v62  ;;  %v282_v2 = vld [vmem:[%s1226_s25 + $0x410] sm:$0xff]  ;;  %v284_v3 = vld [vmem:[%s1226_s25 + $0x418] sm:$0xff] }
  0x32   : > { %277 = vst [vmem:[%s1234_s26 + $0x1f8] sm:$0xff] %v276_v63  ;;  %279 = vst [vmem:[%s1234_s26 + $0x200] sm:$0xff] %v278_v0  ;;  %v286_v4 = vld [vmem:[%s1226_s25 + $0x440] sm:$0xff]  ;;  %v288_v5 = vld [vmem:[%s1226_s25 + $0x448] sm:$0xff] }
  0x33   : > { %281 = vst [vmem:[%s1234_s26 + $0x208] sm:$0xff] %v280_v1  ;;  %283 = vst [vmem:[%s1234_s26 + $0x210] sm:$0xff] %v282_v2  ;;  %v290_v6 = vld [vmem:[%s1226_s25 + $0x450] sm:$0xff]  ;;  %v292_v7 = vld [vmem:[%s1226_s25 + $0x458] sm:$0xff] }
  0x34   : > { %285 = vst [vmem:[%s1234_s26 + $0x218] sm:$0xff] %v284_v3  ;;  %287 = vst [vmem:[%s1234_s26 + $0x220] sm:$0xff] %v286_v4 }
  0x35   : > { %289 = vst [vmem:[%s1234_s26 + $0x228] sm:$0xff] %v288_v5  ;;  %291 = vst [vmem:[%s1234_s26 + $0x230] sm:$0xff] %v290_v6 }
  0x36   : > { %293 = vst [vmem:[%s1234_s26 + $0x238] sm:$0xff] %v292_v7 }
  0x37 PF: > { %p1033_p5 = scmp.ge.s32.totalorder %s1169_s14, 1  ;;  %p298_p6 = scmp.lt.s32.totalorder %s1169_s14, 3 }
  0x39   : > { %p299_p7 = pnand %p1033_p5, %p298_p6 }
  0x3a   : > { %s305_s27 = sand.u32 (!%p299_p7), 1, %s1161_s12   ;;  %v1380_v8 = vld [vmem:[%s1504_s0] sm:$0xff] (!%p299_p7)  ;;  %vm781_vm0 = vcmask (!%p299_p7), 130048   ;;  %v1171_v11 = vmov (!%p299_p7), 0   ;;  %s1034_s7 = sshll.u32 (!%p299_p7), %s1027_s15, 3 }
  0x3b   : > { %302 = sbr.rel (%p299_p7) target bundleno = 357 (0x165), region = 51  ;;  %v409_v9 = vld [vmem:[%s1506_s2] sm:$0xff] (!%p299_p7)  ;;  %v1387_v10 = vcombine.high (!%p299_p7), %v1380_v8, %v1380_v8  ;;  %1144 = vset.pattern.permute.xlu0 (!%p299_p7), %v1171_v11  ;;  %p330_p8 = scmp.lt.s32.totalorder (!%p299_p7), %s1034_s7, 15 }
  0x3c   : > { %s1118_s5 = smul.u32 (!%p299_p7), 576, %s305_s27  ;;  %412 = vperm.xlu0 (!%p299_p7), %1144, %v409_v9  }
  0x3d   : > { %1110 = vmatprep.mubr.msk.bf16.mxu0 (!%p299_p7), %vm781_vm0, %v1387_v10  ;;  %1111 = vmatprep.mubr.msk.bf16.mxu1 (!%p299_p7), %vm781_vm0, %v1387_v10 }
  0x3e   : > { %s1393_s6 = scalar_lea.vmem (!%p299_p7), [#allocation2], %s1118_s5 }
  0x3f   : > { %v337_v12 = vld [vmem:[%s1393_s6] sm:$0xff] (!%p299_p7)  ;;  %v338_v14 = vld [vmem:[%s1393_s6 + $0x8] sm:$0xff] (!%p299_p7) }
  0x40   : > { %v341_v13 = vld [vmem:[%s1393_s6 + $0x20] sm:$0xff] (!%p299_p7)  ;;  %v342_v16 = vld [vmem:[%s1393_s6 + $0x28] sm:$0xff] (!%p299_p7) }
  0x41   : > { %v1039_v15 = vcombine.high (!%p299_p7), %v337_v12, %v341_v13  ;;  %v1038_v17 = vcombine.low (!%p299_p7), %v337_v12, %v341_v13  ;;  %v345_v18 = vld [vmem:[%s1393_s6 + $0x40] sm:$0xff] (!%p299_p7)  ;;  %v1041_v20 = vcombine.high (!%p299_p7), %v338_v14, %v342_v16  ;;  %v1040_v21 = vcombine.low (!%p299_p7), %v338_v14, %v342_v16  ;;  %v346_v23 = vld [vmem:[%s1393_s6 + $0x48] sm:$0xff] (!%p299_p7) }
  0x42   : > { %v349_v19 = vld [vmem:[%s1393_s6 + $0x60] sm:$0xff]  ;;  %v350_v24 = vld [vmem:[%s1393_s6 + $0x68] sm:$0xff]  ;;  %s1512_s7 = smov (!%p330_p8, %s1034_s7), 15 }
  0x43   : > { %v1047_v22 = vcombine.high %v345_v18, %v349_v19  ;;  %v353_v25 = vld [vmem:[%s1393_s6 + $0x80] sm:$0xff]  ;;  %785 = vmatprep.subr.bf16.mxu0 %v1039_v15  ;;  %v1049_v26 = vcombine.high %v346_v23, %v350_v24  ;;  %v354_v28 = vld [vmem:[%s1393_s6 + $0x88] sm:$0xff]  ;;  %826 = vmatprep.subr.bf16.mxu1 %v1041_v20  ;;  %v1046_v30 = vcombine.low %v345_v18, %v349_v19  ;;  %v339_v20 = vld [vmem:[%s1393_s6 + $0x10] sm:$0xff]  ;;  %s1035_s8 = sshll.u32 %s1512_s7, 3 }
  0x44   : > { %v357_v27 = vld [vmem:[%s1393_s6 + $0xa0] sm:$0xff]  ;;  %v358_v29 = vld [vmem:[%s1393_s6 + $0xa8] sm:$0xff]  ;;  %786 = vmatpush1.bf16.msra.mxu0 %v1038_v17  ;;  %827 = vmatpush1.bf16.msra.mxu1 %v1040_v21  ;;  %v1048_v31 = vcombine.low %v346_v23, %v350_v24  ;;  %v343_v21 = vld [vmem:[%s1393_s6 + $0x30] sm:$0xff]  ;;  %s1484_s11 = scalar_lea.vmem %s1507_s3, %s1035_s8 }
  0x45   : > { %787 = vmatprep.subr.bf16.mxu0 %v1047_v22  ;;  %v1055_v32 = vcombine.high %v353_v25, %v357_v27  ;;  %828 = vmatprep.subr.bf16.mxu1 %v1049_v26  ;;  %v1057_v33 = vcombine.high %v354_v28, %v358_v29  ;;  %v361_v34 = vld [vmem:[%s1393_s6 + $0xc0] sm:$0xff]  ;;  %v362_v36 = vld [vmem:[%s1393_s6 + $0xc8] sm:$0xff]  ;;  %v1054_v38 = vcombine.low %v353_v25, %v357_v27  ;;  %v340_v22 = vld [vmem:[%s1393_s6 + $0x18] sm:$0xff] }
  0x46   : > { %v365_v35 = vld [vmem:[%s1393_s6 + $0xe0] sm:$0xff]  ;;  %v366_v37 = vld [vmem:[%s1393_s6 + $0xe8] sm:$0xff]  ;;  %v1056_v39 = vcombine.low %v354_v28, %v358_v29  ;;  %v344_v23 = vld [vmem:[%s1393_s6 + $0x38] sm:$0xff]  ;;  %v1043_v26 = vcombine.high %v339_v20, %v343_v21 }
  0x47   : > { %v1063_v40 = vcombine.high %v361_v34, %v365_v35  ;;  %v1065_v41 = vcombine.high %v362_v36, %v366_v37  ;;  %v369_v42 = vld [vmem:[%s1393_s6 + $0x100] sm:$0xff]  ;;  %v370_v44 = vld [vmem:[%s1393_s6 + $0x108] sm:$0xff]  ;;  %v1062_v46 = vcombine.low %v361_v34, %v365_v35  ;;  %v1064_v47 = vcombine.low %v362_v36, %v366_v37  ;;  %v347_v28 = vld [vmem:[%s1393_s6 + $0x50] sm:$0xff] }
  0x48   : > { %788 = vmatpush1.bf16.msra.mxu0 %v1046_v30  ;;  %829 = vmatpush1.bf16.msra.mxu1 %v1048_v31  ;;  %v373_v43 = vld [vmem:[%s1393_s6 + $0x120] sm:$0xff]  ;;  %v374_v45 = vld [vmem:[%s1393_s6 + $0x128] sm:$0xff]  ;;  %v1045_v27 = vcombine.high %v340_v22, %v344_v23  ;;  %v351_v29 = vld [vmem:[%s1393_s6 + $0x70] sm:$0xff]  ;;  %v1439_v30 = vcombine.low %v1380_v8, %v1380_v8  ;;  %v1044_v34 = vcombine.low %v340_v22, %v344_v23 }
  0x49   : > { %789 = vmatprep.subr.bf16.mxu0 %v1055_v32  ;;  %830 = vmatprep.subr.bf16.mxu1 %v1057_v33  ;;  %v1071_v48 = vcombine.high %v369_v42, %v373_v43  ;;  %v1073_v49 = vcombine.high %v370_v44, %v374_v45  ;;  %v377_v50 = vld [vmem:[%s1393_s6 + $0x140] sm:$0xff]  ;;  %v378_v52 = vld [vmem:[%s1393_s6 + $0x148] sm:$0xff]  ;;  %v1070_v54 = vcombine.low %v369_v42, %v373_v43  ;;  %v348_v31 = vld [vmem:[%s1393_s6 + $0x58] sm:$0xff] }
  0x4a   : > { %v381_v51 = vld [vmem:[%s1393_s6 + $0x160] sm:$0xff]  ;;  %v382_v53 = vld [vmem:[%s1393_s6 + $0x168] sm:$0xff]  ;;  %v1072_v55 = vcombine.low %v370_v44, %v374_v45  ;;  %v352_v32 = vld [vmem:[%s1393_s6 + $0x78] sm:$0xff]  ;;  %v1042_v33 = vcombine.low %v339_v20, %v343_v21  ;;  %v1051_v35 = vcombine.high %v347_v28, %v351_v29 }
  0x4b   : > { %v1079_v56 = vcombine.high %v377_v50, %v381_v51  ;;  %v1081_v57 = vcombine.high %v378_v52, %v382_v53  ;;  %v385_v58 = vld [vmem:[%s1393_s6 + $0x180] sm:$0xff]  ;;  %v386_v60 = vld [vmem:[%s1393_s6 + $0x188] sm:$0xff]  ;;  %v1078_v62 = vcombine.low %v377_v50, %v381_v51  ;;  %v1080_v63 = vcombine.low %v378_v52, %v382_v53  ;;  %v355_v37 = vld [vmem:[%s1393_s6 + $0x90] sm:$0xff] }
  0x4c   : > { %790 = vmatpush1.bf16.msra.mxu0 %v1054_v38  ;;  %831 = vmatpush1.bf16.msra.mxu1 %v1056_v39  ;;  %v389_v59 = vld [vmem:[%s1393_s6 + $0x1a0] sm:$0xff]  ;;  %v390_v61 = vld [vmem:[%s1393_s6 + $0x1a8] sm:$0xff]  ;;  %v1053_v36 = vcombine.high %v348_v31, %v352_v32  ;;  %v359_v38 = vld [vmem:[%s1393_s6 + $0xb0] sm:$0xff] }
  0x4d   : > { %791 = vmatprep.subr.bf16.mxu0 %v1063_v40  ;;  %832 = vmatprep.subr.bf16.mxu1 %v1065_v41  ;;  %v1087_v0 = vcombine.high %v385_v58, %v389_v59  ;;  %v1089_v1 = vcombine.high %v386_v60, %v390_v61  ;;  %v393_v2 = vld [vmem:[%s1393_s6 + $0x1c0] sm:$0xff]  ;;  %v394_v4 = vld [vmem:[%s1393_s6 + $0x1c8] sm:$0xff]  ;;  %v1086_v6 = vcombine.low %v385_v58, %v389_v59  ;;  %v356_v8 = vld [vmem:[%s1393_s6 + $0x98] sm:$0xff] }
  0x4e   : > { %v397_v3 = vld [vmem:[%s1393_s6 + $0x1e0] sm:$0xff]  ;;  %v398_v5 = vld [vmem:[%s1393_s6 + $0x1e8] sm:$0xff]  ;;  %v1088_v7 = vcombine.low %v386_v60, %v390_v61  ;;  %v360_v39 = vld [vmem:[%s1393_s6 + $0xb8] sm:$0xff]  ;;  %v1050_v40 = vcombine.low %v347_v28, %v351_v29  ;;  %v1052_v41 = vcombine.low %v348_v31, %v352_v32  ;;  %v1059_v42 = vcombine.high %v355_v37, %v359_v38 }
  0x4f   : > { %v1095_v9 = vcombine.high %v393_v2, %v397_v3  ;;  %v1097_v11 = vcombine.high %v394_v4, %v398_v5  ;;  %v401_v12 = vld [vmem:[%s1393_s6 + $0x200] sm:$0xff]  ;;  %v402_v14 = vld [vmem:[%s1393_s6 + $0x208] sm:$0xff]  ;;  %v1094_v16 = vcombine.low %v393_v2, %v397_v3  ;;  %v1096_v17 = vcombine.low %v394_v4, %v398_v5  ;;  %v363_v44 = vld [vmem:[%s1393_s6 + $0xd0] sm:$0xff] }
  0x50   : > { %792 = vmatpush1.bf16.msra.mxu0 %v1062_v46  ;;  %833 = vmatpush1.bf16.msra.mxu1 %v1064_v47  ;;  %v405_v13 = vld [vmem:[%s1393_s6 + $0x220] sm:$0xff]  ;;  %v406_v15 = vld [vmem:[%s1393_s6 + $0x228] sm:$0xff]  ;;  %v1061_v43 = vcombine.high %v356_v8, %v360_v39  ;;  %v367_v45 = vld [vmem:[%s1393_s6 + $0xf0] sm:$0xff] }
  0x51   : > { %793 = vmatprep.subr.bf16.mxu0 %v1071_v48  ;;  %834 = vmatprep.subr.bf16.mxu1 %v1073_v49  ;;  %v1103_v18 = vcombine.high %v401_v12, %v405_v13  ;;  %v1105_v19 = vcombine.high %v402_v14, %v406_v15  ;;  %v1102_v24 = vcombine.low %v401_v12, %v405_v13  ;;  %v364_v46 = vld [vmem:[%s1393_s6 + $0xd8] sm:$0xff]  ;;  %v371_v52 = vld [vmem:[%s1393_s6 + $0x110] sm:$0xff] }
  0x52   : > { %v1104_v25 = vcombine.low %v402_v14, %v406_v15  ;;  %v368_v47 = vld [vmem:[%s1393_s6 + $0xf8] sm:$0xff]  ;;  %v1058_v48 = vcombine.low %v355_v37, %v359_v38  ;;  %v1060_v49 = vcombine.low %v356_v8, %v360_v39  ;;  %v1067_v50 = vcombine.high %v363_v44, %v367_v45  ;;  %v375_v53 = vld [vmem:[%s1393_s6 + $0x130] sm:$0xff] }
  0x53   : > { %v1069_v51 = vcombine.high %v364_v46, %v368_v47  ;;  %v379_v59 = vld [vmem:[%s1393_s6 + $0x150] sm:$0xff]  ;;  %v380_v61 = vld [vmem:[%s1393_s6 + $0x158] sm:$0xff] }
  0x54   : > { %794 = vmatpush1.bf16.msra.mxu0 %v1070_v54  ;;  %835 = vmatpush1.bf16.msra.mxu1 %v1072_v55  ;;  %v372_v54 = vld [vmem:[%s1393_s6 + $0x118] sm:$0xff]  ;;  %v383_v60 = vld [vmem:[%s1393_s6 + $0x170] sm:$0xff] }
  0x55   : > { %795 = vmatprep.subr.bf16.mxu0 %v1079_v56  ;;  %836 = vmatprep.subr.bf16.mxu1 %v1081_v57  ;;  %v376_v55 = vld [vmem:[%s1393_s6 + $0x138] sm:$0xff]  ;;  %v1066_v56 = vcombine.low %v363_v44, %v367_v45  ;;  %v1075_v57 = vcombine.high %v371_v52, %v375_v53  ;;  %v387_v3 = vld [vmem:[%s1393_s6 + $0x190] sm:$0xff] }
  0x56   : > { %v1077_v58 = vcombine.high %v372_v54, %v376_v55  ;;  %v391_v4 = vld [vmem:[%s1393_s6 + $0x1b0] sm:$0xff]  ;;  %v388_v5 = vld [vmem:[%s1393_s6 + $0x198] sm:$0xff] }
  0x57   : > { %v395_v13 = vld [vmem:[%s1393_s6 + $0x1d0] sm:$0xff]  ;;  %v396_v15 = vld [vmem:[%s1393_s6 + $0x1d8] sm:$0xff] }
  0x58   : > { %796 = vmatpush1.bf16.msra.mxu0 %v1078_v62  ;;  %837 = vmatpush1.bf16.msra.mxu1 %v1080_v63  ;;  %v384_v62 = vld [vmem:[%s1393_s6 + $0x178] sm:$0xff]  ;;  %v1074_v63 = vcombine.low %v371_v52, %v375_v53  ;;  %v399_v14 = vld [vmem:[%s1393_s6 + $0x1f0] sm:$0xff] }
  0x59   : > { %797 = vmatprep.subr.bf16.mxu0 %v1087_v0  ;;  %838 = vmatprep.subr.bf16.mxu1 %v1089_v1  ;;  %v1076_v0 = vcombine.low %v372_v54, %v376_v55  ;;  %v1083_v1 = vcombine.high %v379_v59, %v383_v60  ;;  %v1085_v2 = vcombine.high %v380_v61, %v384_v62  ;;  %v403_v21 = vld [vmem:[%s1393_s6 + $0x210] sm:$0xff]  ;;  %v404_v23 = vld [vmem:[%s1393_s6 + $0x218] sm:$0xff] }
  0x5a   : > { %v407_v22 = vld [vmem:[%s1393_s6 + $0x230] sm:$0xff] }
  0x5b   : > { %v1106_v29 = vcombine.low %v403_v21, %v407_v22 }
  0x5c   : > { %798 = vmatpush1.bf16.msra.mxu0 %v1086_v6  ;;  %839 = vmatpush1.bf16.msra.mxu1 %v1088_v7  ;;  %v392_v6 = vld [vmem:[%s1393_s6 + $0x1b8] sm:$0xff]  ;;  %v1082_v7 = vcombine.low %v379_v59, %v383_v60 }
  0x5d   : > { %799 = vmatprep.subr.bf16.mxu0 %v1095_v9  ;;  %840 = vmatprep.subr.bf16.mxu1 %v1097_v11  ;;  %v1084_v9 = vcombine.low %v380_v61, %v384_v62  ;;  %v1091_v11 = vcombine.high %v387_v3, %v391_v4  ;;  %v1093_v12 = vcombine.high %v388_v5, %v392_v6 }
  0x60   : > { %800 = vmatpush1.bf16.msra.mxu0 %v1094_v16  ;;  %841 = vmatpush1.bf16.msra.mxu1 %v1096_v17  ;;  %v400_v16 = vld [vmem:[%s1393_s6 + $0x1f8] sm:$0xff]  ;;  %v1090_v17 = vcombine.low %v387_v3, %v391_v4 }
  0x61   : > { %801 = vmatprep.subr.bf16.mxu0 %v1103_v18  ;;  %842 = vmatprep.subr.bf16.mxu1 %v1105_v19  ;;  %v1092_v18 = vcombine.low %v388_v5, %v392_v6  ;;  %v1099_v19 = vcombine.high %v395_v13, %v399_v14  ;;  %v1101_v20 = vcombine.high %v396_v15, %v400_v16 }
  0x64   : > { %802 = vmatpush1.bf16.msra.mxu0 %v1102_v24  ;;  %843 = vmatpush1.bf16.msra.mxu1 %v1104_v25  ;;  %v408_v24 = vld [vmem:[%s1393_s6 + $0x238] sm:$0xff]  ;;  %v1098_v25 = vcombine.low %v395_v13, %v399_v14 }
  0x65   : > { %867 = vmatprep.subr.bf16.mxu0 %v1043_v26  ;;  %908 = vmatprep.subr.bf16.mxu1 %v1045_v27  ;;  %v1100_v26 = vcombine.low %v396_v15, %v400_v16  ;;  %v1107_v27 = vcombine.high %v403_v21, %v407_v22  ;;  %v1109_v28 = vcombine.high %v404_v23, %v408_v24 }
  0x66   : > { %v1108_v31 = vcombine.low %v404_v23, %v408_v24 }
  0x67   : > { %818 = vmatmul.mubr.bf16.vlgmr.msra.gmra.mrb[0].mxu0 %v1439_v30  ;;  %859 = vmatmul.mubr.bf16.vlgmr.msra.gmra.mrb[0].mxu1 %v1439_v30 }
  0x68   : > { %868 = vmatpush1.bf16.msra.mxu0 %v1042_v33  ;;  %909 = vmatpush1.bf16.msra.mxu1 %v1044_v34 }
  0x69   : > { %869 = vmatprep.subr.bf16.mxu0 %v1051_v35  ;;  %910 = vmatprep.subr.bf16.mxu1 %v1053_v36 }
  0x6a   : > { %1112 = vmatprep.mubr.msk.bf16.mxu0 %vm781_vm0, %v1387_v10  ;;  %1113 = vmatprep.mubr.msk.bf16.mxu1 %vm781_vm0, %v1387_v10  ;;  %v1068_v10 = vcombine.low %v364_v46, %v368_v47 }
  0x6c   : > { %870 = vmatpush1.bf16.msra.mxu0 %v1050_v40  ;;  %911 = vmatpush1.bf16.msra.mxu1 %v1052_v41 }
  0x6d   : > { %871 = vmatprep.subr.bf16.mxu0 %v1059_v42  ;;  %912 = vmatprep.subr.bf16.mxu1 %v1061_v43 }
  0x70   : > { %872 = vmatpush1.bf16.msra.mxu0 %v1058_v48  ;;  %913 = vmatpush1.bf16.msra.mxu1 %v1060_v49 }
  0x71   : > { %873 = vmatprep.subr.bf16.mxu0 %v1067_v50  ;;  %914 = vmatprep.subr.bf16.mxu1 %v1069_v51 }
  0x74   : > { %874 = vmatpush1.bf16.msra.mxu0 %v1066_v56  ;;  %915 = vmatpush1.bf16.msra.mxu1 %v1068_v10 }
  0x75   : > { %875 = vmatprep.subr.bf16.mxu0 %v1075_v57  ;;  %916 = vmatprep.subr.bf16.mxu1 %v1077_v58 }
  0x78   : > { %876 = vmatpush1.bf16.msra.mxu0 %v1074_v63  ;;  %917 = vmatpush1.bf16.msra.mxu1 %v1076_v0 }
  0x79   : > { %877 = vmatprep.subr.bf16.mxu0 %v1083_v1  ;;  %918 = vmatprep.subr.bf16.mxu1 %v1085_v2 }
  0x7c   : > { %878 = vmatpush1.bf16.msra.mxu0 %v1082_v7  ;;  %919 = vmatpush1.bf16.msra.mxu1 %v1084_v9 }
  0x7d   : > { %879 = vmatprep.subr.bf16.mxu0 %v1091_v11  ;;  %920 = vmatprep.subr.bf16.mxu1 %v1093_v12 }
  0x80   : > { %880 = vmatpush1.bf16.msra.mxu0 %v1090_v17  ;;  %921 = vmatpush1.bf16.msra.mxu1 %v1092_v18 }
  0x81   : > { %881 = vmatprep.subr.bf16.mxu0 %v1099_v19  ;;  %922 = vmatprep.subr.bf16.mxu1 %v1101_v20 }
  0x84   : > { %882 = vmatpush1.bf16.msra.mxu0 %v1098_v25  ;;  %923 = vmatpush1.bf16.msra.mxu1 %v1100_v26 }
  0x85   : > { %883 = vmatprep.subr.bf16.mxu0 %v1107_v27  ;;  %924 = vmatprep.subr.bf16.mxu1 %v1109_v28 }
  0x88   : > { %884 = vmatpush1.bf16.msra.mxu0 %v1106_v29  ;;  %925 = vmatpush1.bf16.msra.mxu1 %v1108_v31 }
  0x8b   : > { %900 = vmatmul.mubr.bf16.vlgmr.msra.gmra.mrb[4].mxu0 %v1439_v30  ;;  %941 = vmatmul.mubr.bf16.vlgmr.msra.gmra.mrb[4].mxu1 %v1439_v30 }
  0xbb   : > { %v413_v32 = vpop.permute.xlu0 %412 }
 0x13a   : > { %v819_v33 = vpop.f32.mrb[0].mxu0  ;;  %v860_v34 = vpop.f32.mrb[0].mxu1 }
 0x13b   : > { %v820_v35 = vadd.f32 %v819_v33, %v413_v32  ;;  %v821_v36 = vpop.f32.mrb[1].mxu0  ;;  %v861_v30 = vadd.f32 %v860_v34, %v413_v32  ;;  %v862_v38 = vpop.f32.mrb[1].mxu1 }
 0x13c   : > { %v822_v37 = vadd.f32 %v821_v36, %v413_v32  ;;  %v823_v8 = vpop.f32.mrb[2].mxu0  ;;  %v863_v40 = vadd.f32 %v862_v38, %v413_v32  ;;  %v864_v41 = vpop.f32.mrb[2].mxu1 }
 0x13d   : > { %v949_v39 = vmax.f32 %v820_v35, 0.0  ;;  %v824_v42 = vpop.f32.mrb[3].mxu0  ;;  %v951_v43 = vmax.f32 %v861_v30, 0.0  ;;  %v865_v45 = vpop.f32.mrb[3].mxu1 }
 0x13e   : > { %v950_v44 = vmax.f32 %v822_v37, 0.0  ;;  %v952_v46 = vmax.f32 %v863_v40, 0.0 }
 0x13f   : > { %957 = vst [vmem:[%s1484_s11] sm:$0xff] %v949_v39  ;;  %959 = vst [vmem:[%s1484_s11 + $0x10] sm:$0xff] %v951_v43 }
 0x140   : > { %958 = vst [vmem:[%s1484_s11 + $0x8] sm:$0xff] %v950_v44  ;;  %960 = vst [vmem:[%s1484_s11 + $0x18] sm:$0xff] %v952_v46 }
 0x15e   : > { %v901_v47 = vpop.f32.mrb[4].mxu0  ;;  %v942_v49 = vpop.f32.mrb[4].mxu1 }
 0x15f   : > { %v902_v48 = vadd.f32 %v901_v47, %v413_v32  ;;  %v903_v50 = vpop.f32.mrb[5].mxu0  ;;  %v943_v51 = vadd.f32 %v942_v49, %v413_v32  ;;  %v944_v53 = vpop.f32.mrb[5].mxu1 }
 0x160   : > { %v904_v52 = vadd.f32 %v903_v50, %v413_v32  ;;  %v905_v54 = vpop.f32.mrb[6].mxu0  ;;  %v945_v56 = vadd.f32 %v944_v53, %v413_v32  ;;  %v946_v10 = vpop.f32.mrb[6].mxu1 }
 0x161   : > { %v953_v55 = vmax.f32 %v902_v48, 0.0  ;;  %v906_v57 = vpop.f32.mrb[7].mxu0  ;;  %v955_v58 = vmax.f32 %v943_v51, 0.0  ;;  %v947_v60 = vpop.f32.mrb[7].mxu1 }
 0x162   : > { %v954_v59 = vmax.f32 %v904_v52, 0.0  ;;  %v956_v61 = vmax.f32 %v945_v56, 0.0 }
 0x163   : > { %961 = vst [vmem:[%s1484_s11 + $0x20] sm:$0xff] %v953_v55  ;;  %963 = vst [vmem:[%s1484_s11 + $0x30] sm:$0xff] %v955_v58 }
 0x164   : > { %962 = vst [vmem:[%s1484_s11 + $0x28] sm:$0xff] %v954_v59  ;;  %964 = vst [vmem:[%s1484_s11 + $0x38] sm:$0xff] %v956_v61 }
 0x165 PF: > { %p10_p9 = scmp.ge.s32.totalorder %s1209_s16, 4   ;;  %s1508_s12 = smov %s1165_s13 }
 0x166   : > { %s1509_s13 = smov %s1218_s19  ;;  %s1510_s14 = smov %s1209_s16 }
 0x167   :  { %12 = sbr.rel (!%p10_p9) target bundleno = 2 (0x2), region = 90 }

// kernel: _lambda_.8
= control target key start
LH: loop header
LB: loop body
LE: loop exit
PB: predicated region body
PF: predicated region fallthrough
CT: control target
= control target key end

     0   :  { %s2543_s12 = smov 0   ;;  %s2545_s13 = smov 0   ;;  %s3190_s0 = inlined_call_operand.vmem [shape: bf16[8,72], index: 0, kind: input, shape index: {}]   ;;  %s3191_s1 = inlined_call_operand.vmem [shape: bf16[72,8192], index: 1, kind: input, shape index: {}]   ;;  %s3192_s2 = inlined_call_operand.vmem [shape: f32[8,1], index: 2, kind: input, shape index: {}]   ;;  %s3193_s3 = inlined_call_operand.vmem [shape: f32[8,8192], index: 3, kind: output, shape index: {}]  }
   0x1   :  { %s2547_s14 = smov 0  }
   0x2 LB: > { %s2234_s15 = sadd.s32 4294967295, %s2520_s14   ;;  %s2560_s16 = sadd.s32 1, %s2520_s14   ;;  %s2520_s14 = sphi %s2547_s14, %s3196_s14   ;;  %s2516_s13 = sphi %s2545_s13, %s3195_s13   ;;  %s2512_s12 = sphi %s2543_s12, %s3194_s12  }
   0x3   : > { %s38_s17 = ssub.s32 %s2520_s14, %s2560_s16  ;;  %s41_s18 = sadd.s32 1, %s2516_s13 }
   0x4   : > { %p39_p0 = scmp.eq.s32.totalorder %s38_s17, 0  ;;  %p48_p1 = scmp.ne.s32.totalorder %s2516_s13, %s2512_s12 }
   0x5   : > { %p49_p2 = scmp.eq.s32.totalorder %s2520_s14, 0  ;;  %p2237_p4 = scmp.ge.s32.totalorder %s2520_s14, 2 }
   0x6   : > { %s2569_s19 = scalar_select %p39_p0, %s2516_s13, %s41_s18  }
   0x7   : > { %p50_p3 = por %p49_p2, %p48_p1  ;;  %127 = sbr.rel (%p2237_p4) target bundleno = 91 (0x5b), region = 24 }
   0xe   : > { %130 = sbr.rel (!%p50_p3) target bundleno = 91 (0x5b), region = 28  ;;  %s132_s20 = sand.u32 (%p50_p3), 1, %s2516_s13  }
   0xf   : > { %s2437_s21 = sshll.u32 (%p50_p3), %s2520_s14, 7  ;;  %s2438_s22 = smul.u32 (%p50_p3), 1152, %s132_s20 }
  0x10   : > { %s2577_s25 = scalar_lea.vmem (%p50_p3), %s3191_s1, %s2437_s21 }
  0x11   : > { %v150_v0 = vld [vmem:[%s2577_s25] sm:$0xff] (%p50_p3)  ;;  %v152_v1 = vld [vmem:[%s2577_s25 + $0x8] sm:$0xff] (%p50_p3)  ;;  %v154_v2 = vld [vmem:[%s2577_s25 + $0x10] sm:$0xff] (%p50_p3)  ;;  %s2585_s26 = scalar_lea.vmem (%p50_p3), [#allocation2], %s2438_s22 }
  0x12   : > { %v156_v3 = vld [vmem:[%s2577_s25 + $0x18] sm:$0xff] (%p50_p3)  ;;  %v158_v4 = vld [vmem:[%s2577_s25 + $0x20] sm:$0xff] (%p50_p3)  ;;  %v160_v5 = vld [vmem:[%s2577_s25 + $0x28] sm:$0xff] (%p50_p3)  ;;  %151 = vst [vmem:[%s2585_s26] sm:$0xff] (%p50_p3), %v150_v0 }
  0x13   : > { %153 = vst [vmem:[%s2585_s26 + $0x8] sm:$0xff] (%p50_p3), %v152_v1  ;;  %155 = vst [vmem:[%s2585_s26 + $0x10] sm:$0xff] (%p50_p3), %v154_v2  ;;  %v162_v6 = vld [vmem:[%s2577_s25 + $0x30] sm:$0xff] (%p50_p3)  ;;  %v164_v7 = vld [vmem:[%s2577_s25 + $0x38] sm:$0xff] (%p50_p3) }
  0x14   : > { %157 = vst [vmem:[%s2585_s26 + $0x18] sm:$0xff] (%p50_p3), %v156_v3  ;;  %159 = vst [vmem:[%s2585_s26 + $0x20] sm:$0xff] (%p50_p3), %v158_v4  ;;  %v166_v8 = vld [vmem:[%s2577_s25 + $0x40] sm:$0xff] (%p50_p3)  ;;  %v168_v9 = vld [vmem:[%s2577_s25 + $0x48] sm:$0xff] (%p50_p3) }
  0x15   : > { %161 = vst [vmem:[%s2585_s26 + $0x28] sm:$0xff] %v160_v5  ;;  %163 = vst [vmem:[%s2585_s26 + $0x30] sm:$0xff] %v162_v6  ;;  %v170_v10 = vld [vmem:[%s2577_s25 + $0x50] sm:$0xff]  ;;  %v172_v11 = vld [vmem:[%s2577_s25 + $0x58] sm:$0xff] }
  0x16   : > { %165 = vst [vmem:[%s2585_s26 + $0x38] sm:$0xff] %v164_v7  ;;  %167 = vst [vmem:[%s2585_s26 + $0x40] sm:$0xff] %v166_v8  ;;  %v174_v12 = vld [vmem:[%s2577_s25 + $0x60] sm:$0xff]  ;;  %v176_v13 = vld [vmem:[%s2577_s25 + $0x68] sm:$0xff] }
  0x17   : > { %169 = vst [vmem:[%s2585_s26 + $0x48] sm:$0xff] %v168_v9  ;;  %171 = vst [vmem:[%s2585_s26 + $0x50] sm:$0xff] %v170_v10  ;;  %v178_v14 = vld [vmem:[%s2577_s25 + $0x70] sm:$0xff]  ;;  %v180_v15 = vld [vmem:[%s2577_s25 + $0x78] sm:$0xff] }
  0x18   : > { %173 = vst [vmem:[%s2585_s26 + $0x58] sm:$0xff] %v172_v11  ;;  %175 = vst [vmem:[%s2585_s26 + $0x60] sm:$0xff] %v174_v12  ;;  %v182_v16 = vld [vmem:[%s2577_s25 + $0x100] sm:$0xff]  ;;  %v184_v17 = vld [vmem:[%s2577_s25 + $0x108] sm:$0xff] }
  0x19   : > { %177 = vst [vmem:[%s2585_s26 + $0x68] sm:$0xff] %v176_v13  ;;  %179 = vst [vmem:[%s2585_s26 + $0x70] sm:$0xff] %v178_v14  ;;  %v186_v18 = vld [vmem:[%s2577_s25 + $0x110] sm:$0xff]  ;;  %v188_v19 = vld [vmem:[%s2577_s25 + $0x118] sm:$0xff] }
  0x1a   : > { %181 = vst [vmem:[%s2585_s26 + $0x78] sm:$0xff] %v180_v15  ;;  %183 = vst [vmem:[%s2585_s26 + $0x80] sm:$0xff] %v182_v16  ;;  %v190_v20 = vld [vmem:[%s2577_s25 + $0x120] sm:$0xff]  ;;  %v192_v21 = vld [vmem:[%s2577_s25 + $0x128] sm:$0xff] }
  0x1b   : > { %185 = vst [vmem:[%s2585_s26 + $0x88] sm:$0xff] %v184_v17  ;;  %187 = vst [vmem:[%s2585_s26 + $0x90] sm:$0xff] %v186_v18  ;;  %v194_v22 = vld [vmem:[%s2577_s25 + $0x130] sm:$0xff]  ;;  %v196_v23 = vld [vmem:[%s2577_s25 + $0x138] sm:$0xff] }
  0x1c   : > { %189 = vst [vmem:[%s2585_s26 + $0x98] sm:$0xff] %v188_v19  ;;  %191 = vst [vmem:[%s2585_s26 + $0xa0] sm:$0xff] %v190_v20  ;;  %v198_v24 = vld [vmem:[%s2577_s25 + $0x140] sm:$0xff]  ;;  %v200_v25 = vld [vmem:[%s2577_s25 + $0x148] sm:$0xff] }
  0x1d   : > { %193 = vst [vmem:[%s2585_s26 + $0xa8] sm:$0xff] %v192_v21  ;;  %195 = vst [vmem:[%s2585_s26 + $0xb0] sm:$0xff] %v194_v22  ;;  %v202_v26 = vld [vmem:[%s2577_s25 + $0x150] sm:$0xff]  ;;  %v204_v27 = vld [vmem:[%s2577_s25 + $0x158] sm:$0xff] }
  0x1e   : > { %197 = vst [vmem:[%s2585_s26 + $0xb8] sm:$0xff] %v196_v23  ;;  %199 = vst [vmem:[%s2585_s26 + $0xc0] sm:$0xff] %v198_v24  ;;  %v206_v28 = vld [vmem:[%s2577_s25 + $0x160] sm:$0xff]  ;;  %v208_v29 = vld [vmem:[%s2577_s25 + $0x168] sm:$0xff] }
  0x1f   : > { %201 = vst [vmem:[%s2585_s26 + $0xc8] sm:$0xff] %v200_v25  ;;  %203 = vst [vmem:[%s2585_s26 + $0xd0] sm:$0xff] %v202_v26  ;;  %v210_v30 = vld [vmem:[%s2577_s25 + $0x170] sm:$0xff]  ;;  %v212_v31 = vld [vmem:[%s2577_s25 + $0x178] sm:$0xff] }
  0x20   : > { %205 = vst [vmem:[%s2585_s26 + $0xd8] sm:$0xff] %v204_v27  ;;  %207 = vst [vmem:[%s2585_s26 + $0xe0] sm:$0xff] %v206_v28  ;;  %v214_v32 = vld [vmem:[%s2577_s25 + $0x200] sm:$0xff]  ;;  %v216_v33 = vld [vmem:[%s2577_s25 + $0x208] sm:$0xff] }
  0x21   : > { %209 = vst [vmem:[%s2585_s26 + $0xe8] sm:$0xff] %v208_v29  ;;  %211 = vst [vmem:[%s2585_s26 + $0xf0] sm:$0xff] %v210_v30  ;;  %v218_v34 = vld [vmem:[%s2577_s25 + $0x210] sm:$0xff]  ;;  %v220_v35 = vld [vmem:[%s2577_s25 + $0x218] sm:$0xff] }
  0x22   : > { %213 = vst [vmem:[%s2585_s26 + $0xf8] sm:$0xff] %v212_v31  ;;  %215 = vst [vmem:[%s2585_s26 + $0x100] sm:$0xff] %v214_v32  ;;  %v222_v36 = vld [vmem:[%s2577_s25 + $0x220] sm:$0xff]  ;;  %v224_v37 = vld [vmem:[%s2577_s25 + $0x228] sm:$0xff] }
  0x23   : > { %217 = vst [vmem:[%s2585_s26 + $0x108] sm:$0xff] %v216_v33  ;;  %219 = vst [vmem:[%s2585_s26 + $0x110] sm:$0xff] %v218_v34  ;;  %v226_v38 = vld [vmem:[%s2577_s25 + $0x230] sm:$0xff]  ;;  %v228_v39 = vld [vmem:[%s2577_s25 + $0x238] sm:$0xff] }
  0x24   : > { %221 = vst [vmem:[%s2585_s26 + $0x118] sm:$0xff] %v220_v35  ;;  %223 = vst [vmem:[%s2585_s26 + $0x120] sm:$0xff] %v222_v36  ;;  %v230_v40 = vld [vmem:[%s2577_s25 + $0x240] sm:$0xff]  ;;  %v232_v41 = vld [vmem:[%s2577_s25 + $0x248] sm:$0xff] }
  0x25   : > { %225 = vst [vmem:[%s2585_s26 + $0x128] sm:$0xff] %v224_v37  ;;  %227 = vst [vmem:[%s2585_s26 + $0x130] sm:$0xff] %v226_v38  ;;  %v234_v42 = vld [vmem:[%s2577_s25 + $0x250] sm:$0xff]  ;;  %v236_v43 = vld [vmem:[%s2577_s25 + $0x258] sm:$0xff] }
  0x26   : > { %229 = vst [vmem:[%s2585_s26 + $0x138] sm:$0xff] %v228_v39  ;;  %231 = vst [vmem:[%s2585_s26 + $0x140] sm:$0xff] %v230_v40  ;;  %v238_v44 = vld [vmem:[%s2577_s25 + $0x260] sm:$0xff]  ;;  %v240_v45 = vld [vmem:[%s2577_s25 + $0x268] sm:$0xff] }
  0x27   : > { %233 = vst [vmem:[%s2585_s26 + $0x148] sm:$0xff] %v232_v41  ;;  %235 = vst [vmem:[%s2585_s26 + $0x150] sm:$0xff] %v234_v42  ;;  %v242_v46 = vld [vmem:[%s2577_s25 + $0x270] sm:$0xff]  ;;  %v244_v47 = vld [vmem:[%s2577_s25 + $0x278] sm:$0xff] }
  0x28   : > { %237 = vst [vmem:[%s2585_s26 + $0x158] sm:$0xff] %v236_v43  ;;  %239 = vst [vmem:[%s2585_s26 + $0x160] sm:$0xff] %v238_v44  ;;  %v246_v48 = vld [vmem:[%s2577_s25 + $0x300] sm:$0xff]  ;;  %v248_v49 = vld [vmem:[%s2577_s25 + $0x308] sm:$0xff] }
  0x29   : > { %241 = vst [vmem:[%s2585_s26 + $0x168] sm:$0xff] %v240_v45  ;;  %243 = vst [vmem:[%s2585_s26 + $0x170] sm:$0xff] %v242_v46  ;;  %v250_v50 = vld [vmem:[%s2577_s25 + $0x310] sm:$0xff]  ;;  %v252_v51 = vld [vmem:[%s2577_s25 + $0x318] sm:$0xff] }
  0x2a   : > { %245 = vst [vmem:[%s2585_s26 + $0x178] sm:$0xff] %v244_v47  ;;  %247 = vst [vmem:[%s2585_s26 + $0x180] sm:$0xff] %v246_v48  ;;  %v254_v52 = vld [vmem:[%s2577_s25 + $0x320] sm:$0xff]  ;;  %v256_v53 = vld [vmem:[%s2577_s25 + $0x328] sm:$0xff] }
  0x2b   : > { %249 = vst [vmem:[%s2585_s26 + $0x188] sm:$0xff] %v248_v49  ;;  %251 = vst [vmem:[%s2585_s26 + $0x190] sm:$0xff] %v250_v50  ;;  %v258_v54 = vld [vmem:[%s2577_s25 + $0x330] sm:$0xff]  ;;  %v260_v55 = vld [vmem:[%s2577_s25 + $0x338] sm:$0xff] }
  0x2c   : > { %253 = vst [vmem:[%s2585_s26 + $0x198] sm:$0xff] %v252_v51  ;;  %255 = vst [vmem:[%s2585_s26 + $0x1a0] sm:$0xff] %v254_v52  ;;  %v262_v56 = vld [vmem:[%s2577_s25 + $0x340] sm:$0xff]  ;;  %v264_v57 = vld [vmem:[%s2577_s25 + $0x348] sm:$0xff] }
  0x2d   : > { %257 = vst [vmem:[%s2585_s26 + $0x1a8] sm:$0xff] %v256_v53  ;;  %259 = vst [vmem:[%s2585_s26 + $0x1b0] sm:$0xff] %v258_v54  ;;  %v266_v58 = vld [vmem:[%s2577_s25 + $0x350] sm:$0xff]  ;;  %v268_v59 = vld [vmem:[%s2577_s25 + $0x358] sm:$0xff] }
  0x2e   : > { %261 = vst [vmem:[%s2585_s26 + $0x1b8] sm:$0xff] %v260_v55  ;;  %263 = vst [vmem:[%s2585_s26 + $0x1c0] sm:$0xff] %v262_v56  ;;  %v270_v60 = vld [vmem:[%s2577_s25 + $0x360] sm:$0xff]  ;;  %v272_v61 = vld [vmem:[%s2577_s25 + $0x368] sm:$0xff] }
  0x2f   : > { %265 = vst [vmem:[%s2585_s26 + $0x1c8] sm:$0xff] %v264_v57  ;;  %267 = vst [vmem:[%s2585_s26 + $0x1d0] sm:$0xff] %v266_v58  ;;  %v274_v62 = vld [vmem:[%s2577_s25 + $0x370] sm:$0xff]  ;;  %v276_v63 = vld [vmem:[%s2577_s25 + $0x378] sm:$0xff] }
  0x30   : > { %269 = vst [vmem:[%s2585_s26 + $0x1d8] sm:$0xff] %v268_v59  ;;  %271 = vst [vmem:[%s2585_s26 + $0x1e0] sm:$0xff] %v270_v60  ;;  %v278_v0 = vld [vmem:[%s2577_s25 + $0x400] sm:$0xff]  ;;  %v280_v1 = vld [vmem:[%s2577_s25 + $0x408] sm:$0xff] }
  0x31   : > { %273 = vst [vmem:[%s2585_s26 + $0x1e8] sm:$0xff] %v272_v61  ;;  %275 = vst [vmem:[%s2585_s26 + $0x1f0] sm:$0xff] %v274_v62  ;;  %v282_v2 = vld [vmem:[%s2577_s25 + $0x410] sm:$0xff]  ;;  %v284_v3 = vld [vmem:[%s2577_s25 + $0x418] sm:$0xff] }
  0x32   : > { %277 = vst [vmem:[%s2585_s26 + $0x1f8] sm:$0xff] %v276_v63  ;;  %279 = vst [vmem:[%s2585_s26 + $0x200] sm:$0xff] %v278_v0  ;;  %v286_v4 = vld [vmem:[%s2577_s25 + $0x420] sm:$0xff]  ;;  %v288_v5 = vld [vmem:[%s2577_s25 + $0x428] sm:$0xff] }
  0x33   : > { %281 = vst [vmem:[%s2585_s26 + $0x208] sm:$0xff] %v280_v1  ;;  %283 = vst [vmem:[%s2585_s26 + $0x210] sm:$0xff] %v282_v2  ;;  %v290_v6 = vld [vmem:[%s2577_s25 + $0x430] sm:$0xff]  ;;  %v292_v7 = vld [vmem:[%s2577_s25 + $0x438] sm:$0xff] }
  0x34   : > { %285 = vst [vmem:[%s2585_s26 + $0x218] sm:$0xff] %v284_v3  ;;  %287 = vst [vmem:[%s2585_s26 + $0x220] sm:$0xff] %v286_v4  ;;  %v294_v8 = vld [vmem:[%s2577_s25 + $0x440] sm:$0xff]  ;;  %v296_v9 = vld [vmem:[%s2577_s25 + $0x448] sm:$0xff] }
  0x35   : > { %289 = vst [vmem:[%s2585_s26 + $0x228] sm:$0xff] %v288_v5  ;;  %291 = vst [vmem:[%s2585_s26 + $0x230] sm:$0xff] %v290_v6  ;;  %v298_v10 = vld [vmem:[%s2577_s25 + $0x450] sm:$0xff]  ;;  %v300_v11 = vld [vmem:[%s2577_s25 + $0x458] sm:$0xff] }
  0x36   : > { %293 = vst [vmem:[%s2585_s26 + $0x238] sm:$0xff] %v292_v7  ;;  %295 = vst [vmem:[%s2585_s26 + $0x240] sm:$0xff] %v294_v8  ;;  %v302_v12 = vld [vmem:[%s2577_s25 + $0x460] sm:$0xff]  ;;  %v304_v13 = vld [vmem:[%s2577_s25 + $0x468] sm:$0xff] }
  0x37   : > { %297 = vst [vmem:[%s2585_s26 + $0x248] sm:$0xff] %v296_v9  ;;  %299 = vst [vmem:[%s2585_s26 + $0x250] sm:$0xff] %v298_v10  ;;  %v306_v14 = vld [vmem:[%s2577_s25 + $0x470] sm:$0xff]  ;;  %v308_v15 = vld [vmem:[%s2577_s25 + $0x478] sm:$0xff] }
  0x38   : > { %301 = vst [vmem:[%s2585_s26 + $0x258] sm:$0xff] %v300_v11  ;;  %303 = vst [vmem:[%s2585_s26 + $0x260] sm:$0xff] %v302_v12  ;;  %v310_v16 = vld [vmem:[%s2577_s25 + $0x500] sm:$0xff]  ;;  %v312_v17 = vld [vmem:[%s2577_s25 + $0x508] sm:$0xff] }
  0x39   : > { %305 = vst [vmem:[%s2585_s26 + $0x268] sm:$0xff] %v304_v13  ;;  %307 = vst [vmem:[%s2585_s26 + $0x270] sm:$0xff] %v306_v14  ;;  %v314_v18 = vld [vmem:[%s2577_s25 + $0x510] sm:$0xff]  ;;  %v316_v19 = vld [vmem:[%s2577_s25 + $0x518] sm:$0xff] }
  0x3a   : > { %309 = vst [vmem:[%s2585_s26 + $0x278] sm:$0xff] %v308_v15  ;;  %311 = vst [vmem:[%s2585_s26 + $0x280] sm:$0xff] %v310_v16  ;;  %v318_v20 = vld [vmem:[%s2577_s25 + $0x520] sm:$0xff]  ;;  %v320_v21 = vld [vmem:[%s2577_s25 + $0x528] sm:$0xff] }
  0x3b   : > { %313 = vst [vmem:[%s2585_s26 + $0x288] sm:$0xff] %v312_v17  ;;  %315 = vst [vmem:[%s2585_s26 + $0x290] sm:$0xff] %v314_v18  ;;  %v322_v22 = vld [vmem:[%s2577_s25 + $0x530] sm:$0xff]  ;;  %v324_v23 = vld [vmem:[%s2577_s25 + $0x538] sm:$0xff] }
  0x3c   : > { %317 = vst [vmem:[%s2585_s26 + $0x298] sm:$0xff] %v316_v19  ;;  %319 = vst [vmem:[%s2585_s26 + $0x2a0] sm:$0xff] %v318_v20  ;;  %v326_v24 = vld [vmem:[%s2577_s25 + $0x540] sm:$0xff]  ;;  %v328_v25 = vld [vmem:[%s2577_s25 + $0x548] sm:$0xff] }
  0x3d   : > { %321 = vst [vmem:[%s2585_s26 + $0x2a8] sm:$0xff] %v320_v21  ;;  %323 = vst [vmem:[%s2585_s26 + $0x2b0] sm:$0xff] %v322_v22  ;;  %v330_v26 = vld [vmem:[%s2577_s25 + $0x550] sm:$0xff]  ;;  %v332_v27 = vld [vmem:[%s2577_s25 + $0x558] sm:$0xff] }
  0x3e   : > { %325 = vst [vmem:[%s2585_s26 + $0x2b8] sm:$0xff] %v324_v23  ;;  %327 = vst [vmem:[%s2585_s26 + $0x2c0] sm:$0xff] %v326_v24  ;;  %v334_v28 = vld [vmem:[%s2577_s25 + $0x560] sm:$0xff]  ;;  %v336_v29 = vld [vmem:[%s2577_s25 + $0x568] sm:$0xff] }
  0x3f   : > { %329 = vst [vmem:[%s2585_s26 + $0x2c8] sm:$0xff] %v328_v25  ;;  %331 = vst [vmem:[%s2585_s26 + $0x2d0] sm:$0xff] %v330_v26  ;;  %v338_v30 = vld [vmem:[%s2577_s25 + $0x570] sm:$0xff]  ;;  %v340_v31 = vld [vmem:[%s2577_s25 + $0x578] sm:$0xff] }
  0x40   : > { %333 = vst [vmem:[%s2585_s26 + $0x2d8] sm:$0xff] %v332_v27  ;;  %335 = vst [vmem:[%s2585_s26 + $0x2e0] sm:$0xff] %v334_v28  ;;  %v342_v32 = vld [vmem:[%s2577_s25 + $0x600] sm:$0xff]  ;;  %v344_v33 = vld [vmem:[%s2577_s25 + $0x608] sm:$0xff] }
  0x41   : > { %337 = vst [vmem:[%s2585_s26 + $0x2e8] sm:$0xff] %v336_v29  ;;  %339 = vst [vmem:[%s2585_s26 + $0x2f0] sm:$0xff] %v338_v30  ;;  %v346_v34 = vld [vmem:[%s2577_s25 + $0x610] sm:$0xff]  ;;  %v348_v35 = vld [vmem:[%s2577_s25 + $0x618] sm:$0xff] }
  0x42   : > { %341 = vst [vmem:[%s2585_s26 + $0x2f8] sm:$0xff] %v340_v31  ;;  %343 = vst [vmem:[%s2585_s26 + $0x300] sm:$0xff] %v342_v32  ;;  %v350_v36 = vld [vmem:[%s2577_s25 + $0x620] sm:$0xff]  ;;  %v352_v37 = vld [vmem:[%s2577_s25 + $0x628] sm:$0xff] }
  0x43   : > { %345 = vst [vmem:[%s2585_s26 + $0x308] sm:$0xff] %v344_v33  ;;  %347 = vst [vmem:[%s2585_s26 + $0x310] sm:$0xff] %v346_v34  ;;  %v354_v38 = vld [vmem:[%s2577_s25 + $0x630] sm:$0xff]  ;;  %v356_v39 = vld [vmem:[%s2577_s25 + $0x638] sm:$0xff] }
  0x44   : > { %349 = vst [vmem:[%s2585_s26 + $0x318] sm:$0xff] %v348_v35  ;;  %351 = vst [vmem:[%s2585_s26 + $0x320] sm:$0xff] %v350_v36  ;;  %v358_v40 = vld [vmem:[%s2577_s25 + $0x640] sm:$0xff]  ;;  %v360_v41 = vld [vmem:[%s2577_s25 + $0x648] sm:$0xff] }
  0x45   : > { %353 = vst [vmem:[%s2585_s26 + $0x328] sm:$0xff] %v352_v37  ;;  %355 = vst [vmem:[%s2585_s26 + $0x330] sm:$0xff] %v354_v38  ;;  %v362_v42 = vld [vmem:[%s2577_s25 + $0x650] sm:$0xff]  ;;  %v364_v43 = vld [vmem:[%s2577_s25 + $0x658] sm:$0xff] }
  0x46   : > { %357 = vst [vmem:[%s2585_s26 + $0x338] sm:$0xff] %v356_v39  ;;  %359 = vst [vmem:[%s2585_s26 + $0x340] sm:$0xff] %v358_v40  ;;  %v366_v44 = vld [vmem:[%s2577_s25 + $0x660] sm:$0xff]  ;;  %v368_v45 = vld [vmem:[%s2577_s25 + $0x668] sm:$0xff] }
  0x47   : > { %361 = vst [vmem:[%s2585_s26 + $0x348] sm:$0xff] %v360_v41  ;;  %363 = vst [vmem:[%s2585_s26 + $0x350] sm:$0xff] %v362_v42  ;;  %v370_v46 = vld [vmem:[%s2577_s25 + $0x670] sm:$0xff]  ;;  %v372_v47 = vld [vmem:[%s2577_s25 + $0x678] sm:$0xff] }
  0x48   : > { %365 = vst [vmem:[%s2585_s26 + $0x358] sm:$0xff] %v364_v43  ;;  %367 = vst [vmem:[%s2585_s26 + $0x360] sm:$0xff] %v366_v44  ;;  %v374_v48 = vld [vmem:[%s2577_s25 + $0x700] sm:$0xff]  ;;  %v376_v49 = vld [vmem:[%s2577_s25 + $0x708] sm:$0xff] }
  0x49   : > { %369 = vst [vmem:[%s2585_s26 + $0x368] sm:$0xff] %v368_v45  ;;  %371 = vst [vmem:[%s2585_s26 + $0x370] sm:$0xff] %v370_v46  ;;  %v378_v50 = vld [vmem:[%s2577_s25 + $0x710] sm:$0xff]  ;;  %v380_v51 = vld [vmem:[%s2577_s25 + $0x718] sm:$0xff] }
  0x4a   : > { %373 = vst [vmem:[%s2585_s26 + $0x378] sm:$0xff] %v372_v47  ;;  %375 = vst [vmem:[%s2585_s26 + $0x380] sm:$0xff] %v374_v48  ;;  %v382_v52 = vld [vmem:[%s2577_s25 + $0x720] sm:$0xff]  ;;  %v384_v53 = vld [vmem:[%s2577_s25 + $0x728] sm:$0xff] }
  0x4b   : > { %377 = vst [vmem:[%s2585_s26 + $0x388] sm:$0xff] %v376_v49  ;;  %379 = vst [vmem:[%s2585_s26 + $0x390] sm:$0xff] %v378_v50  ;;  %v386_v54 = vld [vmem:[%s2577_s25 + $0x730] sm:$0xff]  ;;  %v388_v55 = vld [vmem:[%s2577_s25 + $0x738] sm:$0xff] }
  0x4c   : > { %381 = vst [vmem:[%s2585_s26 + $0x398] sm:$0xff] %v380_v51  ;;  %383 = vst [vmem:[%s2585_s26 + $0x3a0] sm:$0xff] %v382_v52  ;;  %v390_v56 = vld [vmem:[%s2577_s25 + $0x740] sm:$0xff]  ;;  %v392_v57 = vld [vmem:[%s2577_s25 + $0x748] sm:$0xff] }
  0x4d   : > { %385 = vst [vmem:[%s2585_s26 + $0x3a8] sm:$0xff] %v384_v53  ;;  %387 = vst [vmem:[%s2585_s26 + $0x3b0] sm:$0xff] %v386_v54  ;;  %v394_v58 = vld [vmem:[%s2577_s25 + $0x750] sm:$0xff]  ;;  %v396_v59 = vld [vmem:[%s2577_s25 + $0x758] sm:$0xff] }
  0x4e   : > { %389 = vst [vmem:[%s2585_s26 + $0x3b8] sm:$0xff] %v388_v55  ;;  %391 = vst [vmem:[%s2585_s26 + $0x3c0] sm:$0xff] %v390_v56  ;;  %v398_v60 = vld [vmem:[%s2577_s25 + $0x760] sm:$0xff]  ;;  %v400_v61 = vld [vmem:[%s2577_s25 + $0x768] sm:$0xff] }
  0x4f   : > { %393 = vst [vmem:[%s2585_s26 + $0x3c8] sm:$0xff] %v392_v57  ;;  %395 = vst [vmem:[%s2585_s26 + $0x3d0] sm:$0xff] %v394_v58  ;;  %v402_v62 = vld [vmem:[%s2577_s25 + $0x770] sm:$0xff]  ;;  %v404_v63 = vld [vmem:[%s2577_s25 + $0x778] sm:$0xff] }
  0x50   : > { %397 = vst [vmem:[%s2585_s26 + $0x3d8] sm:$0xff] %v396_v59  ;;  %399 = vst [vmem:[%s2585_s26 + $0x3e0] sm:$0xff] %v398_v60  ;;  %v406_v0 = vld [vmem:[%s2577_s25 + $0x800] sm:$0xff]  ;;  %v408_v1 = vld [vmem:[%s2577_s25 + $0x808] sm:$0xff] }
  0x51   : > { %401 = vst [vmem:[%s2585_s26 + $0x3e8] sm:$0xff] %v400_v61  ;;  %403 = vst [vmem:[%s2585_s26 + $0x3f0] sm:$0xff] %v402_v62  ;;  %v410_v2 = vld [vmem:[%s2577_s25 + $0x810] sm:$0xff]  ;;  %v412_v3 = vld [vmem:[%s2577_s25 + $0x818] sm:$0xff] }
  0x52   : > { %405 = vst [vmem:[%s2585_s26 + $0x3f8] sm:$0xff] %v404_v63  ;;  %407 = vst [vmem:[%s2585_s26 + $0x400] sm:$0xff] %v406_v0  ;;  %v414_v4 = vld [vmem:[%s2577_s25 + $0x820] sm:$0xff]  ;;  %v416_v5 = vld [vmem:[%s2577_s25 + $0x828] sm:$0xff] }
  0x53   : > { %409 = vst [vmem:[%s2585_s26 + $0x408] sm:$0xff] %v408_v1  ;;  %411 = vst [vmem:[%s2585_s26 + $0x410] sm:$0xff] %v410_v2  ;;  %v418_v6 = vld [vmem:[%s2577_s25 + $0x830] sm:$0xff]  ;;  %v420_v7 = vld [vmem:[%s2577_s25 + $0x838] sm:$0xff] }
  0x54   : > { %413 = vst [vmem:[%s2585_s26 + $0x418] sm:$0xff] %v412_v3  ;;  %415 = vst [vmem:[%s2585_s26 + $0x420] sm:$0xff] %v414_v4  ;;  %v422_v8 = vld [vmem:[%s2577_s25 + $0x840] sm:$0xff]  ;;  %v424_v9 = vld [vmem:[%s2577_s25 + $0x848] sm:$0xff] }
  0x55   : > { %417 = vst [vmem:[%s2585_s26 + $0x428] sm:$0xff] %v416_v5  ;;  %419 = vst [vmem:[%s2585_s26 + $0x430] sm:$0xff] %v418_v6  ;;  %v426_v10 = vld [vmem:[%s2577_s25 + $0x850] sm:$0xff]  ;;  %v428_v11 = vld [vmem:[%s2577_s25 + $0x858] sm:$0xff] }
  0x56   : > { %421 = vst [vmem:[%s2585_s26 + $0x438] sm:$0xff] %v420_v7  ;;  %423 = vst [vmem:[%s2585_s26 + $0x440] sm:$0xff] %v422_v8  ;;  %v430_v12 = vld [vmem:[%s2577_s25 + $0x860] sm:$0xff]  ;;  %v432_v13 = vld [vmem:[%s2577_s25 + $0x868] sm:$0xff] }
  0x57   : > { %425 = vst [vmem:[%s2585_s26 + $0x448] sm:$0xff] %v424_v9  ;;  %427 = vst [vmem:[%s2585_s26 + $0x450] sm:$0xff] %v426_v10  ;;  %v434_v14 = vld [vmem:[%s2577_s25 + $0x870] sm:$0xff]  ;;  %v436_v15 = vld [vmem:[%s2577_s25 + $0x878] sm:$0xff] }
  0x58   : > { %429 = vst [vmem:[%s2585_s26 + $0x458] sm:$0xff] %v428_v11  ;;  %431 = vst [vmem:[%s2585_s26 + $0x460] sm:$0xff] %v430_v12 }
  0x59   : > { %433 = vst [vmem:[%s2585_s26 + $0x468] sm:$0xff] %v432_v13  ;;  %435 = vst [vmem:[%s2585_s26 + $0x470] sm:$0xff] %v434_v14 }
  0x5a   : > { %437 = vst [vmem:[%s2585_s26 + $0x478] sm:$0xff] %v436_v15 }
  0x5b PF: > { %p2240_p5 = scmp.ge.s32.totalorder %s2520_s14, 1  ;;  %p442_p6 = scmp.lt.s32.totalorder %s2520_s14, 3 }
  0x5d   : > { %p443_p7 = pnand %p2240_p5, %p442_p6 }
  0x5e   : > { %s449_s27 = sand.u32 (!%p443_p7), 1, %s2512_s12   ;;  %v2522_v16 = vmov (!%p443_p7), 0   ;;  %v625_v17 = vld [vmem:[%s3192_s2] sm:$0xff] (!%p443_p7)  ;;  %vm1355_vm0 = vcmask (!%p443_p7), 1043456   ;;  %vm1351_vm1 = vcmask (!%p443_p7), 588800   ;;  %s2241_s7 = sshll.u32 (!%p443_p7), %s2234_s15, 5 }
  0x5f   : > { %446 = sbr.rel (%p443_p7) target bundleno = 481 (0x1e1), region = 51  ;;  %1484 = vmatprep.mubr.bf16.mxu0 (!%p443_p7), %v2522_v16  ;;  %1525 = vmatprep.mubr.bf16.mxu1 (!%p443_p7), %v2522_v16  ;;  %v2913_v4 = vld [vmem:[%s3190_s0] sm:$0xf] (!%p443_p7)  ;;  %p474_p8 = scmp.lt.s32.totalorder (!%p443_p7), %s2241_s7, 63 }
  0x60   : > { %s2439_s28 = smul.u32 (!%p443_p7), 1152, %s449_s27  ;;  %2465 = vset.pattern.permute.xlu0 (!%p443_p7), %v2522_v16 }
  0x61   : > { %628 = vperm.xlu0 (!%p443_p7), %2465, %v625_v17  }
  0x62   : > { %s2878_s4 = scalar_lea.vmem (!%p443_p7), [#allocation2], %s2439_s28 }
  0x63   : > { %v481_v18 = vld [vmem:[%s2878_s4] sm:$0xff] (!%p443_p7)  ;;  %v482_v20 = vld [vmem:[%s2878_s4 + $0x8] sm:$0xff] (!%p443_p7)  ;;  %v483_v56 = vld [vmem:[%s2878_s4 + $0x10] sm:$0xff] (!%p443_p7) }
  0x64   : > { %v497_v19 = vld [vmem:[%s2878_s4 + $0x80] sm:$0xff] (!%p443_p7)  ;;  %v498_v22 = vld [vmem:[%s2878_s4 + $0x88] sm:$0xff] (!%p443_p7)  ;;  %v499_v57 = vld [vmem:[%s2878_s4 + $0x90] sm:$0xff] (!%p443_p7) }
  0x65   : > { %v2244_v21 = vcombine.high (!%p443_p7), %v481_v18, %v497_v19  ;;  %v2243_v23 = vcombine.low (!%p443_p7), %v481_v18, %v497_v19  ;;  %v513_v24 = vld [vmem:[%s2878_s4 + $0x100] sm:$0xff] (!%p443_p7)  ;;  %v2246_v26 = vcombine.high (!%p443_p7), %v482_v20, %v498_v22  ;;  %v2245_v27 = vcombine.low (!%p443_p7), %v482_v20, %v498_v22  ;;  %v514_v29 = vld [vmem:[%s2878_s4 + $0x108] sm:$0xff] (!%p443_p7)  ;;  %v484_v58 = vld [vmem:[%s2878_s4 + $0x18] sm:$0xff] (!%p443_p7) }
  0x66   : > { %v529_v25 = vld [vmem:[%s2878_s4 + $0x180] sm:$0xff]  ;;  %v530_v30 = vld [vmem:[%s2878_s4 + $0x188] sm:$0xff]  ;;  %v500_v59 = vld [vmem:[%s2878_s4 + $0x98] sm:$0xff]  ;;  %v2248_v61 = vcombine.high %v483_v56, %v499_v57  ;;  %v2247_v5 = vcombine.low %v483_v56, %v499_v57  ;;  %s3198_s7 = smov (!%p474_p8, %s2241_s7), 63 }
  0x67   : > { %v2276_v28 = vcombine.high %v513_v24, %v529_v25  ;;  %v545_v31 = vld [vmem:[%s2878_s4 + $0x200] sm:$0xff]  ;;  %1452 = vmatprep.subr.bf16.mxu0 %v2244_v21  ;;  %v2278_v32 = vcombine.high %v514_v29, %v530_v30  ;;  %v546_v34 = vld [vmem:[%s2878_s4 + $0x208] sm:$0xff]  ;;  %1493 = vmatprep.subr.bf16.mxu1 %v2246_v26  ;;  %v2275_v36 = vcombine.low %v513_v24, %v529_v25  ;;  %v515_v0 = vld [vmem:[%s2878_s4 + $0x110] sm:$0xff]  ;;  %s2242_s8 = sshll.u32 %s3198_s7, 3 }
  0x68   : > { %v561_v33 = vld [vmem:[%s2878_s4 + $0x280] sm:$0xff]  ;;  %v562_v35 = vld [vmem:[%s2878_s4 + $0x288] sm:$0xff]  ;;  %1453 = vmatpush1.bf16.msra.mxu0 %v2243_v23  ;;  %1494 = vmatpush1.bf16.msra.mxu1 %v2245_v27  ;;  %v2277_v37 = vcombine.low %v514_v29, %v530_v30  ;;  %v2250_v63 = vcombine.high %v484_v58, %v500_v59  ;;  %v531_v1 = vld [vmem:[%s2878_s4 + $0x190] sm:$0xff]  ;;  %v2249_v6 = vcombine.low %v484_v58, %v500_v59  ;;  %s3115_s11 = scalar_lea.vmem %s3193_s3, %s2242_s8 }
  0x69   : > { %1454 = vmatprep.subr.bf16.mxu0 %v2276_v28  ;;  %v2308_v38 = vcombine.high %v545_v31, %v561_v33  ;;  %1495 = vmatprep.subr.bf16.mxu1 %v2278_v32  ;;  %v2310_v39 = vcombine.high %v546_v34, %v562_v35  ;;  %v577_v40 = vld [vmem:[%s2878_s4 + $0x300] sm:$0xff]  ;;  %v578_v42 = vld [vmem:[%s2878_s4 + $0x308] sm:$0xff]  ;;  %v2307_v44 = vcombine.low %v545_v31, %v561_v33  ;;  %v516_v2 = vld [vmem:[%s2878_s4 + $0x118] sm:$0xff] }
  0x6a   : > { %v593_v41 = vld [vmem:[%s2878_s4 + $0x380] sm:$0xff]  ;;  %v594_v43 = vld [vmem:[%s2878_s4 + $0x388] sm:$0xff]  ;;  %v2309_v45 = vcombine.low %v546_v34, %v562_v35  ;;  %v532_v3 = vld [vmem:[%s2878_s4 + $0x198] sm:$0xff]  ;;  %v2280_v7 = vcombine.high %v515_v0, %v531_v1  ;;  %v2279_v13 = vcombine.low %v515_v0, %v531_v1 }
  0x6b   : > { %v2340_v46 = vcombine.high %v577_v40, %v593_v41  ;;  %v2342_v47 = vcombine.high %v578_v42, %v594_v43  ;;  %v609_v48 = vld [vmem:[%s2878_s4 + $0x400] sm:$0xff]  ;;  %v610_v49 = vld [vmem:[%s2878_s4 + $0x408] sm:$0xff]  ;;  %v2339_v50 = vcombine.low %v577_v40, %v593_v41  ;;  %v2341_v51 = vcombine.low %v578_v42, %v594_v43  ;;  %v547_v9 = vld [vmem:[%s2878_s4 + $0x210] sm:$0xff] }
  0x6c   : > { %1455 = vmatpush1.bf16.msra.mxu0 %v2275_v36  ;;  %1496 = vmatpush1.bf16.msra.mxu1 %v2277_v37  ;;  %v2372_v52 = vcombine.high %v609_v48, %v609_v48  ;;  %v2371_v53 = vcombine.low %v609_v48, %v609_v48  ;;  %v2374_v54 = vcombine.high %v610_v49, %v610_v49  ;;  %v563_v10 = vld [vmem:[%s2878_s4 + $0x290] sm:$0xff]  ;;  %v548_v11 = vld [vmem:[%s2878_s4 + $0x218] sm:$0xff]  ;;  %v485_v34 = vld [vmem:[%s2878_s4 + $0x20] sm:$0xff] }
  0x6d   : > { %1456 = vmatprep.subr.bf16.mxu0 %v2308_v38  ;;  %1497 = vmatprep.subr.bf16.mxu1 %v2310_v39  ;;  %v2373_v55 = vcombine.low %v610_v49, %v610_v49  ;;  %v2282_v8 = vcombine.high %v516_v2, %v532_v3  ;;  %v564_v12 = vld [vmem:[%s2878_s4 + $0x298] sm:$0xff]  ;;  %v2281_v14 = vcombine.low %v516_v2, %v532_v3  ;;  %v579_v18 = vld [vmem:[%s2878_s4 + $0x310] sm:$0xff]  ;;  %v501_v35 = vld [vmem:[%s2878_s4 + $0xa0] sm:$0xff] }
  0x6e   : > { %v1357_v60 = vsel %vm1355_vm0, %v2371_v53, 0  ;;  %v2312_v15 = vcombine.high %v547_v9, %v563_v10  ;;  %v2314_v17 = vcombine.high %v548_v11, %v564_v12  ;;  %v595_v19 = vld [vmem:[%s2878_s4 + $0x390] sm:$0xff]  ;;  %v580_v20 = vld [vmem:[%s2878_s4 + $0x318] sm:$0xff]  ;;  %v2311_v22 = vcombine.low %v547_v9, %v563_v10  ;;  %v486_v36 = vld [vmem:[%s2878_s4 + $0x28] sm:$0xff] }
  0x6f   : > { %v1363_v62 = vsel %vm1355_vm0, %v2373_v55, 0  ;;  %v596_v21 = vld [vmem:[%s2878_s4 + $0x398] sm:$0xff]  ;;  %v2313_v23 = vcombine.low %v548_v11, %v564_v12  ;;  %v2344_v24 = vcombine.high %v579_v18, %v595_v19  ;;  %v611_v26 = vld [vmem:[%s2878_s4 + $0x410] sm:$0xff]  ;;  %v2343_v28 = vcombine.low %v579_v18, %v595_v19  ;;  %v502_v37 = vld [vmem:[%s2878_s4 + $0xa8] sm:$0xff] }
  0x70   : > { %1457 = vmatpush1.bf16.msra.mxu0 %v2307_v44  ;;  %1498 = vmatpush1.bf16.msra.mxu1 %v2309_v45  ;;  %v2346_v25 = vcombine.high %v580_v20, %v596_v21  ;;  %v612_v27 = vld [vmem:[%s2878_s4 + $0x418] sm:$0xff]  ;;  %v2345_v29 = vcombine.low %v580_v20, %v596_v21  ;;  %v2376_v30 = vcombine.high %v611_v26, %v611_v26  ;;  %v517_v42 = vld [vmem:[%s2878_s4 + $0x120] sm:$0xff]  ;;  %v518_v44 = vld [vmem:[%s2878_s4 + $0x128] sm:$0xff] }
  0x71   : > { %1458 = vmatprep.subr.bf16.mxu0 %v2340_v46  ;;  %1499 = vmatprep.subr.bf16.mxu1 %v2342_v47  ;;  %v2375_v31 = vcombine.low %v611_v26, %v611_v26  ;;  %v2378_v32 = vcombine.high %v612_v27, %v612_v27  ;;  %v2377_v33 = vcombine.low %v612_v27, %v612_v27  ;;  %v533_v43 = vld [vmem:[%s2878_s4 + $0x1a0] sm:$0xff]  ;;  %v534_v45 = vld [vmem:[%s2878_s4 + $0x1a8] sm:$0xff]  ;;  %v487_v11 = vld [vmem:[%s2878_s4 + $0x30] sm:$0xff] }
  0x72   : > { %v2252_v39 = vcombine.high %v485_v34, %v501_v35  ;;  %v2254_v41 = vcombine.high %v486_v36, %v502_v37  ;;  %v2251_v46 = vcombine.low %v485_v34, %v501_v35  ;;  %v2253_v47 = vcombine.low %v486_v36, %v502_v37  ;;  %v566_v53 = vld [vmem:[%s2878_s4 + $0x2a8] sm:$0xff]  ;;  %v581_v58 = vld [vmem:[%s2878_s4 + $0x320] sm:$0xff]  ;;  %v503_v12 = vld [vmem:[%s2878_s4 + $0xb0] sm:$0xff] }
  0x73   : > { %v1369_v38 = vsel %vm1355_vm0, %v2375_v31, 0  ;;  %v1375_v40 = vsel %vm1355_vm0, %v2377_v33, 0  ;;  %v2284_v48 = vcombine.high %v517_v42, %v533_v43  ;;  %v2286_v49 = vcombine.high %v518_v44, %v534_v45  ;;  %v597_v59 = vld [vmem:[%s2878_s4 + $0x3a0] sm:$0xff]  ;;  %v614_v3 = vld [vmem:[%s2878_s4 + $0x428] sm:$0xff]  ;;  %v519_v20 = vld [vmem:[%s2878_s4 + $0x130] sm:$0xff] }
  0x74   : > { %1459 = vmatpush1.bf16.msra.mxu0 %v2339_v50  ;;  %1500 = vmatpush1.bf16.msra.mxu1 %v2341_v51  ;;  %v549_v50 = vld [vmem:[%s2878_s4 + $0x220] sm:$0xff]  ;;  %v2285_v55 = vcombine.low %v518_v44, %v534_v45  ;;  %v2348_v0 = vcombine.high %v581_v58, %v597_v59  ;;  %v2382_v9 = vcombine.high %v614_v3, %v614_v3  ;;  %v535_v21 = vld [vmem:[%s2878_s4 + $0x1b0] sm:$0xff]  ;;  %v568_v31 = vld [vmem:[%s2878_s4 + $0x2b8] sm:$0xff] }
  0x75   : > { %2403 = vmatprep.subr.msk.bf16.mxu0 %vm1355_vm0, %v2372_v52  ;;  %2405 = vmatprep.subr.msk.bf16.mxu1 %vm1355_vm0, %v2374_v54  ;;  %v565_v51 = vld [vmem:[%s2878_s4 + $0x2a0] sm:$0xff]  ;;  %v550_v52 = vld [vmem:[%s2878_s4 + $0x228] sm:$0xff]  ;;  %v2283_v54 = vcombine.low %v517_v42, %v533_v43  ;;  %v2381_v10 = vcombine.low %v614_v3, %v614_v3  ;;  %v2288_v26 = vcombine.high %v519_v20, %v535_v21  ;;  %v583_v36 = vld [vmem:[%s2878_s4 + $0x330] sm:$0xff] }
  0x76   : > { %v2316_v56 = vcombine.high %v549_v50, %v565_v51  ;;  %v2318_v57 = vcombine.high %v550_v52, %v566_v53  ;;  %v613_v2 = vld [vmem:[%s2878_s4 + $0x420] sm:$0xff]  ;;  %v599_v37 = vld [vmem:[%s2878_s4 + $0x3b0] sm:$0xff]  ;;  %v616_v45 = vld [vmem:[%s2878_s4 + $0x438] sm:$0xff] }
  0x77   : > { %v1387_v18 = vsel %vm1355_vm0, %v2381_v10, 0  ;;  %v2352_v42 = vcombine.high %v583_v36, %v599_v37  ;;  %v615_v44 = vld [vmem:[%s2878_s4 + $0x430] sm:$0xff] }
  0x78   : > { %1461 = vmatpush1.bf16.msra.mxu0 %v1357_v60  ;;  %1502 = vmatpush1.bf16.msra.mxu1 %v1363_v62  ;;  %v582_v60 = vld [vmem:[%s2878_s4 + $0x328] sm:$0xff]  ;;  %v2315_v62 = vcombine.low %v549_v50, %v565_v51  ;;  %v2386_v50 = vcombine.high %v616_v45, %v616_v45  ;;  %v2385_v51 = vcombine.low %v616_v45, %v616_v45 }
  0x79   : > { %1534 = vmatprep.subr.bf16.mxu0 %v2248_v61  ;;  %1575 = vmatprep.subr.bf16.mxu1 %v2250_v63  ;;  %v598_v61 = vld [vmem:[%s2878_s4 + $0x3a8] sm:$0xff]  ;;  %v2317_v63 = vcombine.low %v550_v52, %v566_v53  ;;  %v489_v52 = vld [vmem:[%s2878_s4 + $0x40] sm:$0xff] }
  0x7a   : > { %v2350_v1 = vcombine.high %v582_v60, %v598_v61  ;;  %v505_v53 = vld [vmem:[%s2878_s4 + $0xc0] sm:$0xff] }
  0x7b   : > { %2404 = vmatmul.mubr.msk.bf16.vlgmr.msra.gmra.mrb[0].mxu0 %vm1351_vm1, %v2913_v4  ;;  %2406 = vmatmul.mubr.msk.bf16.vlgmr.msra.gmra.mrb[0].mxu1 %vm1351_vm1, %v2913_v4 }
  0x7c   : > { %1535 = vmatpush1.bf16.msra.mxu0 %v2247_v5  ;;  %1576 = vmatpush1.bf16.msra.mxu1 %v2249_v6  ;;  %v2347_v5 = vcombine.low %v581_v58, %v597_v59  ;;  %v2349_v6 = vcombine.low %v582_v60, %v598_v61  ;;  %v1399_v58 = vsel %vm1355_vm0, %v2385_v51, 0  ;;  %v521_v60 = vld [vmem:[%s2878_s4 + $0x140] sm:$0xff] }
  0x7d   : > { %1536 = vmatprep.subr.bf16.mxu0 %v2280_v7  ;;  %1577 = vmatprep.subr.bf16.mxu1 %v2282_v8  ;;  %v2380_v7 = vcombine.high %v613_v2, %v613_v2  ;;  %v2379_v8 = vcombine.low %v613_v2, %v613_v2  ;;  %v537_v61 = vld [vmem:[%s2878_s4 + $0x1c0] sm:$0xff] }
  0x7e   : > { %1566 = vmatprep.mubr.bf16.mxu0 %v2522_v16  ;;  %1607 = vmatprep.mubr.bf16.mxu1 %v2522_v16  ;;  %v2292_v2 = vcombine.high %v521_v60, %v537_v61 }
  0x80   : > { %1537 = vmatpush1.bf16.msra.mxu0 %v2279_v13  ;;  %1578 = vmatpush1.bf16.msra.mxu1 %v2281_v14  ;;  %v488_v13 = vld [vmem:[%s2878_s4 + $0x38] sm:$0xff] }
  0x81   : > { %1538 = vmatprep.subr.bf16.mxu0 %v2312_v15  ;;  %1579 = vmatprep.subr.bf16.mxu1 %v2314_v17  ;;  %v504_v14 = vld [vmem:[%s2878_s4 + $0xb8] sm:$0xff]  ;;  %v1381_v15 = vsel %vm1355_vm0, %v2379_v8, 0  ;;  %v2256_v17 = vcombine.high %v487_v11, %v503_v12  ;;  %v570_v8 = vld [vmem:[%s2878_s4 + $0x2c8] sm:$0xff] }
  0x82   : > { %v2258_v19 = vcombine.high %v488_v13, %v504_v14 }
  0x84   : > { %1539 = vmatpush1.bf16.msra.mxu0 %v2311_v22  ;;  %1580 = vmatpush1.bf16.msra.mxu1 %v2313_v23  ;;  %v520_v22 = vld [vmem:[%s2878_s4 + $0x138] sm:$0xff] }
  0x85   : > { %1540 = vmatprep.subr.bf16.mxu0 %v2344_v24  ;;  %1581 = vmatprep.subr.bf16.mxu1 %v2346_v25  ;;  %v536_v23 = vld [vmem:[%s2878_s4 + $0x1b8] sm:$0xff]  ;;  %v2255_v24 = vcombine.low %v487_v11, %v503_v12  ;;  %v2257_v25 = vcombine.low %v488_v13, %v504_v14  ;;  %v585_v13 = vld [vmem:[%s2878_s4 + $0x340] sm:$0xff] }
  0x86   : > { %v2290_v27 = vcombine.high %v520_v22, %v536_v23  ;;  %v2289_v33 = vcombine.low %v520_v22, %v536_v23  ;;  %v601_v14 = vld [vmem:[%s2878_s4 + $0x3c0] sm:$0xff]  ;;  %v618_v23 = vld [vmem:[%s2878_s4 + $0x448] sm:$0xff] }
  0x87   : > { %v617_v22 = vld [vmem:[%s2878_s4 + $0x440] sm:$0xff] }
  0x88   : > { %1541 = vmatpush1.bf16.msra.mxu0 %v2343_v28  ;;  %1582 = vmatpush1.bf16.msra.mxu1 %v2345_v29  ;;  %v551_v28 = vld [vmem:[%s2878_s4 + $0x230] sm:$0xff] }
  0x89   : > { %2407 = vmatprep.subr.msk.bf16.mxu0 %vm1355_vm0, %v2376_v30  ;;  %2409 = vmatprep.subr.msk.bf16.mxu1 %vm1355_vm0, %v2378_v32  ;;  %v567_v29 = vld [vmem:[%s2878_s4 + $0x2b0] sm:$0xff]  ;;  %v552_v30 = vld [vmem:[%s2878_s4 + $0x238] sm:$0xff]  ;;  %v2287_v32 = vcombine.low %v519_v20, %v535_v21  ;;  %v2356_v20 = vcombine.high %v585_v13, %v601_v14 }
  0x8a   : > { %v2320_v34 = vcombine.high %v551_v28, %v567_v29  ;;  %v2322_v35 = vcombine.high %v552_v30, %v568_v31 }
  0x8c   : > { %1543 = vmatpush1.bf16.msra.mxu0 %v1369_v38  ;;  %1584 = vmatpush1.bf16.msra.mxu1 %v1375_v40  ;;  %v584_v38 = vld [vmem:[%s2878_s4 + $0x338] sm:$0xff]  ;;  %v2319_v40 = vcombine.low %v551_v28, %v567_v29  ;;  %v2390_v28 = vcombine.high %v618_v23, %v618_v23  ;;  %v2389_v29 = vcombine.low %v618_v23, %v618_v23 }
  0x8d   : > { %1616 = vmatprep.subr.bf16.mxu0 %v2252_v39  ;;  %1657 = vmatprep.subr.bf16.mxu1 %v2254_v41  ;;  %v600_v39 = vld [vmem:[%s2878_s4 + $0x3b8] sm:$0xff]  ;;  %v2321_v41 = vcombine.low %v552_v30, %v568_v31  ;;  %v491_v30 = vld [vmem:[%s2878_s4 + $0x50] sm:$0xff] }
  0x8e   : > { %v2354_v43 = vcombine.high %v584_v38, %v600_v39  ;;  %v507_v31 = vld [vmem:[%s2878_s4 + $0xd0] sm:$0xff] }
  0x8f   : > { %2408 = vmatmul.mubr.msk.bf16.vlgmr.msra.gmra.mrb[4].mxu0 %vm1351_vm1, %v2913_v4  ;;  %2410 = vmatmul.mubr.msk.bf16.vlgmr.msra.gmra.mrb[4].mxu1 %vm1351_vm1, %v2913_v4 }
  0x90   : > { %1617 = vmatpush1.bf16.msra.mxu0 %v2251_v46  ;;  %1658 = vmatpush1.bf16.msra.mxu1 %v2253_v47  ;;  %v2351_v46 = vcombine.low %v583_v36, %v599_v37  ;;  %v2353_v47 = vcombine.low %v584_v38, %v600_v39  ;;  %v1411_v36 = vsel %vm1355_vm0, %v2389_v29, 0  ;;  %v523_v38 = vld [vmem:[%s2878_s4 + $0x150] sm:$0xff] }
  0x91   : > { %1618 = vmatprep.subr.bf16.mxu0 %v2284_v48  ;;  %1659 = vmatprep.subr.bf16.mxu1 %v2286_v49  ;;  %v2384_v48 = vcombine.high %v615_v44, %v615_v44  ;;  %v2383_v49 = vcombine.low %v615_v44, %v615_v44  ;;  %v539_v39 = vld [vmem:[%s2878_s4 + $0x1d0] sm:$0xff] }
  0x92   : > { %1648 = vmatprep.mubr.bf16.mxu0 %v2522_v16  ;;  %1689 = vmatprep.mubr.bf16.mxu1 %v2522_v16  ;;  %v2296_v44 = vcombine.high %v523_v38, %v539_v39 }
  0x94   : > { %1619 = vmatpush1.bf16.msra.mxu0 %v2283_v54  ;;  %1660 = vmatpush1.bf16.msra.mxu1 %v2285_v55  ;;  %v490_v54 = vld [vmem:[%s2878_s4 + $0x48] sm:$0xff] }
  0x95   : > { %1620 = vmatprep.subr.bf16.mxu0 %v2316_v56  ;;  %1661 = vmatprep.subr.bf16.mxu1 %v2318_v57  ;;  %v506_v55 = vld [vmem:[%s2878_s4 + $0xc8] sm:$0xff]  ;;  %v1393_v56 = vsel %vm1355_vm0, %v2383_v49, 0  ;;  %v2260_v57 = vcombine.high %v489_v52, %v505_v53  ;;  %v572_v49 = vld [vmem:[%s2878_s4 + $0x2d8] sm:$0xff] }
  0x96   : > { %v2262_v59 = vcombine.high %v490_v54, %v506_v55 }
  0x98   : > { %1621 = vmatpush1.bf16.msra.mxu0 %v2315_v62  ;;  %1662 = vmatpush1.bf16.msra.mxu1 %v2317_v63  ;;  %v522_v62 = vld [vmem:[%s2878_s4 + $0x148] sm:$0xff] }
  0x99   : > { %1622 = vmatprep.subr.bf16.mxu0 %v2348_v0  ;;  %1663 = vmatprep.subr.bf16.mxu1 %v2350_v1  ;;  %v538_v63 = vld [vmem:[%s2878_s4 + $0x1c8] sm:$0xff]  ;;  %v2259_v0 = vcombine.low %v489_v52, %v505_v53  ;;  %v2261_v1 = vcombine.low %v490_v54, %v506_v55  ;;  %v587_v54 = vld [vmem:[%s2878_s4 + $0x350] sm:$0xff] }
  0x9a   : > { %v2294_v3 = vcombine.high %v522_v62, %v538_v63  ;;  %v2293_v10 = vcombine.low %v522_v62, %v538_v63  ;;  %v603_v55 = vld [vmem:[%s2878_s4 + $0x3d0] sm:$0xff]  ;;  %v620_v63 = vld [vmem:[%s2878_s4 + $0x458] sm:$0xff] }
  0x9b   : > { %v619_v62 = vld [vmem:[%s2878_s4 + $0x450] sm:$0xff] }
  0x9c   : > { %1623 = vmatpush1.bf16.msra.mxu0 %v2347_v5  ;;  %1664 = vmatpush1.bf16.msra.mxu1 %v2349_v6  ;;  %v553_v5 = vld [vmem:[%s2878_s4 + $0x240] sm:$0xff] }
  0x9d   : > { %2411 = vmatprep.subr.msk.bf16.mxu0 %vm1355_vm0, %v2380_v7  ;;  %2413 = vmatprep.subr.msk.bf16.mxu1 %vm1355_vm0, %v2382_v9  ;;  %v569_v6 = vld [vmem:[%s2878_s4 + $0x2c0] sm:$0xff]  ;;  %v554_v7 = vld [vmem:[%s2878_s4 + $0x248] sm:$0xff]  ;;  %v2291_v9 = vcombine.low %v521_v60, %v537_v61  ;;  %v2360_v60 = vcombine.high %v587_v54, %v603_v55 }
  0x9e   : > { %v2324_v11 = vcombine.high %v553_v5, %v569_v6  ;;  %v2326_v12 = vcombine.high %v554_v7, %v570_v8 }
  0xa0   : > { %1625 = vmatpush1.bf16.msra.mxu0 %v1381_v15  ;;  %1666 = vmatpush1.bf16.msra.mxu1 %v1387_v18  ;;  %v586_v15 = vld [vmem:[%s2878_s4 + $0x348] sm:$0xff]  ;;  %v2323_v18 = vcombine.low %v553_v5, %v569_v6  ;;  %v2394_v5 = vcombine.high %v620_v63, %v620_v63  ;;  %v2393_v6 = vcombine.low %v620_v63, %v620_v63 }
  0xa1   : > { %1698 = vmatprep.subr.bf16.mxu0 %v2256_v17  ;;  %1739 = vmatprep.subr.bf16.mxu1 %v2258_v19  ;;  %v602_v17 = vld [vmem:[%s2878_s4 + $0x3c8] sm:$0xff]  ;;  %v2325_v19 = vcombine.low %v554_v7, %v570_v8  ;;  %v493_v7 = vld [vmem:[%s2878_s4 + $0x60] sm:$0xff] }
  0xa2   : > { %v2358_v21 = vcombine.high %v586_v15, %v602_v17  ;;  %v509_v8 = vld [vmem:[%s2878_s4 + $0xe0] sm:$0xff] }
  0xa3   : > { %2412 = vmatmul.mubr.msk.bf16.vlgmr.msra.gmra.mrb[8].mxu0 %vm1351_vm1, %v2913_v4  ;;  %2414 = vmatmul.mubr.msk.bf16.vlgmr.msra.gmra.mrb[8].mxu1 %vm1351_vm1, %v2913_v4 }
  0xa4   : > { %1699 = vmatpush1.bf16.msra.mxu0 %v2255_v24  ;;  %1740 = vmatpush1.bf16.msra.mxu1 %v2257_v25  ;;  %v2355_v24 = vcombine.low %v585_v13, %v601_v14  ;;  %v2357_v25 = vcombine.low %v586_v15, %v602_v17  ;;  %v1423_v13 = vsel %vm1355_vm0, %v2393_v6, 0  ;;  %v525_v15 = vld [vmem:[%s2878_s4 + $0x160] sm:$0xff] }
  0xa5   : > { %1700 = vmatprep.subr.bf16.mxu0 %v2288_v26  ;;  %1741 = vmatprep.subr.bf16.mxu1 %v2290_v27  ;;  %v2388_v26 = vcombine.high %v617_v22, %v617_v22  ;;  %v2387_v27 = vcombine.low %v617_v22, %v617_v22  ;;  %v541_v17 = vld [vmem:[%s2878_s4 + $0x1e0] sm:$0xff] }
  0xa6   : > { %1730 = vmatprep.mubr.bf16.mxu0 %v2522_v16  ;;  %1771 = vmatprep.mubr.bf16.mxu1 %v2522_v16  ;;  %v2300_v22 = vcombine.high %v525_v15, %v541_v17 }
  0xa8   : > { %1701 = vmatpush1.bf16.msra.mxu0 %v2287_v32  ;;  %1742 = vmatpush1.bf16.msra.mxu1 %v2289_v33  ;;  %v492_v32 = vld [vmem:[%s2878_s4 + $0x58] sm:$0xff] }
  0xa9   : > { %1702 = vmatprep.subr.bf16.mxu0 %v2320_v34  ;;  %1743 = vmatprep.subr.bf16.mxu1 %v2322_v35  ;;  %v508_v33 = vld [vmem:[%s2878_s4 + $0xd8] sm:$0xff]  ;;  %v1405_v34 = vsel %vm1355_vm0, %v2387_v27, 0  ;;  %v2264_v35 = vcombine.high %v491_v30, %v507_v31  ;;  %v574_v27 = vld [vmem:[%s2878_s4 + $0x2e8] sm:$0xff] }
  0xaa   : > { %v2266_v37 = vcombine.high %v492_v32, %v508_v33 }
  0xac   : > { %1703 = vmatpush1.bf16.msra.mxu0 %v2319_v40  ;;  %1744 = vmatpush1.bf16.msra.mxu1 %v2321_v41  ;;  %v524_v40 = vld [vmem:[%s2878_s4 + $0x158] sm:$0xff] }
  0xad   : > { %1704 = vmatprep.subr.bf16.mxu0 %v2352_v42  ;;  %1745 = vmatprep.subr.bf16.mxu1 %v2354_v43  ;;  %v540_v41 = vld [vmem:[%s2878_s4 + $0x1d8] sm:$0xff]  ;;  %v2263_v42 = vcombine.low %v491_v30, %v507_v31  ;;  %v2265_v43 = vcombine.low %v492_v32, %v508_v33  ;;  %v589_v32 = vld [vmem:[%s2878_s4 + $0x360] sm:$0xff] }
  0xae   : > { %v2298_v45 = vcombine.high %v524_v40, %v540_v41  ;;  %v2297_v51 = vcombine.low %v524_v40, %v540_v41  ;;  %v605_v33 = vld [vmem:[%s2878_s4 + $0x3e0] sm:$0xff]  ;;  %v622_v41 = vld [vmem:[%s2878_s4 + $0x468] sm:$0xff] }
  0xaf   : > { %v621_v40 = vld [vmem:[%s2878_s4 + $0x460] sm:$0xff] }
  0xb0   : > { %1705 = vmatpush1.bf16.msra.mxu0 %v2351_v46  ;;  %1746 = vmatpush1.bf16.msra.mxu1 %v2353_v47  ;;  %v555_v46 = vld [vmem:[%s2878_s4 + $0x250] sm:$0xff] }
  0xb1   : > { %2415 = vmatprep.subr.msk.bf16.mxu0 %vm1355_vm0, %v2384_v48  ;;  %2417 = vmatprep.subr.msk.bf16.mxu1 %vm1355_vm0, %v2386_v50  ;;  %v571_v47 = vld [vmem:[%s2878_s4 + $0x2d0] sm:$0xff]  ;;  %v556_v48 = vld [vmem:[%s2878_s4 + $0x258] sm:$0xff]  ;;  %v2295_v50 = vcombine.low %v523_v38, %v539_v39  ;;  %v2364_v38 = vcombine.high %v589_v32, %v605_v33 }
  0xb2   : > { %v2328_v52 = vcombine.high %v555_v46, %v571_v47  ;;  %v2330_v53 = vcombine.high %v556_v48, %v572_v49 }
  0xb4   : > { %1707 = vmatpush1.bf16.msra.mxu0 %v1393_v56  ;;  %1748 = vmatpush1.bf16.msra.mxu1 %v1399_v58  ;;  %v588_v56 = vld [vmem:[%s2878_s4 + $0x358] sm:$0xff]  ;;  %v2327_v58 = vcombine.low %v555_v46, %v571_v47  ;;  %v2398_v46 = vcombine.high %v622_v41, %v622_v41  ;;  %v2397_v47 = vcombine.low %v622_v41, %v622_v41 }
  0xb5   : > { %1780 = vmatprep.subr.bf16.mxu0 %v2260_v57  ;;  %1821 = vmatprep.subr.bf16.mxu1 %v2262_v59  ;;  %v604_v57 = vld [vmem:[%s2878_s4 + $0x3d8] sm:$0xff]  ;;  %v2329_v59 = vcombine.low %v556_v48, %v572_v49  ;;  %v495_v48 = vld [vmem:[%s2878_s4 + $0x70] sm:$0xff] }
  0xb6   : > { %v2362_v61 = vcombine.high %v588_v56, %v604_v57  ;;  %v511_v49 = vld [vmem:[%s2878_s4 + $0xf0] sm:$0xff] }
  0xb7   : > { %2416 = vmatmul.mubr.msk.bf16.vlgmr.msra.gmra.mrb[12].mxu0 %vm1351_vm1, %v2913_v4  ;;  %2418 = vmatmul.mubr.msk.bf16.vlgmr.msra.gmra.mrb[12].mxu1 %vm1351_vm1, %v2913_v4 }
  0xb8   : > { %1781 = vmatpush1.bf16.msra.mxu0 %v2259_v0  ;;  %1822 = vmatpush1.bf16.msra.mxu1 %v2261_v1  ;;  %v2359_v0 = vcombine.low %v587_v54, %v603_v55  ;;  %v2361_v1 = vcombine.low %v588_v56, %v604_v57  ;;  %v1435_v54 = vsel %vm1355_vm0, %v2397_v47, 0  ;;  %v527_v56 = vld [vmem:[%s2878_s4 + $0x170] sm:$0xff] }
  0xb9   : > { %1782 = vmatprep.subr.bf16.mxu0 %v2292_v2  ;;  %1823 = vmatprep.subr.bf16.mxu1 %v2294_v3  ;;  %v2392_v2 = vcombine.high %v619_v62, %v619_v62  ;;  %v2391_v3 = vcombine.low %v619_v62, %v619_v62  ;;  %v543_v57 = vld [vmem:[%s2878_s4 + $0x1f0] sm:$0xff] }
  0xba   : > { %1812 = vmatprep.mubr.bf16.mxu0 %v2522_v16  ;;  %1853 = vmatprep.mubr.bf16.mxu1 %v2522_v16  ;;  %v2304_v62 = vcombine.high %v527_v56, %v543_v57 }
  0xbc   : > { %1783 = vmatpush1.bf16.msra.mxu0 %v2291_v9  ;;  %1824 = vmatpush1.bf16.msra.mxu1 %v2293_v10  ;;  %v494_v9 = vld [vmem:[%s2878_s4 + $0x68] sm:$0xff] }
  0xbd   : > { %1784 = vmatprep.subr.bf16.mxu0 %v2324_v11  ;;  %1825 = vmatprep.subr.bf16.mxu1 %v2326_v12  ;;  %v510_v10 = vld [vmem:[%s2878_s4 + $0xe8] sm:$0xff]  ;;  %v1417_v11 = vsel %vm1355_vm0, %v2391_v3, 0  ;;  %v2268_v12 = vcombine.high %v493_v7, %v509_v8  ;;  %v576_v3 = vld [vmem:[%s2878_s4 + $0x2f8] sm:$0xff] }
  0xbe   : > { %v2270_v14 = vcombine.high %v494_v9, %v510_v10 }
  0xc0   : > { %1785 = vmatpush1.bf16.msra.mxu0 %v2323_v18  ;;  %1826 = vmatpush1.bf16.msra.mxu1 %v2325_v19  ;;  %v526_v18 = vld [vmem:[%s2878_s4 + $0x168] sm:$0xff] }
  0xc1   : > { %1786 = vmatprep.subr.bf16.mxu0 %v2356_v20  ;;  %1827 = vmatprep.subr.bf16.mxu1 %v2358_v21  ;;  %v542_v19 = vld [vmem:[%s2878_s4 + $0x1e8] sm:$0xff]  ;;  %v2267_v20 = vcombine.low %v493_v7, %v509_v8  ;;  %v2269_v21 = vcombine.low %v494_v9, %v510_v10  ;;  %v591_v9 = vld [vmem:[%s2878_s4 + $0x370] sm:$0xff] }
  0xc2   : > { %v2302_v23 = vcombine.high %v526_v18, %v542_v19  ;;  %v2301_v29 = vcombine.low %v526_v18, %v542_v19  ;;  %v607_v10 = vld [vmem:[%s2878_s4 + $0x3f0] sm:$0xff]  ;;  %v624_v19 = vld [vmem:[%s2878_s4 + $0x478] sm:$0xff] }
  0xc3   : > { %v623_v18 = vld [vmem:[%s2878_s4 + $0x470] sm:$0xff] }
  0xc4   : > { %1787 = vmatpush1.bf16.msra.mxu0 %v2355_v24  ;;  %1828 = vmatpush1.bf16.msra.mxu1 %v2357_v25  ;;  %v557_v24 = vld [vmem:[%s2878_s4 + $0x260] sm:$0xff] }
  0xc5   : > { %2419 = vmatprep.subr.msk.bf16.mxu0 %vm1355_vm0, %v2388_v26  ;;  %2421 = vmatprep.subr.msk.bf16.mxu1 %vm1355_vm0, %v2390_v28  ;;  %v573_v25 = vld [vmem:[%s2878_s4 + $0x2e0] sm:$0xff]  ;;  %v558_v26 = vld [vmem:[%s2878_s4 + $0x268] sm:$0xff]  ;;  %v2299_v28 = vcombine.low %v525_v15, %v541_v17  ;;  %v2368_v15 = vcombine.high %v591_v9, %v607_v10 }
  0xc6   : > { %v2332_v30 = vcombine.high %v557_v24, %v573_v25  ;;  %v2334_v31 = vcombine.high %v558_v26, %v574_v27 }
  0xc8   : > { %1789 = vmatpush1.bf16.msra.mxu0 %v1405_v34  ;;  %1830 = vmatpush1.bf16.msra.mxu1 %v1411_v36  ;;  %v590_v34 = vld [vmem:[%s2878_s4 + $0x368] sm:$0xff]  ;;  %v2331_v36 = vcombine.low %v557_v24, %v573_v25  ;;  %v2401_v24 = vcombine.low %v624_v19, %v624_v19 }
  0xc9   : > { %1862 = vmatprep.subr.bf16.mxu0 %v2264_v35  ;;  %1903 = vmatprep.subr.bf16.mxu1 %v2266_v37  ;;  %v606_v35 = vld [vmem:[%s2878_s4 + $0x3e8] sm:$0xff]  ;;  %v2333_v37 = vcombine.low %v558_v26, %v574_v27 }
  0xca   : > { %v2366_v39 = vcombine.high %v590_v34, %v606_v35  ;;  %v1447_v26 = vsel %vm1355_vm0, %v2401_v24, 0 }
  0xcb   : > { %2420 = vmatmul.mubr.msk.bf16.vlgmr.msra.gmra.mrb[16].mxu0 %vm1351_vm1, %v2913_v4  ;;  %2422 = vmatmul.mubr.msk.bf16.vlgmr.msra.gmra.mrb[16].mxu1 %vm1351_vm1, %v2913_v4 }
  0xcc   : > { %1863 = vmatpush1.bf16.msra.mxu0 %v2263_v42  ;;  %1904 = vmatpush1.bf16.msra.mxu1 %v2265_v43  ;;  %v2363_v42 = vcombine.low %v589_v32, %v605_v33  ;;  %v2365_v43 = vcombine.low %v590_v34, %v606_v35 }
  0xcd   : > { %1864 = vmatprep.subr.bf16.mxu0 %v2296_v44  ;;  %1905 = vmatprep.subr.bf16.mxu1 %v2298_v45  ;;  %v2396_v44 = vcombine.high %v621_v40, %v621_v40  ;;  %v2395_v45 = vcombine.low %v621_v40, %v621_v40 }
  0xce   : > { %1894 = vmatprep.mubr.bf16.mxu0 %v2522_v16  ;;  %1935 = vmatprep.mubr.bf16.mxu1 %v2522_v16 }
  0xd0   : > { %1865 = vmatpush1.bf16.msra.mxu0 %v2295_v50  ;;  %1906 = vmatpush1.bf16.msra.mxu1 %v2297_v51  ;;  %v496_v50 = vld [vmem:[%s2878_s4 + $0x78] sm:$0xff] }
  0xd1   : > { %1866 = vmatprep.subr.bf16.mxu0 %v2328_v52  ;;  %1907 = vmatprep.subr.bf16.mxu1 %v2330_v53  ;;  %v512_v51 = vld [vmem:[%s2878_s4 + $0xf8] sm:$0xff]  ;;  %v1429_v52 = vsel %vm1355_vm0, %v2395_v45, 0  ;;  %v2272_v53 = vcombine.high %v495_v48, %v511_v49 }
  0xd2   : > { %v2274_v55 = vcombine.high %v496_v50, %v512_v51 }
  0xd4   : > { %1867 = vmatpush1.bf16.msra.mxu0 %v2327_v58  ;;  %1908 = vmatpush1.bf16.msra.mxu1 %v2329_v59  ;;  %v528_v58 = vld [vmem:[%s2878_s4 + $0x178] sm:$0xff] }
  0xd5   : > { %1868 = vmatprep.subr.bf16.mxu0 %v2360_v60  ;;  %1909 = vmatprep.subr.bf16.mxu1 %v2362_v61  ;;  %v544_v59 = vld [vmem:[%s2878_s4 + $0x1f8] sm:$0xff]  ;;  %v2271_v60 = vcombine.low %v495_v48, %v511_v49  ;;  %v2273_v61 = vcombine.low %v496_v50, %v512_v51 }
  0xd6   : > { %v2306_v63 = vcombine.high %v528_v58, %v544_v59  ;;  %v2305_v6 = vcombine.low %v528_v58, %v544_v59 }
  0xd8   : > { %1869 = vmatpush1.bf16.msra.mxu0 %v2359_v0  ;;  %1910 = vmatpush1.bf16.msra.mxu1 %v2361_v1  ;;  %v559_v0 = vld [vmem:[%s2878_s4 + $0x270] sm:$0xff] }
  0xd9   : > { %2423 = vmatprep.subr.msk.bf16.mxu0 %vm1355_vm0, %v2392_v2  ;;  %2425 = vmatprep.subr.msk.bf16.mxu1 %vm1355_vm0, %v2394_v5  ;;  %v575_v1 = vld [vmem:[%s2878_s4 + $0x2f0] sm:$0xff]  ;;  %v560_v2 = vld [vmem:[%s2878_s4 + $0x278] sm:$0xff]  ;;  %v2303_v5 = vcombine.low %v527_v56, %v543_v57 }
  0xda   : > { %v2336_v7 = vcombine.high %v559_v0, %v575_v1  ;;  %v2338_v8 = vcombine.high %v560_v2, %v576_v3 }
  0xdc   : > { %1871 = vmatpush1.bf16.msra.mxu0 %v1417_v11  ;;  %1912 = vmatpush1.bf16.msra.mxu1 %v1423_v13  ;;  %v592_v11 = vld [vmem:[%s2878_s4 + $0x378] sm:$0xff]  ;;  %v2335_v13 = vcombine.low %v559_v0, %v575_v1 }
  0xdd   : > { %1944 = vmatprep.subr.bf16.mxu0 %v2268_v12  ;;  %1985 = vmatprep.subr.bf16.mxu1 %v2270_v14  ;;  %v608_v12 = vld [vmem:[%s2878_s4 + $0x3f8] sm:$0xff]  ;;  %v2337_v14 = vcombine.low %v560_v2, %v576_v3 }
  0xde   : > { %v2370_v17 = vcombine.high %v592_v11, %v608_v12 }
  0xdf   : > { %2424 = vmatmul.mubr.msk.bf16.vlgmr.msra.gmra.mrb[20].mxu0 %vm1351_vm1, %v2913_v4  ;;  %2426 = vmatmul.mubr.msk.bf16.vlgmr.msra.gmra.mrb[20].mxu1 %vm1351_vm1, %v2913_v4 }
  0xe0   : > { %1945 = vmatpush1.bf16.msra.mxu0 %v2267_v20  ;;  %1986 = vmatpush1.bf16.msra.mxu1 %v2269_v21  ;;  %v2367_v20 = vcombine.low %v591_v9, %v607_v10  ;;  %v2369_v21 = vcombine.low %v592_v11, %v608_v12  ;;  %v3109_v27 = vpop.permute.xlu0 %628 }
  0xe1   : > { %1946 = vmatprep.subr.bf16.mxu0 %v2300_v22  ;;  %1987 = vmatprep.subr.bf16.mxu1 %v2302_v23  ;;  %v2400_v22 = vcombine.high %v623_v18, %v623_v18  ;;  %v2399_v23 = vcombine.low %v623_v18, %v623_v18 }
  0xe2   : > { %1976 = vmatprep.mubr.bf16.mxu0 %v2522_v16  ;;  %2017 = vmatprep.mubr.bf16.mxu1 %v2522_v16 }
  0xe3   : > { %v1441_v25 = vsel %vm1355_vm0, %v2399_v23, 0 }
  0xe4   : > { %1947 = vmatpush1.bf16.msra.mxu0 %v2299_v28  ;;  %1988 = vmatpush1.bf16.msra.mxu1 %v2301_v29 }
  0xe5   : > { %1948 = vmatprep.subr.bf16.mxu0 %v2332_v30  ;;  %1989 = vmatprep.subr.bf16.mxu1 %v2334_v31 }
  0xe8   : > { %1949 = vmatpush1.bf16.msra.mxu0 %v2331_v36  ;;  %1990 = vmatpush1.bf16.msra.mxu1 %v2333_v37 }
  0xe9   : > { %1950 = vmatprep.subr.bf16.mxu0 %v2364_v38  ;;  %1991 = vmatprep.subr.bf16.mxu1 %v2366_v39 }
  0xec   : > { %1951 = vmatpush1.bf16.msra.mxu0 %v2363_v42  ;;  %1992 = vmatpush1.bf16.msra.mxu1 %v2365_v43 }
  0xed   : > { %2427 = vmatprep.subr.msk.bf16.mxu0 %vm1355_vm0, %v2396_v44  ;;  %2429 = vmatprep.subr.msk.bf16.mxu1 %vm1355_vm0, %v2398_v46 }
  0xf0   : > { %1953 = vmatpush1.bf16.msra.mxu0 %v1429_v52  ;;  %1994 = vmatpush1.bf16.msra.mxu1 %v1435_v54 }
  0xf1   : > { %2026 = vmatprep.subr.bf16.mxu0 %v2272_v53  ;;  %2067 = vmatprep.subr.bf16.mxu1 %v2274_v55 }
  0xf3   : > { %2428 = vmatmul.mubr.msk.bf16.vlgmr.msra.gmra.mrb[24].mxu0 %vm1351_vm1, %v2913_v4  ;;  %2430 = vmatmul.mubr.msk.bf16.vlgmr.msra.gmra.mrb[24].mxu1 %vm1351_vm1, %v2913_v4 }
  0xf4   : > { %2027 = vmatpush1.bf16.msra.mxu0 %v2271_v60  ;;  %2068 = vmatpush1.bf16.msra.mxu1 %v2273_v61 }
  0xf5   : > { %2028 = vmatprep.subr.bf16.mxu0 %v2304_v62  ;;  %2069 = vmatprep.subr.bf16.mxu1 %v2306_v63 }
  0xf6   : > { %2058 = vmatprep.mubr.bf16.mxu0 %v2522_v16  ;;  %2099 = vmatprep.mubr.bf16.mxu1 %v2522_v16  ;;  %v2402_v16 = vcombine.high %v624_v19, %v624_v19 }
  0xf8   : > { %2029 = vmatpush1.bf16.msra.mxu0 %v2303_v5  ;;  %2070 = vmatpush1.bf16.msra.mxu1 %v2305_v6 }
  0xf9   : > { %2030 = vmatprep.subr.bf16.mxu0 %v2336_v7  ;;  %2071 = vmatprep.subr.bf16.mxu1 %v2338_v8 }
  0xfc   : > { %2031 = vmatpush1.bf16.msra.mxu0 %v2335_v13  ;;  %2072 = vmatpush1.bf16.msra.mxu1 %v2337_v14 }
  0xfd   : > { %2032 = vmatprep.subr.bf16.mxu0 %v2368_v15  ;;  %2073 = vmatprep.subr.bf16.mxu1 %v2370_v17 }
 0x100   : > { %2033 = vmatpush1.bf16.msra.mxu0 %v2367_v20  ;;  %2074 = vmatpush1.bf16.msra.mxu1 %v2369_v21 }
 0x101   : > { %2431 = vmatprep.subr.msk.bf16.mxu0 %vm1355_vm0, %v2400_v22  ;;  %2433 = vmatprep.subr.msk.bf16.mxu1 %vm1355_vm0, %v2402_v16 }
 0x104   : > { %2035 = vmatpush1.bf16.msra.mxu0 %v1441_v25  ;;  %2076 = vmatpush1.bf16.msra.mxu1 %v1447_v26 }
 0x107   : > { %2432 = vmatmul.mubr.msk.bf16.vlgmr.msra.gmra.mrb[28].mxu0 %vm1351_vm1, %v2913_v4  ;;  %2434 = vmatmul.mubr.msk.bf16.vlgmr.msra.gmra.mrb[28].mxu1 %vm1351_vm1, %v2913_v4 }
 0x14e   : > { %v1486_v28 = vpop.f32.mrb[0].mxu0  ;;  %v1527_v29 = vpop.f32.mrb[0].mxu1 }
 0x14f   : > { %v1487_v30 = vadd.f32 %v1486_v28, %v3109_v27  ;;  %v1488_v31 = vpop.f32.mrb[1].mxu0  ;;  %v1528_v4 = vadd.f32 %v1527_v29, %v3109_v27  ;;  %v1529_v33 = vpop.f32.mrb[1].mxu1 }
 0x150   : > { %v1489_v32 = vadd.f32 %v1488_v31, %v3109_v27  ;;  %v1490_v34 = vpop.f32.mrb[2].mxu0  ;;  %v1530_v36 = vadd.f32 %v1529_v33, %v3109_v27  ;;  %v1531_v37 = vpop.f32.mrb[2].mxu1 }
 0x151   : > { %v2108_v35 = vmax.f32 %v1487_v30, 0.0  ;;  %v1491_v38 = vpop.f32.mrb[3].mxu0  ;;  %v2110_v39 = vmax.f32 %v1528_v4, 0.0  ;;  %v1532_v41 = vpop.f32.mrb[3].mxu1 }
 0x152   : > { %v2109_v40 = vmax.f32 %v1489_v32, 0.0  ;;  %v2111_v42 = vmax.f32 %v1530_v36, 0.0 }
 0x153   : > { %2140 = vst [vmem:[%s3115_s11] sm:$0xff] %v2108_v35  ;;  %2142 = vst [vmem:[%s3115_s11 + $0x10] sm:$0xff] %v2110_v39 }
 0x154   : > { %2141 = vst [vmem:[%s3115_s11 + $0x8] sm:$0xff] %v2109_v40  ;;  %2143 = vst [vmem:[%s3115_s11 + $0x18] sm:$0xff] %v2111_v42 }
 0x162   : > { %v1568_v43 = vpop.f32.mrb[4].mxu0  ;;  %v1609_v45 = vpop.f32.mrb[4].mxu1 }
 0x163   : > { %v1569_v44 = vadd.f32 %v1568_v43, %v3109_v27  ;;  %v1570_v46 = vpop.f32.mrb[5].mxu0  ;;  %v1610_v47 = vadd.f32 %v1609_v45, %v3109_v27  ;;  %v1611_v49 = vpop.f32.mrb[5].mxu1 }
 0x164   : > { %v1571_v48 = vadd.f32 %v1570_v46, %v3109_v27  ;;  %v1572_v50 = vpop.f32.mrb[6].mxu0  ;;  %v1612_v52 = vadd.f32 %v1611_v49, %v3109_v27  ;;  %v1613_v53 = vpop.f32.mrb[6].mxu1 }
 0x165   : > { %v2112_v51 = vmax.f32 %v1569_v44, 0.0  ;;  %v1573_v54 = vpop.f32.mrb[7].mxu0  ;;  %v2114_v55 = vmax.f32 %v1610_v47, 0.0  ;;  %v1614_v57 = vpop.f32.mrb[7].mxu1 }
 0x166   : > { %v2113_v56 = vmax.f32 %v1571_v48, 0.0  ;;  %v2115_v58 = vmax.f32 %v1612_v52, 0.0 }
 0x167   : > { %2144 = vst [vmem:[%s3115_s11 + $0x20] sm:$0xff] %v2112_v51  ;;  %2146 = vst [vmem:[%s3115_s11 + $0x30] sm:$0xff] %v2114_v55 }
 0x168   : > { %2145 = vst [vmem:[%s3115_s11 + $0x28] sm:$0xff] %v2113_v56  ;;  %2147 = vst [vmem:[%s3115_s11 + $0x38] sm:$0xff] %v2115_v58 }
 0x176   : > { %v1650_v59 = vpop.f32.mrb[8].mxu0  ;;  %v1691_v61 = vpop.f32.mrb[8].mxu1 }
 0x177   : > { %v1651_v60 = vadd.f32 %v1650_v59, %v3109_v27  ;;  %v1652_v62 = vpop.f32.mrb[9].mxu0  ;;  %v1692_v63 = vadd.f32 %v1691_v61, %v3109_v27  ;;  %v1693_v1 = vpop.f32.mrb[9].mxu1 }
 0x178   : > { %v1653_v0 = vadd.f32 %v1652_v62, %v3109_v27  ;;  %v1654_v2 = vpop.f32.mrb[10].mxu0  ;;  %v1694_v5 = vadd.f32 %v1693_v1, %v3109_v27  ;;  %v1695_v6 = vpop.f32.mrb[10].mxu1 }
 0x179   : > { %v2116_v3 = vmax.f32 %v1651_v60, 0.0  ;;  %v1655_v7 = vpop.f32.mrb[11].mxu0  ;;  %v2118_v8 = vmax.f32 %v1692_v63, 0.0  ;;  %v1696_v10 = vpop.f32.mrb[11].mxu1 }
 0x17a   : > { %v2117_v9 = vmax.f32 %v1653_v0, 0.0  ;;  %v2119_v11 = vmax.f32 %v1694_v5, 0.0 }
 0x17b   : > { %2148 = vst [vmem:[%s3115_s11 + $0x40] sm:$0xff] %v2116_v3  ;;  %2150 = vst [vmem:[%s3115_s11 + $0x50] sm:$0xff] %v2118_v8 }
 0x17c   : > { %2149 = vst [vmem:[%s3115_s11 + $0x48] sm:$0xff] %v2117_v9  ;;  %2151 = vst [vmem:[%s3115_s11 + $0x58] sm:$0xff] %v2119_v11 }
 0x18a   : > { %v1732_v12 = vpop.f32.mrb[12].mxu0  ;;  %v1773_v14 = vpop.f32.mrb[12].mxu1 }
 0x18b   : > { %v1733_v13 = vadd.f32 %v1732_v12, %v3109_v27  ;;  %v1734_v15 = vpop.f32.mrb[13].mxu0  ;;  %v1774_v17 = vadd.f32 %v1773_v14, %v3109_v27  ;;  %v1775_v19 = vpop.f32.mrb[13].mxu1 }
 0x18c   : > { %v1735_v18 = vadd.f32 %v1734_v15, %v3109_v27  ;;  %v1736_v20 = vpop.f32.mrb[14].mxu0  ;;  %v1776_v22 = vadd.f32 %v1775_v19, %v3109_v27  ;;  %v1777_v23 = vpop.f32.mrb[14].mxu1 }
 0x18d   : > { %v2120_v21 = vmax.f32 %v1733_v13, 0.0  ;;  %v1737_v16 = vpop.f32.mrb[15].mxu0  ;;  %v2122_v24 = vmax.f32 %v1774_v17, 0.0  ;;  %v1778_v26 = vpop.f32.mrb[15].mxu1 }
 0x18e   : > { %v2121_v25 = vmax.f32 %v1735_v18, 0.0  ;;  %v2123_v28 = vmax.f32 %v1776_v22, 0.0 }
 0x18f   : > { %2152 = vst [vmem:[%s3115_s11 + $0x60] sm:$0xff] %v2120_v21  ;;  %2154 = vst [vmem:[%s3115_s11 + $0x70] sm:$0xff] %v2122_v24 }
 0x190   : > { %2153 = vst [vmem:[%s3115_s11 + $0x68] sm:$0xff] %v2121_v25  ;;  %2155 = vst [vmem:[%s3115_s11 + $0x78] sm:$0xff] %v2123_v28 }
 0x19e   : > { %v1814_v29 = vpop.f32.mrb[16].mxu0  ;;  %v1855_v31 = vpop.f32.mrb[16].mxu1 }
 0x19f   : > { %v1815_v30 = vadd.f32 %v1814_v29, %v3109_v27  ;;  %v1816_v4 = vpop.f32.mrb[17].mxu0  ;;  %v1856_v32 = vadd.f32 %v1855_v31, %v3109_v27  ;;  %v1857_v34 = vpop.f32.mrb[17].mxu1 }
 0x1a0   : > { %v1817_v33 = vadd.f32 %v1816_v4, %v3109_v27  ;;  %v1818_v35 = vpop.f32.mrb[18].mxu0  ;;  %v1858_v37 = vadd.f32 %v1857_v34, %v3109_v27  ;;  %v1859_v38 = vpop.f32.mrb[18].mxu1 }
 0x1a1   : > { %v2124_v36 = vmax.f32 %v1815_v30, 0.0  ;;  %v1819_v39 = vpop.f32.mrb[19].mxu0  ;;  %v2126_v40 = vmax.f32 %v1856_v32, 0.0  ;;  %v1860_v42 = vpop.f32.mrb[19].mxu1 }
 0x1a2   : > { %v2125_v41 = vmax.f32 %v1817_v33, 0.0  ;;  %v2127_v43 = vmax.f32 %v1858_v37, 0.0 }
 0x1a3   : > { %2156 = vst [vmem:[%s3115_s11 + $0x80] sm:$0xff] %v2124_v36  ;;  %2158 = vst [vmem:[%s3115_s11 + $0x90] sm:$0xff] %v2126_v40 }
 0x1a4   : > { %2157 = vst [vmem:[%s3115_s11 + $0x88] sm:$0xff] %v2125_v41  ;;  %2159 = vst [vmem:[%s3115_s11 + $0x98] sm:$0xff] %v2127_v43 }
 0x1b2   : > { %v1896_v44 = vpop.f32.mrb[20].mxu0  ;;  %v1937_v46 = vpop.f32.mrb[20].mxu1 }
 0x1b3   : > { %v1897_v45 = vadd.f32 %v1896_v44, %v3109_v27  ;;  %v1898_v47 = vpop.f32.mrb[21].mxu0  ;;  %v1938_v48 = vadd.f32 %v1937_v46, %v3109_v27  ;;  %v1939_v50 = vpop.f32.mrb[21].mxu1 }
 0x1b4   : > { %v1899_v49 = vadd.f32 %v1898_v47, %v3109_v27  ;;  %v1900_v51 = vpop.f32.mrb[22].mxu0  ;;  %v1940_v53 = vadd.f32 %v1939_v50, %v3109_v27  ;;  %v1941_v54 = vpop.f32.mrb[22].mxu1 }
 0x1b5   : > { %v2128_v52 = vmax.f32 %v1897_v45, 0.0  ;;  %v1901_v55 = vpop.f32.mrb[23].mxu0  ;;  %v2130_v56 = vmax.f32 %v1938_v48, 0.0  ;;  %v1942_v58 = vpop.f32.mrb[23].mxu1 }
 0x1b6   : > { %v2129_v57 = vmax.f32 %v1899_v49, 0.0  ;;  %v2131_v59 = vmax.f32 %v1940_v53, 0.0 }
 0x1b7   : > { %2160 = vst [vmem:[%s3115_s11 + $0xa0] sm:$0xff] %v2128_v52  ;;  %2162 = vst [vmem:[%s3115_s11 + $0xb0] sm:$0xff] %v2130_v56 }
 0x1b8   : > { %2161 = vst [vmem:[%s3115_s11 + $0xa8] sm:$0xff] %v2129_v57  ;;  %2163 = vst [vmem:[%s3115_s11 + $0xb8] sm:$0xff] %v2131_v59 }
 0x1c6   : > { %v1978_v60 = vpop.f32.mrb[24].mxu0  ;;  %v2019_v62 = vpop.f32.mrb[24].mxu1 }
 0x1c7   : > { %v1979_v61 = vadd.f32 %v1978_v60, %v3109_v27  ;;  %v1980_v63 = vpop.f32.mrb[25].mxu0  ;;  %v2020_v0 = vadd.f32 %v2019_v62, %v3109_v27  ;;  %v2021_v2 = vpop.f32.mrb[25].mxu1 }
 0x1c8   : > { %v1981_v1 = vadd.f32 %v1980_v63, %v3109_v27  ;;  %v1982_v3 = vpop.f32.mrb[26].mxu0  ;;  %v2022_v6 = vadd.f32 %v2021_v2, %v3109_v27  ;;  %v2023_v7 = vpop.f32.mrb[26].mxu1 }
 0x1c9   : > { %v2132_v5 = vmax.f32 %v1979_v61, 0.0  ;;  %v1983_v8 = vpop.f32.mrb[27].mxu0  ;;  %v2134_v9 = vmax.f32 %v2020_v0, 0.0  ;;  %v2024_v11 = vpop.f32.mrb[27].mxu1 }
 0x1ca   : > { %v2133_v10 = vmax.f32 %v1981_v1, 0.0  ;;  %v2135_v12 = vmax.f32 %v2022_v6, 0.0 }
 0x1cb   : > { %2164 = vst [vmem:[%s3115_s11 + $0xc0] sm:$0xff] %v2132_v5  ;;  %2166 = vst [vmem:[%s3115_s11 + $0xd0] sm:$0xff] %v2134_v9 }
 0x1cc   : > { %2165 = vst [vmem:[%s3115_s11 + $0xc8] sm:$0xff] %v2133_v10  ;;  %2167 = vst [vmem:[%s3115_s11 + $0xd8] sm:$0xff] %v2135_v12 }
 0x1da   : > { %v2060_v13 = vpop.f32.mrb[28].mxu0  ;;  %v2101_v15 = vpop.f32.mrb[28].mxu1 }
 0x1db   : > { %v2061_v14 = vadd.f32 %v2060_v13, %v3109_v27  ;;  %v2062_v17 = vpop.f32.mrb[29].mxu0  ;;  %v2102_v18 = vadd.f32 %v2101_v15, %v3109_v27  ;;  %v2103_v20 = vpop.f32.mrb[29].mxu1 }
 0x1dc   : > { %v2063_v19 = vadd.f32 %v2062_v17, %v3109_v27  ;;  %v2064_v21 = vpop.f32.mrb[30].mxu0  ;;  %v2104_v23 = vadd.f32 %v2103_v20, %v3109_v27  ;;  %v2105_v16 = vpop.f32.mrb[30].mxu1 }
 0x1dd   : > { %v2136_v22 = vmax.f32 %v2061_v14, 0.0  ;;  %v2065_v24 = vpop.f32.mrb[31].mxu0  ;;  %v2138_v25 = vmax.f32 %v2102_v18, 0.0  ;;  %v2106_v28 = vpop.f32.mrb[31].mxu1 }
 0x1de   : > { %v2137_v26 = vmax.f32 %v2063_v19, 0.0  ;;  %v2139_v29 = vmax.f32 %v2104_v23, 0.0 }
 0x1df   : > { %2168 = vst [vmem:[%s3115_s11 + $0xe0] sm:$0xff] %v2136_v22  ;;  %2170 = vst [vmem:[%s3115_s11 + $0xf0] sm:$0xff] %v2138_v25 }
 0x1e0   : > { %2169 = vst [vmem:[%s3115_s11 + $0xe8] sm:$0xff] %v2137_v26  ;;  %2171 = vst [vmem:[%s3115_s11 + $0xf8] sm:$0xff] %v2139_v29 }
 0x1e1 PF: > { %p10_p9 = scmp.ge.s32.totalorder %s2560_s16, 4   ;;  %s3194_s12 = smov %s2516_s13 }
 0x1e2   : > { %s3195_s13 = smov %s2569_s19  ;;  %s3196_s14 = smov %s2560_s16 }
 0x1e3   :  { %12 = sbr.rel (!%p10_p9) target bundleno = 2 (0x2), region = 90 }

// kernel: _lambda_.9
= control target key start
LH: loop header
LB: loop body
LE: loop exit
PB: predicated region body
PF: predicated region fallthrough
CT: control target
= control target key end

     0   :  { %s2655_s12 = smov 0   ;;  %s2657_s13 = smov 0   ;;  %s3286_s0 = inlined_call_operand.vmem [shape: bf16[3,72], index: 0, kind: input, shape index: {}]   ;;  %s3287_s1 = inlined_call_operand.vmem [shape: bf16[72,8192], index: 1, kind: input, shape index: {}]   ;;  %s3288_s2 = inlined_call_operand.vmem [shape: f32[3,1], index: 2, kind: input, shape index: {}]   ;;  %s3289_s3 = inlined_call_operand.vmem [shape: f32[3,8192], index: 3, kind: output, shape index: {}]  }
   0x1   :  { %s2659_s14 = smov 0  }
   0x2 LB: > { %s2282_s15 = sadd.s32 4294967295, %s2632_s14   ;;  %s2672_s16 = sadd.s32 1, %s2632_s14   ;;  %s2632_s14 = sphi %s2659_s14, %s3292_s14   ;;  %s2628_s13 = sphi %s2657_s13, %s3291_s13   ;;  %s2624_s12 = sphi %s2655_s12, %s3290_s12  }
   0x3   : > { %s38_s17 = ssub.s32 %s2632_s14, %s2672_s16  ;;  %s41_s18 = sadd.s32 1, %s2628_s13 }
   0x4   : > { %p39_p0 = scmp.eq.s32.totalorder %s38_s17, 0  ;;  %p48_p1 = scmp.ne.s32.totalorder %s2628_s13, %s2624_s12 }
   0x5   : > { %p49_p2 = scmp.eq.s32.totalorder %s2632_s14, 0  ;;  %p2285_p4 = scmp.ge.s32.totalorder %s2632_s14, 2 }
   0x6   : > { %s2681_s19 = scalar_select %p39_p0, %s2628_s13, %s41_s18  }
   0x7   : > { %p50_p3 = por %p49_p2, %p48_p1  ;;  %127 = sbr.rel (%p2285_p4) target bundleno = 91 (0x5b), region = 24 }
   0xe   : > { %130 = sbr.rel (!%p50_p3) target bundleno = 91 (0x5b), region = 28  ;;  %s132_s20 = sand.u32 (%p50_p3), 1, %s2628_s13  }
   0xf   : > { %s2485_s21 = sshll.u32 (%p50_p3), %s2632_s14, 7  ;;  %s2486_s22 = smul.u32 (%p50_p3), 1152, %s132_s20 }
  0x10   : > { %s2689_s25 = scalar_lea.vmem (%p50_p3), %s3287_s1, %s2485_s21 }
  0x11   : > { %v150_v0 = vld [vmem:[%s2689_s25] sm:$0xff] (%p50_p3)  ;;  %v152_v1 = vld [vmem:[%s2689_s25 + $0x8] sm:$0xff] (%p50_p3)  ;;  %v154_v2 = vld [vmem:[%s2689_s25 + $0x10] sm:$0xff] (%p50_p3)  ;;  %s2697_s26 = scalar_lea.vmem (%p50_p3), [#allocation2], %s2486_s22 }
  0x12   : > { %v156_v3 = vld [vmem:[%s2689_s25 + $0x18] sm:$0xff] (%p50_p3)  ;;  %v158_v4 = vld [vmem:[%s2689_s25 + $0x20] sm:$0xff] (%p50_p3)  ;;  %v160_v5 = vld [vmem:[%s2689_s25 + $0x28] sm:$0xff] (%p50_p3)  ;;  %151 = vst [vmem:[%s2697_s26] sm:$0xff] (%p50_p3), %v150_v0 }
  0x13   : > { %153 = vst [vmem:[%s2697_s26 + $0x8] sm:$0xff] (%p50_p3), %v152_v1  ;;  %155 = vst [vmem:[%s2697_s26 + $0x10] sm:$0xff] (%p50_p3), %v154_v2  ;;  %v162_v6 = vld [vmem:[%s2689_s25 + $0x30] sm:$0xff] (%p50_p3)  ;;  %v164_v7 = vld [vmem:[%s2689_s25 + $0x38] sm:$0xff] (%p50_p3) }
  0x14   : > { %157 = vst [vmem:[%s2697_s26 + $0x18] sm:$0xff] (%p50_p3), %v156_v3  ;;  %159 = vst [vmem:[%s2697_s26 + $0x20] sm:$0xff] (%p50_p3), %v158_v4  ;;  %v166_v8 = vld [vmem:[%s2689_s25 + $0x40] sm:$0xff] (%p50_p3)  ;;  %v168_v9 = vld [vmem:[%s2689_s25 + $0x48] sm:$0xff] (%p50_p3) }
  0x15   : > { %161 = vst [vmem:[%s2697_s26 + $0x28] sm:$0xff] %v160_v5  ;;  %163 = vst [vmem:[%s2697_s26 + $0x30] sm:$0xff] %v162_v6  ;;  %v170_v10 = vld [vmem:[%s2689_s25 + $0x50] sm:$0xff]  ;;  %v172_v11 = vld [vmem:[%s2689_s25 + $0x58] sm:$0xff] }
  0x16   : > { %165 = vst [vmem:[%s2697_s26 + $0x38] sm:$0xff] %v164_v7  ;;  %167 = vst [vmem:[%s2697_s26 + $0x40] sm:$0xff] %v166_v8  ;;  %v174_v12 = vld [vmem:[%s2689_s25 + $0x60] sm:$0xff]  ;;  %v176_v13 = vld [vmem:[%s2689_s25 + $0x68] sm:$0xff] }
  0x17   : > { %169 = vst [vmem:[%s2697_s26 + $0x48] sm:$0xff] %v168_v9  ;;  %171 = vst [vmem:[%s2697_s26 + $0x50] sm:$0xff] %v170_v10  ;;  %v178_v14 = vld [vmem:[%s2689_s25 + $0x70] sm:$0xff]  ;;  %v180_v15 = vld [vmem:[%s2689_s25 + $0x78] sm:$0xff] }
  0x18   : > { %173 = vst [vmem:[%s2697_s26 + $0x58] sm:$0xff] %v172_v11  ;;  %175 = vst [vmem:[%s2697_s26 + $0x60] sm:$0xff] %v174_v12  ;;  %v182_v16 = vld [vmem:[%s2689_s25 + $0x100] sm:$0xff]  ;;  %v184_v17 = vld [vmem:[%s2689_s25 + $0x108] sm:$0xff] }
  0x19   : > { %177 = vst [vmem:[%s2697_s26 + $0x68] sm:$0xff] %v176_v13  ;;  %179 = vst [vmem:[%s2697_s26 + $0x70] sm:$0xff] %v178_v14  ;;  %v186_v18 = vld [vmem:[%s2689_s25 + $0x110] sm:$0xff]  ;;  %v188_v19 = vld [vmem:[%s2689_s25 + $0x118] sm:$0xff] }
  0x1a   : > { %181 = vst [vmem:[%s2697_s26 + $0x78] sm:$0xff] %v180_v15  ;;  %183 = vst [vmem:[%s2697_s26 + $0x80] sm:$0xff] %v182_v16  ;;  %v190_v20 = vld [vmem:[%s2689_s25 + $0x120] sm:$0xff]  ;;  %v192_v21 = vld [vmem:[%s2689_s25 + $0x128] sm:$0xff] }
  0x1b   : > { %185 = vst [vmem:[%s2697_s26 + $0x88] sm:$0xff] %v184_v17  ;;  %187 = vst [vmem:[%s2697_s26 + $0x90] sm:$0xff] %v186_v18  ;;  %v194_v22 = vld [vmem:[%s2689_s25 + $0x130] sm:$0xff]  ;;  %v196_v23 = vld [vmem:[%s2689_s25 + $0x138] sm:$0xff] }
  0x1c   : > { %189 = vst [vmem:[%s2697_s26 + $0x98] sm:$0xff] %v188_v19  ;;  %191 = vst [vmem:[%s2697_s26 + $0xa0] sm:$0xff] %v190_v20  ;;  %v198_v24 = vld [vmem:[%s2689_s25 + $0x140] sm:$0xff]  ;;  %v200_v25 = vld [vmem:[%s2689_s25 + $0x148] sm:$0xff] }
  0x1d   : > { %193 = vst [vmem:[%s2697_s26 + $0xa8] sm:$0xff] %v192_v21  ;;  %195 = vst [vmem:[%s2697_s26 + $0xb0] sm:$0xff] %v194_v22  ;;  %v202_v26 = vld [vmem:[%s2689_s25 + $0x150] sm:$0xff]  ;;  %v204_v27 = vld [vmem:[%s2689_s25 + $0x158] sm:$0xff] }
  0x1e   : > { %197 = vst [vmem:[%s2697_s26 + $0xb8] sm:$0xff] %v196_v23  ;;  %199 = vst [vmem:[%s2697_s26 + $0xc0] sm:$0xff] %v198_v24  ;;  %v206_v28 = vld [vmem:[%s2689_s25 + $0x160] sm:$0xff]  ;;  %v208_v29 = vld [vmem:[%s2689_s25 + $0x168] sm:$0xff] }
  0x1f   : > { %201 = vst [vmem:[%s2697_s26 + $0xc8] sm:$0xff] %v200_v25  ;;  %203 = vst [vmem:[%s2697_s26 + $0xd0] sm:$0xff] %v202_v26  ;;  %v210_v30 = vld [vmem:[%s2689_s25 + $0x170] sm:$0xff]  ;;  %v212_v31 = vld [vmem:[%s2689_s25 + $0x178] sm:$0xff] }
  0x20   : > { %205 = vst [vmem:[%s2697_s26 + $0xd8] sm:$0xff] %v204_v27  ;;  %207 = vst [vmem:[%s2697_s26 + $0xe0] sm:$0xff] %v206_v28  ;;  %v214_v32 = vld [vmem:[%s2689_s25 + $0x200] sm:$0xff]  ;;  %v216_v33 = vld [vmem:[%s2689_s25 + $0x208] sm:$0xff] }
  0x21   : > { %209 = vst [vmem:[%s2697_s26 + $0xe8] sm:$0xff] %v208_v29  ;;  %211 = vst [vmem:[%s2697_s26 + $0xf0] sm:$0xff] %v210_v30  ;;  %v218_v34 = vld [vmem:[%s2689_s25 + $0x210] sm:$0xff]  ;;  %v220_v35 = vld [vmem:[%s2689_s25 + $0x218] sm:$0xff] }
  0x22   : > { %213 = vst [vmem:[%s2697_s26 + $0xf8] sm:$0xff] %v212_v31  ;;  %215 = vst [vmem:[%s2697_s26 + $0x100] sm:$0xff] %v214_v32  ;;  %v222_v36 = vld [vmem:[%s2689_s25 + $0x220] sm:$0xff]  ;;  %v224_v37 = vld [vmem:[%s2689_s25 + $0x228] sm:$0xff] }
  0x23   : > { %217 = vst [vmem:[%s2697_s26 + $0x108] sm:$0xff] %v216_v33  ;;  %219 = vst [vmem:[%s2697_s26 + $0x110] sm:$0xff] %v218_v34  ;;  %v226_v38 = vld [vmem:[%s2689_s25 + $0x230] sm:$0xff]  ;;  %v228_v39 = vld [vmem:[%s2689_s25 + $0x238] sm:$0xff] }
  0x24   : > { %221 = vst [vmem:[%s2697_s26 + $0x118] sm:$0xff] %v220_v35  ;;  %223 = vst [vmem:[%s2697_s26 + $0x120] sm:$0xff] %v222_v36  ;;  %v230_v40 = vld [vmem:[%s2689_s25 + $0x240] sm:$0xff]  ;;  %v232_v41 = vld [vmem:[%s2689_s25 + $0x248] sm:$0xff] }
  0x25   : > { %225 = vst [vmem:[%s2697_s26 + $0x128] sm:$0xff] %v224_v37  ;;  %227 = vst [vmem:[%s2697_s26 + $0x130] sm:$0xff] %v226_v38  ;;  %v234_v42 = vld [vmem:[%s2689_s25 + $0x250] sm:$0xff]  ;;  %v236_v43 = vld [vmem:[%s2689_s25 + $0x258] sm:$0xff] }
  0x26   : > { %229 = vst [vmem:[%s2697_s26 + $0x138] sm:$0xff] %v228_v39  ;;  %231 = vst [vmem:[%s2697_s26 + $0x140] sm:$0xff] %v230_v40  ;;  %v238_v44 = vld [vmem:[%s2689_s25 + $0x260] sm:$0xff]  ;;  %v240_v45 = vld [vmem:[%s2689_s25 + $0x268] sm:$0xff] }
  0x27   : > { %233 = vst [vmem:[%s2697_s26 + $0x148] sm:$0xff] %v232_v41  ;;  %235 = vst [vmem:[%s2697_s26 + $0x150] sm:$0xff] %v234_v42  ;;  %v242_v46 = vld [vmem:[%s2689_s25 + $0x270] sm:$0xff]  ;;  %v244_v47 = vld [vmem:[%s2689_s25 + $0x278] sm:$0xff] }
  0x28   : > { %237 = vst [vmem:[%s2697_s26 + $0x158] sm:$0xff] %v236_v43  ;;  %239 = vst [vmem:[%s2697_s26 + $0x160] sm:$0xff] %v238_v44  ;;  %v246_v48 = vld [vmem:[%s2689_s25 + $0x300] sm:$0xff]  ;;  %v248_v49 = vld [vmem:[%s2689_s25 + $0x308] sm:$0xff] }
  0x29   : > { %241 = vst [vmem:[%s2697_s26 + $0x168] sm:$0xff] %v240_v45  ;;  %243 = vst [vmem:[%s2697_s26 + $0x170] sm:$0xff] %v242_v46  ;;  %v250_v50 = vld [vmem:[%s2689_s25 + $0x310] sm:$0xff]  ;;  %v252_v51 = vld [vmem:[%s2689_s25 + $0x318] sm:$0xff] }
  0x2a   : > { %245 = vst [vmem:[%s2697_s26 + $0x178] sm:$0xff] %v244_v47  ;;  %247 = vst [vmem:[%s2697_s26 + $0x180] sm:$0xff] %v246_v48  ;;  %v254_v52 = vld [vmem:[%s2689_s25 + $0x320] sm:$0xff]  ;;  %v256_v53 = vld [vmem:[%s2689_s25 + $0x328] sm:$0xff] }
  0x2b   : > { %249 = vst [vmem:[%s2697_s26 + $0x188] sm:$0xff] %v248_v49  ;;  %251 = vst [vmem:[%s2697_s26 + $0x190] sm:$0xff] %v250_v50  ;;  %v258_v54 = vld [vmem:[%s2689_s25 + $0x330] sm:$0xff]  ;;  %v260_v55 = vld [vmem:[%s2689_s25 + $0x338] sm:$0xff] }
  0x2c   : > { %253 = vst [vmem:[%s2697_s26 + $0x198] sm:$0xff] %v252_v51  ;;  %255 = vst [vmem:[%s2697_s26 + $0x1a0] sm:$0xff] %v254_v52  ;;  %v262_v56 = vld [vmem:[%s2689_s25 + $0x340] sm:$0xff]  ;;  %v264_v57 = vld [vmem:[%s2689_s25 + $0x348] sm:$0xff] }
  0x2d   : > { %257 = vst [vmem:[%s2697_s26 + $0x1a8] sm:$0xff] %v256_v53  ;;  %259 = vst [vmem:[%s2697_s26 + $0x1b0] sm:$0xff] %v258_v54  ;;  %v266_v58 = vld [vmem:[%s2689_s25 + $0x350] sm:$0xff]  ;;  %v268_v59 = vld [vmem:[%s2689_s25 + $0x358] sm:$0xff] }
  0x2e   : > { %261 = vst [vmem:[%s2697_s26 + $0x1b8] sm:$0xff] %v260_v55  ;;  %263 = vst [vmem:[%s2697_s26 + $0x1c0] sm:$0xff] %v262_v56  ;;  %v270_v60 = vld [vmem:[%s2689_s25 + $0x360] sm:$0xff]  ;;  %v272_v61 = vld [vmem:[%s2689_s25 + $0x368] sm:$0xff] }
  0x2f   : > { %265 = vst [vmem:[%s2697_s26 + $0x1c8] sm:$0xff] %v264_v57  ;;  %267 = vst [vmem:[%s2697_s26 + $0x1d0] sm:$0xff] %v266_v58  ;;  %v274_v62 = vld [vmem:[%s2689_s25 + $0x370] sm:$0xff]  ;;  %v276_v63 = vld [vmem:[%s2689_s25 + $0x378] sm:$0xff] }
  0x30   : > { %269 = vst [vmem:[%s2697_s26 + $0x1d8] sm:$0xff] %v268_v59  ;;  %271 = vst [vmem:[%s2697_s26 + $0x1e0] sm:$0xff] %v270_v60  ;;  %v278_v0 = vld [vmem:[%s2689_s25 + $0x400] sm:$0xff]  ;;  %v280_v1 = vld [vmem:[%s2689_s25 + $0x408] sm:$0xff] }
  0x31   : > { %273 = vst [vmem:[%s2697_s26 + $0x1e8] sm:$0xff] %v272_v61  ;;  %275 = vst [vmem:[%s2697_s26 + $0x1f0] sm:$0xff] %v274_v62  ;;  %v282_v2 = vld [vmem:[%s2689_s25 + $0x410] sm:$0xff]  ;;  %v284_v3 = vld [vmem:[%s2689_s25 + $0x418] sm:$0xff] }
  0x32   : > { %277 = vst [vmem:[%s2697_s26 + $0x1f8] sm:$0xff] %v276_v63  ;;  %279 = vst [vmem:[%s2697_s26 + $0x200] sm:$0xff] %v278_v0  ;;  %v286_v4 = vld [vmem:[%s2689_s25 + $0x420] sm:$0xff]  ;;  %v288_v5 = vld [vmem:[%s2689_s25 + $0x428] sm:$0xff] }
  0x33   : > { %281 = vst [vmem:[%s2697_s26 + $0x208] sm:$0xff] %v280_v1  ;;  %283 = vst [vmem:[%s2697_s26 + $0x210] sm:$0xff] %v282_v2  ;;  %v290_v6 = vld [vmem:[%s2689_s25 + $0x430] sm:$0xff]  ;;  %v292_v7 = vld [vmem:[%s2689_s25 + $0x438] sm:$0xff] }
  0x34   : > { %285 = vst [vmem:[%s2697_s26 + $0x218] sm:$0xff] %v284_v3  ;;  %287 = vst [vmem:[%s2697_s26 + $0x220] sm:$0xff] %v286_v4  ;;  %v294_v8 = vld [vmem:[%s2689_s25 + $0x440] sm:$0xff]  ;;  %v296_v9 = vld [vmem:[%s2689_s25 + $0x448] sm:$0xff] }
  0x35   : > { %289 = vst [vmem:[%s2697_s26 + $0x228] sm:$0xff] %v288_v5  ;;  %291 = vst [vmem:[%s2697_s26 + $0x230] sm:$0xff] %v290_v6  ;;  %v298_v10 = vld [vmem:[%s2689_s25 + $0x450] sm:$0xff]  ;;  %v300_v11 = vld [vmem:[%s2689_s25 + $0x458] sm:$0xff] }
  0x36   : > { %293 = vst [vmem:[%s2697_s26 + $0x238] sm:$0xff] %v292_v7  ;;  %295 = vst [vmem:[%s2697_s26 + $0x240] sm:$0xff] %v294_v8  ;;  %v302_v12 = vld [vmem:[%s2689_s25 + $0x460] sm:$0xff]  ;;  %v304_v13 = vld [vmem:[%s2689_s25 + $0x468] sm:$0xff] }
  0x37   : > { %297 = vst [vmem:[%s2697_s26 + $0x248] sm:$0xff] %v296_v9  ;;  %299 = vst [vmem:[%s2697_s26 + $0x250] sm:$0xff] %v298_v10  ;;  %v306_v14 = vld [vmem:[%s2689_s25 + $0x470] sm:$0xff]  ;;  %v308_v15 = vld [vmem:[%s2689_s25 + $0x478] sm:$0xff] }
  0x38   : > { %301 = vst [vmem:[%s2697_s26 + $0x258] sm:$0xff] %v300_v11  ;;  %303 = vst [vmem:[%s2697_s26 + $0x260] sm:$0xff] %v302_v12  ;;  %v310_v16 = vld [vmem:[%s2689_s25 + $0x500] sm:$0xff]  ;;  %v312_v17 = vld [vmem:[%s2689_s25 + $0x508] sm:$0xff] }
  0x39   : > { %305 = vst [vmem:[%s2697_s26 + $0x268] sm:$0xff] %v304_v13  ;;  %307 = vst [vmem:[%s2697_s26 + $0x270] sm:$0xff] %v306_v14  ;;  %v314_v18 = vld [vmem:[%s2689_s25 + $0x510] sm:$0xff]  ;;  %v316_v19 = vld [vmem:[%s2689_s25 + $0x518] sm:$0xff] }
  0x3a   : > { %309 = vst [vmem:[%s2697_s26 + $0x278] sm:$0xff] %v308_v15  ;;  %311 = vst [vmem:[%s2697_s26 + $0x280] sm:$0xff] %v310_v16  ;;  %v318_v20 = vld [vmem:[%s2689_s25 + $0x520] sm:$0xff]  ;;  %v320_v21 = vld [vmem:[%s2689_s25 + $0x528] sm:$0xff] }
  0x3b   : > { %313 = vst [vmem:[%s2697_s26 + $0x288] sm:$0xff] %v312_v17  ;;  %315 = vst [vmem:[%s2697_s26 + $0x290] sm:$0xff] %v314_v18  ;;  %v322_v22 = vld [vmem:[%s2689_s25 + $0x530] sm:$0xff]  ;;  %v324_v23 = vld [vmem:[%s2689_s25 + $0x538] sm:$0xff] }
  0x3c   : > { %317 = vst [vmem:[%s2697_s26 + $0x298] sm:$0xff] %v316_v19  ;;  %319 = vst [vmem:[%s2697_s26 + $0x2a0] sm:$0xff] %v318_v20  ;;  %v326_v24 = vld [vmem:[%s2689_s25 + $0x540] sm:$0xff]  ;;  %v328_v25 = vld [vmem:[%s2689_s25 + $0x548] sm:$0xff] }
  0x3d   : > { %321 = vst [vmem:[%s2697_s26 + $0x2a8] sm:$0xff] %v320_v21  ;;  %323 = vst [vmem:[%s2697_s26 + $0x2b0] sm:$0xff] %v322_v22  ;;  %v330_v26 = vld [vmem:[%s2689_s25 + $0x550] sm:$0xff]  ;;  %v332_v27 = vld [vmem:[%s2689_s25 + $0x558] sm:$0xff] }
  0x3e   : > { %325 = vst [vmem:[%s2697_s26 + $0x2b8] sm:$0xff] %v324_v23  ;;  %327 = vst [vmem:[%s2697_s26 + $0x2c0] sm:$0xff] %v326_v24  ;;  %v334_v28 = vld [vmem:[%s2689_s25 + $0x560] sm:$0xff]  ;;  %v336_v29 = vld [vmem:[%s2689_s25 + $0x568] sm:$0xff] }
  0x3f   : > { %329 = vst [vmem:[%s2697_s26 + $0x2c8] sm:$0xff] %v328_v25  ;;  %331 = vst [vmem:[%s2697_s26 + $0x2d0] sm:$0xff] %v330_v26  ;;  %v338_v30 = vld [vmem:[%s2689_s25 + $0x570] sm:$0xff]  ;;  %v340_v31 = vld [vmem:[%s2689_s25 + $0x578] sm:$0xff] }
  0x40   : > { %333 = vst [vmem:[%s2697_s26 + $0x2d8] sm:$0xff] %v332_v27  ;;  %335 = vst [vmem:[%s2697_s26 + $0x2e0] sm:$0xff] %v334_v28  ;;  %v342_v32 = vld [vmem:[%s2689_s25 + $0x600] sm:$0xff]  ;;  %v344_v33 = vld [vmem:[%s2689_s25 + $0x608] sm:$0xff] }
  0x41   : > { %337 = vst [vmem:[%s2697_s26 + $0x2e8] sm:$0xff] %v336_v29  ;;  %339 = vst [vmem:[%s2697_s26 + $0x2f0] sm:$0xff] %v338_v30  ;;  %v346_v34 = vld [vmem:[%s2689_s25 + $0x610] sm:$0xff]  ;;  %v348_v35 = vld [vmem:[%s2689_s25 + $0x618] sm:$0xff] }
  0x42   : > { %341 = vst [vmem:[%s2697_s26 + $0x2f8] sm:$0xff] %v340_v31  ;;  %343 = vst [vmem:[%s2697_s26 + $0x300] sm:$0xff] %v342_v32  ;;  %v350_v36 = vld [vmem:[%s2689_s25 + $0x620] sm:$0xff]  ;;  %v352_v37 = vld [vmem:[%s2689_s25 + $0x628] sm:$0xff] }
  0x43   : > { %345 = vst [vmem:[%s2697_s26 + $0x308] sm:$0xff] %v344_v33  ;;  %347 = vst [vmem:[%s2697_s26 + $0x310] sm:$0xff] %v346_v34  ;;  %v354_v38 = vld [vmem:[%s2689_s25 + $0x630] sm:$0xff]  ;;  %v356_v39 = vld [vmem:[%s2689_s25 + $0x638] sm:$0xff] }
  0x44   : > { %349 = vst [vmem:[%s2697_s26 + $0x318] sm:$0xff] %v348_v35  ;;  %351 = vst [vmem:[%s2697_s26 + $0x320] sm:$0xff] %v350_v36  ;;  %v358_v40 = vld [vmem:[%s2689_s25 + $0x640] sm:$0xff]  ;;  %v360_v41 = vld [vmem:[%s2689_s25 + $0x648] sm:$0xff] }
  0x45   : > { %353 = vst [vmem:[%s2697_s26 + $0x328] sm:$0xff] %v352_v37  ;;  %355 = vst [vmem:[%s2697_s26 + $0x330] sm:$0xff] %v354_v38  ;;  %v362_v42 = vld [vmem:[%s2689_s25 + $0x650] sm:$0xff]  ;;  %v364_v43 = vld [vmem:[%s2689_s25 + $0x658] sm:$0xff] }
  0x46   : > { %357 = vst [vmem:[%s2697_s26 + $0x338] sm:$0xff] %v356_v39  ;;  %359 = vst [vmem:[%s2697_s26 + $0x340] sm:$0xff] %v358_v40  ;;  %v366_v44 = vld [vmem:[%s2689_s25 + $0x660] sm:$0xff]  ;;  %v368_v45 = vld [vmem:[%s2689_s25 + $0x668] sm:$0xff] }
  0x47   : > { %361 = vst [vmem:[%s2697_s26 + $0x348] sm:$0xff] %v360_v41  ;;  %363 = vst [vmem:[%s2697_s26 + $0x350] sm:$0xff] %v362_v42  ;;  %v370_v46 = vld [vmem:[%s2689_s25 + $0x670] sm:$0xff]  ;;  %v372_v47 = vld [vmem:[%s2689_s25 + $0x678] sm:$0xff] }
  0x48   : > { %365 = vst [vmem:[%s2697_s26 + $0x358] sm:$0xff] %v364_v43  ;;  %367 = vst [vmem:[%s2697_s26 + $0x360] sm:$0xff] %v366_v44  ;;  %v374_v48 = vld [vmem:[%s2689_s25 + $0x700] sm:$0xff]  ;;  %v376_v49 = vld [vmem:[%s2689_s25 + $0x708] sm:$0xff] }
  0x49   : > { %369 = vst [vmem:[%s2697_s26 + $0x368] sm:$0xff] %v368_v45  ;;  %371 = vst [vmem:[%s2697_s26 + $0x370] sm:$0xff] %v370_v46  ;;  %v378_v50 = vld [vmem:[%s2689_s25 + $0x710] sm:$0xff]  ;;  %v380_v51 = vld [vmem:[%s2689_s25 + $0x718] sm:$0xff] }
  0x4a   : > { %373 = vst [vmem:[%s2697_s26 + $0x378] sm:$0xff] %v372_v47  ;;  %375 = vst [vmem:[%s2697_s26 + $0x380] sm:$0xff] %v374_v48  ;;  %v382_v52 = vld [vmem:[%s2689_s25 + $0x720] sm:$0xff]  ;;  %v384_v53 = vld [vmem:[%s2689_s25 + $0x728] sm:$0xff] }
  0x4b   : > { %377 = vst [vmem:[%s2697_s26 + $0x388] sm:$0xff] %v376_v49  ;;  %379 = vst [vmem:[%s2697_s26 + $0x390] sm:$0xff] %v378_v50  ;;  %v386_v54 = vld [vmem:[%s2689_s25 + $0x730] sm:$0xff]  ;;  %v388_v55 = vld [vmem:[%s2689_s25 + $0x738] sm:$0xff] }
  0x4c   : > { %381 = vst [vmem:[%s2697_s26 + $0x398] sm:$0xff] %v380_v51  ;;  %383 = vst [vmem:[%s2697_s26 + $0x3a0] sm:$0xff] %v382_v52  ;;  %v390_v56 = vld [vmem:[%s2689_s25 + $0x740] sm:$0xff]  ;;  %v392_v57 = vld [vmem:[%s2689_s25 + $0x748] sm:$0xff] }
  0x4d   : > { %385 = vst [vmem:[%s2697_s26 + $0x3a8] sm:$0xff] %v384_v53  ;;  %387 = vst [vmem:[%s2697_s26 + $0x3b0] sm:$0xff] %v386_v54  ;;  %v394_v58 = vld [vmem:[%s2689_s25 + $0x750] sm:$0xff]  ;;  %v396_v59 = vld [vmem:[%s2689_s25 + $0x758] sm:$0xff] }
  0x4e   : > { %389 = vst [vmem:[%s2697_s26 + $0x3b8] sm:$0xff] %v388_v55  ;;  %391 = vst [vmem:[%s2697_s26 + $0x3c0] sm:$0xff] %v390_v56  ;;  %v398_v60 = vld [vmem:[%s2689_s25 + $0x760] sm:$0xff]  ;;  %v400_v61 = vld [vmem:[%s2689_s25 + $0x768] sm:$0xff] }
  0x4f   : > { %393 = vst [vmem:[%s2697_s26 + $0x3c8] sm:$0xff] %v392_v57  ;;  %395 = vst [vmem:[%s2697_s26 + $0x3d0] sm:$0xff] %v394_v58  ;;  %v402_v62 = vld [vmem:[%s2689_s25 + $0x770] sm:$0xff]  ;;  %v404_v63 = vld [vmem:[%s2689_s25 + $0x778] sm:$0xff] }
  0x50   : > { %397 = vst [vmem:[%s2697_s26 + $0x3d8] sm:$0xff] %v396_v59  ;;  %399 = vst [vmem:[%s2697_s26 + $0x3e0] sm:$0xff] %v398_v60  ;;  %v406_v0 = vld [vmem:[%s2689_s25 + $0x800] sm:$0xff]  ;;  %v408_v1 = vld [vmem:[%s2689_s25 + $0x808] sm:$0xff] }
  0x51   : > { %401 = vst [vmem:[%s2697_s26 + $0x3e8] sm:$0xff] %v400_v61  ;;  %403 = vst [vmem:[%s2697_s26 + $0x3f0] sm:$0xff] %v402_v62  ;;  %v410_v2 = vld [vmem:[%s2689_s25 + $0x810] sm:$0xff]  ;;  %v412_v3 = vld [vmem:[%s2689_s25 + $0x818] sm:$0xff] }
  0x52   : > { %405 = vst [vmem:[%s2697_s26 + $0x3f8] sm:$0xff] %v404_v63  ;;  %407 = vst [vmem:[%s2697_s26 + $0x400] sm:$0xff] %v406_v0  ;;  %v414_v4 = vld [vmem:[%s2689_s25 + $0x820] sm:$0xff]  ;;  %v416_v5 = vld [vmem:[%s2689_s25 + $0x828] sm:$0xff] }
  0x53   : > { %409 = vst [vmem:[%s2697_s26 + $0x408] sm:$0xff] %v408_v1  ;;  %411 = vst [vmem:[%s2697_s26 + $0x410] sm:$0xff] %v410_v2  ;;  %v418_v6 = vld [vmem:[%s2689_s25 + $0x830] sm:$0xff]  ;;  %v420_v7 = vld [vmem:[%s2689_s25 + $0x838] sm:$0xff] }
  0x54   : > { %413 = vst [vmem:[%s2697_s26 + $0x418] sm:$0xff] %v412_v3  ;;  %415 = vst [vmem:[%s2697_s26 + $0x420] sm:$0xff] %v414_v4  ;;  %v422_v8 = vld [vmem:[%s2689_s25 + $0x840] sm:$0xff]  ;;  %v424_v9 = vld [vmem:[%s2689_s25 + $0x848] sm:$0xff] }
  0x55   : > { %417 = vst [vmem:[%s2697_s26 + $0x428] sm:$0xff] %v416_v5  ;;  %419 = vst [vmem:[%s2697_s26 + $0x430] sm:$0xff] %v418_v6  ;;  %v426_v10 = vld [vmem:[%s2689_s25 + $0x850] sm:$0xff]  ;;  %v428_v11 = vld [vmem:[%s2689_s25 + $0x858] sm:$0xff] }
  0x56   : > { %421 = vst [vmem:[%s2697_s26 + $0x438] sm:$0xff] %v420_v7  ;;  %423 = vst [vmem:[%s2697_s26 + $0x440] sm:$0xff] %v422_v8  ;;  %v430_v12 = vld [vmem:[%s2689_s25 + $0x860] sm:$0xff]  ;;  %v432_v13 = vld [vmem:[%s2689_s25 + $0x868] sm:$0xff] }
  0x57   : > { %425 = vst [vmem:[%s2697_s26 + $0x448] sm:$0xff] %v424_v9  ;;  %427 = vst [vmem:[%s2697_s26 + $0x450] sm:$0xff] %v426_v10  ;;  %v434_v14 = vld [vmem:[%s2689_s25 + $0x870] sm:$0xff]  ;;  %v436_v15 = vld [vmem:[%s2689_s25 + $0x878] sm:$0xff] }
  0x58   : > { %429 = vst [vmem:[%s2697_s26 + $0x458] sm:$0xff] %v428_v11  ;;  %431 = vst [vmem:[%s2697_s26 + $0x460] sm:$0xff] %v430_v12 }
  0x59   : > { %433 = vst [vmem:[%s2697_s26 + $0x468] sm:$0xff] %v432_v13  ;;  %435 = vst [vmem:[%s2697_s26 + $0x470] sm:$0xff] %v434_v14 }
  0x5a   : > { %437 = vst [vmem:[%s2697_s26 + $0x478] sm:$0xff] %v436_v15 }
  0x5b PF: > { %p2288_p5 = scmp.ge.s32.totalorder %s2632_s14, 1  ;;  %p442_p6 = scmp.lt.s32.totalorder %s2632_s14, 3 }
  0x5d   : > { %p443_p7 = pnand %p2288_p5, %p442_p6 }
  0x5e   : > { %s449_s27 = sand.u32 (!%p443_p7), 1, %s2624_s12   ;;  %v2634_v16 = vmov (!%p443_p7), 0   ;;  %v625_v17 = vld [vmem:[%s3288_s2] sm:$0x7] (!%p443_p7)  ;;  %vm1355_vm0 = vcmask (!%p443_p7), 1043456   ;;  %vm1351_vm1 = vcmask (!%p443_p7), 588800  }
  0x5f   : > { %446 = sbr.rel (%p443_p7) target bundleno = 494 (0x1ee), region = 51  ;;  %1484 = vmatprep.mubr.bf16.mxu0 (!%p443_p7), %v2634_v16  ;;  %1525 = vmatprep.mubr.bf16.mxu1 (!%p443_p7), %v2634_v16  ;;  %v3025_v4 = vld [vmem:[%s3286_s0] sm:$0x3] (!%p443_p7)  ;;  %s2289_s7 = sshll.u32 (!%p443_p7), %s2282_s15, 5 }
  0x60   : > { %s2487_s28 = smul.u32 (!%p443_p7), 1152, %s449_s27  ;;  %2513 = vset.pattern.permute.xlu0 (!%p443_p7), %v2634_v16  ;;  %p474_p8 = scmp.lt.s32.totalorder (!%p443_p7), %s2289_s7, 63 }
  0x61   : > { %628 = vperm.xlu0 (!%p443_p7), %2513, %v625_v17  }
  0x62   : > { %s2990_s4 = scalar_lea.vmem (!%p443_p7), [#allocation2], %s2487_s28 }
  0x63   : > { %v481_v18 = vld [vmem:[%s2990_s4] sm:$0xff] (!%p443_p7)  ;;  %v482_v20 = vld [vmem:[%s2990_s4 + $0x8] sm:$0xff] (!%p443_p7)  ;;  %v483_v56 = vld [vmem:[%s2990_s4 + $0x10] sm:$0xff] (!%p443_p7) }
  0x64   : > { %v497_v19 = vld [vmem:[%s2990_s4 + $0x80] sm:$0xff] (!%p443_p7)  ;;  %v498_v22 = vld [vmem:[%s2990_s4 + $0x88] sm:$0xff] (!%p443_p7)  ;;  %v499_v57 = vld [vmem:[%s2990_s4 + $0x90] sm:$0xff] (!%p443_p7) }
  0x65   : > { %v2292_v21 = vcombine.high (!%p443_p7), %v481_v18, %v497_v19  ;;  %v2291_v23 = vcombine.low (!%p443_p7), %v481_v18, %v497_v19  ;;  %v513_v24 = vld [vmem:[%s2990_s4 + $0x100] sm:$0xff] (!%p443_p7)  ;;  %v2294_v26 = vcombine.high (!%p443_p7), %v482_v20, %v498_v22  ;;  %v2293_v27 = vcombine.low (!%p443_p7), %v482_v20, %v498_v22  ;;  %v514_v29 = vld [vmem:[%s2990_s4 + $0x108] sm:$0xff] (!%p443_p7)  ;;  %v484_v58 = vld [vmem:[%s2990_s4 + $0x18] sm:$0xff] (!%p443_p7) }
  0x66   : > { %v529_v25 = vld [vmem:[%s2990_s4 + $0x180] sm:$0xff]  ;;  %v530_v30 = vld [vmem:[%s2990_s4 + $0x188] sm:$0xff]  ;;  %v500_v59 = vld [vmem:[%s2990_s4 + $0x98] sm:$0xff]  ;;  %v2296_v61 = vcombine.high %v483_v56, %v499_v57  ;;  %v2295_v5 = vcombine.low %v483_v56, %v499_v57  ;;  %s3294_s7 = smov (!%p474_p8, %s2289_s7), 63 }
  0x67   : > { %v2324_v28 = vcombine.high %v513_v24, %v529_v25  ;;  %v545_v31 = vld [vmem:[%s2990_s4 + $0x200] sm:$0xff]  ;;  %1452 = vmatprep.subr.bf16.mxu0 %v2292_v21  ;;  %v2326_v32 = vcombine.high %v514_v29, %v530_v30  ;;  %v546_v34 = vld [vmem:[%s2990_s4 + $0x208] sm:$0xff]  ;;  %1493 = vmatprep.subr.bf16.mxu1 %v2294_v26  ;;  %v2323_v36 = vcombine.low %v513_v24, %v529_v25  ;;  %v515_v0 = vld [vmem:[%s2990_s4 + $0x110] sm:$0xff]  ;;  %s2290_s8 = sshll.u32 %s3294_s7, 2 }
  0x68   : > { %v561_v33 = vld [vmem:[%s2990_s4 + $0x280] sm:$0xff]  ;;  %v562_v35 = vld [vmem:[%s2990_s4 + $0x288] sm:$0xff]  ;;  %1453 = vmatpush1.bf16.msra.mxu0 %v2291_v23  ;;  %1494 = vmatpush1.bf16.msra.mxu1 %v2293_v27  ;;  %v2325_v37 = vcombine.low %v514_v29, %v530_v30  ;;  %v2298_v63 = vcombine.high %v484_v58, %v500_v59  ;;  %v531_v1 = vld [vmem:[%s2990_s4 + $0x190] sm:$0xff]  ;;  %v2297_v6 = vcombine.low %v484_v58, %v500_v59  ;;  %s3230_s11 = scalar_lea.vmem %s3289_s3, %s2290_s8 }
  0x69   : > { %1454 = vmatprep.subr.bf16.mxu0 %v2324_v28  ;;  %v2356_v38 = vcombine.high %v545_v31, %v561_v33  ;;  %1495 = vmatprep.subr.bf16.mxu1 %v2326_v32  ;;  %v2358_v39 = vcombine.high %v546_v34, %v562_v35  ;;  %v577_v40 = vld [vmem:[%s2990_s4 + $0x300] sm:$0xff]  ;;  %v578_v42 = vld [vmem:[%s2990_s4 + $0x308] sm:$0xff]  ;;  %v2355_v44 = vcombine.low %v545_v31, %v561_v33  ;;  %v516_v2 = vld [vmem:[%s2990_s4 + $0x118] sm:$0xff] }
  0x6a   : > { %v593_v41 = vld [vmem:[%s2990_s4 + $0x380] sm:$0xff]  ;;  %v594_v43 = vld [vmem:[%s2990_s4 + $0x388] sm:$0xff]  ;;  %v2357_v45 = vcombine.low %v546_v34, %v562_v35  ;;  %v532_v3 = vld [vmem:[%s2990_s4 + $0x198] sm:$0xff]  ;;  %v2328_v7 = vcombine.high %v515_v0, %v531_v1  ;;  %v2327_v13 = vcombine.low %v515_v0, %v531_v1 }
  0x6b   : > { %v2388_v46 = vcombine.high %v577_v40, %v593_v41  ;;  %v2390_v47 = vcombine.high %v578_v42, %v594_v43  ;;  %v609_v48 = vld [vmem:[%s2990_s4 + $0x400] sm:$0xff]  ;;  %v610_v49 = vld [vmem:[%s2990_s4 + $0x408] sm:$0xff]  ;;  %v2387_v50 = vcombine.low %v577_v40, %v593_v41  ;;  %v2389_v51 = vcombine.low %v578_v42, %v594_v43  ;;  %v547_v9 = vld [vmem:[%s2990_s4 + $0x210] sm:$0xff] }
  0x6c   : > { %1455 = vmatpush1.bf16.msra.mxu0 %v2323_v36  ;;  %1496 = vmatpush1.bf16.msra.mxu1 %v2325_v37  ;;  %v2420_v52 = vcombine.high %v609_v48, %v609_v48  ;;  %v2419_v53 = vcombine.low %v609_v48, %v609_v48  ;;  %v2422_v54 = vcombine.high %v610_v49, %v610_v49  ;;  %v563_v10 = vld [vmem:[%s2990_s4 + $0x290] sm:$0xff]  ;;  %v548_v11 = vld [vmem:[%s2990_s4 + $0x218] sm:$0xff]  ;;  %v485_v34 = vld [vmem:[%s2990_s4 + $0x20] sm:$0xff] }
  0x6d   : > { %1456 = vmatprep.subr.bf16.mxu0 %v2356_v38  ;;  %1497 = vmatprep.subr.bf16.mxu1 %v2358_v39  ;;  %v2421_v55 = vcombine.low %v610_v49, %v610_v49  ;;  %v2330_v8 = vcombine.high %v516_v2, %v532_v3  ;;  %v564_v12 = vld [vmem:[%s2990_s4 + $0x298] sm:$0xff]  ;;  %v2329_v14 = vcombine.low %v516_v2, %v532_v3  ;;  %v579_v18 = vld [vmem:[%s2990_s4 + $0x310] sm:$0xff]  ;;  %v501_v35 = vld [vmem:[%s2990_s4 + $0xa0] sm:$0xff] }
  0x6e   : > { %v1357_v60 = vsel %vm1355_vm0, %v2419_v53, 0  ;;  %v2360_v15 = vcombine.high %v547_v9, %v563_v10  ;;  %v2362_v17 = vcombine.high %v548_v11, %v564_v12  ;;  %v595_v19 = vld [vmem:[%s2990_s4 + $0x390] sm:$0xff]  ;;  %v580_v20 = vld [vmem:[%s2990_s4 + $0x318] sm:$0xff]  ;;  %v2359_v22 = vcombine.low %v547_v9, %v563_v10  ;;  %v486_v36 = vld [vmem:[%s2990_s4 + $0x28] sm:$0xff] }
  0x6f   : > { %v1363_v62 = vsel %vm1355_vm0, %v2421_v55, 0  ;;  %v596_v21 = vld [vmem:[%s2990_s4 + $0x398] sm:$0xff]  ;;  %v2361_v23 = vcombine.low %v548_v11, %v564_v12  ;;  %v2392_v24 = vcombine.high %v579_v18, %v595_v19  ;;  %v611_v26 = vld [vmem:[%s2990_s4 + $0x410] sm:$0xff]  ;;  %v2391_v28 = vcombine.low %v579_v18, %v595_v19  ;;  %v502_v37 = vld [vmem:[%s2990_s4 + $0xa8] sm:$0xff] }
  0x70   : > { %1457 = vmatpush1.bf16.msra.mxu0 %v2355_v44  ;;  %1498 = vmatpush1.bf16.msra.mxu1 %v2357_v45  ;;  %v2394_v25 = vcombine.high %v580_v20, %v596_v21  ;;  %v612_v27 = vld [vmem:[%s2990_s4 + $0x418] sm:$0xff]  ;;  %v2393_v29 = vcombine.low %v580_v20, %v596_v21  ;;  %v2424_v30 = vcombine.high %v611_v26, %v611_v26  ;;  %v517_v42 = vld [vmem:[%s2990_s4 + $0x120] sm:$0xff]  ;;  %v518_v44 = vld [vmem:[%s2990_s4 + $0x128] sm:$0xff] }
  0x71   : > { %1458 = vmatprep.subr.bf16.mxu0 %v2388_v46  ;;  %1499 = vmatprep.subr.bf16.mxu1 %v2390_v47  ;;  %v2423_v31 = vcombine.low %v611_v26, %v611_v26  ;;  %v2426_v32 = vcombine.high %v612_v27, %v612_v27  ;;  %v2425_v33 = vcombine.low %v612_v27, %v612_v27  ;;  %v533_v43 = vld [vmem:[%s2990_s4 + $0x1a0] sm:$0xff]  ;;  %v534_v45 = vld [vmem:[%s2990_s4 + $0x1a8] sm:$0xff]  ;;  %v487_v11 = vld [vmem:[%s2990_s4 + $0x30] sm:$0xff] }
  0x72   : > { %v2300_v39 = vcombine.high %v485_v34, %v501_v35  ;;  %v2302_v41 = vcombine.high %v486_v36, %v502_v37  ;;  %v2299_v46 = vcombine.low %v485_v34, %v501_v35  ;;  %v2301_v47 = vcombine.low %v486_v36, %v502_v37  ;;  %v566_v53 = vld [vmem:[%s2990_s4 + $0x2a8] sm:$0xff]  ;;  %v581_v58 = vld [vmem:[%s2990_s4 + $0x320] sm:$0xff]  ;;  %v503_v12 = vld [vmem:[%s2990_s4 + $0xb0] sm:$0xff] }
  0x73   : > { %v1369_v38 = vsel %vm1355_vm0, %v2423_v31, 0  ;;  %v1375_v40 = vsel %vm1355_vm0, %v2425_v33, 0  ;;  %v2332_v48 = vcombine.high %v517_v42, %v533_v43  ;;  %v2334_v49 = vcombine.high %v518_v44, %v534_v45  ;;  %v597_v59 = vld [vmem:[%s2990_s4 + $0x3a0] sm:$0xff]  ;;  %v614_v3 = vld [vmem:[%s2990_s4 + $0x428] sm:$0xff]  ;;  %v519_v20 = vld [vmem:[%s2990_s4 + $0x130] sm:$0xff] }
  0x74   : > { %1459 = vmatpush1.bf16.msra.mxu0 %v2387_v50  ;;  %1500 = vmatpush1.bf16.msra.mxu1 %v2389_v51  ;;  %v549_v50 = vld [vmem:[%s2990_s4 + $0x220] sm:$0xff]  ;;  %v2333_v55 = vcombine.low %v518_v44, %v534_v45  ;;  %v2396_v0 = vcombine.high %v581_v58, %v597_v59  ;;  %v2430_v9 = vcombine.high %v614_v3, %v614_v3  ;;  %v535_v21 = vld [vmem:[%s2990_s4 + $0x1b0] sm:$0xff]  ;;  %v568_v31 = vld [vmem:[%s2990_s4 + $0x2b8] sm:$0xff] }
  0x75   : > { %2451 = vmatprep.subr.msk.bf16.mxu0 %vm1355_vm0, %v2420_v52  ;;  %2453 = vmatprep.subr.msk.bf16.mxu1 %vm1355_vm0, %v2422_v54  ;;  %v565_v51 = vld [vmem:[%s2990_s4 + $0x2a0] sm:$0xff]  ;;  %v550_v52 = vld [vmem:[%s2990_s4 + $0x228] sm:$0xff]  ;;  %v2331_v54 = vcombine.low %v517_v42, %v533_v43  ;;  %v2429_v10 = vcombine.low %v614_v3, %v614_v3  ;;  %v2336_v26 = vcombine.high %v519_v20, %v535_v21  ;;  %v583_v36 = vld [vmem:[%s2990_s4 + $0x330] sm:$0xff] }
  0x76   : > { %v2364_v56 = vcombine.high %v549_v50, %v565_v51  ;;  %v2366_v57 = vcombine.high %v550_v52, %v566_v53  ;;  %v613_v2 = vld [vmem:[%s2990_s4 + $0x420] sm:$0xff]  ;;  %v599_v37 = vld [vmem:[%s2990_s4 + $0x3b0] sm:$0xff]  ;;  %v616_v45 = vld [vmem:[%s2990_s4 + $0x438] sm:$0xff] }
  0x77   : > { %v1387_v18 = vsel %vm1355_vm0, %v2429_v10, 0  ;;  %v2400_v42 = vcombine.high %v583_v36, %v599_v37  ;;  %v615_v44 = vld [vmem:[%s2990_s4 + $0x430] sm:$0xff] }
  0x78   : > { %1461 = vmatpush1.bf16.msra.mxu0 %v1357_v60  ;;  %1502 = vmatpush1.bf16.msra.mxu1 %v1363_v62  ;;  %v582_v60 = vld [vmem:[%s2990_s4 + $0x328] sm:$0xff]  ;;  %v2363_v62 = vcombine.low %v549_v50, %v565_v51  ;;  %v2434_v50 = vcombine.high %v616_v45, %v616_v45  ;;  %v2433_v51 = vcombine.low %v616_v45, %v616_v45 }
  0x79   : > { %1534 = vmatprep.subr.bf16.mxu0 %v2296_v61  ;;  %1575 = vmatprep.subr.bf16.mxu1 %v2298_v63  ;;  %v598_v61 = vld [vmem:[%s2990_s4 + $0x3a8] sm:$0xff]  ;;  %v2365_v63 = vcombine.low %v550_v52, %v566_v53  ;;  %v489_v52 = vld [vmem:[%s2990_s4 + $0x40] sm:$0xff] }
  0x7a   : > { %v2398_v1 = vcombine.high %v582_v60, %v598_v61  ;;  %v505_v53 = vld [vmem:[%s2990_s4 + $0xc0] sm:$0xff] }
  0x7b   : > { %2452 = vmatmul.mubr.msk.bf16.vlgmr.msra.gmra.mrb[0].mxu0 %vm1351_vm1, %v3025_v4  ;;  %2454 = vmatmul.mubr.msk.bf16.vlgmr.msra.gmra.mrb[0].mxu1 %vm1351_vm1, %v3025_v4 }
  0x7c   : > { %1535 = vmatpush1.bf16.msra.mxu0 %v2295_v5  ;;  %1576 = vmatpush1.bf16.msra.mxu1 %v2297_v6  ;;  %v2395_v5 = vcombine.low %v581_v58, %v597_v59  ;;  %v2397_v6 = vcombine.low %v582_v60, %v598_v61  ;;  %v1399_v58 = vsel %vm1355_vm0, %v2433_v51, 0  ;;  %v521_v60 = vld [vmem:[%s2990_s4 + $0x140] sm:$0xff] }
  0x7d   : > { %1536 = vmatprep.subr.bf16.mxu0 %v2328_v7  ;;  %1577 = vmatprep.subr.bf16.mxu1 %v2330_v8  ;;  %v2428_v7 = vcombine.high %v613_v2, %v613_v2  ;;  %v2427_v8 = vcombine.low %v613_v2, %v613_v2  ;;  %v537_v61 = vld [vmem:[%s2990_s4 + $0x1c0] sm:$0xff] }
  0x7e   : > { %1566 = vmatprep.mubr.bf16.mxu0 %v2634_v16  ;;  %1607 = vmatprep.mubr.bf16.mxu1 %v2634_v16  ;;  %v2340_v2 = vcombine.high %v521_v60, %v537_v61 }
  0x80   : > { %1537 = vmatpush1.bf16.msra.mxu0 %v2327_v13  ;;  %1578 = vmatpush1.bf16.msra.mxu1 %v2329_v14  ;;  %v488_v13 = vld [vmem:[%s2990_s4 + $0x38] sm:$0xff] }
  0x81   : > { %1538 = vmatprep.subr.bf16.mxu0 %v2360_v15  ;;  %1579 = vmatprep.subr.bf16.mxu1 %v2362_v17  ;;  %v504_v14 = vld [vmem:[%s2990_s4 + $0xb8] sm:$0xff]  ;;  %v1381_v15 = vsel %vm1355_vm0, %v2427_v8, 0  ;;  %v2304_v17 = vcombine.high %v487_v11, %v503_v12  ;;  %v570_v8 = vld [vmem:[%s2990_s4 + $0x2c8] sm:$0xff] }
  0x82   : > { %v2306_v19 = vcombine.high %v488_v13, %v504_v14 }
  0x84   : > { %1539 = vmatpush1.bf16.msra.mxu0 %v2359_v22  ;;  %1580 = vmatpush1.bf16.msra.mxu1 %v2361_v23  ;;  %v520_v22 = vld [vmem:[%s2990_s4 + $0x138] sm:$0xff] }
  0x85   : > { %1540 = vmatprep.subr.bf16.mxu0 %v2392_v24  ;;  %1581 = vmatprep.subr.bf16.mxu1 %v2394_v25  ;;  %v536_v23 = vld [vmem:[%s2990_s4 + $0x1b8] sm:$0xff]  ;;  %v2303_v24 = vcombine.low %v487_v11, %v503_v12  ;;  %v2305_v25 = vcombine.low %v488_v13, %v504_v14  ;;  %v585_v13 = vld [vmem:[%s2990_s4 + $0x340] sm:$0xff] }
  0x86   : > { %v2338_v27 = vcombine.high %v520_v22, %v536_v23  ;;  %v2337_v33 = vcombine.low %v520_v22, %v536_v23  ;;  %v601_v14 = vld [vmem:[%s2990_s4 + $0x3c0] sm:$0xff]  ;;  %v618_v23 = vld [vmem:[%s2990_s4 + $0x448] sm:$0xff] }
  0x87   : > { %v617_v22 = vld [vmem:[%s2990_s4 + $0x440] sm:$0xff] }
  0x88   : > { %1541 = vmatpush1.bf16.msra.mxu0 %v2391_v28  ;;  %1582 = vmatpush1.bf16.msra.mxu1 %v2393_v29  ;;  %v551_v28 = vld [vmem:[%s2990_s4 + $0x230] sm:$0xff] }
  0x89   : > { %2455 = vmatprep.subr.msk.bf16.mxu0 %vm1355_vm0, %v2424_v30  ;;  %2457 = vmatprep.subr.msk.bf16.mxu1 %vm1355_vm0, %v2426_v32  ;;  %v567_v29 = vld [vmem:[%s2990_s4 + $0x2b0] sm:$0xff]  ;;  %v552_v30 = vld [vmem:[%s2990_s4 + $0x238] sm:$0xff]  ;;  %v2335_v32 = vcombine.low %v519_v20, %v535_v21  ;;  %v2404_v20 = vcombine.high %v585_v13, %v601_v14 }
  0x8a   : > { %v2368_v34 = vcombine.high %v551_v28, %v567_v29  ;;  %v2370_v35 = vcombine.high %v552_v30, %v568_v31 }
  0x8c   : > { %1543 = vmatpush1.bf16.msra.mxu0 %v1369_v38  ;;  %1584 = vmatpush1.bf16.msra.mxu1 %v1375_v40  ;;  %v584_v38 = vld [vmem:[%s2990_s4 + $0x338] sm:$0xff]  ;;  %v2367_v40 = vcombine.low %v551_v28, %v567_v29  ;;  %v2438_v28 = vcombine.high %v618_v23, %v618_v23  ;;  %v2437_v29 = vcombine.low %v618_v23, %v618_v23 }
  0x8d   : > { %1616 = vmatprep.subr.bf16.mxu0 %v2300_v39  ;;  %1657 = vmatprep.subr.bf16.mxu1 %v2302_v41  ;;  %v600_v39 = vld [vmem:[%s2990_s4 + $0x3b8] sm:$0xff]  ;;  %v2369_v41 = vcombine.low %v552_v30, %v568_v31  ;;  %v491_v30 = vld [vmem:[%s2990_s4 + $0x50] sm:$0xff] }
  0x8e   : > { %v2402_v43 = vcombine.high %v584_v38, %v600_v39  ;;  %v507_v31 = vld [vmem:[%s2990_s4 + $0xd0] sm:$0xff] }
  0x8f   : > { %2456 = vmatmul.mubr.msk.bf16.vlgmr.msra.gmra.mrb[4].mxu0 %vm1351_vm1, %v3025_v4  ;;  %2458 = vmatmul.mubr.msk.bf16.vlgmr.msra.gmra.mrb[4].mxu1 %vm1351_vm1, %v3025_v4 }
  0x90   : > { %1617 = vmatpush1.bf16.msra.mxu0 %v2299_v46  ;;  %1658 = vmatpush1.bf16.msra.mxu1 %v2301_v47  ;;  %v2399_v46 = vcombine.low %v583_v36, %v599_v37  ;;  %v2401_v47 = vcombine.low %v584_v38, %v600_v39  ;;  %v1411_v36 = vsel %vm1355_vm0, %v2437_v29, 0  ;;  %v523_v38 = vld [vmem:[%s2990_s4 + $0x150] sm:$0xff] }
  0x91   : > { %1618 = vmatprep.subr.bf16.mxu0 %v2332_v48  ;;  %1659 = vmatprep.subr.bf16.mxu1 %v2334_v49  ;;  %v2432_v48 = vcombine.high %v615_v44, %v615_v44  ;;  %v2431_v49 = vcombine.low %v615_v44, %v615_v44  ;;  %v539_v39 = vld [vmem:[%s2990_s4 + $0x1d0] sm:$0xff] }
  0x92   : > { %1648 = vmatprep.mubr.bf16.mxu0 %v2634_v16  ;;  %1689 = vmatprep.mubr.bf16.mxu1 %v2634_v16  ;;  %v2344_v44 = vcombine.high %v523_v38, %v539_v39 }
  0x94   : > { %1619 = vmatpush1.bf16.msra.mxu0 %v2331_v54  ;;  %1660 = vmatpush1.bf16.msra.mxu1 %v2333_v55  ;;  %v490_v54 = vld [vmem:[%s2990_s4 + $0x48] sm:$0xff] }
  0x95   : > { %1620 = vmatprep.subr.bf16.mxu0 %v2364_v56  ;;  %1661 = vmatprep.subr.bf16.mxu1 %v2366_v57  ;;  %v506_v55 = vld [vmem:[%s2990_s4 + $0xc8] sm:$0xff]  ;;  %v1393_v56 = vsel %vm1355_vm0, %v2431_v49, 0  ;;  %v2308_v57 = vcombine.high %v489_v52, %v505_v53  ;;  %v572_v49 = vld [vmem:[%s2990_s4 + $0x2d8] sm:$0xff] }
  0x96   : > { %v2310_v59 = vcombine.high %v490_v54, %v506_v55 }
  0x98   : > { %1621 = vmatpush1.bf16.msra.mxu0 %v2363_v62  ;;  %1662 = vmatpush1.bf16.msra.mxu1 %v2365_v63  ;;  %v522_v62 = vld [vmem:[%s2990_s4 + $0x148] sm:$0xff] }
  0x99   : > { %1622 = vmatprep.subr.bf16.mxu0 %v2396_v0  ;;  %1663 = vmatprep.subr.bf16.mxu1 %v2398_v1  ;;  %v538_v63 = vld [vmem:[%s2990_s4 + $0x1c8] sm:$0xff]  ;;  %v2307_v0 = vcombine.low %v489_v52, %v505_v53  ;;  %v2309_v1 = vcombine.low %v490_v54, %v506_v55  ;;  %v587_v54 = vld [vmem:[%s2990_s4 + $0x350] sm:$0xff] }
  0x9a   : > { %v2342_v3 = vcombine.high %v522_v62, %v538_v63  ;;  %v2341_v10 = vcombine.low %v522_v62, %v538_v63  ;;  %v603_v55 = vld [vmem:[%s2990_s4 + $0x3d0] sm:$0xff]  ;;  %v620_v63 = vld [vmem:[%s2990_s4 + $0x458] sm:$0xff] }
  0x9b   : > { %v619_v62 = vld [vmem:[%s2990_s4 + $0x450] sm:$0xff] }
  0x9c   : > { %1623 = vmatpush1.bf16.msra.mxu0 %v2395_v5  ;;  %1664 = vmatpush1.bf16.msra.mxu1 %v2397_v6  ;;  %v553_v5 = vld [vmem:[%s2990_s4 + $0x240] sm:$0xff] }
  0x9d   : > { %2459 = vmatprep.subr.msk.bf16.mxu0 %vm1355_vm0, %v2428_v7  ;;  %2461 = vmatprep.subr.msk.bf16.mxu1 %vm1355_vm0, %v2430_v9  ;;  %v569_v6 = vld [vmem:[%s2990_s4 + $0x2c0] sm:$0xff]  ;;  %v554_v7 = vld [vmem:[%s2990_s4 + $0x248] sm:$0xff]  ;;  %v2339_v9 = vcombine.low %v521_v60, %v537_v61  ;;  %v2408_v60 = vcombine.high %v587_v54, %v603_v55 }
  0x9e   : > { %v2372_v11 = vcombine.high %v553_v5, %v569_v6  ;;  %v2374_v12 = vcombine.high %v554_v7, %v570_v8 }
  0xa0   : > { %1625 = vmatpush1.bf16.msra.mxu0 %v1381_v15  ;;  %1666 = vmatpush1.bf16.msra.mxu1 %v1387_v18  ;;  %v586_v15 = vld [vmem:[%s2990_s4 + $0x348] sm:$0xff]  ;;  %v2371_v18 = vcombine.low %v553_v5, %v569_v6  ;;  %v2442_v5 = vcombine.high %v620_v63, %v620_v63  ;;  %v2441_v6 = vcombine.low %v620_v63, %v620_v63 }
  0xa1   : > { %1698 = vmatprep.subr.bf16.mxu0 %v2304_v17  ;;  %1739 = vmatprep.subr.bf16.mxu1 %v2306_v19  ;;  %v602_v17 = vld [vmem:[%s2990_s4 + $0x3c8] sm:$0xff]  ;;  %v2373_v19 = vcombine.low %v554_v7, %v570_v8  ;;  %v493_v7 = vld [vmem:[%s2990_s4 + $0x60] sm:$0xff] }
  0xa2   : > { %v2406_v21 = vcombine.high %v586_v15, %v602_v17  ;;  %v509_v8 = vld [vmem:[%s2990_s4 + $0xe0] sm:$0xff] }
  0xa3   : > { %2460 = vmatmul.mubr.msk.bf16.vlgmr.msra.gmra.mrb[8].mxu0 %vm1351_vm1, %v3025_v4  ;;  %2462 = vmatmul.mubr.msk.bf16.vlgmr.msra.gmra.mrb[8].mxu1 %vm1351_vm1, %v3025_v4 }
  0xa4   : > { %1699 = vmatpush1.bf16.msra.mxu0 %v2303_v24  ;;  %1740 = vmatpush1.bf16.msra.mxu1 %v2305_v25  ;;  %v2403_v24 = vcombine.low %v585_v13, %v601_v14  ;;  %v2405_v25 = vcombine.low %v586_v15, %v602_v17  ;;  %v1423_v13 = vsel %vm1355_vm0, %v2441_v6, 0  ;;  %v525_v15 = vld [vmem:[%s2990_s4 + $0x160] sm:$0xff] }
  0xa5   : > { %1700 = vmatprep.subr.bf16.mxu0 %v2336_v26  ;;  %1741 = vmatprep.subr.bf16.mxu1 %v2338_v27  ;;  %v2436_v26 = vcombine.high %v617_v22, %v617_v22  ;;  %v2435_v27 = vcombine.low %v617_v22, %v617_v22  ;;  %v541_v17 = vld [vmem:[%s2990_s4 + $0x1e0] sm:$0xff] }
  0xa6   : > { %1730 = vmatprep.mubr.bf16.mxu0 %v2634_v16  ;;  %1771 = vmatprep.mubr.bf16.mxu1 %v2634_v16  ;;  %v2348_v22 = vcombine.high %v525_v15, %v541_v17 }
  0xa8   : > { %1701 = vmatpush1.bf16.msra.mxu0 %v2335_v32  ;;  %1742 = vmatpush1.bf16.msra.mxu1 %v2337_v33  ;;  %v492_v32 = vld [vmem:[%s2990_s4 + $0x58] sm:$0xff] }
  0xa9   : > { %1702 = vmatprep.subr.bf16.mxu0 %v2368_v34  ;;  %1743 = vmatprep.subr.bf16.mxu1 %v2370_v35  ;;  %v508_v33 = vld [vmem:[%s2990_s4 + $0xd8] sm:$0xff]  ;;  %v1405_v34 = vsel %vm1355_vm0, %v2435_v27, 0  ;;  %v2312_v35 = vcombine.high %v491_v30, %v507_v31  ;;  %v574_v27 = vld [vmem:[%s2990_s4 + $0x2e8] sm:$0xff] }
  0xaa   : > { %v2314_v37 = vcombine.high %v492_v32, %v508_v33 }
  0xac   : > { %1703 = vmatpush1.bf16.msra.mxu0 %v2367_v40  ;;  %1744 = vmatpush1.bf16.msra.mxu1 %v2369_v41  ;;  %v524_v40 = vld [vmem:[%s2990_s4 + $0x158] sm:$0xff] }
  0xad   : > { %1704 = vmatprep.subr.bf16.mxu0 %v2400_v42  ;;  %1745 = vmatprep.subr.bf16.mxu1 %v2402_v43  ;;  %v540_v41 = vld [vmem:[%s2990_s4 + $0x1d8] sm:$0xff]  ;;  %v2311_v42 = vcombine.low %v491_v30, %v507_v31  ;;  %v2313_v43 = vcombine.low %v492_v32, %v508_v33  ;;  %v589_v32 = vld [vmem:[%s2990_s4 + $0x360] sm:$0xff] }
  0xae   : > { %v2346_v45 = vcombine.high %v524_v40, %v540_v41  ;;  %v2345_v51 = vcombine.low %v524_v40, %v540_v41  ;;  %v605_v33 = vld [vmem:[%s2990_s4 + $0x3e0] sm:$0xff]  ;;  %v622_v41 = vld [vmem:[%s2990_s4 + $0x468] sm:$0xff] }
  0xaf   : > { %v621_v40 = vld [vmem:[%s2990_s4 + $0x460] sm:$0xff] }
  0xb0   : > { %1705 = vmatpush1.bf16.msra.mxu0 %v2399_v46  ;;  %1746 = vmatpush1.bf16.msra.mxu1 %v2401_v47  ;;  %v555_v46 = vld [vmem:[%s2990_s4 + $0x250] sm:$0xff] }
  0xb1   : > { %2463 = vmatprep.subr.msk.bf16.mxu0 %vm1355_vm0, %v2432_v48  ;;  %2465 = vmatprep.subr.msk.bf16.mxu1 %vm1355_vm0, %v2434_v50  ;;  %v571_v47 = vld [vmem:[%s2990_s4 + $0x2d0] sm:$0xff]  ;;  %v556_v48 = vld [vmem:[%s2990_s4 + $0x258] sm:$0xff]  ;;  %v2343_v50 = vcombine.low %v523_v38, %v539_v39  ;;  %v2412_v38 = vcombine.high %v589_v32, %v605_v33 }
  0xb2   : > { %v2376_v52 = vcombine.high %v555_v46, %v571_v47  ;;  %v2378_v53 = vcombine.high %v556_v48, %v572_v49 }
  0xb4   : > { %1707 = vmatpush1.bf16.msra.mxu0 %v1393_v56  ;;  %1748 = vmatpush1.bf16.msra.mxu1 %v1399_v58  ;;  %v588_v56 = vld [vmem:[%s2990_s4 + $0x358] sm:$0xff]  ;;  %v2375_v58 = vcombine.low %v555_v46, %v571_v47  ;;  %v2446_v46 = vcombine.high %v622_v41, %v622_v41  ;;  %v2445_v47 = vcombine.low %v622_v41, %v622_v41 }
  0xb5   : > { %1780 = vmatprep.subr.bf16.mxu0 %v2308_v57  ;;  %1821 = vmatprep.subr.bf16.mxu1 %v2310_v59  ;;  %v604_v57 = vld [vmem:[%s2990_s4 + $0x3d8] sm:$0xff]  ;;  %v2377_v59 = vcombine.low %v556_v48, %v572_v49  ;;  %v495_v48 = vld [vmem:[%s2990_s4 + $0x70] sm:$0xff] }
  0xb6   : > { %v2410_v61 = vcombine.high %v588_v56, %v604_v57  ;;  %v511_v49 = vld [vmem:[%s2990_s4 + $0xf0] sm:$0xff] }
  0xb7   : > { %2464 = vmatmul.mubr.msk.bf16.vlgmr.msra.gmra.mrb[12].mxu0 %vm1351_vm1, %v3025_v4  ;;  %2466 = vmatmul.mubr.msk.bf16.vlgmr.msra.gmra.mrb[12].mxu1 %vm1351_vm1, %v3025_v4 }
  0xb8   : > { %1781 = vmatpush1.bf16.msra.mxu0 %v2307_v0  ;;  %1822 = vmatpush1.bf16.msra.mxu1 %v2309_v1  ;;  %v2407_v0 = vcombine.low %v587_v54, %v603_v55  ;;  %v2409_v1 = vcombine.low %v588_v56, %v604_v57  ;;  %v1435_v54 = vsel %vm1355_vm0, %v2445_v47, 0  ;;  %v527_v56 = vld [vmem:[%s2990_s4 + $0x170] sm:$0xff] }
  0xb9   : > { %1782 = vmatprep.subr.bf16.mxu0 %v2340_v2  ;;  %1823 = vmatprep.subr.bf16.mxu1 %v2342_v3  ;;  %v2440_v2 = vcombine.high %v619_v62, %v619_v62  ;;  %v2439_v3 = vcombine.low %v619_v62, %v619_v62  ;;  %v543_v57 = vld [vmem:[%s2990_s4 + $0x1f0] sm:$0xff] }
  0xba   : > { %1812 = vmatprep.mubr.bf16.mxu0 %v2634_v16  ;;  %1853 = vmatprep.mubr.bf16.mxu1 %v2634_v16  ;;  %v2352_v62 = vcombine.high %v527_v56, %v543_v57 }
  0xbc   : > { %1783 = vmatpush1.bf16.msra.mxu0 %v2339_v9  ;;  %1824 = vmatpush1.bf16.msra.mxu1 %v2341_v10  ;;  %v494_v9 = vld [vmem:[%s2990_s4 + $0x68] sm:$0xff] }
  0xbd   : > { %1784 = vmatprep.subr.bf16.mxu0 %v2372_v11  ;;  %1825 = vmatprep.subr.bf16.mxu1 %v2374_v12  ;;  %v510_v10 = vld [vmem:[%s2990_s4 + $0xe8] sm:$0xff]  ;;  %v1417_v11 = vsel %vm1355_vm0, %v2439_v3, 0  ;;  %v2316_v12 = vcombine.high %v493_v7, %v509_v8  ;;  %v576_v3 = vld [vmem:[%s2990_s4 + $0x2f8] sm:$0xff] }
  0xbe   : > { %v2318_v14 = vcombine.high %v494_v9, %v510_v10 }
  0xc0   : > { %1785 = vmatpush1.bf16.msra.mxu0 %v2371_v18  ;;  %1826 = vmatpush1.bf16.msra.mxu1 %v2373_v19  ;;  %v526_v18 = vld [vmem:[%s2990_s4 + $0x168] sm:$0xff] }
  0xc1   : > { %1786 = vmatprep.subr.bf16.mxu0 %v2404_v20  ;;  %1827 = vmatprep.subr.bf16.mxu1 %v2406_v21  ;;  %v542_v19 = vld [vmem:[%s2990_s4 + $0x1e8] sm:$0xff]  ;;  %v2315_v20 = vcombine.low %v493_v7, %v509_v8  ;;  %v2317_v21 = vcombine.low %v494_v9, %v510_v10  ;;  %v591_v9 = vld [vmem:[%s2990_s4 + $0x370] sm:$0xff] }
  0xc2   : > { %v2350_v23 = vcombine.high %v526_v18, %v542_v19  ;;  %v2349_v29 = vcombine.low %v526_v18, %v542_v19  ;;  %v607_v10 = vld [vmem:[%s2990_s4 + $0x3f0] sm:$0xff]  ;;  %v624_v19 = vld [vmem:[%s2990_s4 + $0x478] sm:$0xff] }
  0xc3   : > { %v623_v18 = vld [vmem:[%s2990_s4 + $0x470] sm:$0xff] }
  0xc4   : > { %1787 = vmatpush1.bf16.msra.mxu0 %v2403_v24  ;;  %1828 = vmatpush1.bf16.msra.mxu1 %v2405_v25  ;;  %v557_v24 = vld [vmem:[%s2990_s4 + $0x260] sm:$0xff] }
  0xc5   : > { %2467 = vmatprep.subr.msk.bf16.mxu0 %vm1355_vm0, %v2436_v26  ;;  %2469 = vmatprep.subr.msk.bf16.mxu1 %vm1355_vm0, %v2438_v28  ;;  %v573_v25 = vld [vmem:[%s2990_s4 + $0x2e0] sm:$0xff]  ;;  %v558_v26 = vld [vmem:[%s2990_s4 + $0x268] sm:$0xff]  ;;  %v2347_v28 = vcombine.low %v525_v15, %v541_v17  ;;  %v2416_v15 = vcombine.high %v591_v9, %v607_v10 }
  0xc6   : > { %v2380_v30 = vcombine.high %v557_v24, %v573_v25  ;;  %v2382_v31 = vcombine.high %v558_v26, %v574_v27 }
  0xc8   : > { %1789 = vmatpush1.bf16.msra.mxu0 %v1405_v34  ;;  %1830 = vmatpush1.bf16.msra.mxu1 %v1411_v36  ;;  %v590_v34 = vld [vmem:[%s2990_s4 + $0x368] sm:$0xff]  ;;  %v2379_v36 = vcombine.low %v557_v24, %v573_v25  ;;  %v2449_v24 = vcombine.low %v624_v19, %v624_v19 }
  0xc9   : > { %1862 = vmatprep.subr.bf16.mxu0 %v2312_v35  ;;  %1903 = vmatprep.subr.bf16.mxu1 %v2314_v37  ;;  %v606_v35 = vld [vmem:[%s2990_s4 + $0x3e8] sm:$0xff]  ;;  %v2381_v37 = vcombine.low %v558_v26, %v574_v27 }
  0xca   : > { %v2414_v39 = vcombine.high %v590_v34, %v606_v35  ;;  %v1447_v26 = vsel %vm1355_vm0, %v2449_v24, 0 }
  0xcb   : > { %2468 = vmatmul.mubr.msk.bf16.vlgmr.msra.gmra.mrb[16].mxu0 %vm1351_vm1, %v3025_v4  ;;  %2470 = vmatmul.mubr.msk.bf16.vlgmr.msra.gmra.mrb[16].mxu1 %vm1351_vm1, %v3025_v4 }
  0xcc   : > { %1863 = vmatpush1.bf16.msra.mxu0 %v2311_v42  ;;  %1904 = vmatpush1.bf16.msra.mxu1 %v2313_v43  ;;  %v2411_v42 = vcombine.low %v589_v32, %v605_v33  ;;  %v2413_v43 = vcombine.low %v590_v34, %v606_v35 }
  0xcd   : > { %1864 = vmatprep.subr.bf16.mxu0 %v2344_v44  ;;  %1905 = vmatprep.subr.bf16.mxu1 %v2346_v45  ;;  %v2444_v44 = vcombine.high %v621_v40, %v621_v40  ;;  %v2443_v45 = vcombine.low %v621_v40, %v621_v40 }
  0xce   : > { %1894 = vmatprep.mubr.bf16.mxu0 %v2634_v16  ;;  %1935 = vmatprep.mubr.bf16.mxu1 %v2634_v16 }
  0xd0   : > { %1865 = vmatpush1.bf16.msra.mxu0 %v2343_v50  ;;  %1906 = vmatpush1.bf16.msra.mxu1 %v2345_v51  ;;  %v496_v50 = vld [vmem:[%s2990_s4 + $0x78] sm:$0xff] }
  0xd1   : > { %1866 = vmatprep.subr.bf16.mxu0 %v2376_v52  ;;  %1907 = vmatprep.subr.bf16.mxu1 %v2378_v53  ;;  %v512_v51 = vld [vmem:[%s2990_s4 + $0xf8] sm:$0xff]  ;;  %v1429_v52 = vsel %vm1355_vm0, %v2443_v45, 0  ;;  %v2320_v53 = vcombine.high %v495_v48, %v511_v49 }
  0xd2   : > { %v2322_v55 = vcombine.high %v496_v50, %v512_v51 }
  0xd4   : > { %1867 = vmatpush1.bf16.msra.mxu0 %v2375_v58  ;;  %1908 = vmatpush1.bf16.msra.mxu1 %v2377_v59  ;;  %v528_v58 = vld [vmem:[%s2990_s4 + $0x178] sm:$0xff] }
  0xd5   : > { %1868 = vmatprep.subr.bf16.mxu0 %v2408_v60  ;;  %1909 = vmatprep.subr.bf16.mxu1 %v2410_v61  ;;  %v544_v59 = vld [vmem:[%s2990_s4 + $0x1f8] sm:$0xff]  ;;  %v2319_v60 = vcombine.low %v495_v48, %v511_v49  ;;  %v2321_v61 = vcombine.low %v496_v50, %v512_v51 }
  0xd6   : > { %v2354_v63 = vcombine.high %v528_v58, %v544_v59  ;;  %v2353_v6 = vcombine.low %v528_v58, %v544_v59 }
  0xd8   : > { %1869 = vmatpush1.bf16.msra.mxu0 %v2407_v0  ;;  %1910 = vmatpush1.bf16.msra.mxu1 %v2409_v1  ;;  %v559_v0 = vld [vmem:[%s2990_s4 + $0x270] sm:$0xff] }
  0xd9   : > { %2471 = vmatprep.subr.msk.bf16.mxu0 %vm1355_vm0, %v2440_v2  ;;  %2473 = vmatprep.subr.msk.bf16.mxu1 %vm1355_vm0, %v2442_v5  ;;  %v575_v1 = vld [vmem:[%s2990_s4 + $0x2f0] sm:$0xff]  ;;  %v560_v2 = vld [vmem:[%s2990_s4 + $0x278] sm:$0xff]  ;;  %v2351_v5 = vcombine.low %v527_v56, %v543_v57 }
  0xda   : > { %v2384_v7 = vcombine.high %v559_v0, %v575_v1  ;;  %v2386_v8 = vcombine.high %v560_v2, %v576_v3 }
  0xdc   : > { %1871 = vmatpush1.bf16.msra.mxu0 %v1417_v11  ;;  %1912 = vmatpush1.bf16.msra.mxu1 %v1423_v13  ;;  %v592_v11 = vld [vmem:[%s2990_s4 + $0x378] sm:$0xff]  ;;  %v2383_v13 = vcombine.low %v559_v0, %v575_v1 }
  0xdd   : > { %1944 = vmatprep.subr.bf16.mxu0 %v2316_v12  ;;  %1985 = vmatprep.subr.bf16.mxu1 %v2318_v14  ;;  %v608_v12 = vld [vmem:[%s2990_s4 + $0x3f8] sm:$0xff]  ;;  %v2385_v14 = vcombine.low %v560_v2, %v576_v3 }
  0xde   : > { %v2418_v17 = vcombine.high %v592_v11, %v608_v12 }
  0xdf   : > { %2472 = vmatmul.mubr.msk.bf16.vlgmr.msra.gmra.mrb[20].mxu0 %vm1351_vm1, %v3025_v4  ;;  %2474 = vmatmul.mubr.msk.bf16.vlgmr.msra.gmra.mrb[20].mxu1 %vm1351_vm1, %v3025_v4 }
  0xe0   : > { %1945 = vmatpush1.bf16.msra.mxu0 %v2315_v20  ;;  %1986 = vmatpush1.bf16.msra.mxu1 %v2317_v21  ;;  %v2415_v20 = vcombine.low %v591_v9, %v607_v10  ;;  %v2417_v21 = vcombine.low %v592_v11, %v608_v12  ;;  %v3219_v27 = vpop.permute.xlu0 %628 }
  0xe1   : > { %1946 = vmatprep.subr.bf16.mxu0 %v2348_v22  ;;  %1987 = vmatprep.subr.bf16.mxu1 %v2350_v23  ;;  %v2448_v22 = vcombine.high %v623_v18, %v623_v18  ;;  %v2447_v23 = vcombine.low %v623_v18, %v623_v18 }
  0xe2   : > { %1976 = vmatprep.mubr.bf16.mxu0 %v2634_v16  ;;  %2017 = vmatprep.mubr.bf16.mxu1 %v2634_v16 }
  0xe3   : > { %v1441_v25 = vsel %vm1355_vm0, %v2447_v23, 0 }
  0xe4   : > { %1947 = vmatpush1.bf16.msra.mxu0 %v2347_v28  ;;  %1988 = vmatpush1.bf16.msra.mxu1 %v2349_v29 }
  0xe5   : > { %1948 = vmatprep.subr.bf16.mxu0 %v2380_v30  ;;  %1989 = vmatprep.subr.bf16.mxu1 %v2382_v31 }
  0xe8   : > { %1949 = vmatpush1.bf16.msra.mxu0 %v2379_v36  ;;  %1990 = vmatpush1.bf16.msra.mxu1 %v2381_v37 }
  0xe9   : > { %1950 = vmatprep.subr.bf16.mxu0 %v2412_v38  ;;  %1991 = vmatprep.subr.bf16.mxu1 %v2414_v39 }
  0xec   : > { %1951 = vmatpush1.bf16.msra.mxu0 %v2411_v42  ;;  %1992 = vmatpush1.bf16.msra.mxu1 %v2413_v43 }
  0xed   : > { %2475 = vmatprep.subr.msk.bf16.mxu0 %vm1355_vm0, %v2444_v44  ;;  %2477 = vmatprep.subr.msk.bf16.mxu1 %vm1355_vm0, %v2446_v46 }
  0xf0   : > { %1953 = vmatpush1.bf16.msra.mxu0 %v1429_v52  ;;  %1994 = vmatpush1.bf16.msra.mxu1 %v1435_v54 }
  0xf1   : > { %2026 = vmatprep.subr.bf16.mxu0 %v2320_v53  ;;  %2067 = vmatprep.subr.bf16.mxu1 %v2322_v55 }
  0xf3   : > { %2476 = vmatmul.mubr.msk.bf16.vlgmr.msra.gmra.mrb[24].mxu0 %vm1351_vm1, %v3025_v4  ;;  %2478 = vmatmul.mubr.msk.bf16.vlgmr.msra.gmra.mrb[24].mxu1 %vm1351_vm1, %v3025_v4 }
  0xf4   : > { %2027 = vmatpush1.bf16.msra.mxu0 %v2319_v60  ;;  %2068 = vmatpush1.bf16.msra.mxu1 %v2321_v61 }
  0xf5   : > { %2028 = vmatprep.subr.bf16.mxu0 %v2352_v62  ;;  %2069 = vmatprep.subr.bf16.mxu1 %v2354_v63 }
  0xf6   : > { %2058 = vmatprep.mubr.bf16.mxu0 %v2634_v16  ;;  %2099 = vmatprep.mubr.bf16.mxu1 %v2634_v16  ;;  %v2450_v16 = vcombine.high %v624_v19, %v624_v19 }
  0xf8   : > { %2029 = vmatpush1.bf16.msra.mxu0 %v2351_v5  ;;  %2070 = vmatpush1.bf16.msra.mxu1 %v2353_v6 }
  0xf9   : > { %2030 = vmatprep.subr.bf16.mxu0 %v2384_v7  ;;  %2071 = vmatprep.subr.bf16.mxu1 %v2386_v8 }
  0xfc   : > { %2031 = vmatpush1.bf16.msra.mxu0 %v2383_v13  ;;  %2072 = vmatpush1.bf16.msra.mxu1 %v2385_v14 }
  0xfd   : > { %2032 = vmatprep.subr.bf16.mxu0 %v2416_v15  ;;  %2073 = vmatprep.subr.bf16.mxu1 %v2418_v17 }
 0x100   : > { %2033 = vmatpush1.bf16.msra.mxu0 %v2415_v20  ;;  %2074 = vmatpush1.bf16.msra.mxu1 %v2417_v21 }
 0x101   : > { %2479 = vmatprep.subr.msk.bf16.mxu0 %vm1355_vm0, %v2448_v22  ;;  %2481 = vmatprep.subr.msk.bf16.mxu1 %vm1355_vm0, %v2450_v16 }
 0x104   : > { %2035 = vmatpush1.bf16.msra.mxu0 %v1441_v25  ;;  %2076 = vmatpush1.bf16.msra.mxu1 %v1447_v26 }
 0x107   : > { %2480 = vmatmul.mubr.msk.bf16.vlgmr.msra.gmra.mrb[28].mxu0 %vm1351_vm1, %v3025_v4  ;;  %2482 = vmatmul.mubr.msk.bf16.vlgmr.msra.gmra.mrb[28].mxu1 %vm1351_vm1, %v3025_v4 }
 0x14e   : > { %v1486_v28 = vpop.f32.mrb[0].mxu0  ;;  %v1527_v29 = vpop.f32.mrb[0].mxu1 }
 0x14f   : > { %v1487_v30 = vadd.f32 %v1486_v28, %v3219_v27  ;;  %v1488_v31 = vpop.f32.mrb[1].mxu0  ;;  %v1528_v33 = vadd.f32 %v1527_v29, %v3219_v27  ;;  %v1529_v34 = vpop.f32.mrb[1].mxu1 }
 0x150   : > { %v1489_v32 = vadd.f32 %v1488_v31, %v3219_v27  ;;  %v1490_v35 = vpop.f32.mrb[2].mxu0  ;;  %v1530_v36 = vadd.f32 %v1529_v34, %v3219_v27  ;;  %v1531_v4 = vpop.f32.mrb[2].mxu1 }
 0x151   : > { %2546 = vtanh.f32 %v1487_v30  ;;  %v1491_v37 = vpop.f32.mrb[3].mxu0  ;;  %v1532_v38 = vpop.f32.mrb[3].mxu1 }
 0x152   : > { %2548 = vtanh.f32 %v1489_v32 }
 0x153   : > { %2550 = vtanh.f32 %v1528_v33 }
 0x154   : > { %2552 = vtanh.f32 %v1530_v36 }
 0x15b   : > { %v2547_v39 = vpop.eup %2546 }
 0x15c   : > { %v2549_v40 = vpop.eup %2548 }
 0x15d   : > { %v2551_v41 = vpop.eup %2550  ;;  %v2172_v42 = vcombine.low %v2547_v39, %v2549_v40 }
 0x15e   : > { %v2553_v43 = vpop.eup %2552 }
 0x15f   : > { %2204 = vst [vmem:[%s3230_s11] sm:$0x77] %v2172_v42  ;;  %v2173_v44 = vcombine.low %v2551_v41, %v2553_v43 }
 0x161   : > { %2205 = vst [vmem:[%s3230_s11 + $0x8] sm:$0x77] %v2173_v44 }
 0x162   : > { %v1568_v45 = vpop.f32.mrb[4].mxu0  ;;  %v1609_v47 = vpop.f32.mrb[4].mxu1 }
 0x163   : > { %v1569_v46 = vadd.f32 %v1568_v45, %v3219_v27  ;;  %v1570_v48 = vpop.f32.mrb[5].mxu0  ;;  %v1610_v49 = vadd.f32 %v1609_v47, %v3219_v27  ;;  %v1611_v51 = vpop.f32.mrb[5].mxu1 }
 0x164   : > { %v1571_v50 = vadd.f32 %v1570_v48, %v3219_v27  ;;  %v1572_v52 = vpop.f32.mrb[6].mxu0  ;;  %v1612_v53 = vadd.f32 %v1611_v51, %v3219_v27  ;;  %v1613_v54 = vpop.f32.mrb[6].mxu1 }
 0x165   : > { %2554 = vtanh.f32 %v1569_v46  ;;  %v1573_v55 = vpop.f32.mrb[7].mxu0  ;;  %v1614_v56 = vpop.f32.mrb[7].mxu1 }
 0x166   : > { %2556 = vtanh.f32 %v1610_v49 }
 0x167   : > { %2558 = vtanh.f32 %v1571_v50 }
 0x168   : > { %2560 = vtanh.f32 %v1612_v53 }
 0x16f   : > { %v2555_v57 = vpop.eup %2554 }
 0x170   : > { %v2557_v58 = vpop.eup %2556 }
 0x171   : > { %v2559_v59 = vpop.eup %2558 }
 0x172   : > { %v2561_v60 = vpop.eup %2560  ;;  %v2174_v61 = vcombine.low %v2555_v57, %v2559_v59 }
 0x173   : > { %v2175_v62 = vcombine.low %v2557_v58, %v2561_v60 }
 0x174   : > { %2206 = vst [vmem:[%s3230_s11 + $0x10] sm:$0x77] %v2174_v61 }
 0x175   : > { %2207 = vst [vmem:[%s3230_s11 + $0x18] sm:$0x77] %v2175_v62 }
 0x176   : > { %v1650_v63 = vpop.f32.mrb[8].mxu0  ;;  %v1691_v1 = vpop.f32.mrb[8].mxu1 }
 0x177   : > { %v1651_v0 = vadd.f32 %v1650_v63, %v3219_v27  ;;  %v1652_v2 = vpop.f32.mrb[9].mxu0  ;;  %v1692_v3 = vadd.f32 %v1691_v1, %v3219_v27  ;;  %v1693_v6 = vpop.f32.mrb[9].mxu1 }
 0x178   : > { %v1653_v5 = vadd.f32 %v1652_v2, %v3219_v27  ;;  %v1654_v7 = vpop.f32.mrb[10].mxu0  ;;  %v1694_v8 = vadd.f32 %v1693_v6, %v3219_v27  ;;  %v1695_v9 = vpop.f32.mrb[10].mxu1 }
 0x179   : > { %2562 = vtanh.f32 %v1651_v0  ;;  %v1655_v10 = vpop.f32.mrb[11].mxu0  ;;  %v1696_v11 = vpop.f32.mrb[11].mxu1 }
 0x17a   : > { %2564 = vtanh.f32 %v1692_v3 }
 0x17b   : > { %2566 = vtanh.f32 %v1653_v5 }
 0x17c   : > { %2568 = vtanh.f32 %v1694_v8 }
 0x183   : > { %v2563_v12 = vpop.eup %2562 }
 0x184   : > { %v2565_v13 = vpop.eup %2564 }
 0x185   : > { %v2567_v14 = vpop.eup %2566 }
 0x186   : > { %v2569_v15 = vpop.eup %2568  ;;  %v2176_v17 = vcombine.low %v2563_v12, %v2567_v14 }
 0x187   : > { %v2177_v18 = vcombine.low %v2565_v13, %v2569_v15 }
 0x188   : > { %2208 = vst [vmem:[%s3230_s11 + $0x20] sm:$0x77] %v2176_v17 }
 0x189   : > { %2209 = vst [vmem:[%s3230_s11 + $0x28] sm:$0x77] %v2177_v18 }
 0x18a   : > { %v1732_v19 = vpop.f32.mrb[12].mxu0  ;;  %v1773_v21 = vpop.f32.mrb[12].mxu1 }
 0x18b   : > { %v1733_v20 = vadd.f32 %v1732_v19, %v3219_v27  ;;  %v1734_v22 = vpop.f32.mrb[13].mxu0  ;;  %v1774_v23 = vadd.f32 %v1773_v21, %v3219_v27  ;;  %v1775_v24 = vpop.f32.mrb[13].mxu1 }
 0x18c   : > { %v1735_v16 = vadd.f32 %v1734_v22, %v3219_v27  ;;  %v1736_v25 = vpop.f32.mrb[14].mxu0  ;;  %v1776_v26 = vadd.f32 %v1775_v24, %v3219_v27  ;;  %v1777_v28 = vpop.f32.mrb[14].mxu1 }
 0x18d   : > { %2570 = vtanh.f32 %v1733_v20  ;;  %v1737_v29 = vpop.f32.mrb[15].mxu0  ;;  %v1778_v30 = vpop.f32.mrb[15].mxu1 }
 0x18e   : > { %2572 = vtanh.f32 %v1774_v23 }
 0x18f   : > { %2574 = vtanh.f32 %v1735_v16 }
 0x190   : > { %2576 = vtanh.f32 %v1776_v26 }
 0x197   : > { %v2571_v31 = vpop.eup %2570 }
 0x198   : > { %v2573_v32 = vpop.eup %2572 }
 0x199   : > { %v2575_v33 = vpop.eup %2574 }
 0x19a   : > { %v2577_v34 = vpop.eup %2576  ;;  %v2178_v35 = vcombine.low %v2571_v31, %v2575_v33 }
 0x19b   : > { %v2179_v36 = vcombine.low %v2573_v32, %v2577_v34 }
 0x19c   : > { %2210 = vst [vmem:[%s3230_s11 + $0x30] sm:$0x77] %v2178_v35 }
 0x19d   : > { %2211 = vst [vmem:[%s3230_s11 + $0x38] sm:$0x77] %v2179_v36 }
 0x19e   : > { %v1814_v4 = vpop.f32.mrb[16].mxu0  ;;  %v1855_v38 = vpop.f32.mrb[16].mxu1 }
 0x19f   : > { %v1815_v37 = vadd.f32 %v1814_v4, %v3219_v27  ;;  %v1816_v39 = vpop.f32.mrb[17].mxu0  ;;  %v1856_v40 = vadd.f32 %v1855_v38, %v3219_v27  ;;  %v1857_v42 = vpop.f32.mrb[17].mxu1 }
 0x1a0   : > { %v1817_v41 = vadd.f32 %v1816_v39, %v3219_v27  ;;  %v1818_v43 = vpop.f32.mrb[18].mxu0  ;;  %v1858_v44 = vadd.f32 %v1857_v42, %v3219_v27  ;;  %v1859_v45 = vpop.f32.mrb[18].mxu1 }
 0x1a1   : > { %2578 = vtanh.f32 %v1815_v37  ;;  %v1819_v46 = vpop.f32.mrb[19].mxu0  ;;  %v1860_v47 = vpop.f32.mrb[19].mxu1 }
 0x1a2   : > { %2580 = vtanh.f32 %v1856_v40 }
 0x1a3   : > { %2582 = vtanh.f32 %v1817_v41 }
 0x1a4   : > { %2584 = vtanh.f32 %v1858_v44 }
 0x1ab   : > { %v2579_v48 = vpop.eup %2578 }
 0x1ac   : > { %v2581_v49 = vpop.eup %2580 }
 0x1ad   : > { %v2583_v50 = vpop.eup %2582 }
 0x1ae   : > { %v2585_v51 = vpop.eup %2584  ;;  %v2180_v52 = vcombine.low %v2579_v48, %v2583_v50 }
 0x1af   : > { %v2181_v53 = vcombine.low %v2581_v49, %v2585_v51 }
 0x1b0   : > { %2212 = vst [vmem:[%s3230_s11 + $0x40] sm:$0x77] %v2180_v52 }
 0x1b1   : > { %2213 = vst [vmem:[%s3230_s11 + $0x48] sm:$0x77] %v2181_v53 }
 0x1b2   : > { %v1896_v54 = vpop.f32.mrb[20].mxu0  ;;  %v1937_v56 = vpop.f32.mrb[20].mxu1 }
 0x1b3   : > { %v1897_v55 = vadd.f32 %v1896_v54, %v3219_v27  ;;  %v1898_v57 = vpop.f32.mrb[21].mxu0  ;;  %v1938_v58 = vadd.f32 %v1937_v56, %v3219_v27  ;;  %v1939_v60 = vpop.f32.mrb[21].mxu1 }
 0x1b4   : > { %v1899_v59 = vadd.f32 %v1898_v57, %v3219_v27  ;;  %v1900_v61 = vpop.f32.mrb[22].mxu0  ;;  %v1940_v62 = vadd.f32 %v1939_v60, %v3219_v27  ;;  %v1941_v63 = vpop.f32.mrb[22].mxu1 }
 0x1b5   : > { %2586 = vtanh.f32 %v1897_v55  ;;  %v1901_v0 = vpop.f32.mrb[23].mxu0  ;;  %v1942_v1 = vpop.f32.mrb[23].mxu1 }
 0x1b6   : > { %2588 = vtanh.f32 %v1938_v58 }
 0x1b7   : > { %2590 = vtanh.f32 %v1899_v59 }
 0x1b8   : > { %2592 = vtanh.f32 %v1940_v62 }
 0x1bf   : > { %v2587_v2 = vpop.eup %2586 }
 0x1c0   : > { %v2589_v3 = vpop.eup %2588 }
 0x1c1   : > { %v2591_v5 = vpop.eup %2590 }
 0x1c2   : > { %v2593_v6 = vpop.eup %2592  ;;  %v2182_v7 = vcombine.low %v2587_v2, %v2591_v5 }
 0x1c3   : > { %v2183_v8 = vcombine.low %v2589_v3, %v2593_v6 }
 0x1c4   : > { %2214 = vst [vmem:[%s3230_s11 + $0x50] sm:$0x77] %v2182_v7 }
 0x1c5   : > { %2215 = vst [vmem:[%s3230_s11 + $0x58] sm:$0x77] %v2183_v8 }
 0x1c6   : > { %v1978_v9 = vpop.f32.mrb[24].mxu0  ;;  %v2019_v11 = vpop.f32.mrb[24].mxu1 }
 0x1c7   : > { %v1979_v10 = vadd.f32 %v1978_v9, %v3219_v27  ;;  %v1980_v12 = vpop.f32.mrb[25].mxu0  ;;  %v2020_v13 = vadd.f32 %v2019_v11, %v3219_v27  ;;  %v2021_v15 = vpop.f32.mrb[25].mxu1 }
 0x1c8   : > { %v1981_v14 = vadd.f32 %v1980_v12, %v3219_v27  ;;  %v1982_v17 = vpop.f32.mrb[26].mxu0  ;;  %v2022_v18 = vadd.f32 %v2021_v15, %v3219_v27  ;;  %v2023_v19 = vpop.f32.mrb[26].mxu1 }
 0x1c9   : > { %2594 = vtanh.f32 %v1979_v10  ;;  %v1983_v20 = vpop.f32.mrb[27].mxu0  ;;  %v2024_v21 = vpop.f32.mrb[27].mxu1 }
 0x1ca   : > { %2596 = vtanh.f32 %v2020_v13 }
 0x1cb   : > { %2598 = vtanh.f32 %v1981_v14 }
 0x1cc   : > { %2600 = vtanh.f32 %v2022_v18 }
 0x1d3   : > { %v2595_v22 = vpop.eup %2594 }
 0x1d4   : > { %v2597_v23 = vpop.eup %2596 }
 0x1d5   : > { %v2599_v16 = vpop.eup %2598 }
 0x1d6   : > { %v2601_v24 = vpop.eup %2600  ;;  %v2184_v25 = vcombine.low %v2595_v22, %v2599_v16 }
 0x1d7   : > { %v2185_v26 = vcombine.low %v2597_v23, %v2601_v24 }
 0x1d8   : > { %2216 = vst [vmem:[%s3230_s11 + $0x60] sm:$0x77] %v2184_v25 }
 0x1d9   : > { %2217 = vst [vmem:[%s3230_s11 + $0x68] sm:$0x77] %v2185_v26 }
 0x1da   : > { %v2060_v28 = vpop.f32.mrb[28].mxu0  ;;  %v2101_v30 = vpop.f32.mrb[28].mxu1 }
 0x1db   : > { %v2061_v29 = vadd.f32 %v2060_v28, %v3219_v27  ;;  %v2062_v31 = vpop.f32.mrb[29].mxu0  ;;  %v2102_v32 = vadd.f32 %v2101_v30, %v3219_v27  ;;  %v2103_v34 = vpop.f32.mrb[29].mxu1 }
 0x1dc   : > { %v2063_v33 = vadd.f32 %v2062_v31, %v3219_v27  ;;  %v2064_v35 = vpop.f32.mrb[30].mxu0  ;;  %v2104_v36 = vadd.f32 %v2103_v34, %v3219_v27  ;;  %v2105_v4 = vpop.f32.mrb[30].mxu1 }
 0x1dd   : > { %2602 = vtanh.f32 %v2061_v29  ;;  %v2065_v37 = vpop.f32.mrb[31].mxu0  ;;  %v2106_v38 = vpop.f32.mrb[31].mxu1 }
 0x1de   : > { %2604 = vtanh.f32 %v2102_v32 }
 0x1df   : > { %2606 = vtanh.f32 %v2063_v33 }
 0x1e0   : > { %2608 = vtanh.f32 %v2104_v36 }
 0x1e7   : > { %v2603_v39 = vpop.eup %2602 }
 0x1e8   : > { %v2605_v40 = vpop.eup %2604 }
 0x1e9   : > { %v2607_v41 = vpop.eup %2606 }
 0x1ea   : > { %v2609_v42 = vpop.eup %2608  ;;  %v2186_v43 = vcombine.low %v2603_v39, %v2607_v41 }
 0x1eb   : > { %v2187_v44 = vcombine.low %v2605_v40, %v2609_v42 }
 0x1ec   : > { %2218 = vst [vmem:[%s3230_s11 + $0x70] sm:$0x77] %v2186_v43 }
 0x1ed   : > { %2219 = vst [vmem:[%s3230_s11 + $0x78] sm:$0x77] %v2187_v44 }
 0x1ee PF: > { %p10_p9 = scmp.ge.s32.totalorder %s2672_s16, 4   ;;  %s3290_s12 = smov %s2628_s13 }
 0x1ef   : > { %s3291_s13 = smov %s2681_s19  ;;  %s3292_s14 = smov %s2672_s16 }
 0x1f0   :  { %12 = sbr.rel (!%p10_p9) target bundleno = 2 (0x2), region = 90 }

</bundles_post_ra>
